<compile_context>
chip_gen: v7x
topology: tpu7x:2x2x1
jax: 0.10.0
libtpu: 0.0.40
codegen_flags: <defaults>
</compile_context>

<pallas_src>
import functools

import jax
import jax.numpy as jnp
from jax.experimental import pallas as pl
from jax.experimental.pallas import tpu as pltpu

IN_DIMS = 3          # Network(in_dims=3)
EMB_DIMS = 2         # Embedding2D.out_dims
N_NEURONS = 512      # IntParameter('neurons', 512, ...)
N_LAYERS = 3         # IntParameter('layers', 3, ...) -> 2 hidden Linear+ReLU, 1 output Linear


def _mlp_kernel(x_ref, w1_ref, b1_ref, w2_ref, b2_ref, w3_ref, b3_ref, o_ref):
    """One grid step: tm points through the full MLP (feature-major layout).

    x_ref : (EMB_DIMS, tm)  f32   points, batch on lanes (lane-dense)
    w1    : (H, EMB_DIMS)   f32   PyTorch (out, in) layout
    b1,b2 : (H, 1)          f32
    w2    : (H, H)          bf16  PyTorch (out, in) layout
    w3    : (H, 1)          f32   output-layer weight as a column
    b3    : (1, 1)          f32
    o_ref : (1, 1, tm)      f32   lane-dense output row
    """
    x0 = x_ref[0:1, :]            # (1, tm)
    x1 = x_ref[1:2, :]            # (1, tm)

    # Layer 1 (in=2): a K=2 matmul is MXU-hostile -> two broadcast FMAs on the
    # VPU (different VLIW slot than the MXU). Stays in f32.
    h = w1_ref[:, 0:1] * x0 + w1_ref[:, 1:2] * x1 + b1_ref[...]   # (H, tm) f32
    h = jnp.maximum(h, 0.0)

    # Layer 2: the only real matmul -> MXU, bf16 operands, f32 accumulation.
    h = jnp.dot(w2_ref[...], h.astype(jnp.bfloat16),
                preferred_element_type=jnp.float32)               # (H, tm) f32
    h = jnp.maximum(h + b2_ref[...], 0.0)

    # Output layer (out=1): VPU multiply + cross-sublane (XLU) reduce instead of
    # an N=1 MXU matmul; the (1, tm) result is naturally lane-dense.
    o_ref[0] = jnp.sum(h * w3_ref[...], axis=0, keepdims=True) + b3_ref[...]


@functools.partial(jax.jit, static_argnames=("tm",))
def network_forward(x, params, *, tm=512):
    """x: (N, IN_DIMS) float32 -> (N,) float32 (matches torch .squeeze())."""
    w1, b1, w2, b2, w3, b3 = params
    assert tm % 128 == 0, "tm must be a multiple of 128 (lane width)"
    N = x.shape[0]
    H = w2.shape[0]

    num_tiles = max(int(pl.cdiv(N, tm)), 1)
    n_pad = num_tiles * tm

    # Embedding2D: first two coordinates; transpose to feature-major so the
    # batch dim is lane-dense; zero-pad the batch to a whole number of tiles.
    x2t = jnp.zeros((EMB_DIMS, n_pad), jnp.float32)
    x2t = x2t.at[:, :N].set(x[:, :EMB_DIMS].astype(jnp.float32).T)

    # bf16 weights for the dominant matmul (accumulation stays f32 in-kernel).
    w2b = w2.astype(jnp.bfloat16)

    full = lambda i: (0, 0)   # resident weights/biases: single block
    flops = 2 * n_pad * (EMB_DIMS * H + H * H + H)
    bytes_accessed = (x2t.size + n_pad + w1.size + b1.size + b2.size
                      + w3.size + b3.size) * 4 + w2b.size * 2

    out3d = pl.pallas_call(
        _mlp_kernel,
        out_shape=jax.ShapeDtypeStruct((num_tiles, 1, tm), jnp.float32),
        grid_spec=pltpu.PrefetchScalarGridSpec(
            num_scalar_prefetch=0,
            grid=(num_tiles,),
            in_specs=[
                pl.BlockSpec((EMB_DIMS, tm), lambda i: (0, i)),   # points tile
                pl.BlockSpec(w1.shape, full),
                pl.BlockSpec(b1.shape, full),
                pl.BlockSpec(w2b.shape, full),
                pl.BlockSpec(b2.shape, full),
                pl.BlockSpec(w3.shape, full),
                pl.BlockSpec(b3.shape, full),
            ],
            out_specs=pl.BlockSpec((1, 1, tm), lambda i: (i, 0, 0)),
        ),
        compiler_params=pltpu.CompilerParams(
            dimension_semantics=("parallel",),
            vmem_limit_bytes=32 * 1024 * 1024),
        cost_estimate=pl.CostEstimate(
            flops=flops, transcendentals=0, bytes_accessed=int(bytes_accessed)),
    )(x2t, w1, b1, w2b, b2, w3, b3)

    return out3d.reshape(-1)[:N]   # torch .squeeze() on (N, 1) -> (N,)


def init_params(key):
    """Deterministic params mimicking torch.nn.Linear default init.

    Weights are stored in PyTorch (out_features, in_features) layout; biases as
    (out_features, 1) columns; the output-layer weight is stored as an (H, 1)
    column. Master copies are f32 (bf16 cast happens in network_forward).
    """
    ks = jax.random.split(key, 6)

    def linear(kw, kb, fan_in, fan_out):
        bound = 1.0 / jnp.sqrt(jnp.float32(fan_in))
        w = jax.random.uniform(kw, (fan_out, fan_in), jnp.float32, -bound, bound)
        b = jax.random.uniform(kb, (fan_out, 1), jnp.float32, -bound, bound)
        return w, b

    w1, b1 = linear(ks[0], ks[1], EMB_DIMS, N_NEURONS)      # Linear(2, 512)
    w2, b2 = linear(ks[2], ks[3], N_NEURONS, N_NEURONS)     # Linear(512, 512)
    w3t, b3 = linear(ks[4], ks[5], N_NEURONS, 1)            # Linear(512, 1)
    w3 = w3t.T                                              # (H, 1) column
    return (w1, b1, w2, b2, w3, b3)


def reference_forward(x, params):
    """Pure-JAX f32 reference for correctness checking."""
    w1, b1, w2, b2, w3, b3 = params
    e = x[:, :EMB_DIMS]                                 # Embedding2D
    h = jnp.maximum(e @ w1.T + b1[:, 0], 0.0)
    h = jnp.maximum(h @ w2.T + b2[:, 0], 0.0)
    return (h @ w3 + b3[0, 0])[:, 0]


if __name__ == "__main__":
    key = jax.random.PRNGKey(0)
    kx, kp = jax.random.split(key)

    N = 2048  # number of query points: 4 tiles of tm=512 (even grid, uses both v7x TCs)
    x = jax.random.normal(kx, (N, IN_DIMS), jnp.float32)
    params = init_params(kp)

    out = jax.block_until_ready(network_forward(x, params))
    ref = reference_forward(x, params)

    assert out.shape == (N,), out.shape
    max_err = float(jnp.max(jnp.abs(out - ref)))
    # Loosened tolerance: the 512x512 matmul runs in bf16 (f32 accumulation).
    assert jnp.allclose(out, ref, atol=3e-2, rtol=3e-2), max_err

    print("KERNEL_OK")
</pallas_src>

<mosaic_0001>
module attributes {stable_mosaic.version = 11 : i64} {
  func.func @_mlp_kernel(%arg0: i32, %arg1: memref<2x512xf32, #tpu.memory_space<vmem>>, %arg2: memref<512x2xf32, #tpu.memory_space<vmem>>, %arg3: memref<512x1xf32, #tpu.memory_space<vmem>>, %arg4: memref<512x512xbf16, #tpu.memory_space<vmem>>, %arg5: memref<512x1xf32, #tpu.memory_space<vmem>>, %arg6: memref<512x1xf32, #tpu.memory_space<vmem>>, %arg7: memref<1x1xf32, #tpu.memory_space<vmem>>, %arg8: memref<1x1x512xf32, #tpu.memory_space<vmem>>) attributes {dimension_semantics = [#tpu.dimension_semantics<parallel>], iteration_bounds = array<i64: 4>, scalar_prefetch = 0 : i64, scratch_operands = 0 : i64, tpu.core_type = #tpu.core_type<tc>, window_params = [{transform_indices = @transform_0, window_bounds = array<i64: 2, 512>}, {pipeline_mode = #tpu.pipeline_mode<synchronous>, transform_indices = @transform_1, window_bounds = array<i64: 512, 2>}, {pipeline_mode = #tpu.pipeline_mode<synchronous>, transform_indices = @transform_2, window_bounds = array<i64: 512, 1>}, {pipeline_mode = #tpu.pipeline_mode<synchronous>, transform_indices = @transform_3, window_bounds = array<i64: 512, 512>}, {pipeline_mode = #tpu.pipeline_mode<synchronous>, transform_indices = @transform_4, window_bounds = array<i64: 512, 1>}, {pipeline_mode = #tpu.pipeline_mode<synchronous>, transform_indices = @transform_5, window_bounds = array<i64: 512, 1>}, {pipeline_mode = #tpu.pipeline_mode<synchronous>, transform_indices = @transform_6, window_bounds = array<i64: 1, 1>}, {transform_indices = @transform_7, window_bounds = array<i64: 1, 1, 512>}]} {
    %c0 = arith.constant 0 : index
    %c0_0 = arith.constant 0 : index
    %0 = vector.load %arg1[%c0, %c0_0] : memref<2x512xf32, #tpu.memory_space<vmem>>, vector<1x512xf32>
    %c1 = arith.constant 1 : index
    %c0_1 = arith.constant 0 : index
    %1 = vector.load %arg1[%c1, %c0_1] : memref<2x512xf32, #tpu.memory_space<vmem>>, vector<1x512xf32>
    %c0_2 = arith.constant 0 : index
    %c0_3 = arith.constant 0 : index
    %2 = vector.load %arg2[%c0_2, %c0_3] : memref<512x2xf32, #tpu.memory_space<vmem>>, vector<512x1xf32>
    %3 = vector.broadcast %2 : vector<512x1xf32> to vector<512x512xf32>
    %4 = vector.broadcast %0 : vector<1x512xf32> to vector<512x512xf32>
    %5 = arith.mulf %3, %4 : vector<512x512xf32>
    %c0_4 = arith.constant 0 : index
    %c1_5 = arith.constant 1 : index
    %6 = vector.load %arg2[%c0_4, %c1_5] : memref<512x2xf32, #tpu.memory_space<vmem>>, vector<512x1xf32>
    %7 = vector.broadcast %6 : vector<512x1xf32> to vector<512x512xf32>
    %8 = vector.broadcast %1 : vector<1x512xf32> to vector<512x512xf32>
    %9 = arith.mulf %7, %8 : vector<512x512xf32>
    %10 = arith.addf %5, %9 : vector<512x512xf32>
    %c0_6 = arith.constant 0 : index
    %c0_7 = arith.constant 0 : index
    %11 = vector.load %arg3[%c0_6, %c0_7] : memref<512x1xf32, #tpu.memory_space<vmem>>, vector<512x1xf32>
    %12 = vector.broadcast %11 : vector<512x1xf32> to vector<512x512xf32>
    %13 = arith.addf %10, %12 : vector<512x512xf32>
    %cst = arith.constant 0.000000e+00 : f32
    %14 = vector.broadcast %cst : f32 to vector<512x512xf32>
    %15 = arith.maximumf %13, %14 : vector<512x512xf32>
    %c0_8 = arith.constant 0 : index
    %c0_9 = arith.constant 0 : index
    %16 = vector.load %arg4[%c0_8, %c0_9] : memref<512x512xbf16, #tpu.memory_space<vmem>>, vector<512x512xbf16>
    %17 = arith.truncf %15 : vector<512x512xf32> to vector<512x512xbf16>
    %cst_10 = arith.constant dense<0.000000e+00> : vector<512x512xf32>
    %18 = tpu.matmul %16, %17, %cst_10 {dimension_numbers = #tpu.dot_dimension_numbers<[1], [0], [0], [1], [0, 0, 1, 1], [], []>} : vector<512x512xbf16>, vector<512x512xbf16>, vector<512x512xf32> -> vector<512x512xf32>
    %c0_11 = arith.constant 0 : index
    %c0_12 = arith.constant 0 : index
    %19 = vector.load %arg5[%c0_11, %c0_12] : memref<512x1xf32, #tpu.memory_space<vmem>>, vector<512x1xf32>
    %20 = vector.broadcast %19 : vector<512x1xf32> to vector<512x512xf32>
    %21 = arith.addf %18, %20 : vector<512x512xf32>
    %cst_13 = arith.constant 0.000000e+00 : f32
    %22 = vector.broadcast %cst_13 : f32 to vector<512x512xf32>
    %23 = arith.maximumf %21, %22 : vector<512x512xf32>
    %c0_14 = arith.constant 0 : index
    %c0_15 = arith.constant 0 : index
    %24 = vector.load %arg6[%c0_14, %c0_15] : memref<512x1xf32, #tpu.memory_space<vmem>>, vector<512x1xf32>
    %25 = vector.broadcast %24 : vector<512x1xf32> to vector<512x512xf32>
    %26 = arith.mulf %23, %25 : vector<512x512xf32>
    %cst_16 = arith.constant dense<0.000000e+00> : vector<512xf32>
    %27 = vector.multi_reduction <add>, %26, %cst_16 [0] : vector<512x512xf32> to vector<512xf32>
    %28 = vector.shape_cast %27 : vector<512xf32> to vector<1x512xf32>
    %c0_17 = arith.constant 0 : index
    %c0_18 = arith.constant 0 : index
    %29 = vector.load %arg7[%c0_17, %c0_18] : memref<1x1xf32, #tpu.memory_space<vmem>>, vector<1x1xf32>
    %30 = vector.broadcast %29 : vector<1x1xf32> to vector<1x512xf32>
    %31 = arith.addf %28, %30 : vector<1x512xf32>
    %c0_19 = arith.constant 0 : index
    %c0_20 = arith.constant 0 : index
    %c0_21 = arith.constant 0 : index
    %32 = vector.load %arg8[%c0_19, %c0_20, %c0_21] : memref<1x1x512xf32, #tpu.memory_space<vmem>>, vector<1x1x512xf32>
    %33 = vector.shape_cast %32 : vector<1x1x512xf32> to vector<1x512xf32>
    %34 = vector.shape_cast %31 : vector<1x512xf32> to vector<1x1x512xf32>
    tpu.vector_store %arg8[%c0_19, %c0_20, %c0_21], %34 {strides = array<i32>} : memref<1x1x512xf32, #tpu.memory_space<vmem>>, vector<1x1x512xf32>,
    return
  }
  func.func @transform_0(%arg0: i32) -> (i32, i32) {
    %c0_i32 = arith.constant 0 : i32
    %c0_i32_0 = arith.constant 0 : i32
    return %c0_i32, %arg0 : i32, i32
  }
  func.func @transform_1(%arg0: i32) -> (i32, i32) {
    %c0_i32 = arith.constant 0 : i32
    %c0_i32_0 = arith.constant 0 : i32
    %c0_i32_1 = arith.constant 0 : i32
    return %c0_i32, %c0_i32_0 : i32, i32
  }
  func.func @transform_2(%arg0: i32) -> (i32, i32) {
    %c0_i32 = arith.constant 0 : i32
    %c0_i32_0 = arith.constant 0 : i32
    %c0_i32_1 = arith.constant 0 : i32
    return %c0_i32, %c0_i32_0 : i32, i32
  }
  func.func @transform_3(%arg0: i32) -> (i32, i32) {
    %c0_i32 = arith.constant 0 : i32
    %c0_i32_0 = arith.constant 0 : i32
    %c0_i32_1 = arith.constant 0 : i32
    return %c0_i32, %c0_i32_0 : i32, i32
  }
  func.func @transform_4(%arg0: i32) -> (i32, i32) {
    %c0_i32 = arith.constant 0 : i32
    %c0_i32_0 = arith.constant 0 : i32
    %c0_i32_1 = arith.constant 0 : i32
    return %c0_i32, %c0_i32_0 : i32, i32
  }
  func.func @transform_5(%arg0: i32) -> (i32, i32) {
    %c0_i32 = arith.constant 0 : i32
    %c0_i32_0 = arith.constant 0 : i32
    %c0_i32_1 = arith.constant 0 : i32
    return %c0_i32, %c0_i32_0 : i32, i32
  }
  func.func @transform_6(%arg0: i32) -> (i32, i32) {
    %c0_i32 = arith.constant 0 : i32
    %c0_i32_0 = arith.constant 0 : i32
    %c0_i32_1 = arith.constant 0 : i32
    return %c0_i32, %c0_i32_0 : i32, i32
  }
  func.func @transform_7(%arg0: i32) -> (i32, i32, i32) {
    %c0_i32 = arith.constant 0 : i32
    %c0_i32_0 = arith.constant 0 : i32
    %c0_i32_1 = arith.constant 0 : i32
    return %arg0, %c0_i32, %c0_i32_0 : i32, i32, i32
  }
}

</mosaic_0001>

<bundles_post_ra>
// kernel: network_forward.1
= control target key start
LH: loop header
LB: loop body
LE: loop exit
PB: predicated region body
PF: predicated region fallthrough
CT: control target
= control target key end

     0   :  { %s12647_s0 = inlined_call_operand.vmem [shape: f32[2,2048], index: 0, kind: input, shape index: {}]   ;;  %s12648_s1 = inlined_call_operand.vmem [shape: f32[512,2], index: 1, kind: input, shape index: {}]   ;;  %s12649_s2 = inlined_call_operand.vmem [shape: f32[512,1], index: 2, kind: input, shape index: {}]   ;;  %s12650_s3 = inlined_call_operand.vmem [shape: bf16[512,512], index: 3, kind: input, shape index: {}]   ;;  %s12651_s4 = inlined_call_operand.vmem [shape: f32[512,1], index: 4, kind: input, shape index: {}]   ;;  %s12652_s5 = inlined_call_operand.vmem [shape: f32[512,1], index: 5, kind: input, shape index: {}]   ;;  %s12653_s6 = inlined_call_operand.<no memory space> [shape: f32[1,1], index: 6, kind: input, shape index: {}]   ;;  %s12654_s7 = inlined_call_operand.hbm [shape: f32[4,1,512], index: 7, kind: output, shape index: {}]  }
   0x1   :  { %v12_v0 = vstv %s12653_s6 }
   0x2   :  { %13 = vst [vmem:[#allocation2] sm:$0x1] %v12_v0 }
   0x3   :  { %14 = vsyncpa [#allocation4], 0 }
   0x4   :  { %16 = vsyncpa [#allocation4 + $0x1], 0  ;;  %s7652_s26 = smov 0   ;;  %s7654_s27 = smov 0  }
   0x5   :  { %s7656_s28 = smov 0   ;;  %s7658_s29 = smov 0  }
   0x6 LB: > { %s7673_s6 = sadd.s32 4294967295, %s7603_s29   ;;  %s6616_s30 = sadd.s32 4294967294, %s7603_s29   ;;  %s7603_s29 = sphi %s7658_s29, %s13505_s29   ;;  %s7599_s28 = sphi %s7656_s28, %s13504_s28   ;;  %s7595_s27 = sphi %s7654_s27, %s13503_s27   ;;  %s7591_s26 = sphi %s7652_s26, %s13502_s26  }
   0x7   : > { %s7677_s8 = sadd.s32 1, %s7603_s29   ;;  %s181_s9 = sadd.s32 1, %s7599_s28 }
   0x8   : > { %s178_s10 = ssub.s32 %s7603_s29, %s7677_s8  ;;  %p191_p0 = scmp.ne.s32.totalorder %s7599_s28, %s7595_s27 }
   0x9   : > { %p179_p1 = scmp.eq.s32.totalorder %s178_s10, 0  ;;  %p192_p2 = scmp.eq.s32.totalorder %s7673_s6, 3 }
   0xa   : > { %p197_p3 = scmp.ne.s32.totalorder %s7595_s27, %s7591_s26  ;;  %p198_p4 = scmp.eq.s32.totalorder %s6616_s30, 3 }
   0xb   : > { %s7688_s11 = scalar_select %p179_p1, %s7599_s28, %s181_s9  }
   0xc   : > { %p7690_p5 = por %p192_p2, %p191_p0  ;;  %p7694_p6 = por %p198_p4, %p197_p3 }
   0xd   : > { %p6619_p7 = scmp.ge.s32.totalorder %s7603_s29, 1  ;;  %p243_p8 = scmp.lt.s32.totalorder %s7603_s29, 5 }
   0xf   : > { %p244_p9 = pnand %p6619_p7, %p243_p8 }
  0x11   : > { %247 = sbr.rel (%p244_p9) target bundleno = 1250 (0x4e2), region = 48 }
  0x18   : > { %v7703_v1 = vld [vmem:[%s12648_s1 + $0x10] sm:$0xff]  ;;  %v284_v2 = vld [vmem:[%s12648_s1] sm:$0xff]  ;;  %v12656_v3 = vmov 1   ;;  %v12658_v4 = vmov 0   ;;  %v287_v5 = vld [vmem:[%s12648_s1 + $0x18] sm:$0xff]  ;;  %s6621_s25 = sshll.u32 %s7673_s6, 2 }
  0x19   : > { %7313 = vset.pattern.permute.xlu0 %v12656_v3  ;;  %7312 = vset.pattern.permute.xlu1 %v12658_v4  ;;  %v289_v6 = vld [vmem:[%s12648_s1 + $0x28] sm:$0xff]  ;;  %v291_v7 = vld [vmem:[%s12648_s1 + $0x38] sm:$0xff]  ;;  %v7775_v24 = vld [vmem:[%s12648_s1 + $0x20] sm:$0xff]  ;;  %p276_p10 = scmp.lt.s32.totalorder %s6621_s25, 15  ;;  %s272_s18 = sand.u32 1, %s7595_s27  }
  0x1a   : > { %360 = vperm.xlu1 %7312, %v7703_v1   ;;  %946 = vperm.xlu0 %7313, %v284_v2   ;;  %v293_v8 = vld [vmem:[%s12648_s1 + $0x48] sm:$0xff]  ;;  %v295_v9 = vld [vmem:[%s12648_s1 + $0x58] sm:$0xff]  ;;  %v7784_v26 = vld [vmem:[%s12648_s1 + $0x30] sm:$0xff]  ;;  %s6620_s19 = sshll.u32 %s272_s18, 2  ;;  %s6757_s20 = sshll.u32 %s7673_s6, 6 }
  0x1b   : > { %v297_v10 = vld [vmem:[%s12648_s1 + $0x68] sm:$0xff]  ;;  %v299_v11 = vld [vmem:[%s12648_s1 + $0x78] sm:$0xff]  ;;  %v7793_v28 = vld [vmem:[%s12648_s1 + $0x40] sm:$0xff]  ;;  %s13507_s25 = smov (!%p276_p10, %s6621_s25), 15  ;;  %s274_s21 = scalar_lea.vmem [#allocation3], %s6620_s19 }
  0x1c   : > { %v301_v12 = vld [vmem:[%s12648_s1 + $0x88] sm:$0xff]  ;;  %v303_v13 = vld [vmem:[%s12648_s1 + $0x98] sm:$0xff]  ;;  %v7802_v30 = vld [vmem:[%s12648_s1 + $0x50] sm:$0xff]  ;;  %s6622_s17 = sshll.u32 %s13507_s25, 1  ;;  %s12605_s25 = scalar_lea.hbm %s12654_s7, %s6757_s20 }
  0x1d   : > { %v305_v14 = vld [vmem:[%s12648_s1 + $0xa8] sm:$0xff]  ;;  %v307_v15 = vld [vmem:[%s12648_s1 + $0xb8] sm:$0xff]  ;;  %v7811_v32 = vld [vmem:[%s12648_s1 + $0x60] sm:$0xff]  ;;  %s279_s22 = scalar_lea.vmem %s12647_s0, %s6622_s17  ;;  %s6543_s30 = scalar_lea.sflag [#allocation4], %s272_s18 }
  0x1e   : > { %365 = vperm.xlu1 %7312, %v287_v5   ;;  %958 = vperm.xlu0 %7313, %v287_v5   ;;  %v309_v16 = vld [vmem:[%s12648_s1 + $0xc8] sm:$0xff]  ;;  %v311_v17 = vld [vmem:[%s12648_s1 + $0xd8] sm:$0xff]  ;;  %v7820_v34 = vld [vmem:[%s12648_s1 + $0x70] sm:$0xff]  ;;  %s7608_s6 = smov [#allocation3]  }
  0x1f   : > { %v313_v18 = vld [vmem:[%s12648_s1 + $0xe8] sm:$0xff]  ;;  %v315_v19 = vld [vmem:[%s12648_s1 + $0xf8] sm:$0xff]  ;;  %v7829_v36 = vld [vmem:[%s12648_s1 + $0x80] sm:$0xff]  ;;  %s7545_s10 = sshll.u32 %s7608_s6, 4  ;;  %s7546_s10 = int_to_ptr.vmem [resolvable:$false] %s7545_s10 }
  0x20   : > { %v7759_v20 = vld [vmem:[%s12648_s1 + $0x108] sm:$0xff]  ;;  %v319_v21 = vld [vmem:[%s12648_s1 + $0x118] sm:$0xff]  ;;  %v7838_v38 = vld [vmem:[%s12648_s1 + $0x90] sm:$0xff]  ;;  %s7547_s14 = scalar_lea.vmem %s7546_s10, 128 }
  0x21   : > { %12707 = vst [vmem:[#allocation6_spill] sm:$0xff] %v7759_v20  ;;  %v285_v22 = vld [vmem:[%s12648_s1 + $0x8] sm:$0xff]  ;;  %v323_v25 = vld [vmem:[%s12648_s1 + $0x138] sm:$0xff]  ;;  %v7847_v40 = vld [vmem:[%s12648_s1 + $0xa0] sm:$0xff] }
  0x22   : > { %375 = vperm.xlu1 %7312, %v289_v6   ;;  %966 = vperm.xlu0 %7313, %v289_v6   ;;  %v321_v23 = vld [vmem:[%s12648_s1 + $0x128] sm:$0xff]  ;;  %v327_v29 = vld [vmem:[%s12648_s1 + $0x158] sm:$0xff]  ;;  %v7856_v42 = vld [vmem:[%s12648_s1 + $0xb0] sm:$0xff] }
  0x23   : > { %v325_v27 = vld [vmem:[%s12648_s1 + $0x148] sm:$0xff]  ;;  %v331_v33 = vld [vmem:[%s12648_s1 + $0x178] sm:$0xff]  ;;  %v7865_v44 = vld [vmem:[%s12648_s1 + $0xc0] sm:$0xff] }
  0x24   : > { %v329_v31 = vld [vmem:[%s12648_s1 + $0x168] sm:$0xff]  ;;  %v335_v37 = vld [vmem:[%s12648_s1 + $0x198] sm:$0xff]  ;;  %v7874_v46 = vld [vmem:[%s12648_s1 + $0xd0] sm:$0xff] }
  0x25   : > { %v333_v35 = vld [vmem:[%s12648_s1 + $0x188] sm:$0xff]  ;;  %v339_v41 = vld [vmem:[%s12648_s1 + $0x1b8] sm:$0xff]  ;;  %v7883_v48 = vld [vmem:[%s12648_s1 + $0xe0] sm:$0xff] }
  0x26   : > { %385 = vperm.xlu1 %7312, %v291_v7   ;;  %974 = vperm.xlu0 %7313, %v291_v7   ;;  %v337_v39 = vld [vmem:[%s12648_s1 + $0x1a8] sm:$0xff]  ;;  %v343_v45 = vld [vmem:[%s12648_s1 + $0x1d8] sm:$0xff]  ;;  %v7892_v50 = vld [vmem:[%s12648_s1 + $0xf0] sm:$0xff] }
  0x27   : > { %v341_v43 = vld [vmem:[%s12648_s1 + $0x1c8] sm:$0xff]  ;;  %v347_v49 = vld [vmem:[%s12648_s1 + $0x1f8] sm:$0xff]  ;;  %v7898_v51 = vld [vmem:[%s12648_s1 + $0x100] sm:$0xff] }
  0x28   : > { %v345_v47 = vld [vmem:[%s12648_s1 + $0x1e8] sm:$0xff]  ;;  %v7913_v56 = vld [vmem:[%s12648_s1 + $0x110] sm:$0xff]  ;;  %v7924_v59 = vld [vmem:[%s12648_s1 + $0x120] sm:$0xff] }
  0x29   : > { %12708 = vst [vmem:[#allocation7_spill] sm:$0xff] %v7924_v59  ;;  %v322_v62 = vld [vmem:[%s12648_s1 + $0x130] sm:$0xff] }
  0x2a   : > { %395 = vperm.xlu1 %7312, %v293_v8   ;;  %982 = vperm.xlu0 %7313, %v293_v8   ;;  %v326_v6 = vld [vmem:[%s12648_s1 + $0x150] sm:$0xff] }
  0x2e   : > { %405 = vperm.xlu1 %7312, %v295_v9   ;;  %990 = vperm.xlu0 %7313, %v295_v9   ;;  %v328_v9 = vld [vmem:[%s12648_s1 + $0x160] sm:$0xff] }
  0x32   : > { %415 = vperm.xlu1 %7312, %v297_v10   ;;  %998 = vperm.xlu0 %7313, %v297_v10  }
  0x36   : > { %425 = vperm.xlu1 %7312, %v299_v11   ;;  %1006 = vperm.xlu0 %7313, %v299_v11  }
  0x3a   : > { %435 = vperm.xlu1 %7312, %v301_v12   ;;  %1014 = vperm.xlu0 %7313, %v301_v12   ;;  %v330_v12 = vld [vmem:[%s12648_s1 + $0x170] sm:$0xff] }
  0x3e   : > { %445 = vperm.xlu1 %7312, %v303_v13   ;;  %1022 = vperm.xlu0 %7313, %v303_v13  }
  0x42   : > { %455 = vperm.xlu1 %7312, %v305_v14   ;;  %1030 = vperm.xlu0 %7313, %v305_v14  }
  0x46   : > { %465 = vperm.xlu1 %7312, %v307_v15   ;;  %1038 = vperm.xlu0 %7313, %v307_v15   ;;  %v332_v15 = vld [vmem:[%s12648_s1 + $0x180] sm:$0xff] }
  0x4a   : > { %475 = vperm.xlu1 %7312, %v309_v16   ;;  %1046 = vperm.xlu0 %7313, %v309_v16  }
  0x4e   : > { %485 = vperm.xlu1 %7312, %v311_v17   ;;  %1054 = vperm.xlu0 %7313, %v311_v17  }
  0x52   : > { %495 = vperm.xlu1 %7312, %v313_v18   ;;  %1062 = vperm.xlu0 %7313, %v313_v18   ;;  %v334_v18 = vld [vmem:[%s12648_s1 + $0x190] sm:$0xff] }
  0x56   : > { %505 = vperm.xlu1 %7312, %v315_v19   ;;  %1070 = vperm.xlu0 %7313, %v315_v19  }
  0x5a   : > { %515 = vperm.xlu1 %7312, %v7759_v20   ;;  %7315 = vset.pattern.permute.xlu0 %v12658_v4 }
  0x5b   : > { %350 = vperm.xlu0 %7315, %v284_v2  }
  0x5e   : > { %525 = vperm.xlu1 %7312, %v319_v21  }
  0x5f   : > { %355 = vperm.xlu0 %7315, %v285_v22  }
  0x62   : > { %535 = vperm.xlu1 %7312, %v321_v23  }
  0x63   : > { %370 = vperm.xlu0 %7315, %v7775_v24  }
  0x66   : > { %545 = vperm.xlu1 %7312, %v323_v25   ;;  %v338_v25 = vld [vmem:[%s12648_s1 + $0x1b0] sm:$0xff] }
  0x67   : > { %380 = vperm.xlu0 %7315, %v7784_v26  }
  0x6a   : > { %555 = vperm.xlu1 %7312, %v325_v27  }
  0x6b   : > { %390 = vperm.xlu0 %7315, %v7793_v28  }
  0x6e   : > { %565 = vperm.xlu1 %7312, %v327_v29   ;;  %v340_v29 = vld [vmem:[%s12648_s1 + $0x1c0] sm:$0xff] }
  0x6f   : > { %400 = vperm.xlu0 %7315, %v7802_v30  }
  0x72   : > { %575 = vperm.xlu1 %7312, %v329_v31  }
  0x73   : > { %410 = vperm.xlu0 %7315, %v7811_v32  }
  0x76   : > { %585 = vperm.xlu1 %7312, %v331_v33   ;;  %v342_v33 = vld [vmem:[%s12648_s1 + $0x1d0] sm:$0xff] }
  0x77   : > { %420 = vperm.xlu0 %7315, %v7820_v34  }
  0x7a   : > { %595 = vperm.xlu1 %7312, %v333_v35  }
  0x7b   : > { %430 = vperm.xlu0 %7315, %v7829_v36  }
  0x7e   : > { %605 = vperm.xlu1 %7312, %v335_v37  }
  0x7f   : > { %440 = vperm.xlu0 %7315, %v7838_v38  }
  0x82   : > { %615 = vperm.xlu1 %7312, %v337_v39  }
  0x83   : > { %450 = vperm.xlu0 %7315, %v7847_v40  }
  0x86   : > { %625 = vperm.xlu1 %7312, %v339_v41   ;;  %v281_v41 = vld [vmem:[%s279_s22] ss:$2 sm:$0xf] }
  0x87   : > { %460 = vperm.xlu0 %7315, %v7856_v42  }
  0x8a   : > { %635 = vperm.xlu1 %7312, %v341_v43  }
  0x8b   : > { %470 = vperm.xlu0 %7315, %v7865_v44  }
  0x8e   : > { %645 = vperm.xlu1 %7312, %v343_v45  }
  0x8f   : > { %480 = vperm.xlu0 %7315, %v7874_v46  }
  0x92   : > { %655 = vperm.xlu1 %7312, %v345_v47   ;;  %v346_v47 = vld [vmem:[%s12648_s1 + $0x1f0] sm:$0xff] }
  0x93   : > { %490 = vperm.xlu0 %7315, %v7883_v48  }
  0x96   : > { %665 = vperm.xlu1 %7312, %v347_v49  }
  0x97   : > { %500 = vperm.xlu0 %7315, %v7892_v50  }
  0x99   : > { %v7900_v52 = vpop.permute.xlu1 %360  ;;  %v7902_v53 = vpop.permute.xlu0 %946 }
  0x9a   : > { %7314 = vset.pattern.permute.xlu1 %v12656_v3 }
  0x9b   : > { %950 = vperm.xlu1 %7314, %v285_v22   ;;  %510 = vperm.xlu0 %7315, %v7898_v51   ;;  %v336_v22 = vld [vmem:[%s12648_s1 + $0x1a0] sm:$0xff] }
  0x9d   : > { %v7906_v54 = vpop.permute.xlu1 %365  ;;  %v7908_v55 = vpop.permute.xlu0 %958 }
  0x9f   : > { %954 = vperm.xlu1 %7314, %v7703_v1   ;;  %520 = vperm.xlu0 %7315, %v7913_v56   ;;  %v324_v1 = vld [vmem:[%s12648_s1 + $0x140] sm:$0xff] }
  0xa1   : > { %v7917_v57 = vpop.permute.xlu1 %375  ;;  %v7919_v58 = vpop.permute.xlu0 %966 }
  0xa3   : > { %962 = vperm.xlu1 %7314, %v7775_v24   ;;  %530 = vperm.xlu0 %7315, %v7924_v59  }
  0xa5   : > { %v7928_v60 = vpop.permute.xlu1 %385  ;;  %v7930_v61 = vpop.permute.xlu0 %974 }
  0xa7   : > { %970 = vperm.xlu1 %7314, %v7784_v26   ;;  %540 = vperm.xlu0 %7315, %v322_v62   ;;  %v12655_v26 = vlaneseq }
  0xa9   : > { %v7936_v63 = vpop.permute.xlu1 %395  ;;  %v7938_v0 = vpop.permute.xlu0 %982 }
  0xab   : > { %978 = vperm.xlu1 %7314, %v7793_v28   ;;  %550 = vperm.xlu0 %7315, %v324_v1  }
  0xad   : > { %v7944_v2 = vpop.permute.xlu1 %405  ;;  %v7946_v5 = vpop.permute.xlu0 %990 }
  0xaf   : > { %986 = vperm.xlu1 %7314, %v7802_v30   ;;  %560 = vperm.xlu0 %7315, %v326_v6   ;;  %v8010_v30 = vshrl.u32 %v12655_v26, 7 }
  0xb1   : > { %v7952_v7 = vpop.permute.xlu1 %415  ;;  %v7954_v8 = vpop.permute.xlu0 %998  ;;  %12709 = vst [vmem:[#allocation8_spill] sm:$0xff] %v8010_v30  ;;  %v675_v35 = vsub.s32 1, %v8010_v30  ;;  %v679_v39 = vsub.s32 2, %v8010_v30 }
  0xb3   : > { %994 = vperm.xlu1 %7314, %v7811_v32   ;;  %570 = vperm.xlu0 %7315, %v328_v9   ;;  %v8040_v43 = vrot.slane %v281_v41, %v675_v35  ;;  %v8049_v49 = vrot.slane %v281_v41, %v679_v39 }
  0xb5   : > { %v7960_v10 = vpop.permute.xlu1 %425  ;;  %v7962_v11 = vpop.permute.xlu0 %1006  ;;  %v710_v3 = vmul.f32 %v8040_v43, %v7917_v57 }
  0xb7   : > { %1002 = vperm.xlu1 %7314, %v7820_v34   ;;  %580 = vperm.xlu0 %7315, %v330_v12   ;;  %v8024_v34 = vsub.s32 0, %v8010_v30 }
  0xb9   : > { %v7968_v13 = vpop.permute.xlu1 %435  ;;  %v7970_v14 = vpop.permute.xlu0 %1014  ;;  %12710 = vst [vmem:[#allocation9_spill] sm:$0xff] %v8024_v34 }
  0xbb   : > { %1010 = vperm.xlu1 %7314, %v7829_v36   ;;  %590 = vperm.xlu0 %7315, %v332_v15   ;;  %v8069_v15 = vmul.f32 %v8040_v43, %v7900_v52 }
  0xbd   : > { %v7976_v16 = vpop.permute.xlu1 %445  ;;  %v7978_v17 = vpop.permute.xlu0 %1022  ;;  %12715 = vst [vmem:[#allocation14_spill] sm:$0xff] %v8069_v15  ;;  %v718_v15 = vmul.f32 %v8040_v43, %v7928_v60 }
  0xbf   : > { %1018 = vperm.xlu1 %7314, %v7838_v38   ;;  %600 = vperm.xlu0 %7315, %v334_v18   ;;  %v344_v38 = vld [vmem:[%s12648_s1 + $0x1e0] sm:$0xff] }
  0xc1   : > { %v7985_v19 = vpop.permute.xlu1 %455  ;;  %v7987_v21 = vpop.permute.xlu0 %1030 }
  0xc3   : > { %1026 = vperm.xlu1 %7314, %v7847_v40   ;;  %610 = vperm.xlu0 %7315, %v336_v22   ;;  %v683_v40 = vsub.s32 3, %v8010_v30  ;;  %v8078_v22 = vmul.f32 %v8049_v49, %v7900_v52 }
  0xc5   : > { %v7993_v23 = vpop.permute.xlu1 %465  ;;  %v7995_v24 = vpop.permute.xlu0 %1038  ;;  %v8051_v62 = vrot.slane %v281_v41, %v683_v40  ;;  %12717 = vst [vmem:[#allocation16_spill] sm:$0xff] %v8078_v22 }
  0xc7   : > { %1034 = vperm.xlu1 %7314, %v7856_v42   ;;  %620 = vperm.xlu0 %7315, %v338_v25   ;;  %v8038_v42 = vrot.slane %v281_v41, %v8024_v34  ;;  %v8082_v25 = vmul.f32 %v8051_v62, %v7900_v52  ;;  %v720_v59 = vmul.f32 %v8051_v62, %v7928_v60 }
  0xc9   : > { %v8001_v27 = vpop.permute.xlu1 %475  ;;  %v8003_v28 = vpop.permute.xlu0 %1046  ;;  %v8065_v12 = vmul.f32 %v8038_v42, %v7900_v52  ;;  %12718 = vst [vmem:[#allocation17_spill] sm:$0xff] %v8082_v25  ;;  %v703_v52 = vmul.f32 %v8049_v49, %v7906_v54 }
  0xcb   : > { %1042 = vperm.xlu1 %7314, %v7865_v44   ;;  %630 = vperm.xlu0 %7315, %v340_v29   ;;  %v6623_v44 = vld [vmem:[%s279_s22 + $0x1] ss:$2 sm:$0xf]  ;;  %12714 = vst [vmem:[#allocation13_spill] sm:$0xff] %v8065_v12  ;;  %s6557_s22 = sshll.u32 %s274_s21, 4  ;;  %s12607_s22 = int_to_ptr.vmem [resolvable:$true] %s6557_s22 }
  0xcc   : > { %v8057_v1 = vrot.slane %v6623_v44, %v675_v35  ;;  %v8059_v6 = vrot.slane %v6623_v44, %v679_v39  ;;  %v8061_v9 = vrot.slane %v6623_v44, %v683_v40  ;;  %v702_v39 = vmul.f32 %v8040_v43, %v7906_v54  ;;  %s7541_s9 = scalar_lea.vmem %s12607_s22, 64  ;;  %p7548_p0 = scmp.lt.s32.totalorder %s12607_s22, %s7546_s10 }
  0xcd   : > { %v8012_v31 = vpop.permute.xlu1 %485  ;;  %v8014_v32 = vpop.permute.xlu0 %1054  ;;  %v704_v40 = vmul.f32 %v8051_v62, %v7906_v54  ;;  %p7542_p11 = scmp.ne.s32.totalorder %s12607_s22, %s7541_s9  ;;  %p7549_p1 = scmp.lt.s32.totalorder %s7547_s14, %s7541_s9 }
  0xce   : > { %12713 = vst [vmem:[#allocation12_spill] sm:$0xff] %v8061_v9  ;;  %v8092_v35 = vmul.f32 %v8061_v9, %v7902_v53  ;;  %v1237_v26 = vmul.f32 %v8061_v9, %v7908_v55  ;;  %v1245_v4 = vmul.f32 %v8061_v9, %v7919_v58  ;;  %v1244_v12 = vmul.f32 %v8059_v6, %v7919_v58 }
  0xcf   : > { %1050 = vperm.xlu1 %7314, %v7874_v46   ;;  %640 = vperm.xlu0 %7315, %v342_v33   ;;  %v8088_v33 = vmul.f32 %v8057_v1, %v7902_v53  ;;  %v1251_v20 = vmul.f32 %v8057_v1, %v7930_v61  ;;  %p7543_p12 = pnand %p7542_p11, %p7690_p5  ;;  %p7550_p2 = por %p7549_p1, %p7548_p0 }
  0xd0   : > { %12721 = vst [vmem:[#allocation20_spill] sm:$0xff] %v8092_v35  ;;  %v8153_v35 = vadd.f32 %v1237_v26, %v704_v40  ;;  %v717_v26 = vmul.f32 %v8038_v42, %v7928_v60  ;;  %v719_v40 = vmul.f32 %v8049_v49, %v7928_v60  ;;  %v725_v60 = vmul.f32 %v8038_v42, %v7936_v63 }
  0xd1   : > { %v8027_v36 = vpop.permute.xlu1 %495  ;;  %v8029_v37 = vpop.permute.xlu0 %1062  ;;  %12720 = vst [vmem:[#allocation19_spill] sm:$0xff] %v8088_v33  ;;  %p7544_p13 = pneg %p7543_p12 }
  0xd2   : > { %12727 = vst [vmem:[#allocation26_spill] sm:$0xff] %v8153_v35 }
  0xd3   : > { %1058 = vperm.xlu1 %7314, %v7883_v48   ;;  %650 = vperm.xlu0 %7315, %v344_v38   ;;  %v8055_v48 = vrot.slane %v6623_v44, %v8024_v34  ;;  %v701_v38 = vmul.f32 %v8038_v42, %v7906_v54  ;;  %v1235_v44 = vmul.f32 %v8057_v1, %v7908_v55  ;;  %v1738_v34 = vld [vmem:[%s12649_s2 + $0x20] sm:$0xff]  ;;  %p7551_p3 = pnand %p7550_p2, %p7544_p13 }
  0xd4   : > { %v712_v54 = vmul.f32 %v8051_v62, %v7917_v57 }
  0xd5   : > { %v8042_v45 = vpop.permute.xlu1 %505  ;;  %v8044_v46 = vpop.permute.xlu0 %1070  ;;  %v1234_v41 = vmul.f32 %v8055_v48, %v7908_v55  ;;  %v1242_v22 = vmul.f32 %v8055_v48, %v7919_v58 }
  0xd6   : > { %12711 = vst [vmem:[#allocation10_spill] sm:$0xff] %v8042_v45  ;;  %12712 = vst [vmem:[#allocation11_spill] sm:$0xff] %v8044_v46 }
  0xd7   : > { %1066 = vperm.xlu1 %7314, %v7892_v50   ;;  %660 = vperm.xlu0 %7315, %v346_v47   ;;  %v1735_v50 = vld [vmem:[%s12649_s2 + $0x8] sm:$0xff]  ;;  %v1236_v47 = vmul.f32 %v8059_v6, %v7908_v55  ;;  %v709_v55 = vmul.f32 %v8038_v42, %v7917_v57 }
  0xd9   : > { %v8071_v18 = vpop.permute.xlu1 %515  ;;  %v8177_v35 = vadd.f32 %v1242_v22, %v709_v55  ;;  %v726_v22 = vmul.f32 %v8040_v43, %v7936_v63  ;;  %v734_v55 = vmul.f32 %v8040_v43, %v7944_v2 }
  0xda   : > { %12716 = vst [vmem:[#allocation15_spill] sm:$0xff] %v8071_v18  ;;  %v8084_v29 = vpop.permute.xlu0 %350  ;;  %v1740_v18 = vld [vmem:[%s12649_s2 + $0x30] sm:$0xff] }
  0xdb   : > { %12719 = vst [vmem:[#allocation18_spill] sm:$0xff] %v8084_v29  ;;  %1074 = vperm.xlu1 %7314, %v7898_v51   ;;  %1805 = vperm.xlu0 %7315, %v1735_v50   ;;  %v1243_v51 = vmul.f32 %v8057_v1, %v7919_v58  ;;  %v711_v50 = vmul.f32 %v8049_v49, %v7917_v57  ;;  %12734 = vst [vmem:[#allocation33_spill] sm:$0xff] %v8177_v35 }
  0xdc   : > { %v1253_v57 = vmul.f32 %v8061_v9, %v7930_v61  ;;  %v8145_v58 = vmul.f32 %v8055_v48, %v7902_v53  ;;  %v741_v35 = vmul.f32 %v8038_v42, %v7952_v7 }
  0xdd   : > { %v8119_v30 = vpop.permute.xlu1 %525 }
  0xde   : > { %12722 = vst [vmem:[#allocation21_spill] sm:$0xff] %v8119_v30  ;;  %v8132_v25 = vpop.permute.xlu0 %355  ;;  %12724 = vst [vmem:[#allocation23_spill] sm:$0xff] %v8145_v58  ;;  %v8151_v30 = vadd.f32 %v1235_v44, %v702_v39  ;;  %v8165_v58 = vadd.f32 %v1236_v47, %v703_v52  ;;  %v8169_v39 = vadd.f32 %v1245_v4, %v712_v54  ;;  %v12736_v4 = vmov 0   ;;  %v1742_v54 = vld [vmem:[%s12649_s2 + $0x40] sm:$0xff] }
  0xdf   : > { %12723 = vst [vmem:[#allocation22_spill] sm:$0xff] %v8132_v25  ;;  %1082 = vperm.xlu1 %7314, %v7913_v56   ;;  %1820 = vperm.xlu0 %7315, %v1738_v34   ;;  %v8149_v25 = vmul.f32 %v8059_v6, %v7902_v53  ;;  %v1734_v56 = vld [vmem:[%s12649_s2] sm:$0xff]  ;;  %v8163_v34 = vadd.f32 %v1234_v41, %v701_v38 }
  0xe0   : > { %12726 = vst [vmem:[#allocation25_spill] sm:$0xff] %v8151_v30  ;;  %12730 = vst [vmem:[#allocation29_spill] sm:$0xff] %v8165_v58  ;;  %v8167_v53 = vadd.f32 %v1243_v51, %v710_v3  ;;  %v8179_v30 = vadd.f32 %v1244_v12, %v711_v50  ;;  %v1250_v38 = vmul.f32 %v8055_v48, %v7930_v61 }
  0xe1   : > { %12725 = vst [vmem:[#allocation24_spill] sm:$0xff] %v8149_v25  ;;  %v8155_v33 = vpop.permute.xlu1 %535  ;;  %12729 = vst [vmem:[#allocation28_spill] sm:$0xff] %v8163_v34  ;;  %v1252_v3 = vmul.f32 %v8059_v6, %v7930_v61  ;;  %v8186_v52 = vadd.f32 %v1251_v20, %v718_v15  ;;  %v8188_v41 = vadd.f32 %v1253_v57, %v720_v59 }
  0xe2   : > { %12728 = vst [vmem:[#allocation27_spill] sm:$0xff] %v8155_v33  ;;  %12731 = vst [vmem:[#allocation30_spill] sm:$0xff] %v8167_v53  ;;  %v8175_v44 = vpop.permute.xlu0 %370  ;;  %v727_v12 = vmul.f32 %v8049_v49, %v7936_v63  ;;  %v728_v61 = vmul.f32 %v8051_v62, %v7936_v63  ;;  %v1258_v20 = vmul.f32 %v8055_v48, %v7938_v0 }
  0xe3   : > { %12732 = vst [vmem:[#allocation31_spill] sm:$0xff] %v8169_v39  ;;  %12733 = vst [vmem:[#allocation32_spill] sm:$0xff] %v8175_v44  ;;  %7316 = vset.pattern.permute.xlu1 %v12736_v4  ;;  %1830 = vperm.xlu0 %7315, %v1740_v18   ;;  %v1259_v59 = vmul.f32 %v8057_v1, %v7938_v0  ;;  %v1260_v15 = vmul.f32 %v8059_v6, %v7938_v0  ;;  %v1736_v18 = vld [vmem:[%s12649_s2 + $0x10] sm:$0xff] }
  0xe4   : > { %12735 = vst [vmem:[#allocation34_spill] sm:$0xff] %v8179_v30  ;;  %12737 = vst [vmem:[#allocation35_spill] sm:$0xff] %v8186_v52  ;;  %1800 = vperm.xlu1 %7316, %v1734_v56   ;;  %v1261_v63 = vmul.f32 %v8061_v9, %v7938_v0  ;;  %v733_v51 = vmul.f32 %v8038_v42, %v7944_v2  ;;  %v735_v50 = vmul.f32 %v8049_v49, %v7944_v2  ;;  %v1744_v4 = vld [vmem:[%s12649_s2 + $0x50] sm:$0xff] }
  0xe5   : > { %12738 = vst [vmem:[#allocation36_spill] sm:$0xff] %v8188_v41  ;;  %v8204_v47 = vpop.permute.xlu1 %545  ;;  %v736_v56 = vmul.f32 %v8051_v62, %v7944_v2  ;;  %v1266_v41 = vmul.f32 %v8055_v48, %v7946_v5  ;;  %v1267_v0 = vmul.f32 %v8057_v1, %v7946_v5  ;;  %v1268_v52 = vmul.f32 %v8059_v6, %v7946_v5 }
  0xe6   : > { %12739 = vst [vmem:[#allocation37_spill] sm:$0xff] %v8204_v47  ;;  %v8220_v57 = vpop.permute.xlu0 %380  ;;  %v1269_v30 = vmul.f32 %v8061_v9, %v7946_v5  ;;  %v742_v39 = vmul.f32 %v8040_v43, %v7952_v7  ;;  %v744_v2 = vmul.f32 %v8051_v62, %v7952_v7  ;;  %v1274_v53 = vmul.f32 %v8055_v48, %v7954_v8 }
  0xe7   : > { %12740 = vst [vmem:[#allocation38_spill] sm:$0xff] %v8220_v57  ;;  %1840 = vperm.xlu0 %7315, %v1742_v54   ;;  %v1275_v58 = vmul.f32 %v8057_v1, %v7954_v8  ;;  %v1277_v5 = vmul.f32 %v8061_v9, %v7954_v8  ;;  %v1737_v54 = vld [vmem:[%s12649_s2 + $0x18] sm:$0xff]  ;;  %v1276_v57 = vmul.f32 %v8059_v6, %v7954_v8 }
  0xe8   : > { %1810 = vperm.xlu1 %7316, %v1736_v18   ;;  %v743_v18 = vmul.f32 %v8049_v49, %v7952_v7  ;;  %v8258_v44 = vadd.f32 %v1250_v38, %v717_v26  ;;  %v8260_v33 = vadd.f32 %v1252_v3, %v719_v40  ;;  %v8264_v25 = vadd.f32 %v1261_v63, %v728_v61  ;;  %v1746_v40 = vld [vmem:[%s12649_s2 + $0x60] sm:$0xff]  ;;  %v1739_v38 = vld [vmem:[%s12649_s2 + $0x28] sm:$0xff] }
  0xe9   : > { %v8244_v34 = vpop.permute.xlu1 %555  ;;  %v8266_v29 = vadd.f32 %v1258_v20, %v725_v60  ;;  %v8268_v46 = vadd.f32 %v1260_v15, %v727_v12  ;;  %v8270_v7 = vadd.f32 %v1267_v0, %v734_v55  ;;  %v8272_v45 = vadd.f32 %v1269_v30, %v736_v56 }
  0xea   : > { %12741 = vst [vmem:[#allocation39_spill] sm:$0xff] %v8244_v34  ;;  %v8256_v47 = vpop.permute.xlu0 %390  ;;  %12742 = vst [vmem:[#allocation40_spill] sm:$0xff] %v8258_v44  ;;  %v8262_v34 = vadd.f32 %v1259_v59, %v726_v22  ;;  %v8274_v8 = vadd.f32 %v1266_v41, %v733_v51  ;;  %v8284_v3 = vadd.f32 %v1268_v52, %v735_v50  ;;  %v1748_v50 = vld [vmem:[%s12649_s2 + $0x70] sm:$0xff] }
  0xeb   : > { %12743 = vst [vmem:[#allocation41_spill] sm:$0xff] %v8260_v33  ;;  %12745 = vst [vmem:[#allocation43_spill] sm:$0xff] %v8264_v25  ;;  %1850 = vperm.xlu0 %7315, %v1744_v4   ;;  %v8286_v4 = vadd.f32 %v1275_v58, %v742_v39  ;;  %v8288_v60 = vadd.f32 %v1277_v5, %v744_v2  ;;  %v8290_v30 = vadd.f32 %v1274_v53, %v741_v35 }
  0xec   : > { %12744 = vst [vmem:[#allocation42_spill] sm:$0xff] %v8262_v34  ;;  %12746 = vst [vmem:[#allocation44_spill] sm:$0xff] %v8266_v29  ;;  %1815 = vperm.xlu1 %7316, %v1737_v54   ;;  %v749_v41 = vmul.f32 %v8038_v42, %v7960_v10  ;;  %v750_v22 = vmul.f32 %v8040_v43, %v7960_v10  ;;  %v751_v12 = vmul.f32 %v8049_v49, %v7960_v10 }
  0xed   : > { %12747 = vst [vmem:[#allocation45_spill] sm:$0xff] %v8268_v46  ;;  %12748 = vst [vmem:[#allocation46_spill] sm:$0xff] %v8270_v7  ;;  %v8276_v26 = vpop.permute.xlu1 %565  ;;  %v8300_v20 = vadd.f32 %v1276_v57, %v743_v18  ;;  %v752_v58 = vmul.f32 %v8051_v62, %v7960_v10  ;;  %v1282_v35 = vmul.f32 %v8055_v48, %v7962_v11  ;;  %v1741_v57 = vld [vmem:[%s12649_s2 + $0x38] sm:$0xff] }
  0xee   : > { %12749 = vst [vmem:[#allocation47_spill] sm:$0xff] %v8272_v45  ;;  %12750 = vst [vmem:[#allocation48_spill] sm:$0xff] %v8274_v8  ;;  %v8298_v61 = vpop.permute.xlu0 %400  ;;  %v1283_v53 = vmul.f32 %v8057_v1, %v7962_v11  ;;  %v1284_v39 = vmul.f32 %v8059_v6, %v7962_v11  ;;  %v1285_v52 = vmul.f32 %v8061_v9, %v7962_v11 }
  0xef   : > { %12751 = vst [vmem:[#allocation49_spill] sm:$0xff] %v8284_v3  ;;  %12752 = vst [vmem:[#allocation50_spill] sm:$0xff] %v8286_v4  ;;  %v757_v59 = vmul.f32 %v8038_v42, %v7968_v13  ;;  %v758_v15 = vmul.f32 %v8040_v43, %v7968_v13  ;;  %1860 = vperm.xlu0 %7315, %v1746_v40   ;;  %v760_v10 = vmul.f32 %v8051_v62, %v7968_v13  ;;  %v1750_v4 = vld [vmem:[%s12649_s2 + $0x80] sm:$0xff]  ;;  %v1743_v3 = vld [vmem:[%s12649_s2 + $0x48] sm:$0xff] }
  0xf0   : > { %12753 = vst [vmem:[#allocation51_spill] sm:$0xff] %v8288_v60  ;;  %12754 = vst [vmem:[#allocation52_spill] sm:$0xff] %v8290_v30  ;;  %1825 = vperm.xlu1 %7316, %v1739_v38   ;;  %v1290_v63 = vmul.f32 %v8055_v48, %v7970_v14  ;;  %v1291_v51 = vmul.f32 %v8057_v1, %v7970_v14  ;;  %v1293_v11 = vmul.f32 %v8061_v9, %v7970_v14 }
  0xf1   : > { %12755 = vst [vmem:[#allocation53_spill] sm:$0xff] %v8300_v20  ;;  %v8324_v55 = vpop.permute.xlu1 %575  ;;  %v759_v56 = vmul.f32 %v8049_v49, %v7968_v13  ;;  %v1292_v0 = vmul.f32 %v8059_v6, %v7970_v14  ;;  %v766_v2 = vmul.f32 %v8040_v43, %v7976_v16  ;;  %v1299_v5 = vmul.f32 %v8057_v1, %v7978_v17 }
  0xf2   : > { %v8340_v54 = vpop.permute.xlu0 %410  ;;  %v765_v18 = vmul.f32 %v8038_v42, %v7976_v16  ;;  %v768_v40 = vmul.f32 %v8051_v62, %v7976_v16  ;;  %v1298_v13 = vmul.f32 %v8055_v48, %v7978_v17  ;;  %v1301_v14 = vmul.f32 %v8061_v9, %v7978_v17 }
  0xf3   : > { %1870 = vperm.xlu0 %7315, %v1748_v50   ;;  %v8350_v38 = vadd.f32 %v1283_v53, %v750_v22  ;;  %v8352_v20 = vadd.f32 %v1285_v52, %v752_v58  ;;  %v8354_v30 = vadd.f32 %v1282_v35, %v749_v41  ;;  %v8364_v8 = vadd.f32 %v1284_v39, %v751_v12 }
  0xf4   : > { %1835 = vperm.xlu1 %7316, %v1741_v57   ;;  %v8366_v50 = vadd.f32 %v1291_v51, %v758_v15  ;;  %v8368_v22 = vadd.f32 %v1293_v11, %v760_v10  ;;  %v8370_v58 = vadd.f32 %v1290_v63, %v757_v59  ;;  %v767_v41 = vmul.f32 %v8049_v49, %v7976_v16 }
  0xf5   : > { %12756 = vst [vmem:[#allocation54_spill] sm:$0xff] %v8350_v38  ;;  %12757 = vst [vmem:[#allocation55_spill] sm:$0xff] %v8352_v20  ;;  %v8356_v60 = vpop.permute.xlu1 %585  ;;  %v1300_v35 = vmul.f32 %v8059_v6, %v7978_v17  ;;  %v8378_v52 = vadd.f32 %v1292_v0, %v759_v56  ;;  %v8380_v57 = vadd.f32 %v1299_v5, %v766_v2 }
  0xf6   : > { %12758 = vst [vmem:[#allocation56_spill] sm:$0xff] %v8354_v30  ;;  %12759 = vst [vmem:[#allocation57_spill] sm:$0xff] %v8364_v8  ;;  %v8376_v53 = vpop.permute.xlu0 %420  ;;  %v773_v12 = vmul.f32 %v8038_v42, %v7985_v19  ;;  %v774_v39 = vmul.f32 %v8040_v43, %v7985_v19  ;;  %v8386_v59 = vadd.f32 %v1301_v14, %v768_v40 }
  0xf7   : > { %12760 = vst [vmem:[#allocation58_spill] sm:$0xff] %v8366_v50  ;;  %12761 = vst [vmem:[#allocation59_spill] sm:$0xff] %v8368_v22  ;;  %v8388_v15 = vadd.f32 %v1298_v13, %v765_v18  ;;  %v775_v16 = vmul.f32 %v8049_v49, %v7985_v19  ;;  %v776_v17 = vmul.f32 %v8051_v62, %v7985_v19  ;;  %1880 = vperm.xlu0 %7315, %v1750_v4   ;;  %v1752_v19 = vld [vmem:[%s12649_s2 + $0x90] sm:$0xff] }
  0xf8   : > { %12762 = vst [vmem:[#allocation60_spill] sm:$0xff] %v8370_v58  ;;  %12763 = vst [vmem:[#allocation61_spill] sm:$0xff] %v8378_v52  ;;  %v1306_v10 = vmul.f32 %v8055_v48, %v7987_v21  ;;  %1845 = vperm.xlu1 %7316, %v1743_v3   ;;  %v1307_v63 = vmul.f32 %v8057_v1, %v7987_v21  ;;  %v1308_v51 = vmul.f32 %v8059_v6, %v7987_v21  ;;  %v1745_v3 = vld [vmem:[%s12649_s2 + $0x58] sm:$0xff] }
  0xf9   : > { %12764 = vst [vmem:[#allocation62_spill] sm:$0xff] %v8380_v57  ;;  %12765 = vst [vmem:[#allocation63_spill] sm:$0xff] %v8386_v59  ;;  %v1309_v11 = vmul.f32 %v8061_v9, %v7987_v21  ;;  %v781_v56 = vmul.f32 %v8038_v42, %v7993_v23  ;;  %v8404_v0 = vpop.permute.xlu1 %595  ;;  %v782_v4 = vmul.f32 %v8040_v43, %v7993_v23 }
  0xfa   : > { %12766 = vst [vmem:[#allocation64_spill] sm:$0xff] %v8388_v15  ;;  %v783_v2 = vmul.f32 %v8049_v49, %v7993_v23  ;;  %v784_v21 = vmul.f32 %v8051_v62, %v7993_v23  ;;  %v1314_v5 = vmul.f32 %v8055_v48, %v7995_v24  ;;  %v8420_v18 = vpop.permute.xlu0 %430  ;;  %v1315_v40 = vmul.f32 %v8057_v1, %v7995_v24 }
  0xfb   : > { %v1316_v13 = vmul.f32 %v8059_v6, %v7995_v24  ;;  %v1317_v14 = vmul.f32 %v8061_v9, %v7995_v24  ;;  %v789_v15 = vmul.f32 %v8038_v42, %v8001_v27  ;;  %v790_v23 = vmul.f32 %v8040_v43, %v8001_v27  ;;  %1890 = vperm.xlu0 %7315, %v1752_v19   ;;  %v1747_v19 = vld [vmem:[%s12649_s2 + $0x68] sm:$0xff] }
  0xfc   : > { %v791_v59 = vmul.f32 %v8049_v49, %v8001_v27  ;;  %v792_v57 = vmul.f32 %v8051_v62, %v8001_v27  ;;  %1855 = vperm.xlu1 %7316, %v1745_v3   ;;  %v1322_v52 = vmul.f32 %v8055_v48, %v8003_v28  ;;  %v1323_v24 = vmul.f32 %v8057_v1, %v8003_v28  ;;  %v1754_v27 = vld [vmem:[%s12649_s2 + $0xa0] sm:$0xff] }
  0xfd   : > { %v1324_v58 = vmul.f32 %v8059_v6, %v8003_v28  ;;  %v1325_v22 = vmul.f32 %v8061_v9, %v8003_v28  ;;  %v8444_v50 = vpop.permute.xlu1 %605  ;;  %v8454_v8 = vadd.f32 %v1300_v35, %v767_v41  ;;  %v8456_v30 = vadd.f32 %v1307_v63, %v774_v39 }
  0xfe   : > { %v8452_v3 = vpop.permute.xlu0 %440  ;;  %v8458_v20 = vadd.f32 %v1309_v11, %v776_v17  ;;  %v8460_v38 = vadd.f32 %v1306_v10, %v773_v12  ;;  %v798_v28 = vmul.f32 %v8040_v43, %v8012_v31  ;;  %v1331_v45 = vmul.f32 %v8057_v1, %v8014_v32  ;;  %v1756_v17 = vld [vmem:[%s12649_s2 + $0xb0] sm:$0xff] }
  0xff   : > { %12767 = vst [vmem:[#allocation65_spill] sm:$0xff] %v8454_v8  ;;  %12768 = vst [vmem:[#allocation66_spill] sm:$0xff] %v8456_v30  ;;  %v8466_v7 = vadd.f32 %v1308_v51, %v775_v16  ;;  %v8468_v46 = vadd.f32 %v1315_v40, %v782_v4  ;;  %1900 = vperm.xlu0 %7315, %v1754_v27   ;;  %v8470_v41 = vadd.f32 %v1317_v14, %v784_v21  ;;  %v1749_v16 = vld [vmem:[%s12649_s2 + $0x78] sm:$0xff] }
 0x100   : > { %12769 = vst [vmem:[#allocation67_spill] sm:$0xff] %v8458_v20  ;;  %12770 = vst [vmem:[#allocation68_spill] sm:$0xff] %v8460_v38  ;;  %1865 = vperm.xlu1 %7316, %v1747_v19   ;;  %v8472_v35 = vadd.f32 %v1314_v5, %v781_v56  ;;  %v8474_v39 = vadd.f32 %v1316_v13, %v783_v2  ;;  %v8484_v10 = vadd.f32 %v1323_v24, %v790_v23  ;;  %v1751_v23 = vld [vmem:[%s12649_s2 + $0x88] sm:$0xff] }
 0x101   : > { %12771 = vst [vmem:[#allocation69_spill] sm:$0xff] %v8466_v7  ;;  %12772 = vst [vmem:[#allocation70_spill] sm:$0xff] %v8468_v46  ;;  %v8476_v12 = vpop.permute.xlu1 %615  ;;  %v8486_v63 = vadd.f32 %v1325_v22, %v792_v57  ;;  %v8488_v51 = vadd.f32 %v1322_v52, %v789_v15  ;;  %v8490_v11 = vadd.f32 %v1324_v58, %v791_v59  ;;  %v12781_v24 = vld [vmem:[#allocation10_spill] sm:$0xff]  ;;  %v1753_v46 = vld [vmem:[%s12649_s2 + $0x98] sm:$0xff] }
 0x102   : > { %12773 = vst [vmem:[#allocation71_spill] sm:$0xff] %v8470_v41  ;;  %12774 = vst [vmem:[#allocation72_spill] sm:$0xff] %v8472_v35  ;;  %v797_v56 = vmul.f32 %v8038_v42, %v8012_v31  ;;  %v799_v4 = vmul.f32 %v8049_v49, %v8012_v31  ;;  %v800_v2 = vmul.f32 %v8051_v62, %v8012_v31  ;;  %v8500_v5 = vpop.permute.xlu0 %450  ;;  %v1760_v41 = vld [vmem:[%s12649_s2 + $0xd0] sm:$0xff] }
 0x103   : > { %12775 = vst [vmem:[#allocation73_spill] sm:$0xff] %v8474_v39  ;;  %12776 = vst [vmem:[#allocation74_spill] sm:$0xff] %v8484_v10  ;;  %v1330_v21 = vmul.f32 %v8055_v48, %v8014_v32  ;;  %v1332_v22 = vmul.f32 %v8059_v6, %v8014_v32  ;;  %v1333_v58 = vmul.f32 %v8061_v9, %v8014_v32  ;;  %1910 = vperm.xlu0 %7315, %v1756_v17   ;;  %v12786_v7 = vld [vmem:[#allocation18_spill] sm:$0xff] }
 0x104   : > { %12777 = vst [vmem:[#allocation75_spill] sm:$0xff] %v8486_v63  ;;  %12778 = vst [vmem:[#allocation76_spill] sm:$0xff] %v8488_v51  ;;  %v805_v52 = vmul.f32 %v8038_v42, %v8027_v36  ;;  %v8508_v57 = vadd.f32 %v1331_v45, %v798_v28  ;;  %v806_v59 = vmul.f32 %v8040_v43, %v8027_v36  ;;  %1875 = vperm.xlu1 %7316, %v1749_v16   ;;  %v12782_v16 = vld [vmem:[#allocation11_spill] sm:$0xff] }
 0x105   : > { %12779 = vst [vmem:[#allocation77_spill] sm:$0xff] %v8490_v11  ;;  %v807_v31 = vmul.f32 %v8049_v49, %v8027_v36  ;;  %v808_v15 = vmul.f32 %v8051_v62, %v8027_v36  ;;  %v1338_v40 = vmul.f32 %v8055_v48, %v8029_v37  ;;  %v1339_v32 = vmul.f32 %v8057_v1, %v8029_v37  ;;  %v8524_v14 = vpop.permute.xlu1 %625  ;;  %v1758_v36 = vld [vmem:[%s12649_s2 + $0xc0] sm:$0xff] }
 0x106   : > { %12780 = vst [vmem:[#allocation78_spill] sm:$0xff] %v8508_v57  ;;  %v1340_v45 = vmul.f32 %v8059_v6, %v8029_v37  ;;  %v1341_v13 = vmul.f32 %v8061_v9, %v8029_v37  ;;  %v813_v27 = vmul.f32 %v8038_v42, %v12781_v24  ;;  %v814_v19 = vmul.f32 %v8040_v43, %v12781_v24  ;;  %v8540_v17 = vpop.permute.xlu0 %460 }
 0x107   : > { %v815_v28 = vmul.f32 %v8049_v49, %v12781_v24  ;;  %v816_v37 = vmul.f32 %v8051_v62, %v12781_v24  ;;  %v1346_v57 = vmul.f32 %v8055_v48, %v12782_v16  ;;  %v1347_v11 = vmul.f32 %v8057_v1, %v12782_v16  ;;  %1920 = vperm.xlu0 %7315, %v1758_v36  }
 0x108   : > { %v1348_v51 = vmul.f32 %v8059_v6, %v12782_v16  ;;  %v1349_v63 = vmul.f32 %v8061_v9, %v12782_v16  ;;  %1885 = vperm.xlu1 %7316, %v1751_v23   ;;  %v8550_v10 = vadd.f32 %v1333_v58, %v800_v2  ;;  %v8552_v39 = vadd.f32 %v1330_v21, %v797_v56 }
 0x109   : > { %v8554_v24 = vadd.f32 %v1332_v22, %v799_v4  ;;  %v8556_v35 = vpop.permute.xlu1 %635  ;;  %v690_v36 = vmul.f32 %v8040_v43, %v12786_v7  ;;  %v692_v2 = vmul.f32 %v8051_v62, %v12786_v7  ;;  %v689_v56 = vmul.f32 %v8038_v42, %v12786_v7 }
 0x10a   : > { %12783 = vst [vmem:[#allocation10_spill] sm:$0xff] %v8550_v10  ;;  %12784 = vst [vmem:[#allocation11_spill] sm:$0xff] %v8552_v39  ;;  %v8570_v4 = vadd.f32 %v1339_v32, %v806_v59  ;;  %v8572_v21 = vpop.permute.xlu0 %470  ;;  %v691_v22 = vmul.f32 %v8049_v49, %v12786_v7  ;;  %v8576_v58 = vadd.f32 %v1341_v13, %v808_v15  ;;  %v12795_v59 = vld [vmem:[#allocation15_spill] sm:$0xff]  ;;  %v12806_v13 = vld [vmem:[#allocation21_spill] sm:$0xff] }
 0x10b   : > { %12785 = vst [vmem:[#allocation79_spill] sm:$0xff] %v8554_v24  ;;  %v8578_v23 = vadd.f32 %v1338_v40, %v805_v52  ;;  %v8580_v16 = vadd.f32 %v1340_v45, %v807_v31  ;;  %v8582_v24 = vadd.f32 %v1347_v11, %v814_v19  ;;  %v8584_v39 = vadd.f32 %v1349_v63, %v816_v37  ;;  %v1762_v11 = vld [vmem:[%s12649_s2 + $0xe0] sm:$0xff]  ;;  %v12800_v31 = vld [vmem:[#allocation19_spill] sm:$0xff] }
 0x10c   : > { %12787 = vst [vmem:[#allocation18_spill] sm:$0xff] %v8570_v4  ;;  %12788 = vst [vmem:[#allocation80_spill] sm:$0xff] %v8576_v58  ;;  %v8586_v10 = vadd.f32 %v1346_v57, %v813_v27  ;;  %v8588_v38 = vadd.f32 %v1348_v51, %v815_v28  ;;  %v8592_v32 = vmul.f32 %v8038_v42, %v12795_v59  ;;  %1930 = vperm.xlu0 %7315, %v1760_v41   ;;  %v1755_v57 = vld [vmem:[%s12649_s2 + $0xa8] sm:$0xff]  ;;  %v12802_v40 = vld [vmem:[#allocation20_spill] sm:$0xff] }
 0x10d   : > { %12789 = vst [vmem:[#allocation81_spill] sm:$0xff] %v8578_v23  ;;  %12790 = vst [vmem:[#allocation82_spill] sm:$0xff] %v8580_v16  ;;  %v8596_v7 = vmul.f32 %v8040_v43, %v12795_v59  ;;  %v8600_v52 = vmul.f32 %v8049_v49, %v12795_v59  ;;  %1895 = vperm.xlu1 %7316, %v1753_v46   ;;  %v8604_v63 = vmul.f32 %v8051_v62, %v12795_v59  ;;  %v8606_v51 = vpop.permute.xlu1 %645  ;;  %v12804_v46 = vld [vmem:[#allocation23_spill] sm:$0xff]  ;;  %v12813_v59 = vld [vmem:[#allocation22_spill] sm:$0xff] }
 0x10e   : > { %12791 = vst [vmem:[#allocation83_spill] sm:$0xff] %v8582_v24  ;;  %12792 = vst [vmem:[#allocation84_spill] sm:$0xff] %v8584_v39  ;;  %v8615_v15 = vadd.f32 %v12800_v31, %v690_v36  ;;  %v8618_v41 = vadd.f32 %v12802_v40, %v692_v2  ;;  %v8621_v45 = vadd.f32 %v12804_v46, %v689_v56  ;;  %v8635_v37 = vpop.permute.xlu0 %480  ;;  %v12810_v36 = vld [vmem:[#allocation24_spill] sm:$0xff] }
 0x10f   : > { %12793 = vst [vmem:[#allocation85_spill] sm:$0xff] %v8586_v10  ;;  %12794 = vst [vmem:[#allocation86_spill] sm:$0xff] %v8588_v38  ;;  %v8625_v27 = vmul.f32 %v8038_v42, %v12806_v13  ;;  %v8629_v19 = vmul.f32 %v8040_v43, %v12806_v13  ;;  %v8633_v28 = vmul.f32 %v8049_v49, %v12806_v13 }
 0x110   : > { %12796 = vst [vmem:[#allocation15_spill] sm:$0xff] %v8592_v32  ;;  %12797 = vst [vmem:[#allocation87_spill] sm:$0xff] %v8596_v7  ;;  %v8638_v2 = vadd.f32 %v12810_v36, %v691_v22  ;;  %v8642_v56 = vmul.f32 %v8051_v62, %v12806_v13  ;;  %v8646_v31 = vmul.f32 %v8040_v43, %v12813_v59  ;;  %1940 = vperm.xlu0 %7315, %v1762_v11  }
 0x111   : > { %12798 = vst [vmem:[#allocation88_spill] sm:$0xff] %v8600_v52  ;;  %12799 = vst [vmem:[#allocation89_spill] sm:$0xff] %v8604_v63  ;;  %v8650_v40 = vmul.f32 %v8051_v62, %v12813_v59  ;;  %v8654_v46 = vmul.f32 %v8038_v42, %v12813_v59  ;;  %1905 = vperm.xlu1 %7316, %v1755_v57   ;;  %v8666_v36 = vmul.f32 %v8049_v49, %v12813_v59  ;;  %v8684_v57 = vpop.permute.xlu1 %655  ;;  %v1764_v59 = vld [vmem:[%s12649_s2 + $0xf0] sm:$0xff] }
 0x112   : > { %12801 = vst [vmem:[#allocation19_spill] sm:$0xff] %v8615_v15  ;;  %12803 = vst [vmem:[#allocation20_spill] sm:$0xff] %v8618_v41  ;;  %v8708_v52 = vpop.permute.xlu0 %490  ;;  %v8783_v58 = vmul.f32 %v8049_v49, %v8276_v26  ;;  %v8787_v4 = vmul.f32 %v8051_v62, %v8276_v26  ;;  %v8799_v20 = vmul.f32 %v8049_v49, %v8298_v61 }
 0x113   : > { %12805 = vst [vmem:[#allocation23_spill] sm:$0xff] %v8621_v45  ;;  %12807 = vst [vmem:[#allocation21_spill] sm:$0xff] %v8625_v27  ;;  %v12819_v27 = vld [vmem:[#allocation32_spill] sm:$0xff]  ;;  %v8816_v30 = vmul.f32 %v8049_v49, %v8324_v55  ;;  %v8820_v8 = vmul.f32 %v8051_v62, %v8324_v55  ;;  %v8848_v29 = vmul.f32 %v8038_v42, %v8356_v60 }
 0x114   : > { %12808 = vst [vmem:[#allocation90_spill] sm:$0xff] %v8629_v19  ;;  %12809 = vst [vmem:[#allocation91_spill] sm:$0xff] %v8633_v28  ;;  %v12814_v19 = vld [vmem:[#allocation27_spill] sm:$0xff]  ;;  %v8682_v11 = vmul.f32 %v8040_v43, %v12819_v27  ;;  %1950 = vperm.xlu0 %7315, %v1764_v59   ;;  %v8761_v59 = vmul.f32 %v8040_v43, %v8256_v47  ;;  %v8852_v25 = vmul.f32 %v8040_v43, %v8356_v60 }
 0x115   : > { %12811 = vst [vmem:[#allocation24_spill] sm:$0xff] %v8638_v2  ;;  %12812 = vst [vmem:[#allocation92_spill] sm:$0xff] %v8642_v56  ;;  %v8658_v22 = vmul.f32 %v8038_v42, %v12814_v19  ;;  %v8662_v13 = vmul.f32 %v8040_v43, %v12814_v19  ;;  %v8670_v56 = vmul.f32 %v8049_v49, %v12814_v19  ;;  %v8754_v23 = vpop.permute.xlu1 %665 }
 0x116   : > { %v8674_v28 = vmul.f32 %v8051_v62, %v12814_v19  ;;  %v8694_v19 = vmul.f32 %v8049_v49, %v12819_v27  ;;  %12833 = vst [vmem:[#allocation101_spill] sm:$0xff] %v8783_v58  ;;  %12834 = vst [vmem:[#allocation102_spill] sm:$0xff] %v8787_v4  ;;  %v12835_v58 = vmov 1   ;;  %v8812_v4 = vmul.f32 %v8040_v43, %v8324_v55 }
 0x117   : > { %12815 = vst [vmem:[#allocation22_spill] sm:$0xff] %v8658_v22  ;;  %12816 = vst [vmem:[#allocation27_spill] sm:$0xff] %v8662_v13  ;;  %v8678_v22 = vmul.f32 %v8038_v42, %v12819_v27  ;;  %v1757_v13 = vld [vmem:[%s12649_s2 + $0xb8] sm:$0xff]  ;;  %v8856_v34 = vmul.f32 %v8049_v49, %v8356_v60  ;;  %v8864_v33 = vmul.f32 %v8038_v42, %v8376_v53 }
 0x118   : > { %12817 = vst [vmem:[#allocation93_spill] sm:$0xff] %v8670_v56  ;;  %12818 = vst [vmem:[#allocation94_spill] sm:$0xff] %v8674_v28  ;;  %v8698_v28 = vmul.f32 %v8051_v62, %v12819_v27  ;;  %v12820_v56 = vld [vmem:[#allocation37_spill] sm:$0xff]  ;;  %v12825_v27 = vld [vmem:[#allocation38_spill] sm:$0xff]  ;;  %1915 = vperm.xlu1 %7316, %v1757_v13   ;;  %7317 = vset.pattern.permute.xlu0 %v12835_v58  ;;  %v8868_v44 = vmul.f32 %v8040_v43, %v8376_v53 }
 0x119   : > { %v8702_v63 = vmul.f32 %v8038_v42, %v12820_v56  ;;  %v8706_v7 = vmul.f32 %v8040_v43, %v12820_v56  ;;  %v8712_v32 = vmul.f32 %v8049_v49, %v12820_v56  ;;  %v8716_v38 = vmul.f32 %v8051_v62, %v12820_v56  ;;  %v1759_v13 = vld [vmem:[%s12649_s2 + $0xc8] sm:$0xff]  ;;  %12837 = vst [vmem:[#allocation104_spill] sm:$0xff] %v8812_v4 }
 0x11a   : > { %v8720_v10 = vmul.f32 %v8038_v42, %v12825_v27  ;;  %v8732_v39 = vmul.f32 %v8051_v62, %v12825_v27  ;;  %12838 = vst [vmem:[#allocation105_spill] sm:$0xff] %v8816_v30  ;;  %12839 = vst [vmem:[#allocation106_spill] sm:$0xff] %v8820_v8  ;;  %v8832_v4 = vmul.f32 %v8040_v43, %v8340_v54 }
 0x11b   : > { %12821 = vst [vmem:[#allocation32_spill] sm:$0xff] %v8702_v63  ;;  %12822 = vst [vmem:[#allocation37_spill] sm:$0xff] %v8706_v7  ;;  %v8724_v63 = vmul.f32 %v8040_v43, %v12825_v27  ;;  %v8728_v7 = vmul.f32 %v8049_v49, %v12825_v27  ;;  %v8752_v27 = vmul.f32 %v8038_v42, %v8256_v47 }
 0x11c   : > { %12823 = vst [vmem:[#allocation95_spill] sm:$0xff] %v8712_v32  ;;  %12824 = vst [vmem:[#allocation96_spill] sm:$0xff] %v8716_v38  ;;  %v12826_v32 = vld [vmem:[#allocation39_spill] sm:$0xff]  ;;  %1925 = vperm.xlu1 %7316, %v1759_v13   ;;  %v8836_v30 = vmul.f32 %v8049_v49, %v8340_v54  ;;  %v8892_v2 = vmul.f32 %v8051_v62, %v8404_v0  ;;  %v8924_v45 = vmul.f32 %v8040_v43, %v8444_v50 }
 0x11d   : > { %v8736_v56 = vmul.f32 %v8038_v42, %v12826_v32  ;;  %v8740_v38 = vmul.f32 %v8040_v43, %v12826_v32  ;;  %v8744_v24 = vmul.f32 %v8049_v49, %v12826_v32  ;;  %v8748_v16 = vmul.f32 %v8051_v62, %v12826_v32  ;;  %v1761_v13 = vld [vmem:[%s12649_s2 + $0xd8] sm:$0xff]  ;;  %12842 = vst [vmem:[#allocation107_spill] sm:$0xff] %v8852_v25 }
 0x11e   : > { %v8769_v32 = vmul.f32 %v8051_v62, %v8256_v47  ;;  %12843 = vst [vmem:[#allocation108_spill] sm:$0xff] %v8856_v34  ;;  %v8876_v25 = vmul.f32 %v8051_v62, %v8376_v53  ;;  %v8888_v34 = vmul.f32 %v8049_v49, %v8404_v0  ;;  %12848 = vst [vmem:[#allocation113_spill] sm:$0xff] %v8892_v2 }
 0x11f   : > { %12827 = vst [vmem:[#allocation38_spill] sm:$0xff] %v8736_v56  ;;  %12828 = vst [vmem:[#allocation39_spill] sm:$0xff] %v8740_v38  ;;  %v8765_v38 = vmul.f32 %v8049_v49, %v8256_v47  ;;  %v8779_v56 = vmul.f32 %v8040_v43, %v8276_v26  ;;  %v8791_v47 = vmul.f32 %v8038_v42, %v8298_v61 }
 0x120   : > { %12829 = vst [vmem:[#allocation97_spill] sm:$0xff] %v8744_v24  ;;  %12830 = vst [vmem:[#allocation98_spill] sm:$0xff] %v8748_v16  ;;  %v8773_v16 = vmul.f32 %v8038_v42, %v8276_v26  ;;  %v8775_v24 = vpop.permute.xlu0 %500  ;;  %v8808_v26 = vmul.f32 %v8038_v42, %v8324_v55  ;;  %v8840_v55 = vmul.f32 %v8051_v62, %v8340_v54  ;;  %1935 = vperm.xlu1 %7316, %v1761_v13   ;;  %v1763_v13 = vld [vmem:[%s12649_s2 + $0xe8] sm:$0xff] }
 0x121   : > { %12832 = vst [vmem:[#allocation100_spill] sm:$0xff] %v8779_v56  ;;  %v8803_v56 = vmul.f32 %v8051_v62, %v8298_v61  ;;  %12847 = vst [vmem:[#allocation112_spill] sm:$0xff] %v8888_v34  ;;  %v8906_v34 = vmul.f32 %v8040_v43, %v8420_v18  ;;  %v8914_v2 = vmul.f32 %v8051_v62, %v8420_v18 }
 0x122   : > { %12831 = vst [vmem:[#allocation99_spill] sm:$0xff] %v8773_v16  ;;  %v8795_v16 = vmul.f32 %v8040_v43, %v8298_v61  ;;  %12836 = vst [vmem:[#allocation103_spill] sm:$0xff] %v8808_v26  ;;  %v12840_v61 = vld [vmem:[#allocation6_spill] sm:$0xff]  ;;  %v8828_v26 = vmul.f32 %v8038_v42, %v8340_v54  ;;  %v8860_v54 = vmul.f32 %v8051_v62, %v8356_v60 }
 0x123   : > { %1078 = vperm.xlu0 %7317, %v12840_v61   ;;  %v8842_v61 = vpop.permute.xlu1 %950  ;;  %12841 = vst [vmem:[#allocation6_spill] sm:$0xff] %v8848_v29  ;;  %v8872_v29 = vmul.f32 %v8049_v49, %v8376_v53  ;;  %v8880_v60 = vmul.f32 %v8038_v42, %v8404_v0  ;;  %v7513_v53 = vld [vmem:[%s12648_s1 + $0x118] sm:$0xff]  ;;  %12851 = vst [vmem:[#allocation116_spill] sm:$0xff] %v8924_v45  ;;  %v8928_v41 = vmul.f32 %v8049_v49, %v8444_v50 }
 0x124   : > { %v8844_v8 = vpop.permute.xlu0 %510  ;;  %12844 = vst [vmem:[#allocation109_spill] sm:$0xff] %v8860_v54  ;;  %v8884_v54 = vmul.f32 %v8040_v43, %v8404_v0  ;;  %v8910_v0 = vmul.f32 %v8049_v49, %v8420_v18  ;;  %v8932_v15 = vmul.f32 %v8051_v62, %v8444_v50  ;;  %v8946_v45 = vmul.f32 %v8049_v49, %v8452_v3 }
 0x125   : > { %12845 = vst [vmem:[#allocation110_spill] sm:$0xff] %v8880_v60  ;;  %v8920_v60 = vmul.f32 %v8038_v42, %v8444_v50  ;;  %12852 = vst [vmem:[#allocation117_spill] sm:$0xff] %v8928_v41  ;;  %v8950_v41 = vmul.f32 %v8051_v62, %v8452_v3  ;;  %1945 = vperm.xlu1 %7316, %v1763_v13   ;;  %v8954_v50 = vmul.f32 %v8038_v42, %v8476_v12 }
 0x126   : > { %12846 = vst [vmem:[#allocation111_spill] sm:$0xff] %v8884_v54  ;;  %v8902_v54 = vmul.f32 %v8038_v42, %v8420_v18  ;;  %12849 = vst [vmem:[#allocation114_spill] sm:$0xff] %v8910_v0  ;;  %v8938_v0 = vmul.f32 %v8038_v42, %v8452_v3  ;;  %v8974_v13 = vmul.f32 %v8038_v42, %v8500_v5 }
 0x127   : > { %1086 = vperm.xlu0 %7317, %v7513_v53   ;;  %v8916_v53 = vpop.permute.xlu1 %954  ;;  %12850 = vst [vmem:[#allocation115_spill] sm:$0xff] %v8920_v60  ;;  %12853 = vst [vmem:[#allocation118_spill] sm:$0xff] %v8932_v15  ;;  %v8942_v60 = vmul.f32 %v8040_v43, %v8452_v3  ;;  %v8958_v15 = vmul.f32 %v8040_v43, %v8476_v12  ;;  %v1765_v3 = vld [vmem:[%s12649_s2 + $0xf8] sm:$0xff] }
 0x128   : > { %v8934_v18 = vpop.permute.xlu0 %520  ;;  %12854 = vst [vmem:[#allocation119_spill] sm:$0xff] %v8938_v0  ;;  %12856 = vst [vmem:[#allocation121_spill] sm:$0xff] %v8946_v45  ;;  %v8962_v0 = vmul.f32 %v8049_v49, %v8476_v12  ;;  %v8966_v45 = vmul.f32 %v8051_v62, %v8476_v12  ;;  %v8986_v12 = vmul.f32 %v8051_v62, %v8500_v5 }
 0x129   : > { %12855 = vst [vmem:[#allocation120_spill] sm:$0xff] %v8942_v60  ;;  %12857 = vst [vmem:[#allocation122_spill] sm:$0xff] %v8954_v50  ;;  %v12861_v60 = vld [vmem:[#allocation7_spill] sm:$0xff]  ;;  %v8996_v50 = vmul.f32 %v8040_v43, %v8524_v14  ;;  %1955 = vperm.xlu1 %7316, %v1765_v3   ;;  %v9045_v3 = vmul.f32 %v8038_v42, %v8572_v21 }
 0x12a   : > { %12858 = vst [vmem:[#allocation123_spill] sm:$0xff] %v8958_v15  ;;  %12859 = vst [vmem:[#allocation124_spill] sm:$0xff] %v8962_v0  ;;  %v8978_v15 = vmul.f32 %v8040_v43, %v8500_v5  ;;  %v8982_v0 = vmul.f32 %v8049_v49, %v8500_v5 }
 0x12b   : > { %12860 = vst [vmem:[#allocation125_spill] sm:$0xff] %v8966_v45  ;;  %1090 = vperm.xlu0 %7317, %v12861_v60   ;;  %12862 = vst [vmem:[#allocation7_spill] sm:$0xff] %v8974_v13  ;;  %v8988_v60 = vpop.permute.xlu1 %962  ;;  %v8992_v45 = vmul.f32 %v8038_v42, %v8524_v14  ;;  %v9000_v13 = vmul.f32 %v8049_v49, %v8524_v14 }
 0x12c   : > { %12863 = vst [vmem:[#allocation126_spill] sm:$0xff] %v8982_v0  ;;  %12864 = vst [vmem:[#allocation127_spill] sm:$0xff] %v8986_v12  ;;  %v9004_v0 = vmul.f32 %v8051_v62, %v8524_v14  ;;  %v9006_v5 = vpop.permute.xlu0 %530  ;;  %v9010_v12 = vmul.f32 %v8038_v42, %v8540_v17  ;;  %v9026_v14 = vmul.f32 %v8038_v42, %v8556_v35 }
 0x12d   : > { %12865 = vst [vmem:[#allocation128_spill] sm:$0xff] %v8992_v45  ;;  %12866 = vst [vmem:[#allocation129_spill] sm:$0xff] %v8996_v50  ;;  %v9014_v45 = vmul.f32 %v8040_v43, %v8540_v17  ;;  %v9018_v50 = vmul.f32 %v8049_v49, %v8540_v17  ;;  %7318 = vset.pattern.permute.xlu1 %v12835_v58  ;;  %v7516_v58 = vld [vmem:[%s12648_s1 + $0x128] sm:$0xff] }
 0x12e   : > { %12867 = vst [vmem:[#allocation130_spill] sm:$0xff] %v9000_v13  ;;  %12868 = vst [vmem:[#allocation131_spill] sm:$0xff] %v9004_v0  ;;  %v9022_v13 = vmul.f32 %v8051_v62, %v8540_v17  ;;  %v9030_v0 = vmul.f32 %v8040_v43, %v8556_v35  ;;  %v7514_v17 = vld [vmem:[%s12648_s1 + $0x138] sm:$0xff]  ;;  %1094 = vperm.xlu1 %7318, %v7516_v58   ;;  %v9134_v58 = vmul.f32 %v8051_v62, %v8708_v52 }
 0x12f   : > { %12869 = vst [vmem:[#allocation132_spill] sm:$0xff] %v9010_v12  ;;  %12870 = vst [vmem:[#allocation133_spill] sm:$0xff] %v9014_v45  ;;  %v9034_v12 = vmul.f32 %v8049_v49, %v8556_v35  ;;  %1102 = vperm.xlu0 %7317, %v7514_v17   ;;  %v9063_v17 = vmul.f32 %v8038_v42, %v8606_v51 }
 0x130   : > { %12871 = vst [vmem:[#allocation134_spill] sm:$0xff] %v9018_v50  ;;  %12872 = vst [vmem:[#allocation135_spill] sm:$0xff] %v9022_v13  ;;  %v9038_v50 = vmul.f32 %v8051_v62, %v8556_v35  ;;  %v9057_v35 = vmul.f32 %v8051_v62, %v8572_v21  ;;  %v12921_v13 = vld [vmem:[#allocation16_spill] sm:$0xff] }
 0x131   : > { %12873 = vst [vmem:[#allocation136_spill] sm:$0xff] %v9026_v14  ;;  %12874 = vst [vmem:[#allocation137_spill] sm:$0xff] %v9030_v0  ;;  %v9049_v0 = vmul.f32 %v8040_v43, %v8572_v21  ;;  %v9067_v14 = vmul.f32 %v8040_v43, %v8606_v51 }
 0x132   : > { %12875 = vst [vmem:[#allocation138_spill] sm:$0xff] %v9034_v12  ;;  %12876 = vst [vmem:[#allocation139_spill] sm:$0xff] %v9038_v50  ;;  %v9053_v12 = vmul.f32 %v8049_v49, %v8572_v21  ;;  %v9059_v50 = vpop.permute.xlu1 %970  ;;  %v9077_v21 = vpop.permute.xlu0 %540 }
 0x133   : > { %12877 = vst [vmem:[#allocation140_spill] sm:$0xff] %v9045_v3  ;;  %12878 = vst [vmem:[#allocation141_spill] sm:$0xff] %v9049_v0  ;;  %v9071_v3 = vmul.f32 %v8049_v49, %v8606_v51  ;;  %v1232_v0 = vmul.f32 %v8059_v6, %v8916_v53 }
 0x134   : > { %12879 = vst [vmem:[#allocation142_spill] sm:$0xff] %v9053_v12  ;;  %12880 = vst [vmem:[#allocation143_spill] sm:$0xff] %v9057_v35  ;;  %v9075_v12 = vmul.f32 %v8051_v62, %v8606_v51  ;;  %v9081_v35 = vmul.f32 %v8038_v42, %v8635_v37  ;;  %v9098_v51 = vmul.f32 %v8038_v42, %v8684_v57 }
 0x135   : > { %12881 = vst [vmem:[#allocation144_spill] sm:$0xff] %v9063_v17  ;;  %12882 = vst [vmem:[#allocation145_spill] sm:$0xff] %v9067_v14  ;;  %v9085_v17 = vmul.f32 %v8040_v43, %v8635_v37  ;;  %v9089_v14 = vmul.f32 %v8049_v49, %v8635_v37  ;;  %v9272_v45 = vadd.f32 %v1232_v0, %v12921_v13  ;;  %v7522_v0 = vld [vmem:[%s12648_s1 + $0x150] sm:$0xff] }
 0x136   : > { %12883 = vst [vmem:[#allocation146_spill] sm:$0xff] %v9071_v3  ;;  %12884 = vst [vmem:[#allocation147_spill] sm:$0xff] %v9075_v12  ;;  %v9093_v3 = vmul.f32 %v8051_v62, %v8635_v37  ;;  %v9102_v12 = vmul.f32 %v8040_v43, %v8684_v57  ;;  %v9116_v37 = vmul.f32 %v8051_v62, %v8684_v57 }
 0x137   : > { %12885 = vst [vmem:[#allocation148_spill] sm:$0xff] %v9081_v35  ;;  %12886 = vst [vmem:[#allocation149_spill] sm:$0xff] %v9085_v17  ;;  %v9106_v35 = vmul.f32 %v8049_v49, %v8684_v57  ;;  %v9138_v57 = vmul.f32 %v8038_v42, %v8754_v23  ;;  %v9292_v13 = vmul.f32 %v8051_v62, %v9006_v5 }
 0x138   : > { %12887 = vst [vmem:[#allocation150_spill] sm:$0xff] %v9089_v14  ;;  %12888 = vst [vmem:[#allocation151_spill] sm:$0xff] %v9093_v3  ;;  %v7515_v14 = vld [vmem:[%s12648_s1 + $0x148] sm:$0xff]  ;;  %v7517_v3 = vld [vmem:[%s12648_s1 + $0x158] sm:$0xff] }
 0x139   : > { %12889 = vst [vmem:[#allocation152_spill] sm:$0xff] %v9098_v51  ;;  %12890 = vst [vmem:[#allocation153_spill] sm:$0xff] %v9102_v12  ;;  %1110 = vperm.xlu0 %7317, %v7515_v14   ;;  %v9120_v12 = vmul.f32 %v8038_v42, %v8708_v52  ;;  %v9128_v14 = vmul.f32 %v8049_v49, %v8708_v52  ;;  %v9130_v51 = vpop.permute.xlu1 %978 }
 0x13a   : > { %12891 = vst [vmem:[#allocation154_spill] sm:$0xff] %v9106_v35  ;;  %12892 = vst [vmem:[#allocation155_spill] sm:$0xff] %v9116_v37  ;;  %v9124_v35 = vmul.f32 %v8040_v43, %v8708_v52  ;;  %v9142_v37 = vmul.f32 %v8040_v43, %v8754_v23  ;;  %v9154_v52 = vmul.f32 %v8051_v62, %v8754_v23 }
 0x13b   : > { %12893 = vst [vmem:[#allocation156_spill] sm:$0xff] %v9120_v12  ;;  %12895 = vst [vmem:[#allocation158_spill] sm:$0xff] %v9128_v14  ;;  %v9144_v12 = vpop.permute.xlu0 %550  ;;  %v9150_v14 = vmul.f32 %v8049_v49, %v8754_v23  ;;  %v7518_v23 = vld [vmem:[%s12648_s1 + $0x130] sm:$0xff] }
 0x13c   : > { %12894 = vst [vmem:[#allocation157_spill] sm:$0xff] %v9124_v35  ;;  %12896 = vst [vmem:[#allocation159_spill] sm:$0xff] %v9134_v58  ;;  %v1227_v35 = vmul.f32 %v8057_v1, %v8842_v61  ;;  %v9164_v58 = vmul.f32 %v8040_v43, %v8775_v24  ;;  %1098 = vperm.xlu1 %7318, %v7518_v23   ;;  %v9190_v23 = vmul.f32 %v8040_v43, %v8844_v8 }
 0x13d   : > { %12897 = vst [vmem:[#allocation160_spill] sm:$0xff] %v9138_v57  ;;  %12898 = vst [vmem:[#allocation161_spill] sm:$0xff] %v9142_v37  ;;  %v9158_v57 = vmul.f32 %v8038_v42, %v8775_v24  ;;  %v1229_v37 = vmul.f32 %v8061_v9, %v8842_v61  ;;  %1118 = vperm.xlu0 %7317, %v7517_v3   ;;  %v9186_v3 = vmul.f32 %v8038_v42, %v8844_v8  ;;  %v9192_v17 = vpop.permute.xlu1 %986 }
 0x13e   : > { %12899 = vst [vmem:[#allocation162_spill] sm:$0xff] %v9150_v14  ;;  %12900 = vst [vmem:[#allocation163_spill] sm:$0xff] %v9154_v52  ;;  %v1226_v52 = vmul.f32 %v8055_v48, %v8842_v61  ;;  %v1228_v14 = vmul.f32 %v8059_v6, %v8842_v61  ;;  %v9196_v61 = vmul.f32 %v8049_v49, %v8844_v8 }
 0x13f   : > { %12901 = vst [vmem:[#allocation164_spill] sm:$0xff] %v9158_v57  ;;  %12902 = vst [vmem:[#allocation165_spill] sm:$0xff] %v9164_v58  ;;  %v9178_v57 = vmul.f32 %v8049_v49, %v8775_v24  ;;  %v9182_v58 = vmul.f32 %v8051_v62, %v8775_v24  ;;  %v1231_v24 = vmul.f32 %v8057_v1, %v8916_v53 }
 0x140   : > { %12905 = vst [vmem:[#allocation168_spill] sm:$0xff] %v9186_v3  ;;  %12906 = vst [vmem:[#allocation169_spill] sm:$0xff] %v9190_v23  ;;  %v9207_v3 = vadd.f32 %v1227_v35, %v8646_v31  ;;  %v1230_v23 = vmul.f32 %v8055_v48, %v8916_v53  ;;  %v7519_v31 = vld [vmem:[%s12648_s1 + $0x168] sm:$0xff]  ;;  %v7520_v35 = vld [vmem:[%s12648_s1 + $0x140] sm:$0xff] }
 0x141   : > { %12903 = vst [vmem:[#allocation166_spill] sm:$0xff] %v9178_v57  ;;  %12904 = vst [vmem:[#allocation167_spill] sm:$0xff] %v9182_v58  ;;  %v9200_v57 = vmul.f32 %v8051_v62, %v8844_v8  ;;  %v9204_v58 = vpop.permute.xlu0 %560  ;;  %v9216_v8 = vadd.f32 %v1229_v37, %v8650_v40  ;;  %1126 = vperm.xlu0 %7317, %v7519_v31   ;;  %1106 = vperm.xlu1 %7318, %v7520_v35  }
 0x142   : > { %12907 = vst [vmem:[#allocation170_spill] sm:$0xff] %v9196_v61  ;;  %12909 = vst [vmem:[#allocation172_spill] sm:$0xff] %v9207_v3  ;;  %v1233_v61 = vmul.f32 %v8061_v9, %v8916_v53  ;;  %v9229_v3 = vadd.f32 %v1226_v52, %v8654_v46  ;;  %v9232_v40 = vadd.f32 %v1228_v14, %v8666_v36  ;;  %v9248_v46 = vpop.permute.xlu1 %994 }
 0x143   : > { %12908 = vst [vmem:[#allocation171_spill] sm:$0xff] %v9200_v57  ;;  %12910 = vst [vmem:[#allocation173_spill] sm:$0xff] %v9216_v8  ;;  %v9220_v57 = vmul.f32 %v8038_v42, %v8934_v18  ;;  %v9236_v53 = vmul.f32 %v8040_v43, %v8934_v18  ;;  %v9240_v37 = vmul.f32 %v8049_v49, %v8934_v18 }
 0x144   : > { %12912 = vst [vmem:[#allocation175_spill] sm:$0xff] %v9229_v3  ;;  %12913 = vst [vmem:[#allocation176_spill] sm:$0xff] %v9232_v40  ;;  %v9244_v31 = vmul.f32 %v8051_v62, %v8934_v18  ;;  %v1239_v35 = vmul.f32 %v8057_v1, %v8988_v60  ;;  %v1238_v36 = vmul.f32 %v8055_v48, %v8988_v60  ;;  %v12920_v3 = vld [vmem:[#allocation13_spill] sm:$0xff] }
 0x145   : > { %12911 = vst [vmem:[#allocation174_spill] sm:$0xff] %v9220_v57  ;;  %12914 = vst [vmem:[#allocation177_spill] sm:$0xff] %v9236_v53  ;;  %v1240_v14 = vmul.f32 %v8059_v6, %v8988_v60  ;;  %v1241_v52 = vmul.f32 %v8061_v9, %v8988_v60  ;;  %v9256_v53 = vpop.permute.xlu0 %570  ;;  %v9263_v18 = vmul.f32 %v8038_v42, %v9006_v5  ;;  %1114 = vperm.xlu1 %7318, %v7522_v0  }
 0x146   : > { %12915 = vst [vmem:[#allocation178_spill] sm:$0xff] %v9240_v37  ;;  %12916 = vst [vmem:[#allocation179_spill] sm:$0xff] %v9244_v31  ;;  %v12917_v37 = vld [vmem:[#allocation14_spill] sm:$0xff]  ;;  %v12919_v31 = vld [vmem:[#allocation17_spill] sm:$0xff]  ;;  %v9269_v8 = vadd.f32 %v1230_v23, %v12920_v3  ;;  %v9276_v60 = vmul.f32 %v8040_v43, %v9006_v5  ;;  %v1246_v3 = vmul.f32 %v8055_v48, %v9059_v50 }
 0x147   : > { %v9259_v57 = vadd.f32 %v1231_v24, %v12917_v37  ;;  %12918 = vst [vmem:[#allocation14_spill] sm:$0xff] %v9263_v18  ;;  %v9266_v40 = vadd.f32 %v1233_v61, %v12919_v31  ;;  %v9280_v24 = vmul.f32 %v8049_v49, %v9006_v5  ;;  %v1247_v37 = vmul.f32 %v8057_v1, %v9059_v50  ;;  %v7521_v61 = vld [vmem:[%s12648_s1 + $0x178] sm:$0xff]  ;;  %v9298_v31 = vpop.permute.xlu1 %1002 }
 0x148   : > { %12922 = vst [vmem:[#allocation17_spill] sm:$0xff] %v9276_v60  ;;  %1134 = vperm.xlu0 %7317, %v7521_v61   ;;  %12924 = vst [vmem:[#allocation16_spill] sm:$0xff] %v9292_v13  ;;  %v1249_v23 = vmul.f32 %v8061_v9, %v9059_v50  ;;  %v9301_v60 = vadd.f32 %v1239_v35, %v8682_v11  ;;  %v1248_v61 = vmul.f32 %v8059_v6, %v9059_v50  ;;  %v7523_v35 = vld [vmem:[%s12648_s1 + $0x188] sm:$0xff] }
 0x149   : > { %12923 = vst [vmem:[#allocation13_spill] sm:$0xff] %v9280_v24  ;;  %v9305_v24 = vpop.permute.xlu0 %580  ;;  %v9308_v0 = vadd.f32 %v1241_v52, %v8698_v28  ;;  %v9311_v5 = vadd.f32 %v1238_v36, %v8678_v22  ;;  %v9314_v13 = vadd.f32 %v1240_v14, %v8694_v19  ;;  %v9318_v18 = vmul.f32 %v8038_v42, %v9077_v21  ;;  %v7524_v36 = vld [vmem:[%s12648_s1 + $0x160] sm:$0xff] }
 0x14a   : > { %v9322_v11 = vmul.f32 %v8040_v43, %v9077_v21  ;;  %v1255_v50 = vmul.f32 %v8057_v1, %v9130_v51  ;;  %v1257_v28 = vmul.f32 %v8061_v9, %v9130_v51  ;;  %v9330_v22 = vmul.f32 %v8049_v49, %v9077_v21  ;;  %1122 = vperm.xlu1 %7318, %v7524_v36  }
 0x14b   : > { %12925 = vst [vmem:[#allocation180_spill] sm:$0xff] %v9318_v18  ;;  %v9334_v19 = vmul.f32 %v8051_v62, %v9077_v21  ;;  %v9343_v14 = vadd.f32 %v1247_v37, %v8724_v63  ;;  %v1254_v52 = vmul.f32 %v8055_v48, %v9130_v51  ;;  %v1256_v21 = vmul.f32 %v8059_v6, %v9130_v51 }
 0x14c   : > { %12926 = vst [vmem:[#allocation181_spill] sm:$0xff] %v9322_v11  ;;  %12927 = vst [vmem:[#allocation182_spill] sm:$0xff] %v9330_v22  ;;  %1142 = vperm.xlu0 %7317, %v7523_v35   ;;  %v9352_v11 = vadd.f32 %v1249_v23, %v8732_v39  ;;  %v9355_v35 = vadd.f32 %v1246_v3, %v8720_v10  ;;  %v9359_v36 = vmul.f32 %v8038_v42, %v9144_v12 }
 0x14d   : > { %12928 = vst [vmem:[#allocation183_spill] sm:$0xff] %v9334_v19  ;;  %v9349_v19 = vpop.permute.xlu1 %1010  ;;  %v9363_v63 = vmul.f32 %v8040_v43, %v9144_v12  ;;  %v9367_v37 = vmul.f32 %v8049_v49, %v9144_v12  ;;  %v9369_v51 = vpop.permute.xlu0 %590  ;;  %v9372_v39 = vadd.f32 %v1248_v61, %v8728_v7  ;;  %v9376_v10 = vmul.f32 %v8051_v62, %v9144_v12 }
 0x14e   : > { %12929 = vst [vmem:[#allocation184_spill] sm:$0xff] %v9359_v36  ;;  %v1263_v3 = vmul.f32 %v8057_v1, %v9192_v17  ;;  %v9381_v23 = vadd.f32 %v1255_v50, %v8761_v59  ;;  %v1262_v7 = vmul.f32 %v8055_v48, %v9192_v17  ;;  %v1264_v12 = vmul.f32 %v8059_v6, %v9192_v17  ;;  %v7525_v59 = vld [vmem:[%s12648_s1 + $0x198] sm:$0xff] }
 0x14f   : > { %12930 = vst [vmem:[#allocation185_spill] sm:$0xff] %v9363_v63  ;;  %12931 = vst [vmem:[#allocation186_spill] sm:$0xff] %v9367_v37  ;;  %v9384_v63 = vadd.f32 %v1257_v28, %v8769_v32  ;;  %v7323_v37 = vld [vmem:[%s12650_s3 + $0x4] ss:$16 sps:$4 sm:$0xff]   ;;  %v1265_v61 = vmul.f32 %v8061_v9, %v9192_v17  ;;  %v9403_v50 = vmul.f32 %v8038_v42, %v9204_v58 }
 0x150   : > { %12932 = vst [vmem:[#allocation187_spill] sm:$0xff] %v9376_v10  ;;  %1150 = vperm.xlu0 %7317, %v7525_v59   ;;  %v7526_v32 = vld [vmem:[%s12648_s1 + $0x170] sm:$0xff]  ;;  %v9408_v10 = vadd.f32 %v1254_v52, %v8752_v27  ;;  %v9411_v17 = vadd.f32 %v1256_v21, %v8765_v38  ;;  %3942 = vmatprep.mubr.bf16.mxu0 %v7323_v37 }
 0x151   : > { %1130 = vperm.xlu1 %7318, %v7526_v32   ;;  %12933 = vst [vmem:[#allocation188_spill] sm:$0xff] %v9403_v50  ;;  %v9405_v28 = vpop.permute.xlu1 %1018  ;;  %4648 = vmatprep.mubr.bf16.mxu1 %v7323_v37  ;;  %v9415_v59 = vmul.f32 %v8040_v43, %v9204_v58  ;;  %v9419_v32 = vmul.f32 %v8049_v49, %v9204_v58  ;;  %v9427_v52 = vpop.permute.xlu0 %600 }
 0x152   : > { %v9423_v50 = vmul.f32 %v8051_v62, %v9204_v58  ;;  %v1271_v27 = vmul.f32 %v8057_v1, %v9248_v46  ;;  %v1270_v38 = vmul.f32 %v8055_v48, %v9248_v46  ;;  %v1272_v21 = vmul.f32 %v8059_v6, %v9248_v46  ;;  %v7527_v58 = vld [vmem:[%s12648_s1 + $0x1a8] sm:$0xff] }
 0x153   : > { %12934 = vst [vmem:[#allocation189_spill] sm:$0xff] %v9415_v59  ;;  %12935 = vst [vmem:[#allocation190_spill] sm:$0xff] %v9419_v32  ;;  %v1273_v37 = vmul.f32 %v8061_v9, %v9248_v46  ;;  %v9436_v59 = vadd.f32 %v1263_v3, %v8795_v16  ;;  %v9445_v32 = vadd.f32 %v1265_v61, %v8803_v56 }
 0x154   : > { %12936 = vst [vmem:[#allocation191_spill] sm:$0xff] %v9423_v50  ;;  %1158 = vperm.xlu0 %7317, %v7527_v58   ;;  %v7528_v50 = vld [vmem:[%s12648_s1 + $0x180] sm:$0xff]  ;;  %v9448_v36 = vadd.f32 %v1262_v7, %v8791_v47  ;;  %v9451_v46 = vadd.f32 %v1264_v12, %v8799_v20  ;;  %v9455_v16 = vmul.f32 %v8038_v42, %v9256_v53 }
 0x155   : > { %1138 = vperm.xlu1 %7318, %v7528_v50   ;;  %v9459_v3 = vmul.f32 %v8040_v43, %v9256_v53  ;;  %v9463_v50 = vmul.f32 %v8049_v49, %v9256_v53  ;;  %v1279_v56 = vmul.f32 %v8057_v1, %v9298_v31  ;;  %v1027_v47 = vpop.permute.xlu1 %1026  ;;  %v9469_v20 = vmul.f32 %v8051_v62, %v9256_v53  ;;  %v611_v61 = vpop.permute.xlu0 %610 }
 0x156   : > { %12937 = vst [vmem:[#allocation192_spill] sm:$0xff] %v9455_v16  ;;  %v1278_v7 = vmul.f32 %v8055_v48, %v9298_v31  ;;  %v1281_v12 = vmul.f32 %v8061_v9, %v9298_v31  ;;  %v9476_v58 = vadd.f32 %v1271_v27, %v8832_v4  ;;  %v9484_v16 = vadd.f32 %v1270_v38, %v8828_v26 }
 0x157   : > { %12938 = vst [vmem:[#allocation193_spill] sm:$0xff] %v9459_v3  ;;  %12939 = vst [vmem:[#allocation194_spill] sm:$0xff] %v9463_v50  ;;  %v1280_v3 = vmul.f32 %v8059_v6, %v9298_v31  ;;  %v9481_v50 = vadd.f32 %v1273_v37, %v8840_v55  ;;  %v9487_v53 = vadd.f32 %v1272_v21, %v8836_v30  ;;  %v7529_v55 = vld [vmem:[%s12648_s1 + $0x1b8] sm:$0xff]  ;;  %v7530_v30 = vld [vmem:[%s12648_s1 + $0x190] sm:$0xff] }
 0x158   : > { %12940 = vst [vmem:[#allocation195_spill] sm:$0xff] %v9469_v20  ;;  %v9491_v20 = vmul.f32 %v8038_v42, %v9305_v24  ;;  %v9495_v4 = vmul.f32 %v8040_v43, %v9305_v24  ;;  %v1287_v31 = vmul.f32 %v8057_v1, %v9349_v19  ;;  %1166 = vperm.xlu0 %7317, %v7529_v55  }
 0x159   : > { %1146 = vperm.xlu1 %7318, %v7530_v30   ;;  %v9507_v26 = vmul.f32 %v8049_v49, %v9305_v24  ;;  %v9511_v27 = vmul.f32 %v8051_v62, %v9305_v24  ;;  %v1289_v38 = vmul.f32 %v8061_v9, %v9349_v19  ;;  %v1035_v21 = vpop.permute.xlu1 %1034  ;;  %v9516_v37 = vadd.f32 %v1279_v56, %v8868_v44 }
 0x15a   : > { %12941 = vst [vmem:[#allocation196_spill] sm:$0xff] %v9491_v20  ;;  %12942 = vst [vmem:[#allocation197_spill] sm:$0xff] %v9495_v4  ;;  %v1286_v55 = vmul.f32 %v8055_v48, %v9349_v19  ;;  %v1288_v30 = vmul.f32 %v8059_v6, %v9349_v19  ;;  %v621_v4 = vpop.permute.xlu0 %620  ;;  %v9526_v24 = vadd.f32 %v1278_v7, %v8864_v33  ;;  %v7531_v7 = vld [vmem:[%s12648_s1 + $0x1c8] sm:$0xff] }
 0x15b   : > { %12943 = vst [vmem:[#allocation198_spill] sm:$0xff] %v9507_v26  ;;  %12944 = vst [vmem:[#allocation199_spill] sm:$0xff] %v9511_v27  ;;  %v9523_v26 = vadd.f32 %v1281_v12, %v8876_v25  ;;  %v9530_v27 = vmul.f32 %v8038_v42, %v9369_v51  ;;  %v9534_v44 = vmul.f32 %v8040_v43, %v9369_v51  ;;  %v7532_v12 = vld [vmem:[%s12648_s1 + $0x1a0] sm:$0xff] }
 0x15c   : > { %v1295_v56 = vmul.f32 %v8057_v1, %v9405_v28  ;;  %v9539_v19 = vadd.f32 %v1280_v3, %v8872_v29  ;;  %v9543_v25 = vmul.f32 %v8049_v49, %v9369_v51  ;;  %v9547_v33 = vmul.f32 %v8051_v62, %v9369_v51  ;;  %1174 = vperm.xlu0 %7317, %v7531_v7  }
 0x15d   : > { %12945 = vst [vmem:[#allocation200_spill] sm:$0xff] %v9530_v27  ;;  %12946 = vst [vmem:[#allocation201_spill] sm:$0xff] %v9534_v44  ;;  %1154 = vperm.xlu1 %7318, %v7532_v12   ;;  %v9556_v29 = vadd.f32 %v1287_v31, %v8906_v34  ;;  %v1294_v3 = vmul.f32 %v8055_v48, %v9405_v28  ;;  %v1296_v51 = vmul.f32 %v8059_v6, %v9405_v28  ;;  %v1043_v44 = vpop.permute.xlu1 %1042  ;;  %v12951_v27 = vld [vmem:[#allocation114_spill] sm:$0xff] }
 0x15e   : > { %12947 = vst [vmem:[#allocation202_spill] sm:$0xff] %v9543_v25  ;;  %12948 = vst [vmem:[#allocation203_spill] sm:$0xff] %v9547_v33  ;;  %v1297_v33 = vmul.f32 %v8061_v9, %v9405_v28  ;;  %v9565_v7 = vadd.f32 %v1289_v38, %v8914_v2  ;;  %v9569_v25 = vmul.f32 %v8038_v42, %v9427_v52  ;;  %v631_v31 = vpop.permute.xlu0 %630 }
 0x15f   : > { %v9573_v34 = vmul.f32 %v8040_v43, %v9427_v52  ;;  %v9576_v12 = vadd.f32 %v1286_v55, %v8902_v54  ;;  %v9579_v20 = vadd.f32 %v1288_v30, %v12951_v27  ;;  %v9583_v28 = vmul.f32 %v8049_v49, %v9427_v52  ;;  %v7533_v55 = vld [vmem:[%s12648_s1 + $0x1d8] sm:$0xff] }
 0x160   : > { %12949 = vst [vmem:[#allocation204_spill] sm:$0xff] %v9569_v25  ;;  %v9587_v2 = vmul.f32 %v8051_v62, %v9427_v52  ;;  %v1303_v38 = vmul.f32 %v8057_v1, %v1027_v47  ;;  %v12955_v25 = vld [vmem:[#allocation120_spill] sm:$0xff]  ;;  %v1304_v54 = vmul.f32 %v8059_v6, %v1027_v47  ;;  %v1305_v27 = vmul.f32 %v8061_v9, %v1027_v47  ;;  %v7534_v52 = vld [vmem:[%s12648_s1 + $0x1b0] sm:$0xff] }
 0x161   : > { %12950 = vst [vmem:[#allocation205_spill] sm:$0xff] %v9573_v34  ;;  %12952 = vst [vmem:[#allocation114_spill] sm:$0xff] %v9579_v20  ;;  %v9591_v22 = vadd.f32 %v1295_v56, %v12955_v25  ;;  %v1302_v34 = vmul.f32 %v8055_v48, %v1027_v47  ;;  %1182 = vperm.xlu0 %7317, %v7533_v55   ;;  %1162 = vperm.xlu1 %7318, %v7534_v52   ;;  %v1051_v56 = vpop.permute.xlu1 %1050  ;;  %v12961_v47 = vld [vmem:[#allocation121_spill] sm:$0xff] }
 0x162   : > { %12953 = vst [vmem:[#allocation206_spill] sm:$0xff] %v9583_v28  ;;  %12954 = vst [vmem:[#allocation207_spill] sm:$0xff] %v9587_v2  ;;  %v9603_v30 = vmul.f32 %v8038_v42, %v611_v61  ;;  %v9606_v25 = vadd.f32 %v1297_v33, %v8950_v41  ;;  %v12959_v2 = vld [vmem:[#allocation119_spill] sm:$0xff]  ;;  %v9612_v18 = vadd.f32 %v1296_v51, %v12961_v47  ;;  %v641_v20 = vpop.permute.xlu0 %640 }
 0x163   : > { %12956 = vst [vmem:[#allocation120_spill] sm:$0xff] %v9591_v22  ;;  %v9609_v28 = vadd.f32 %v1294_v3, %v12959_v2  ;;  %v9615_v55 = vmul.f32 %v8040_v43, %v611_v61  ;;  %v9618_v22 = vmul.f32 %v8049_v49, %v611_v61  ;;  %v9621_v52 = vmul.f32 %v8051_v62, %v611_v61  ;;  %v7535_v2 = vld [vmem:[%s12648_s1 + $0x1e8] sm:$0xff]  ;;  %v7536_v61 = vld [vmem:[%s12648_s1 + $0x1c0] sm:$0xff]  ;;  %v12967_v47 = vld [vmem:[#allocation127_spill] sm:$0xff] }
 0x164   : > { %12957 = vst [vmem:[#allocation208_spill] sm:$0xff] %v9603_v30  ;;  %12958 = vst [vmem:[#allocation209_spill] sm:$0xff] %v9606_v25  ;;  %v1311_v30 = vmul.f32 %v8057_v1, %v1035_v21  ;;  %v1310_v41 = vmul.f32 %v8055_v48, %v1035_v21  ;;  %v1312_v33 = vmul.f32 %v8059_v6, %v1035_v21 }
 0x165   : > { %12960 = vst [vmem:[#allocation119_spill] sm:$0xff] %v9609_v28  ;;  %12962 = vst [vmem:[#allocation121_spill] sm:$0xff] %v9612_v18  ;;  %v1313_v3 = vmul.f32 %v8061_v9, %v1035_v21  ;;  %v9628_v51 = vadd.f32 %v1303_v38, %v8978_v15  ;;  %1190 = vperm.xlu0 %7317, %v7535_v2   ;;  %1170 = vperm.xlu1 %7318, %v7536_v61   ;;  %v12971_v21 = vld [vmem:[#allocation126_spill] sm:$0xff] }
 0x166   : > { %12963 = vst [vmem:[#allocation210_spill] sm:$0xff] %v9615_v55  ;;  %12964 = vst [vmem:[#allocation211_spill] sm:$0xff] %v9618_v22  ;;  %v12969_v55 = vld [vmem:[#allocation7_spill] sm:$0xff]  ;;  %v9643_v18 = vadd.f32 %v1304_v54, %v12971_v21  ;;  %v9646_v15 = vmul.f32 %v8038_v42, %v621_v4  ;;  %v9649_v38 = vmul.f32 %v8040_v43, %v621_v4  ;;  %v12977_v21 = vld [vmem:[#allocation133_spill] sm:$0xff] }
 0x167   : > { %12965 = vst [vmem:[#allocation212_spill] sm:$0xff] %v9621_v52  ;;  %12966 = vst [vmem:[#allocation213_spill] sm:$0xff] %v9628_v51  ;;  %v9637_v52 = vadd.f32 %v1305_v27, %v12967_v47  ;;  %v9640_v22 = vadd.f32 %v1302_v34, %v12969_v55  ;;  %v9652_v2 = vmul.f32 %v8049_v49, %v621_v4  ;;  %v1059_v27 = vpop.permute.xlu1 %1058  ;;  %v651_v55 = vpop.permute.xlu0 %650 }
 0x168   : > { %12972 = vst [vmem:[#allocation126_spill] sm:$0xff] %v9643_v18  ;;  %12973 = vst [vmem:[#allocation214_spill] sm:$0xff] %v9646_v15  ;;  %v9655_v61 = vmul.f32 %v8051_v62, %v621_v4  ;;  %v1318_v47 = vmul.f32 %v8055_v48, %v1043_v44  ;;  %v1319_v34 = vmul.f32 %v8057_v1, %v1043_v44  ;;  %v12983_v4 = vld [vmem:[#allocation134_spill] sm:$0xff] }
 0x169   : > { %12968 = vst [vmem:[#allocation127_spill] sm:$0xff] %v9637_v52  ;;  %12970 = vst [vmem:[#allocation7_spill] sm:$0xff] %v9640_v22  ;;  %v1321_v54 = vmul.f32 %v8061_v9, %v1043_v44  ;;  %v9661_v18 = vadd.f32 %v1311_v30, %v12977_v21  ;;  %v1320_v15 = vmul.f32 %v8059_v6, %v1043_v44  ;;  %v7537_v44 = vld [vmem:[%s12648_s1 + $0x1f8] sm:$0xff] }
 0x16a   : > { %12974 = vst [vmem:[#allocation215_spill] sm:$0xff] %v9649_v38  ;;  %12975 = vst [vmem:[#allocation216_spill] sm:$0xff] %v9652_v2  ;;  %v12979_v38 = vld [vmem:[#allocation135_spill] sm:$0xff]  ;;  %v12981_v2 = vld [vmem:[#allocation132_spill] sm:$0xff]  ;;  %v9674_v51 = vmul.f32 %v8038_v42, %v631_v31  ;;  %v9677_v28 = vmul.f32 %v8040_v43, %v631_v31  ;;  %v9680_v30 = vmul.f32 %v8049_v49, %v631_v31  ;;  %1198 = vperm.xlu0 %7317, %v7537_v44  }
 0x16b   : > { %12976 = vst [vmem:[#allocation217_spill] sm:$0xff] %v9655_v61  ;;  %12978 = vst [vmem:[#allocation133_spill] sm:$0xff] %v9661_v18  ;;  %v9665_v22 = vadd.f32 %v1313_v3, %v12979_v38  ;;  %v9668_v52 = vadd.f32 %v1310_v41, %v12981_v2  ;;  %v9671_v61 = vadd.f32 %v1312_v33, %v12983_v4  ;;  %v7538_v41 = vld [vmem:[%s12648_s1 + $0x1d0] sm:$0xff]  ;;  %v1067_v21 = vpop.permute.xlu1 %1066  ;;  %v1767_v44 = vld [vmem:[%s12649_s2 + $0x108] sm:$0xff] }
 0x16c   : > { %12985 = vst [vmem:[#allocation218_spill] sm:$0xff] %v9674_v51  ;;  %12986 = vst [vmem:[#allocation219_spill] sm:$0xff] %v9677_v28  ;;  %1178 = vperm.xlu1 %7318, %v7538_v41   ;;  %v1326_v33 = vmul.f32 %v8055_v48, %v1051_v56  ;;  %v1327_v3 = vmul.f32 %v8057_v1, %v1051_v56  ;;  %v1328_v38 = vmul.f32 %v8059_v6, %v1051_v56  ;;  %v661_v28 = vpop.permute.xlu0 %660  ;;  %v12991_v41 = vld [vmem:[#allocation143_spill] sm:$0xff]  ;;  %v12997_v18 = vld [vmem:[#allocation142_spill] sm:$0xff] }
 0x16d   : > { %12980 = vst [vmem:[#allocation135_spill] sm:$0xff] %v9665_v22  ;;  %12982 = vst [vmem:[#allocation132_spill] sm:$0xff] %v9668_v52  ;;  %v1329_v2 = vmul.f32 %v8061_v9, %v1051_v56  ;;  %v9693_v4 = vmul.f32 %v8051_v62, %v631_v31  ;;  %v12993_v52 = vld [vmem:[#allocation140_spill] sm:$0xff]  ;;  %v9708_v56 = vmul.f32 %v8038_v42, %v641_v20 }
 0x16e   : > { %12984 = vst [vmem:[#allocation134_spill] sm:$0xff] %v9671_v61  ;;  %12987 = vst [vmem:[#allocation220_spill] sm:$0xff] %v9680_v30  ;;  %v12989_v30 = vld [vmem:[#allocation141_spill] sm:$0xff]  ;;  %v9702_v61 = vadd.f32 %v1321_v54, %v12991_v41  ;;  %v9705_v22 = vadd.f32 %v1318_v47, %v12993_v52  ;;  %v9711_v31 = vmul.f32 %v8040_v43, %v641_v20  ;;  %v13001_v47 = vmov 0  }
 0x16f   : > { %12988 = vst [vmem:[#allocation221_spill] sm:$0xff] %v9693_v4  ;;  %v9699_v51 = vadd.f32 %v1319_v34, %v12989_v30  ;;  %12995 = vst [vmem:[#allocation222_spill] sm:$0xff] %v9708_v56  ;;  %v1335_v4 = vmul.f32 %v8057_v1, %v1059_v27  ;;  %v9715_v25 = vadd.f32 %v1320_v15, %v12997_v18  ;;  %7320 = vset.pattern.permute.xlu0 %v13001_v47  ;;  %v7539_v30 = vld [vmem:[%s12648_s1 + $0x1e0] sm:$0xff]  ;;  %v9728_v41 = vpop.permute.xlu1 %1074  ;;  %v13008_v56 = vld [vmem:[#allocation150_spill] sm:$0xff] }
 0x170   : > { %12992 = vst [vmem:[#allocation143_spill] sm:$0xff] %v9702_v61  ;;  %12994 = vst [vmem:[#allocation140_spill] sm:$0xff] %v9705_v22  ;;  %v9718_v34 = vmul.f32 %v8049_v49, %v641_v20  ;;  %v9721_v54 = vmul.f32 %v8051_v62, %v641_v20  ;;  %v1337_v52 = vmul.f32 %v8061_v9, %v1059_v27  ;;  %1186 = vperm.xlu1 %7318, %v7539_v30   ;;  %v13002_v18 = vld [vmem:[#allocation149_spill] sm:$0xff]  ;;  %v13006_v20 = vld [vmem:[#allocation148_spill] sm:$0xff] }
 0x171   : > { %12990 = vst [vmem:[#allocation141_spill] sm:$0xff] %v9699_v51  ;;  %12996 = vst [vmem:[#allocation223_spill] sm:$0xff] %v9711_v31  ;;  %1965 = vperm.xlu0 %7320, %v1767_v44   ;;  %v9731_v15 = vadd.f32 %v1327_v3, %v13002_v18  ;;  %v13004_v31 = vld [vmem:[#allocation151_spill] sm:$0xff]  ;;  %v1334_v22 = vmul.f32 %v8055_v48, %v1059_v27  ;;  %v1336_v61 = vmul.f32 %v8059_v6, %v1059_v27  ;;  %v1806_v3 = vpop.permute.xlu0 %1805  ;;  %v13014_v27 = vld [vmem:[#allocation157_spill] sm:$0xff] }
 0x172   : > { %12998 = vst [vmem:[#allocation142_spill] sm:$0xff] %v9715_v25  ;;  %12999 = vst [vmem:[#allocation224_spill] sm:$0xff] %v9718_v34  ;;  %v9734_v34 = vadd.f32 %v1329_v2, %v13004_v31  ;;  %v9740_v25 = vadd.f32 %v1328_v38, %v13008_v56  ;;  %v9745_v44 = vmul.f32 %v8038_v42, %v651_v55  ;;  %v1770_v2 = vld [vmem:[%s12649_s2 + $0x120] sm:$0xff] }
 0x173   : > { %13000 = vst [vmem:[#allocation225_spill] sm:$0xff] %v9721_v54  ;;  %13003 = vst [vmem:[#allocation149_spill] sm:$0xff] %v9731_v15  ;;  %v9737_v54 = vadd.f32 %v1326_v33, %v13006_v20  ;;  %v9748_v30 = vmul.f32 %v8040_v43, %v651_v55  ;;  %v9754_v33 = vmul.f32 %v8049_v49, %v651_v55  ;;  %v13020_v15 = vld [vmem:[#allocation176_spill] sm:$0xff] }
 0x174   : > { %13005 = vst [vmem:[#allocation151_spill] sm:$0xff] %v9734_v34  ;;  %13009 = vst [vmem:[#allocation150_spill] sm:$0xff] %v9740_v25  ;;  %v9757_v38 = vmul.f32 %v8051_v62, %v651_v55  ;;  %v1343_v56 = vmul.f32 %v8057_v1, %v1067_v21  ;;  %v9761_v31 = vadd.f32 %v1335_v4, %v13014_v27  ;;  %v9772_v55 = vpop.permute.xlu1 %1082  ;;  %v13018_v27 = vld [vmem:[#allocation173_spill] sm:$0xff] }
 0x175   : > { %13007 = vst [vmem:[#allocation148_spill] sm:$0xff] %v9737_v54  ;;  %13010 = vst [vmem:[#allocation226_spill] sm:$0xff] %v9745_v44  ;;  %v1342_v18 = vmul.f32 %v8055_v48, %v1067_v21  ;;  %v1344_v20 = vmul.f32 %v8059_v6, %v1067_v21  ;;  %v7540_v44 = vld [vmem:[%s12648_s1 + $0x1f0] sm:$0xff]  ;;  %1980 = vperm.xlu0 %7320, %v1770_v2   ;;  %v2124_v51 = vadd.f32 %v1806_v3, %v13020_v15  ;;  %v1766_v2 = vld [vmem:[%s12649_s2 + $0x100] sm:$0xff] }
 0x176   : > { %13011 = vst [vmem:[#allocation227_spill] sm:$0xff] %v9748_v30  ;;  %13012 = vst [vmem:[#allocation228_spill] sm:$0xff] %v9754_v33  ;;  %v1345_v30 = vmul.f32 %v8061_v9, %v1067_v21  ;;  %1194 = vperm.xlu1 %7318, %v7540_v44   ;;  %v13016_v33 = vld [vmem:[#allocation159_spill] sm:$0xff]  ;;  %v9779_v21 = vmul.f32 %v8038_v42, %v661_v28  ;;  %v9782_v9 = vmul.f32 %v8040_v43, %v661_v28  ;;  %v1821_v44 = vpop.permute.xlu0 %1820 }
 0x177   : > { %13013 = vst [vmem:[#allocation229_spill] sm:$0xff] %v9757_v38  ;;  %13015 = vst [vmem:[#allocation157_spill] sm:$0xff] %v9761_v31  ;;  %v9770_v25 = vadd.f32 %v1337_v52, %v13016_v33  ;;  %v13017_v38 = vld [vmem:[#allocation172_spill] sm:$0xff]  ;;  %v2125_v31 = vadd.f32 %v1806_v3, %v13018_v27  ;;  %v13019_v54 = vld [vmem:[#allocation175_spill] sm:$0xff]  ;;  %v9797_v42 = vmul.f32 %v8049_v49, %v661_v28 }
 0x178   : > { %v2123_v4 = vadd.f32 %v1806_v3, %v13017_v38  ;;  %v2122_v34 = vadd.f32 %v1806_v3, %v13019_v54  ;;  %13021 = vst [vmem:[#allocation159_spill] sm:$0xff] %v9779_v21  ;;  %13022 = vst [vmem:[#allocation172_spill] sm:$0xff] %v9782_v9  ;;  %v1772_v52 = vld [vmem:[%s12649_s2 + $0x130] sm:$0xff]  ;;  %v13023_v33 = vld [vmem:[#allocation156_spill] sm:$0xff]  ;;  %v9800_v43 = vmul.f32 %v8051_v62, %v661_v28 }
 0x179   : > { %v9791_v38 = vadd.f32 %v1334_v22, %v13023_v33  ;;  %v13024_v54 = vld [vmem:[#allocation158_spill] sm:$0xff]  ;;  %13025 = vst [vmem:[#allocation173_spill] sm:$0xff] %v9797_v42  ;;  %v9803_v3 = vadd.f32 %v1821_v44, %v9301_v60  ;;  %v13027_v27 = vld [vmem:[#allocation165_spill] sm:$0xff]  ;;  %v9810_v21 = vmul.f32 %v8055_v48, %v9728_v41  ;;  %v13029_v22 = vld [vmem:[#allocation167_spill] sm:$0xff]  ;;  %1990 = vperm.xlu0 %7320, %v1772_v52   ;;  %v1801_v42 = vpop.permute.xlu1 %1800 }
 0x17a   : > { %v9794_v15 = vadd.f32 %v1336_v61, %v13024_v54  ;;  %13026 = vst [vmem:[#allocation175_spill] sm:$0xff] %v9800_v43  ;;  %v9806_v9 = vadd.f32 %v1343_v56, %v13027_v27  ;;  %7319 = vset.pattern.permute.xlu1 %v13001_v47  ;;  %v9814_v61 = vadd.f32 %v1345_v30, %v13029_v22  ;;  %v13031_v49 = vld [vmem:[#allocation164_spill] sm:$0xff]  ;;  %v13033_v62 = vld [vmem:[#allocation166_spill] sm:$0xff]  ;;  %v2379_v60 = vmax.f32 %v2123_v4, 0.0  ;;  %v1831_v43 = vpop.permute.xlu0 %1830  ;;  %v13037_v22 = vld [vmem:[#allocation23_spill] sm:$0xff] }
 0x17b   : > { %v9817_v33 = vadd.f32 %v1342_v18, %v13031_v49  ;;  %v9820_v28 = vadd.f32 %v1344_v20, %v13033_v62  ;;  %1960 = vperm.xlu1 %7319, %v1766_v2   ;;  %v2381_v56 = vmax.f32 %v2125_v31, 0.0  ;;  %v2378_v54 = vmax.f32 %v2122_v34, 0.0  ;;  %v1774_v47 = vld [vmem:[%s12649_s2 + $0x140] sm:$0xff]  ;;  %v1768_v30 = vld [vmem:[%s12649_s2 + $0x110] sm:$0xff] }
 0x17c   : > { %13028 = vst [vmem:[#allocation176_spill] sm:$0xff] %v9806_v9  ;;  %13030 = vst [vmem:[#allocation156_spill] sm:$0xff] %v9814_v61  ;;  %v2380_v27 = vmax.f32 %v2124_v51, 0.0  ;;  %v9830_v20 = vadd.f32 %v1821_v44, %v9308_v0  ;;  %v9833_v4 = vadd.f32 %v1821_v44, %v9311_v5  ;;  %v9836_v51 = vadd.f32 %v1821_v44, %v9314_v13  ;;  %v13035_v34 = vld [vmem:[#allocation19_spill] sm:$0xff]  ;;  %v13036_v52 = vld [vmem:[#allocation20_spill] sm:$0xff] }
 0x17d   : > { %13032 = vst [vmem:[#allocation158_spill] sm:$0xff] %v9817_v33  ;;  %13034 = vst [vmem:[#allocation165_spill] sm:$0xff] %v9820_v28  ;;  %v2119_v31 = vadd.f32 %v1801_v42, %v13035_v34  ;;  %v2121_v2 = vadd.f32 %v1801_v42, %v13036_v52  ;;  %v2118_v49 = vadd.f32 %v1801_v42, %v13037_v22  ;;  %v13038_v62 = vld [vmem:[#allocation24_spill] sm:$0xff]  ;;  %2000 = vperm.xlu0 %7320, %v1774_v47  }
 0x17e   : > { %v2120_v28 = vadd.f32 %v1801_v42, %v13038_v62  ;;  %v9843_v33 = vadd.f32 %v1831_v43, %v9343_v14  ;;  %v9846_v0 = vadd.f32 %v1831_v43, %v9352_v11  ;;  %v9849_v5 = vadd.f32 %v1831_v43, %v9355_v35  ;;  %v1841_v18 = vpop.permute.xlu0 %1840  ;;  %v1811_v42 = vpop.permute.xlu1 %1810  ;;  %v1776_v14 = vld [vmem:[%s12649_s2 + $0x150] sm:$0xff]  ;;  %v1769_v11 = vld [vmem:[%s12649_s2 + $0x118] sm:$0xff] }
 0x17f   : > { %v9852_v13 = vadd.f32 %v1831_v43, %v9372_v39  ;;  %1970 = vperm.xlu1 %7319, %v1768_v30   ;;  %v2375_v44 = vmax.f32 %v2119_v31, 0.0  ;;  %v2377_v34 = vmax.f32 %v2121_v2, 0.0  ;;  %v2374_v52 = vmax.f32 %v2118_v49, 0.0  ;;  %v13045_v43 = vld [vmem:[#allocation33_spill] sm:$0xff]  ;;  %v13046_v39 = vld [vmem:[#allocation34_spill] sm:$0xff] }
 0x180   : > { %v2376_v22 = vmax.f32 %v2120_v28, 0.0  ;;  %v2127_v49 = vadd.f32 %v1811_v42, %v9259_v57  ;;  %v2129_v62 = vadd.f32 %v1811_v42, %v9266_v40  ;;  %v2126_v61 = vadd.f32 %v1811_v42, %v9269_v8  ;;  %v1771_v8 = vld [vmem:[%s12649_s2 + $0x128] sm:$0xff] }
 0x181   : > { %v2759_v30 = vpack.c.bf16 %v2379_v60, %v2375_v44  ;;  %v2761_v28 = vpack.c.bf16 %v2381_v56, %v2377_v34  ;;  %v2758_v31 = vpack.c.bf16 %v2378_v54, %v2374_v52  ;;  %v2128_v9 = vadd.f32 %v1811_v42, %v9272_v45  ;;  %2010 = vperm.xlu0 %7320, %v1776_v14   ;;  %v1778_v45 = vld [vmem:[%s12649_s2 + $0x160] sm:$0xff]  ;;  %v13040_v52 = vld [vmem:[#allocation26_spill] sm:$0xff] }
 0x182   : > { %v2760_v2 = vpack.c.bf16 %v2380_v27, %v2376_v22  ;;  %v9872_v60 = vadd.f32 %v1841_v18, %v9381_v23  ;;  %v9874_v56 = vpop.permute.xlu0 %1850  ;;  %v1816_v57 = vpop.permute.xlu1 %1815  ;;  %v2383_v40 = vmax.f32 %v2127_v49, 0.0  ;;  %v2385_v54 = vmax.f32 %v2129_v62, 0.0  ;;  %v13039_v44 = vld [vmem:[#allocation25_spill] sm:$0xff]  ;;  %v13041_v42 = vld [vmem:[#allocation28_spill] sm:$0xff] }
 0x183   : > { %1975 = vperm.xlu1 %7319, %v1769_v11   ;;  %3910 = vmatprep.subr.bf16.mxu0 %v2759_v30  ;;  %v9883_v27 = vadd.f32 %v1841_v18, %v9384_v63  ;;  %v9886_v23 = vadd.f32 %v1841_v18, %v9408_v10  ;;  %v2131_v34 = vadd.f32 %v1816_v57, %v13039_v44  ;;  %v2382_v11 = vmax.f32 %v2126_v61, 0.0  ;;  %v13042_v30 = vld [vmem:[#allocation29_spill] sm:$0xff] }
 0x184   : > { %4616 = vmatprep.subr.bf16.mxu1 %v2761_v28  ;;  %3911 = vmatpush1.bf16.msra.mxu0 %v2758_v31  ;;  %v2133_v22 = vadd.f32 %v1816_v57, %v13040_v52  ;;  %v2130_v14 = vadd.f32 %v1816_v57, %v13041_v42  ;;  %v2132_v28 = vadd.f32 %v1816_v57, %v13042_v30  ;;  %v2384_v47 = vmax.f32 %v2128_v9, 0.0  ;;  %v1780_v9 = vld [vmem:[%s12649_s2 + $0x170] sm:$0xff] }
 0x185   : > { %4617 = vmatpush1.bf16.msra.mxu1 %v2760_v2  ;;  %v9894_v63 = vadd.f32 %v1841_v18, %v9411_v17  ;;  %2020 = vperm.xlu0 %7320, %v1778_v45   ;;  %v2387_v10 = vmax.f32 %v2131_v34, 0.0  ;;  %v9898_v62 = vadd.f32 %v9874_v56, %v9436_v59  ;;  %v1773_v17 = vld [vmem:[%s12649_s2 + $0x138] sm:$0xff]  ;;  %v9911_v45 = vadd.f32 %v9874_v56, %v9445_v32 }
 0x186   : > { %v2389_v31 = vmax.f32 %v2133_v22, 0.0  ;;  %v2386_v2 = vmax.f32 %v2130_v14, 0.0  ;;  %v9900_v44 = vpop.permute.xlu0 %1860  ;;  %v1826_v61 = vpop.permute.xlu1 %1825  ;;  %v2388_v18 = vmax.f32 %v2132_v28, 0.0  ;;  %v9915_v59 = vadd.f32 %v9874_v56, %v9448_v36  ;;  %v13043_v22 = vld [vmem:[#allocation30_spill] sm:$0xff]  ;;  %v13044_v30 = vld [vmem:[#allocation31_spill] sm:$0xff] }
 0x187   : > { %1985 = vperm.xlu1 %7319, %v1771_v8   ;;  %v2763_v8 = vpack.c.bf16 %v2387_v10, %v2383_v40  ;;  %v2139_v42 = vadd.f32 %v1826_v61, %v13043_v22  ;;  %v2141_v49 = vadd.f32 %v1826_v61, %v13044_v30  ;;  %v2138_v28 = vadd.f32 %v1826_v61, %v13045_v43  ;;  %v1782_v43 = vld [vmem:[%s12649_s2 + $0x180] sm:$0xff] }
 0x188   : > { %v2765_v34 = vpack.c.bf16 %v2389_v31, %v2385_v54  ;;  %v2762_v52 = vpack.c.bf16 %v2386_v2, %v2382_v11  ;;  %v2764_v14 = vpack.c.bf16 %v2388_v18, %v2384_v47  ;;  %v2140_v57 = vadd.f32 %v1826_v61, %v13046_v39  ;;  %v1775_v39 = vld [vmem:[%s12649_s2 + $0x148] sm:$0xff] }
 0x189   : > { %2030 = vperm.xlu0 %7320, %v1780_v9   ;;  %v2395_v32 = vmax.f32 %v2139_v42, 0.0  ;;  %v2406_v35 = vmax.f32 %v9886_v23, 0.0  ;;  %v2408_v36 = vmax.f32 %v9894_v63, 0.0  ;;  %v2415_v40 = vmax.f32 %v9898_v62, 0.0  ;;  %3912 = vmatprep.subr.bf16.mxu0 %v2763_v8  ;;  %v13049_v8 = vld [vmem:[#allocation36_spill] sm:$0xff] }
 0x18a   : > { %v9924_v54 = vpop.permute.xlu0 %1870  ;;  %4618 = vmatprep.subr.bf16.mxu1 %v2765_v34  ;;  %v1836_v47 = vpop.permute.xlu1 %1835  ;;  %v2397_v11 = vmax.f32 %v2141_v49, 0.0  ;;  %v2394_v10 = vmax.f32 %v2138_v28, 0.0  ;;  %v2396_v31 = vmax.f32 %v2140_v57, 0.0  ;;  %3913 = vmatpush1.bf16.msra.mxu0 %v2762_v52  ;;  %v13047_v61 = vmax.f32 %v9803_v3, 0.0  ;;  %v13053_v52 = vld [vmem:[#allocation40_spill] sm:$0xff] }
 0x18b   : > { %1995 = vperm.xlu1 %7319, %v1773_v17   ;;  %4619 = vmatpush1.bf16.msra.mxu1 %v2764_v14  ;;  %v13048_v17 = vld [vmem:[#allocation35_spill] sm:$0xff]  ;;  %v2149_v34 = vadd.f32 %v1836_v47, %v13049_v8  ;;  %v2414_v22 = vmax.f32 %v9915_v59, 0.0  ;;  %v13050_v42 = vmax.f32 %v9830_v20, 0.0  ;;  %v13051_v49 = vmax.f32 %v9833_v4, 0.0  ;;  %v1790_v59 = vld [vmem:[%s12649_s2 + $0x1c0] sm:$0xff] }
 0x18c   : > { %v2767_v9 = vpack.c.bf16 %v2395_v32, %v13047_v61  ;;  %v2147_v18 = vadd.f32 %v1836_v47, %v13048_v17  ;;  %v13052_v57 = vmax.f32 %v9836_v51, 0.0  ;;  %v2146_v14 = vadd.f32 %v1836_v47, %v13053_v52  ;;  %v13054_v61 = vld [vmem:[#allocation41_spill] sm:$0xff]  ;;  %v1784_v51 = vld [vmem:[%s12649_s2 + $0x190] sm:$0xff]  ;;  %v1781_v23 = vld [vmem:[%s12649_s2 + $0x178] sm:$0xff] }
 0x18d   : > { %v2769_v30 = vpack.c.bf16 %v2397_v11, %v13050_v42  ;;  %v2766_v28 = vpack.c.bf16 %v2394_v10, %v13051_v49  ;;  %2040 = vperm.xlu0 %7320, %v1782_v43   ;;  %v2405_v32 = vmax.f32 %v2149_v34, 0.0  ;;  %v2148_v17 = vadd.f32 %v1836_v47, %v13054_v61  ;;  %v1777_v43 = vld [vmem:[%s12649_s2 + $0x158] sm:$0xff]  ;;  %v13057_v34 = vld [vmem:[#allocation42_spill] sm:$0xff]  ;;  %v1786_v61 = vld [vmem:[%s12649_s2 + $0x1a0] sm:$0xff] }
 0x18e   : > { %v2768_v2 = vpack.c.bf16 %v2396_v31, %v13052_v57  ;;  %v2403_v3 = vmax.f32 %v2147_v18, 0.0  ;;  %v9948_v8 = vadd.f32 %v9874_v56, %v9451_v46  ;;  %v9950_v20 = vpop.permute.xlu0 %1880  ;;  %3914 = vmatprep.subr.bf16.mxu0 %v2767_v9  ;;  %v1846_v4 = vpop.permute.xlu1 %1845  ;;  %v9960_v47 = vadd.f32 %v9900_v44, %v9476_v58  ;;  %v13060_v57 = vld [vmem:[#allocation44_spill] sm:$0xff] }
 0x18f   : > { %2005 = vperm.xlu1 %7319, %v1775_v39   ;;  %4620 = vmatprep.subr.bf16.mxu1 %v2769_v30  ;;  %v2402_v39 = vmax.f32 %v2146_v14, 0.0  ;;  %v9964_v46 = vadd.f32 %v9900_v44, %v9481_v50  ;;  %v9968_v56 = vadd.f32 %v9900_v44, %v9484_v16  ;;  %v13055_v11 = vmax.f32 %v9843_v33, 0.0  ;;  %v13059_v50 = vld [vmem:[#allocation43_spill] sm:$0xff]  ;;  %v13061_v16 = vld [vmem:[#allocation45_spill] sm:$0xff] }
 0x190   : > { %3915 = vmatpush1.bf16.msra.mxu0 %v2766_v28  ;;  %4621 = vmatpush1.bf16.msra.mxu1 %v2768_v2  ;;  %v13056_v31 = vmax.f32 %v9846_v0, 0.0  ;;  %v2404_v18 = vmax.f32 %v2148_v17, 0.0  ;;  %v2155_v58 = vadd.f32 %v1846_v4, %v13057_v34  ;;  %v13058_v42 = vmax.f32 %v9849_v5, 0.0  ;;  %v1779_v17 = vld [vmem:[%s12649_s2 + $0x168] sm:$0xff] }
 0x191   : > { %v2771_v10 = vpack.c.bf16 %v2403_v3, %v13055_v11  ;;  %v2157_v49 = vadd.f32 %v1846_v4, %v13059_v50  ;;  %v2154_v52 = vadd.f32 %v1846_v4, %v13060_v57  ;;  %v2156_v14 = vadd.f32 %v1846_v4, %v13061_v16  ;;  %2050 = vperm.xlu0 %7320, %v1784_v51   ;;  %v13064_v11 = vld [vmem:[#allocation46_spill] sm:$0xff]  ;;  %v13068_v57 = vld [vmem:[#allocation49_spill] sm:$0xff] }
 0x192   : > { %v2773_v9 = vpack.c.bf16 %v2405_v32, %v13056_v31  ;;  %v2770_v30 = vpack.c.bf16 %v2402_v39, %v13058_v42  ;;  %v13062_v33 = vmax.f32 %v9852_v13, 0.0  ;;  %v2411_v28 = vmax.f32 %v2155_v58, 0.0  ;;  %v9984_v32 = vpop.permute.xlu0 %1890  ;;  %v1856_v5 = vpop.permute.xlu1 %1855  ;;  %v13065_v31 = vld [vmem:[#allocation47_spill] sm:$0xff] }
 0x193   : > { %2015 = vperm.xlu1 %7319, %v1777_v43   ;;  %v2416_v0 = vmax.f32 %v9948_v8, 0.0  ;;  %v2423_v3 = vmax.f32 %v9960_v47, 0.0  ;;  %3916 = vmatprep.subr.bf16.mxu0 %v2771_v10  ;;  %v2413_v13 = vmax.f32 %v2157_v49, 0.0  ;;  %v2410_v4 = vmax.f32 %v2154_v52, 0.0 }
 0x194   : > { %v2772_v2 = vpack.c.bf16 %v2404_v18, %v13062_v33  ;;  %4622 = vmatprep.subr.bf16.mxu1 %v2773_v9  ;;  %v2412_v51 = vmax.f32 %v2156_v14, 0.0  ;;  %v2425_v8 = vmax.f32 %v9964_v46, 0.0  ;;  %3917 = vmatpush1.bf16.msra.mxu0 %v2770_v30  ;;  %v13063_v43 = vmax.f32 %v9872_v60, 0.0  ;;  %v13067_v30 = vld [vmem:[#allocation48_spill] sm:$0xff] }
 0x195   : > { %v2163_v10 = vadd.f32 %v1856_v5, %v13064_v11  ;;  %v2165_v9 = vadd.f32 %v1856_v5, %v13065_v31  ;;  %v2422_v18 = vmax.f32 %v9968_v56, 0.0  ;;  %v13066_v34 = vmax.f32 %v9883_v27, 0.0  ;;  %2060 = vperm.xlu0 %7320, %v1786_v61  }
 0x196   : > { %4623 = vmatpush1.bf16.msra.mxu1 %v2772_v2  ;;  %v2775_v39 = vpack.c.bf16 %v2411_v28, %v13063_v43  ;;  %v2774_v42 = vpack.c.bf16 %v2410_v4, %v2406_v35  ;;  %v2776_v46 = vpack.c.bf16 %v2412_v51, %v2408_v36  ;;  %v2162_v50 = vadd.f32 %v1856_v5, %v13067_v30  ;;  %v10008_v16 = vpop.permute.xlu0 %1900  ;;  %v1866_v27 = vpop.permute.xlu1 %1865  ;;  %v1788_v35 = vld [vmem:[%s12649_s2 + $0x1b0] sm:$0xff]  ;;  %v13073_v51 = vld [vmem:[#allocation53_spill] sm:$0xff] }
 0x197   : > { %v2777_v58 = vpack.c.bf16 %v2413_v13, %v13066_v34  ;;  %2025 = vperm.xlu1 %7319, %v1779_v17   ;;  %v2419_v60 = vmax.f32 %v2163_v10, 0.0  ;;  %v2421_v49 = vmax.f32 %v2165_v9, 0.0  ;;  %v2164_v52 = vadd.f32 %v1856_v5, %v13068_v57  ;;  %v13070_v5 = vld [vmem:[#allocation50_spill] sm:$0xff]  ;;  %v13071_v17 = vld [vmem:[#allocation51_spill] sm:$0xff] }
 0x198   : > { %v2168_v56 = vadd.f32 %v9900_v44, %v9487_v53  ;;  %3918 = vmatprep.subr.bf16.mxu0 %v2775_v39  ;;  %v2418_v63 = vmax.f32 %v2162_v50, 0.0  ;;  %v2175_v36 = vadd.f32 %v9924_v54, %v9516_v37  ;;  %v2177_v53 = vadd.f32 %v9924_v54, %v9523_v26  ;;  %v13072_v26 = vld [vmem:[#allocation52_spill] sm:$0xff] }
 0x199   : > { %4624 = vmatprep.subr.bf16.mxu1 %v2777_v58  ;;  %v2174_v44 = vadd.f32 %v9924_v54, %v9526_v24  ;;  %3919 = vmatpush1.bf16.msra.mxu0 %v2774_v42  ;;  %v2779_v14 = vpack.c.bf16 %v2419_v60, %v2415_v40  ;;  %v13069_v33 = vmax.f32 %v9911_v45, 0.0  ;;  %v2420_v28 = vmax.f32 %v2164_v52, 0.0  ;;  %v13074_v58 = vld [vmem:[#allocation54_spill] sm:$0xff]  ;;  %v13076_v52 = vld [vmem:[#allocation56_spill] sm:$0xff] }
 0x19a   : > { %4625 = vmatpush1.bf16.msra.mxu1 %v2776_v46  ;;  %v2171_v61 = vadd.f32 %v1866_v27, %v13070_v5  ;;  %v2778_v37 = vpack.c.bf16 %v2418_v63, %v2414_v22  ;;  %v2173_v13 = vadd.f32 %v1866_v27, %v13071_v17  ;;  %v2170_v4 = vadd.f32 %v1866_v27, %v13072_v26  ;;  %v10032_v45 = vpop.permute.xlu0 %1910  ;;  %v1876_v11 = vpop.permute.xlu1 %1875  ;;  %v1783_v22 = vld [vmem:[%s12649_s2 + $0x188] sm:$0xff]  ;;  %v13075_v46 = vld [vmem:[#allocation55_spill] sm:$0xff] }
 0x19b   : > { %v2781_v2 = vpack.c.bf16 %v2421_v49, %v13069_v33  ;;  %v2172_v24 = vadd.f32 %v1866_v27, %v13073_v51  ;;  %2070 = vperm.xlu0 %7320, %v1788_v35   ;;  %2035 = vperm.xlu1 %7319, %v1781_v23   ;;  %v2780_v43 = vpack.c.bf16 %v2420_v28, %v2416_v0  ;;  %v2424_v40 = vmax.f32 %v2168_v56, 0.0  ;;  %v13077_v63 = vld [vmem:[#allocation57_spill] sm:$0xff] }
 0x19c   : > { %v2427_v62 = vmax.f32 %v2171_v61, 0.0  ;;  %v2431_v39 = vmax.f32 %v2175_v36, 0.0  ;;  %3920 = vmatprep.subr.bf16.mxu0 %v2779_v14  ;;  %v2429_v10 = vmax.f32 %v2173_v13, 0.0  ;;  %v2426_v31 = vmax.f32 %v2170_v4, 0.0  ;;  %v13078_v61 = vld [vmem:[#allocation58_spill] sm:$0xff]  ;;  %v13079_v13 = vld [vmem:[#allocation59_spill] sm:$0xff] }
 0x19d   : > { %4626 = vmatprep.subr.bf16.mxu1 %v2781_v2  ;;  %v2428_v9 = vmax.f32 %v2172_v24, 0.0  ;;  %v2433_v0 = vmax.f32 %v2177_v53, 0.0  ;;  %3921 = vmatpush1.bf16.msra.mxu0 %v2778_v37  ;;  %v2179_v42 = vadd.f32 %v1876_v11, %v13074_v58  ;;  %v2181_v30 = vadd.f32 %v1876_v11, %v13075_v46  ;;  %v13084_v58 = vld [vmem:[#allocation62_spill] sm:$0xff]  ;;  %v13085_v46 = vld [vmem:[#allocation209_spill] sm:$0xff] }
 0x19e   : > { %4627 = vmatpush1.bf16.msra.mxu1 %v2780_v43  ;;  %v2783_v34 = vpack.c.bf16 %v2427_v62, %v2423_v3  ;;  %v2430_v50 = vmax.f32 %v2174_v44, 0.0  ;;  %v2785_v60 = vpack.c.bf16 %v2429_v10, %v2425_v8  ;;  %v2782_v49 = vpack.c.bf16 %v2426_v31, %v2422_v18  ;;  %v10048_v3 = vpop.permute.xlu0 %1920  ;;  %v1886_v36 = vpop.permute.xlu1 %1885  ;;  %v1792_v8 = vld [vmem:[%s12649_s2 + $0x1d0] sm:$0xff]  ;;  %v1785_v18 = vld [vmem:[%s12649_s2 + $0x198] sm:$0xff]  ;;  %v1794_v62 = vld [vmem:[%s12649_s2 + $0x1e0] sm:$0xff] }
 0x19f   : > { %v2784_v57 = vpack.c.bf16 %v2428_v9, %v2424_v40  ;;  %v2178_v56 = vadd.f32 %v1876_v11, %v13076_v52  ;;  %2080 = vperm.xlu0 %7320, %v1790_v59   ;;  %2045 = vperm.xlu1 %7319, %v1783_v22   ;;  %v2435_v27 = vmax.f32 %v2179_v42, 0.0  ;;  %v2437_v35 = vmax.f32 %v2181_v30, 0.0  ;;  %v1787_v40 = vld [vmem:[%s12649_s2 + $0x1a8] sm:$0xff] }
 0x1a0   : > { %v2176_v23 = vadd.f32 %v9924_v54, %v9539_v19  ;;  %v2180_v47 = vadd.f32 %v1876_v11, %v13077_v63  ;;  %3922 = vmatprep.subr.bf16.mxu0 %v2783_v34  ;;  %4628 = vmatprep.subr.bf16.mxu1 %v2785_v60  ;;  %v2183_v44 = vadd.f32 %v9950_v20, %v9556_v29  ;;  %v13081_v59 = vld [vmem:[#allocation114_spill] sm:$0xff]  ;;  %v13082_v10 = vld [vmem:[#allocation61_spill] sm:$0xff] }
 0x1a1   : > { %v2434_v53 = vmax.f32 %v2178_v56, 0.0  ;;  %v2185_v19 = vadd.f32 %v9950_v20, %v9565_v7  ;;  %v2182_v54 = vadd.f32 %v9950_v20, %v9576_v12  ;;  %3923 = vmatpush1.bf16.msra.mxu0 %v2782_v49  ;;  %v2787_v14 = vpack.c.bf16 %v2435_v27, %v2431_v39  ;;  %v13080_v7 = vld [vmem:[#allocation60_spill] sm:$0xff]  ;;  %v13086_v27 = vld [vmem:[#allocation63_spill] sm:$0xff] }
 0x1a2   : > { %4629 = vmatpush1.bf16.msra.mxu1 %v2784_v57  ;;  %v2789_v33 = vpack.c.bf16 %v2437_v35, %v2433_v0  ;;  %v2432_v2 = vmax.f32 %v2176_v23, 0.0  ;;  %v2436_v28 = vmax.f32 %v2180_v47, 0.0  ;;  %v2187_v37 = vadd.f32 %v1886_v36, %v13078_v61  ;;  %v10065_v12 = vpop.permute.xlu0 %1930  ;;  %v1896_v43 = vpop.permute.xlu1 %1895  ;;  %v13083_v0 = vld [vmem:[#allocation120_spill] sm:$0xff] }
 0x1a3   : > { %v2786_v5 = vpack.c.bf16 %v2434_v53, %v2430_v50  ;;  %v2439_v17 = vmax.f32 %v2183_v44, 0.0  ;;  %v2189_v26 = vadd.f32 %v1886_v36, %v13079_v13  ;;  %2090 = vperm.xlu0 %7320, %v1792_v8   ;;  %2055 = vperm.xlu1 %7319, %v1785_v18   ;;  %v2441_v4 = vmax.f32 %v2185_v19, 0.0  ;;  %v1789_v8 = vld [vmem:[%s12649_s2 + $0x1b8] sm:$0xff]  ;;  %v13091_v13 = vld [vmem:[#allocation213_spill] sm:$0xff] }
 0x1a4   : > { %v2788_v29 = vpack.c.bf16 %v2436_v28, %v2432_v2  ;;  %v2186_v51 = vadd.f32 %v1886_v36, %v13080_v7  ;;  %v2438_v24 = vmax.f32 %v2182_v54, 0.0  ;;  %3924 = vmatprep.subr.bf16.mxu0 %v2787_v14  ;;  %4630 = vmatprep.subr.bf16.mxu1 %v2789_v33  ;;  %v2443_v39 = vmax.f32 %v2187_v37, 0.0  ;;  %v13087_v53 = vld [vmem:[#allocation119_spill] sm:$0xff]  ;;  %v13088_v19 = vld [vmem:[#allocation64_spill] sm:$0xff]  ;;  %v13089_v2 = vld [vmem:[#allocation121_spill] sm:$0xff] }
 0x1a5   : > { %v2445_v11 = vmax.f32 %v2189_v26, 0.0  ;;  %v2184_v22 = vadd.f32 %v9950_v20, %v13081_v59  ;;  %v2188_v31 = vadd.f32 %v1886_v36, %v13082_v10  ;;  %3925 = vmatpush1.bf16.msra.mxu0 %v2786_v5  ;;  %v2191_v34 = vadd.f32 %v9984_v32, %v13083_v0  ;;  %v1796_v36 = vld [vmem:[%s12649_s2 + $0x1f0] sm:$0xff]  ;;  %v13090_v5 = vld [vmem:[#allocation65_spill] sm:$0xff] }
 0x1a6   : > { %4631 = vmatpush1.bf16.msra.mxu1 %v2788_v29  ;;  %v2442_v9 = vmax.f32 %v2186_v51, 0.0  ;;  %v2195_v42 = vadd.f32 %v1896_v43, %v13084_v58  ;;  %v2193_v30 = vadd.f32 %v9984_v32, %v13085_v46  ;;  %v2791_v50 = vpack.c.bf16 %v2443_v39, %v2439_v17  ;;  %v10082_v23 = vpop.permute.xlu0 %1940  ;;  %v1906_v63 = vpop.permute.xlu1 %1905  ;;  %v13092_v29 = vld [vmem:[#allocation66_spill] sm:$0xff]  ;;  %v13094_v10 = vld [vmem:[#allocation67_spill] sm:$0xff]  ;;  %v13096_v46 = vld [vmem:[#allocation68_spill] sm:$0xff] }
 0x1a7   : > { %v2793_v60 = vpack.c.bf16 %v2445_v11, %v2441_v4  ;;  %v2440_v49 = vmax.f32 %v2184_v22, 0.0  ;;  %v2444_v57 = vmax.f32 %v2188_v31, 0.0  ;;  %2100 = vperm.xlu0 %7320, %v1794_v62   ;;  %2065 = vperm.xlu1 %7319, %v1787_v40   ;;  %v2447_v52 = vmax.f32 %v2191_v34, 0.0  ;;  %v13093_v62 = vld [vmem:[#allocation127_spill] sm:$0xff]  ;;  %v2886_v11 = vld [vmem:[%s12651_s4] sm:$0xff]  ;;  %v1791_v0 = vld [vmem:[%s12649_s2 + $0x1c8] sm:$0xff] }
 0x1a8   : > { %v2790_v20 = vpack.c.bf16 %v2442_v9, %v2438_v24  ;;  %v2451_v56 = vmax.f32 %v2195_v42, 0.0  ;;  %v2197_v35 = vadd.f32 %v1896_v43, %v13086_v27  ;;  %3926 = vmatprep.subr.bf16.mxu0 %v2791_v50  ;;  %v2449_v18 = vmax.f32 %v2193_v30, 0.0  ;;  %v13095_v58 = vld [vmem:[#allocation7_spill] sm:$0xff] }
 0x1a9   : > { %4632 = vmatprep.subr.bf16.mxu1 %v2793_v60  ;;  %v2792_v47 = vpack.c.bf16 %v2444_v57, %v2440_v49  ;;  %v2190_v44 = vadd.f32 %v9984_v32, %v13087_v53  ;;  %v2194_v54 = vadd.f32 %v1896_v43, %v13088_v19  ;;  %v2192_v28 = vadd.f32 %v9984_v32, %v13089_v2  ;;  %v13097_v49 = vld [vmem:[#allocation126_spill] sm:$0xff]  ;;  %v1793_v2 = vld [vmem:[%s12649_s2 + $0x1d8] sm:$0xff] }
 0x1aa   : > { %3927 = vmatpush1.bf16.msra.mxu0 %v2790_v20  ;;  %v2795_v14 = vpack.c.bf16 %v2451_v56, %v2447_v52  ;;  %v2453_v33 = vmax.f32 %v2197_v35, 0.0  ;;  %v2196_v61 = vadd.f32 %v1896_v43, %v13090_v5  ;;  %v2199_v26 = vadd.f32 %v10008_v16, %v13091_v13  ;;  %v10101_v39 = vpop.permute.xlu0 %1950  ;;  %v1916_v32 = vpop.permute.xlu1 %1915  ;;  %v13098_v20 = vld [vmem:[#allocation69_spill] sm:$0xff] }
 0x1ab   : > { %4633 = vmatpush1.bf16.msra.mxu1 %v2792_v47  ;;  %v2446_v37 = vmax.f32 %v2190_v44, 0.0  ;;  %v2450_v17 = vmax.f32 %v2194_v54, 0.0  ;;  %v2203_v4 = vadd.f32 %v1906_v63, %v13092_v29  ;;  %2110 = vperm.xlu0 %7320, %v1796_v36   ;;  %v2448_v51 = vmax.f32 %v2192_v28, 0.0  ;;  %v13099_v35 = vld [vmem:[#allocation133_spill] sm:$0xff]  ;;  %v13100_v36 = vld [vmem:[#allocation70_spill] sm:$0xff] }
 0x1ac   : > { %2075 = vperm.xlu1 %7319, %v1789_v8   ;;  %v2797_v7 = vpack.c.bf16 %v2453_v33, %v2449_v18  ;;  %v2452_v24 = vmax.f32 %v2196_v61, 0.0  ;;  %v2201_v40 = vadd.f32 %v10008_v16, %v13093_v62  ;;  %3928 = vmatprep.subr.bf16.mxu0 %v2795_v14  ;;  %v2455_v59 = vmax.f32 %v2199_v26, 0.0  ;;  %v13102_v61 = vld [vmem:[#allocation71_spill] sm:$0xff]  ;;  %v13103_v26 = vld [vmem:[#allocation12_spill] sm:$0xff] }
 0x1ad   : > { %v2794_v43 = vpack.c.bf16 %v2450_v17, %v2446_v37  ;;  %v2459_v22 = vmax.f32 %v2203_v4, 0.0  ;;  %v2205_v31 = vadd.f32 %v1906_v63, %v13094_v10  ;;  %v2198_v42 = vadd.f32 %v10008_v16, %v13095_v58  ;;  %v13104_v4 = vld [vmem:[#allocation168_spill] sm:$0xff] }
 0x1ae   : > { %4634 = vmatprep.subr.bf16.mxu1 %v2797_v7  ;;  %v2796_v9 = vpack.c.bf16 %v2452_v24, %v2448_v51  ;;  %v2457_v34 = vmax.f32 %v2201_v40, 0.0  ;;  %v2202_v30 = vadd.f32 %v1906_v63, %v13096_v46  ;;  %v2200_v57 = vadd.f32 %v10008_v16, %v13097_v49  ;;  %v10119_v53 = vpop.permute.xlu1 %1925  ;;  %v2888_v16 = vld [vmem:[%s12651_s4 + $0x10] sm:$0xff]  ;;  %v10126_v14 = vpop.permute.xlu0 %1078  ;;  %v13109_v46 = vld [vmem:[#allocation141_spill] sm:$0xff] }
 0x1af   : > { %3929 = vmatpush1.bf16.msra.mxu0 %v2794_v43  ;;  %v2799_v50 = vpack.c.bf16 %v2459_v22, %v2455_v59  ;;  %v2461_v60 = vmax.f32 %v2205_v31, 0.0  ;;  %v2204_v52 = vadd.f32 %v1906_v63, %v13098_v20  ;;  %2952 = vperm.xlu0 %7320, %v2886_v11   ;;  %v2454_v56 = vmax.f32 %v2198_v42, 0.0  ;;  %v13101_v63 = vld [vmem:[#allocation135_spill] sm:$0xff]  ;;  %v13105_v11 = vld [vmem:[#allocation132_spill] sm:$0xff]  ;;  %v1795_v42 = vld [vmem:[%s12649_s2 + $0x1e8] sm:$0xff] }
 0x1b0   : > { %4635 = vmatpush1.bf16.msra.mxu1 %v2796_v9  ;;  %v2458_v27 = vmax.f32 %v2202_v30, 0.0  ;;  %v2207_v47 = vadd.f32 %v10032_v45, %v13099_v35  ;;  %v2211_v8 = vadd.f32 %v1916_v32, %v13100_v36  ;;  %2085 = vperm.xlu1 %7319, %v1791_v0   ;;  %v2456_v44 = vmax.f32 %v2200_v57, 0.0  ;;  %v13106_v22 = vld [vmem:[#allocation72_spill] sm:$0xff]  ;;  %v13108_v9 = vld [vmem:[#allocation73_spill] sm:$0xff] }
 0x1b1   : > { %3930 = vmatprep.subr.bf16.mxu0 %v2799_v50  ;;  %v2801_v18 = vpack.c.bf16 %v2461_v60, %v2457_v34  ;;  %v2460_v19 = vmax.f32 %v2204_v52, 0.0  ;;  %v2209_v54 = vadd.f32 %v10032_v45, %v13101_v63  ;;  %v2213_v37 = vadd.f32 %v1916_v32, %v13102_v61  ;;  %v2890_v0 = vld [vmem:[%s12651_s4 + $0x20] sm:$0xff]  ;;  %v13110_v50 = vld [vmem:[#allocation74_spill] sm:$0xff]  ;;  %v13113_v52 = vld [vmem:[#allocation171_spill] sm:$0xff] }
 0x1b2   : > { %v2798_v33 = vpack.c.bf16 %v2458_v27, %v2454_v56  ;;  %v2463_v28 = vmax.f32 %v2207_v47, 0.0  ;;  %v2467_v5 = vmax.f32 %v2211_v8, 0.0  ;;  %v1351_v17 = vmul.f32 %v8057_v1, %v9728_v41  ;;  %v10142_v43 = vpop.permute.xlu1 %1935  ;;  %v10153_v58 = vpop.permute.xlu0 %1086  ;;  %v13111_v60 = vld [vmem:[#allocation170_spill] sm:$0xff]  ;;  %v13112_v57 = vld [vmem:[#allocation169_spill] sm:$0xff] }
 0x1b3   : > { %v1352_v13 = vmul.f32 %v8059_v6, %v9728_v41  ;;  %v1353_v29 = vmul.f32 %v13103_v26, %v9728_v41  ;;  %4636 = vmatprep.subr.bf16.mxu1 %v2801_v18  ;;  %v10140_v7 = vadd.f32 %v9810_v21, %v13104_v4  ;;  %v2800_v51 = vpack.c.bf16 %v2460_v19, %v2456_v44  ;;  %v13107_v41 = vld [vmem:[#allocation134_spill] sm:$0xff]  ;;  %v13115_v44 = vld [vmem:[#allocation143_spill] sm:$0xff] }
 0x1b4   : > { %3931 = vmatpush1.bf16.msra.mxu0 %v2798_v33  ;;  %2962 = vperm.xlu0 %7320, %v2888_v16   ;;  %v2803_v24 = vpack.c.bf16 %v2467_v5, %v2463_v28  ;;  %v2465_v62 = vmax.f32 %v2209_v54, 0.0  ;;  %v2469_v40 = vmax.f32 %v2213_v37, 0.0  ;;  %v2206_v59 = vadd.f32 %v10032_v45, %v13105_v11  ;;  %v13116_v16 = vld [vmem:[#allocation75_spill] sm:$0xff]  ;;  %v13117_v5 = vld [vmem:[#allocation140_spill] sm:$0xff] }
 0x1b5   : > { %2095 = vperm.xlu1 %7319, %v1793_v2   ;;  %v2210_v10 = vadd.f32 %v1916_v32, %v13106_v22  ;;  %v2208_v31 = vadd.f32 %v10032_v45, %v13107_v41  ;;  %v2212_v21 = vadd.f32 %v1916_v32, %v13108_v9  ;;  %4637 = vmatpush1.bf16.msra.mxu1 %v2800_v51  ;;  %v13118_v37 = vld [vmem:[#allocation76_spill] sm:$0xff]  ;;  %v13119_v22 = vld [vmem:[#allocation174_spill] sm:$0xff] }
 0x1b6   : > { %3932 = vmatprep.subr.bf16.mxu0 %v2803_v24  ;;  %v2805_v34 = vpack.c.bf16 %v2469_v40, %v2465_v62  ;;  %v2215_v30 = vadd.f32 %v10048_v3, %v13109_v46  ;;  %v2219_v45 = vadd.f32 %v10119_v53, %v13110_v50  ;;  %v1358_v32 = vmul.f32 %v8055_v48, %v9772_v55  ;;  %v10177_v54 = vpop.permute.xlu1 %1945  ;;  %v10179_v28 = vpop.permute.xlu0 %1090  ;;  %v1797_v62 = vld [vmem:[%s12649_s2 + $0x1f8] sm:$0xff]  ;;  %v13121_v9 = vld [vmem:[#allocation142_spill] sm:$0xff] }
 0x1b7   : > { %v10165_v49 = vadd.f32 %v1352_v13, %v13111_v60  ;;  %v10168_v20 = vadd.f32 %v1351_v17, %v13112_v57  ;;  %v10171_v56 = vadd.f32 %v1353_v29, %v13113_v52  ;;  %v2462_v27 = vmax.f32 %v2206_v59, 0.0  ;;  %v2892_v13 = vld [vmem:[%s12651_s4 + $0x30] sm:$0xff] }
 0x1b8   : > { %4638 = vmatprep.subr.bf16.mxu1 %v2805_v34  ;;  %v2466_v35 = vmax.f32 %v2210_v10, 0.0  ;;  %v2464_v47 = vmax.f32 %v2208_v31, 0.0  ;;  %v2468_v36 = vmax.f32 %v2212_v21, 0.0  ;;  %2972 = vperm.xlu0 %7320, %v2890_v0   ;;  %v2471_v8 = vmax.f32 %v2215_v30, 0.0  ;;  %v13122_v0 = vld [vmem:[#allocation77_spill] sm:$0xff]  ;;  %v13124_v30 = vld [vmem:[#allocation78_spill] sm:$0xff] }
 0x1b9   : > { %13114 = vst [vmem:[#allocation167_spill] sm:$0xff] %v10171_v56  ;;  %2105 = vperm.xlu1 %7319, %v1795_v42   ;;  %v2475_v18 = vmax.f32 %v2219_v45, 0.0  ;;  %v2217_v19 = vadd.f32 %v10048_v3, %v13115_v44  ;;  %v2221_v63 = vadd.f32 %v10119_v53, %v13116_v16  ;;  %v2214_v61 = vadd.f32 %v10048_v3, %v13117_v5  ;;  %v13125_v45 = vld [vmem:[#allocation151_spill] sm:$0xff]  ;;  %v13126_v60 = vld [vmem:[#allocation10_spill] sm:$0xff] }
 0x1ba   : > { %v2802_v33 = vpack.c.bf16 %v2466_v35, %v2462_v27  ;;  %v2804_v2 = vpack.c.bf16 %v2468_v36, %v2464_v47  ;;  %v2218_v17 = vadd.f32 %v10119_v53, %v13118_v37  ;;  %v1360_v29 = vmul.f32 %v8059_v6, %v9772_v55  ;;  %v10204_v42 = vpop.permute.xlu1 %1955  ;;  %v2894_v35 = vld [vmem:[%s12651_s4 + $0x40] sm:$0xff]  ;;  %v13127_v47 = vld [vmem:[#allocation178_spill] sm:$0xff] }
 0x1bb   : > { %v2807_v4 = vpack.c.bf16 %v2475_v18, %v2471_v8  ;;  %v2473_v51 = vmax.f32 %v2217_v19, 0.0  ;;  %v2477_v24 = vmax.f32 %v2221_v63, 0.0  ;;  %v1359_v40 = vmul.f32 %v8057_v1, %v9772_v55  ;;  %v2887_v16 = vld [vmem:[%s12651_s4 + $0x8] sm:$0xff] }
 0x1bc   : > { %v1361_v11 = vmul.f32 %v13103_v26, %v9772_v55  ;;  %3933 = vmatpush1.bf16.msra.mxu0 %v2802_v33  ;;  %4639 = vmatpush1.bf16.msra.mxu1 %v2804_v2  ;;  %v2470_v59 = vmax.f32 %v2214_v61, 0.0  ;;  %v10198_v10 = vadd.f32 %v1358_v32, %v13119_v22  ;;  %v2474_v31 = vmax.f32 %v2218_v17, 0.0  ;;  %v13123_v55 = vld [vmem:[#allocation149_spill] sm:$0xff]  ;;  %v13131_v61 = vld [vmem:[#allocation179_spill] sm:$0xff]  ;;  %v13135_v22 = vld [vmem:[#allocation150_spill] sm:$0xff] }
 0x1bd   : > { %3934 = vmatprep.subr.bf16.mxu0 %v2807_v4  ;;  %v2809_v41 = vpack.c.bf16 %v2477_v24, %v2473_v51  ;;  %v2216_v21 = vadd.f32 %v10048_v3, %v13121_v9  ;;  %v2220_v34 = vadd.f32 %v10119_v53, %v13122_v0  ;;  %2982 = vperm.xlu0 %7320, %v2892_v13   ;;  %v10214_v3 = vpop.permute.xlu0 %1102  ;;  %v13129_v2 = vld [vmem:[#allocation177_spill] sm:$0xff]  ;;  %v13134_v51 = vld [vmem:[#allocation11_spill] sm:$0xff] }
 0x1be   : > { %13120 = vst [vmem:[#allocation164_spill] sm:$0xff] %v10198_v10  ;;  %2115 = vperm.xlu1 %7319, %v1797_v62   ;;  %v2223_v46 = vadd.f32 %v10065_v12, %v13123_v55  ;;  %v2227_v50 = vadd.f32 %v10142_v43, %v13124_v30  ;;  %v2225_v32 = vadd.f32 %v10065_v12, %v13125_v45  ;;  %v13138_v55 = vld [vmem:[#allocation18_spill] sm:$0xff] }
 0x1bf   : > { %v2229_v57 = vadd.f32 %v10142_v43, %v13126_v60  ;;  %4640 = vmatprep.subr.bf16.mxu1 %v2809_v41  ;;  %v2806_v53 = vpack.c.bf16 %v2474_v31, %v2470_v59  ;;  %v2472_v52 = vmax.f32 %v2216_v21, 0.0  ;;  %v2476_v27 = vmax.f32 %v2220_v34, 0.0  ;;  %v10241_v59 = vpop.permute.xlu1 %1094  ;;  %v13136_v41 = vld [vmem:[#allocation79_spill] sm:$0xff]  ;;  %v13137_v31 = vld [vmem:[#allocation157_spill] sm:$0xff] }
 0x1c0   : > { %v10220_v36 = vadd.f32 %v1360_v29, %v13127_v47  ;;  %v2479_v8 = vmax.f32 %v2223_v46, 0.0  ;;  %v2483_v18 = vmax.f32 %v2227_v50, 0.0  ;;  %v2481_v44 = vmax.f32 %v2225_v32, 0.0  ;;  %v13133_v29 = vld [vmem:[#allocation148_spill] sm:$0xff]  ;;  %v2896_v21 = vld [vmem:[%s12651_s4 + $0x50] sm:$0xff] }
 0x1c1   : > { %v2485_v19 = vmax.f32 %v2229_v57, 0.0  ;;  %v10227_v63 = vmul.f32 %v8055_v48, %v10126_v14  ;;  %3935 = vmatpush1.bf16.msra.mxu0 %v2806_v53  ;;  %v2808_v33 = vpack.c.bf16 %v2476_v27, %v2472_v52  ;;  %v10230_v5 = vadd.f32 %v1359_v40, %v13129_v2  ;;  %2992 = vperm.xlu0 %7320, %v2894_v35   ;;  %v10239_v62 = vpop.permute.xlu0 %1110  ;;  %v13139_v32 = vld [vmem:[#allocation80_spill] sm:$0xff] }
 0x1c2   : > { %13128 = vst [vmem:[#allocation166_spill] sm:$0xff] %v10220_v36  ;;  %v10233_v37 = vadd.f32 %v1361_v11, %v13131_v61  ;;  %v2811_v17 = vpack.c.bf16 %v2483_v18, %v2479_v8  ;;  %v2222_v4 = vadd.f32 %v10065_v12, %v13133_v29  ;;  %v2226_v24 = vadd.f32 %v10142_v43, %v13134_v51  ;;  %v13140_v61 = vld [vmem:[#allocation81_spill] sm:$0xff]  ;;  %v13141_v51 = vld [vmem:[#allocation82_spill] sm:$0xff] }
 0x1c3   : > { %13130 = vst [vmem:[#allocation19_spill] sm:$0xff] %v10230_v5  ;;  %v2813_v13 = vpack.c.bf16 %v2485_v19, %v2481_v44  ;;  %4641 = vmatpush1.bf16.msra.mxu1 %v2808_v33  ;;  %v2224_v40 = vadd.f32 %v10065_v12, %v13135_v22  ;;  %v2228_v11 = vadd.f32 %v10142_v43, %v13136_v41  ;;  %v2889_v43 = vld [vmem:[%s12651_s4 + $0x18] sm:$0xff]  ;;  %v10271_v35 = vpop.permute.xlu1 %1098  ;;  %v2898_v19 = vld [vmem:[%s12651_s4 + $0x60] sm:$0xff] }
 0x1c4   : > { %13132 = vst [vmem:[#allocation20_spill] sm:$0xff] %v10233_v37  ;;  %2957 = vperm.xlu1 %7319, %v2887_v16   ;;  %v2231_v9 = vadd.f32 %v10082_v23, %v13137_v31  ;;  %3936 = vmatprep.subr.bf16.mxu0 %v2811_v17  ;;  %v2478_v0 = vmax.f32 %v2222_v4, 0.0  ;;  %v2482_v34 = vmax.f32 %v2226_v24, 0.0  ;;  %v2235_v46 = vadd.f32 %v10177_v54, %v13138_v55  ;;  %v2891_v17 = vld [vmem:[%s12651_s4 + $0x28] sm:$0xff] }
 0x1c5   : > { %4642 = vmatprep.subr.bf16.mxu1 %v2813_v13  ;;  %v2233_v12 = vadd.f32 %v10082_v23, %v9770_v25  ;;  %v10261_v30 = vmul.f32 %v8057_v1, %v10126_v14  ;;  %v2480_v50 = vmax.f32 %v2224_v40, 0.0  ;;  %v2484_v45 = vmax.f32 %v2228_v11, 0.0  ;;  %3002 = vperm.xlu0 %7320, %v2896_v21   ;;  %v10269_v27 = vpop.permute.xlu0 %1118 }
 0x1c6   : > { %v2237_v60 = vadd.f32 %v10177_v54, %v13139_v32  ;;  %v10267_v57 = vmul.f32 %v8059_v6, %v10126_v14  ;;  %v2810_v53 = vpack.c.bf16 %v2482_v34, %v2478_v0  ;;  %v2487_v52 = vmax.f32 %v2231_v9, 0.0  ;;  %v13142_v9 = vld [vmem:[#allocation176_spill] sm:$0xff]  ;;  %v13143_v34 = vld [vmem:[#allocation83_spill] sm:$0xff] }
 0x1c7   : > { %v2491_v25 = vmax.f32 %v2235_v46, 0.0  ;;  %v10275_v47 = vmul.f32 %v13103_v26, %v10126_v14  ;;  %v2812_v8 = vpack.c.bf16 %v2484_v45, %v2480_v50  ;;  %v2489_v18 = vmax.f32 %v2233_v12, 0.0  ;;  %v10309_v31 = vpop.permute.xlu1 %1106  ;;  %v13144_v46 = vld [vmem:[#allocation156_spill] sm:$0xff] }
 0x1c8   : > { %v2493_v44 = vmax.f32 %v2237_v60, 0.0  ;;  %2967 = vperm.xlu1 %7319, %v2889_v43   ;;  %v10282_v16 = vmul.f32 %v8055_v48, %v10153_v58  ;;  %3937 = vmatpush1.bf16.msra.mxu0 %v2810_v53  ;;  %v2230_v2 = vadd.f32 %v10082_v23, %v9791_v38  ;;  %v2234_v14 = vadd.f32 %v10177_v54, %v13140_v61  ;;  %v13145_v43 = vld [vmem:[#allocation84_spill] sm:$0xff] }
 0x1c9   : > { %v2815_v33 = vpack.c.bf16 %v2491_v25, %v2487_v52  ;;  %v10293_v13 = vmul.f32 %v8057_v1, %v10153_v58  ;;  %4643 = vmatpush1.bf16.msra.mxu1 %v2812_v8  ;;  %v2232_v4 = vadd.f32 %v10082_v23, %v9794_v15  ;;  %v2236_v24 = vadd.f32 %v10177_v54, %v13141_v51  ;;  %v10307_v11 = vpop.permute.xlu0 %1126  ;;  %v2893_v52 = vld [vmem:[%s12651_s4 + $0x38] sm:$0xff] }
 0x1ca   : > { %v2817_v29 = vpack.c.bf16 %v2493_v44, %v2489_v18  ;;  %v10301_v38 = vmul.f32 %v8059_v6, %v10153_v58  ;;  %v10305_v22 = vmul.f32 %v13103_v26, %v10153_v58  ;;  %v2486_v40 = vmax.f32 %v2230_v2, 0.0  ;;  %3012 = vperm.xlu0 %7320, %v2898_v19   ;;  %v2900_v58 = vld [vmem:[%s12651_s4 + $0x70] sm:$0xff] }
 0x1cb   : > { %3938 = vmatprep.subr.bf16.mxu0 %v2815_v33  ;;  %v2490_v41 = vmax.f32 %v2234_v14, 0.0  ;;  %v10313_v15 = vmul.f32 %v8055_v48, %v10179_v28  ;;  %v2488_v23 = vmax.f32 %v2232_v4, 0.0  ;;  %v2492_v54 = vmax.f32 %v2236_v24, 0.0  ;;  %v10343_v33 = vpop.permute.xlu1 %1114  ;;  %v13147_v14 = vld [vmem:[#allocation85_spill] sm:$0xff] }
 0x1cc   : > { %4644 = vmatprep.subr.bf16.mxu1 %v2817_v29  ;;  %v2239_v21 = vadd.f32 %v10101_v39, %v13142_v9  ;;  %2977 = vperm.xlu1 %7319, %v2891_v17   ;;  %v2243_v55 = vadd.f32 %v10204_v42, %v13143_v34  ;;  %v2241_v12 = vadd.f32 %v10101_v39, %v13144_v46  ;;  %v13148_v29 = vld [vmem:[#allocation165_spill] sm:$0xff] }
 0x1cd   : > { %v2814_v0 = vpack.c.bf16 %v2490_v41, %v2486_v40  ;;  %v2245_v50 = vadd.f32 %v10204_v42, %v13145_v43  ;;  %v10328_v45 = vmul.f32 %v8057_v1, %v10179_v28  ;;  %v10332_v32 = vmul.f32 %v8059_v6, %v10179_v28  ;;  %v10341_v19 = vpop.permute.xlu0 %1134  ;;  %v13149_v41 = vld [vmem:[#allocation86_spill] sm:$0xff] }
 0x1ce   : > { %v10336_v60 = vmul.f32 %v13103_v26, %v10179_v28  ;;  %v2816_v53 = vpack.c.bf16 %v2492_v54, %v2488_v23  ;;  %v2495_v25 = vmax.f32 %v2239_v21, 0.0  ;;  %v2499_v8 = vmax.f32 %v2243_v55, 0.0  ;;  %3022 = vperm.xlu0 %7320, %v2900_v58   ;;  %v13146_v28 = vld [vmem:[#allocation158_spill] sm:$0xff]  ;;  %v2902_v54 = vld [vmem:[%s12651_s4 + $0x80] sm:$0xff] }
 0x1cf   : > { %3939 = vmatpush1.bf16.msra.mxu0 %v2814_v0  ;;  %v2497_v18 = vmax.f32 %v2241_v12, 0.0  ;;  %v2501_v44 = vmax.f32 %v2245_v50, 0.0  ;;  %v10347_v2 = vmul.f32 %v8055_v48, %v10214_v3  ;;  %v2238_v61 = vadd.f32 %v10101_v39, %v13146_v28  ;;  %v2895_v0 = vld [vmem:[%s12651_s4 + $0x48] sm:$0xff]  ;;  %v10383_v12 = vpop.permute.xlu1 %1122  ;;  %v2904_v28 = vld [vmem:[%s12651_s4 + $0x90] sm:$0xff] }
 0x1d0   : > { %4645 = vmatpush1.bf16.msra.mxu1 %v2816_v53  ;;  %v2242_v17 = vadd.f32 %v10204_v42, %v13147_v14  ;;  %v2240_v4 = vadd.f32 %v10101_v39, %v13148_v29  ;;  %v10357_v51 = vmul.f32 %v8057_v1, %v10214_v3  ;;  %v2819_v24 = vpack.c.bf16 %v2499_v8, %v2495_v25  ;;  %v7324_v29 = vld [vmem:[%s12650_s3 + $0x24] ss:$16 sps:$4 sm:$0xff]  }
 0x1d1   : > { %v2821_v40 = vpack.c.bf16 %v2501_v44, %v2497_v18  ;;  %v2244_v23 = vadd.f32 %v10204_v42, %v13149_v41  ;;  %2987 = vperm.xlu1 %7319, %v2893_v52   ;;  %v10366_v9 = vmul.f32 %v8059_v6, %v10214_v3  ;;  %v10370_v39 = vmul.f32 %v13103_v26, %v10214_v3  ;;  %v1143_v3 = vpop.permute.xlu0 %1142  ;;  %v7321_v44 = vld [vmem:[%s12650_s3] ss:$16 sps:$4 sm:$0xff]  }
 0x1d2   : > { %v2494_v21 = vmax.f32 %v2238_v61, 0.0  ;;  %v2498_v58 = vmax.f32 %v2242_v17, 0.0  ;;  %v10377_v42 = vmul.f32 %v8055_v48, %v10239_v62  ;;  %v10381_v34 = vmul.f32 %v8057_v1, %v10239_v62  ;;  %3940 = vmatprep.subr.bf16.mxu0 %v2819_v24  ;;  %3032 = vperm.xlu0 %7320, %v2902_v54  }
 0x1d3   : > { %4646 = vmatprep.subr.bf16.mxu1 %v2821_v40  ;;  %v2496_v55 = vmax.f32 %v2240_v4, 0.0  ;;  %v2500_v46 = vmax.f32 %v2244_v23, 0.0  ;;  %v10387_v43 = vmul.f32 %v8059_v6, %v10239_v62  ;;  %v10391_v50 = vmul.f32 %v13103_v26, %v10239_v62  ;;  %v1131_v23 = vpop.permute.xlu1 %1130 }
 0x1d4   : > { %13150 = vst [vmem:[#allocation23_spill] sm:$0xff] %v10381_v34  ;;  %v10395_v53 = vmul.f32 %v8055_v48, %v10241_v59  ;;  %v2818_v52 = vpack.c.bf16 %v2498_v58, %v2494_v21  ;;  %v10399_v25 = vmul.f32 %v8057_v1, %v10241_v59  ;;  %v10403_v8 = vmul.f32 %v8059_v6, %v10241_v59  ;;  %v13199_v34 = vld [vmem:[#allocation188_spill] sm:$0xff] }
 0x1d5   : > { %13151 = vst [vmem:[#allocation24_spill] sm:$0xff] %v10391_v50  ;;  %v10407_v18 = vmul.f32 %v13103_v26, %v10241_v59  ;;  %v2820_v62 = vpack.c.bf16 %v2500_v46, %v2496_v55  ;;  %2997 = vperm.xlu1 %7319, %v2895_v0   ;;  %v10417_v61 = vmul.f32 %v8055_v48, %v10269_v27  ;;  %v1151_v41 = vpop.permute.xlu0 %1150 }
 0x1d6   : > { %v10421_v14 = vmul.f32 %v8057_v1, %v10269_v27  ;;  %v10425_v59 = vmul.f32 %v8059_v6, %v10269_v27  ;;  %v10429_v17 = vmul.f32 %v13103_v26, %v10269_v27  ;;  %3941 = vmatpush1.bf16.msra.mxu0 %v2818_v52  ;;  %v10436_v4 = vmul.f32 %v8055_v48, %v10271_v35 }
 0x1d7   : > { %4647 = vmatpush1.bf16.msra.mxu1 %v2820_v62  ;;  %v10440_v24 = vmul.f32 %v8057_v1, %v10271_v35  ;;  %v10444_v40 = vmul.f32 %v8059_v6, %v10271_v35  ;;  %v10448_v27 = vmul.f32 %v13103_v26, %v10271_v35  ;;  %v10452_v54 = vmul.f32 %v8055_v48, %v10307_v11  ;;  %v2897_v35 = vld [vmem:[%s12651_s4 + $0x58] sm:$0xff]  ;;  %v2906_v62 = vld [vmem:[%s12651_s4 + $0xa0] sm:$0xff] }
 0x1d8   : > { %13152 = vst [vmem:[#allocation25_spill] sm:$0xff] %v10421_v14  ;;  %13153 = vst [vmem:[#allocation26_spill] sm:$0xff] %v10429_v17  ;;  %v10456_v21 = vmul.f32 %v8057_v1, %v10307_v11  ;;  %v10460_v58 = vmul.f32 %v8059_v6, %v10307_v11  ;;  %v10464_v0 = vmul.f32 %v13103_v26, %v10307_v11  ;;  %3042 = vperm.xlu0 %7320, %v2904_v28   ;;  %v1139_v17 = vpop.permute.xlu1 %1138 }
 0x1d9   : > { %13154 = vst [vmem:[#allocation28_spill] sm:$0xff] %v10452_v54  ;;  %3943 = vmatmul.mubr.bf16.vlgmr.msra.gmra.mrb[0].mxu0 %v7321_v44  ;;  %v10471_v55 = vmul.f32 %v8055_v48, %v10309_v31  ;;  %v10475_v46 = vmul.f32 %v8057_v1, %v10309_v31  ;;  %v10479_v52 = vmul.f32 %v8059_v6, %v10309_v31 }
 0x1da   : > { %13155 = vst [vmem:[#allocation29_spill] sm:$0xff] %v10456_v21  ;;  %13156 = vst [vmem:[#allocation30_spill] sm:$0xff] %v10460_v58  ;;  %v10483_v11 = vmul.f32 %v13103_v26, %v10309_v31  ;;  %4649 = vmatmul.mubr.bf16.vlgmr.msra.gmra.mrb[0].mxu1 %v7321_v44  ;;  %v10490_v28 = vmul.f32 %v8055_v48, %v10341_v19  ;;  %v10498_v21 = vmul.f32 %v8059_v6, %v10341_v19  ;;  %v13184_v58 = vld [vmem:[#allocation88_spill] sm:$0xff] }
 0x1db   : > { %13157 = vst [vmem:[#allocation31_spill] sm:$0xff] %v10464_v0  ;;  %v10494_v0 = vmul.f32 %v8057_v1, %v10341_v19  ;;  %3952 = vmatprep.mubr.bf16.mxu0 %v7324_v29  ;;  %v10502_v31 = vmul.f32 %v13103_v26, %v10341_v19  ;;  %v10506_v44 = vmul.f32 %v8055_v48, %v10343_v33 }
 0x1dc   : > { %13158 = vst [vmem:[#allocation33_spill] sm:$0xff] %v10483_v11  ;;  %13159 = vst [vmem:[#allocation34_spill] sm:$0xff] %v10490_v28  ;;  %v10510_v28 = vmul.f32 %v8057_v1, %v10343_v33  ;;  %4658 = vmatprep.mubr.bf16.mxu1 %v7324_v29  ;;  %3007 = vperm.xlu1 %7319, %v2897_v35   ;;  %v10518_v19 = vmul.f32 %v13103_v26, %v10343_v33  ;;  %v2899_v29 = vld [vmem:[%s12651_s4 + $0x68] sm:$0xff]  ;;  %v7326_v35 = vld [vmem:[%s12650_s3 + $0x20] ss:$16 sps:$4 sm:$0xff]  }
 0x1dd   : > { %13160 = vst [vmem:[#allocation35_spill] sm:$0xff] %v10494_v0  ;;  %13161 = vst [vmem:[#allocation36_spill] sm:$0xff] %v10498_v21  ;;  %v1159_v0 = vpop.permute.xlu0 %1158  ;;  %v10514_v21 = vmul.f32 %v8059_v6, %v10343_v33  ;;  %v10524_v14 = vmul.f32 %v8057_v1, %v1143_v3  ;;  %3052 = vperm.xlu0 %7320, %v2906_v62   ;;  %v10536_v33 = vmul.f32 %v13103_v26, %v1143_v3  ;;  %v13186_v11 = vld [vmem:[#allocation13_spill] sm:$0xff] }
 0x1de   : > { %13162 = vst [vmem:[#allocation40_spill] sm:$0xff] %v10502_v31  ;;  %13163 = vst [vmem:[#allocation41_spill] sm:$0xff] %v10510_v28  ;;  %v10521_v31 = vmul.f32 %v8055_v48, %v1143_v3  ;;  %v10533_v28 = vmul.f32 %v8059_v6, %v1143_v3  ;;  %v10544_v62 = vmul.f32 %v8057_v1, %v10383_v12 }
 0x1df   : > { %13164 = vst [vmem:[#allocation42_spill] sm:$0xff] %v10518_v19  ;;  %13166 = vst [vmem:[#allocation44_spill] sm:$0xff] %v10524_v14  ;;  %v2908_v14 = vld [vmem:[%s12651_s4 + $0xb0] sm:$0xff]  ;;  %v10551_v19 = vmul.f32 %v8059_v6, %v10383_v12  ;;  %v10555_v3 = vmul.f32 %v13103_v26, %v10383_v12  ;;  %v10567_v36 = vmul.f32 %v8059_v6, %v1151_v41 }
 0x1e0   : > { %13165 = vst [vmem:[#allocation43_spill] sm:$0xff] %v10521_v31  ;;  %13167 = vst [vmem:[#allocation45_spill] sm:$0xff] %v10533_v28  ;;  %v10540_v31 = vmul.f32 %v8055_v48, %v10383_v12  ;;  %v10561_v28 = vmul.f32 %v8057_v1, %v1151_v41  ;;  %v10570_v37 = vmul.f32 %v13103_v26, %v1151_v41  ;;  %3017 = vperm.xlu1 %7319, %v2899_v29  }
 0x1e1   : > { %13168 = vst [vmem:[#allocation46_spill] sm:$0xff] %v10536_v33  ;;  %13169 = vst [vmem:[#allocation47_spill] sm:$0xff] %v10544_v62  ;;  %v10558_v33 = vmul.f32 %v8055_v48, %v1151_v41  ;;  %v7327_v62 = vld [vmem:[%s12650_s3 + $0x44] ss:$16 sps:$4 sm:$0xff]   ;;  %v10573_v5 = vmul.f32 %v8055_v48, %v1131_v23  ;;  %v10576_v12 = vmul.f32 %v8057_v1, %v1131_v23  ;;  %3062 = vperm.xlu0 %7320, %v2908_v14  }
 0x1e2   : > { %13170 = vst [vmem:[#allocation48_spill] sm:$0xff] %v10555_v3  ;;  %13172 = vst [vmem:[#allocation50_spill] sm:$0xff] %v10561_v28  ;;  %v1147_v3 = vpop.permute.xlu1 %1146  ;;  %v10579_v28 = vmul.f32 %v8059_v6, %v1131_v23  ;;  %v10582_v10 = vmul.f32 %v13103_v26, %v1131_v23  ;;  %v10588_v41 = vmul.f32 %v8057_v1, %v1159_v0  ;;  %3953 = vmatmul.mubr.bf16.gmra.mrb[4].mxu0 %v7326_v35  ;;  %v2910_v14 = vld [vmem:[%s12651_s4 + $0xc0] sm:$0xff] }
 0x1e3   : > { %13171 = vst [vmem:[#allocation49_spill] sm:$0xff] %v10558_v33  ;;  %13173 = vst [vmem:[#allocation51_spill] sm:$0xff] %v10567_v36  ;;  %v1167_v33 = vpop.permute.xlu0 %1166  ;;  %v10585_v36 = vmul.f32 %v8055_v48, %v1159_v0  ;;  %v10594_v29 = vmul.f32 %v8059_v6, %v1159_v0  ;;  %v10600_v23 = vmul.f32 %v8055_v48, %v1139_v17  ;;  %4659 = vmatmul.mubr.bf16.gmra.mrb[4].mxu1 %v7326_v35  ;;  %v13185_v35 = vld [vmem:[#allocation14_spill] sm:$0xff] }
 0x1e4   : > { %13174 = vst [vmem:[#allocation52_spill] sm:$0xff] %v10570_v37  ;;  %13175 = vst [vmem:[#allocation53_spill] sm:$0xff] %v10576_v12  ;;  %v2901_v37 = vld [vmem:[%s12651_s4 + $0x78] sm:$0xff]  ;;  %v10597_v12 = vmul.f32 %v13103_v26, %v1159_v0  ;;  %3962 = vmatprep.mubr.bf16.mxu0 %v7327_v62  ;;  %4668 = vmatprep.mubr.bf16.mxu1 %v7327_v62  ;;  %v10620_v54 = vadd.f32 %v10267_v57, %v13184_v58  ;;  %v2903_v57 = vld [vmem:[%s12651_s4 + $0x88] sm:$0xff] }
 0x1e5   : > { %13176 = vst [vmem:[#allocation54_spill] sm:$0xff] %v10582_v10  ;;  %13177 = vst [vmem:[#allocation55_spill] sm:$0xff] %v10585_v36  ;;  %v10603_v36 = vmul.f32 %v8057_v1, %v1139_v17  ;;  %v13183_v0 = vld [vmem:[#allocation15_spill] sm:$0xff]  ;;  %3027 = vperm.xlu1 %7319, %v2901_v37   ;;  %v10624_v50 = vadd.f32 %v10313_v15, %v13185_v35  ;;  %v10637_v37 = vmul.f32 %v8059_v6, %v1167_v33  ;;  %v13190_v15 = vld [vmem:[#allocation180_spill] sm:$0xff] }
 0x1e6   : > { %13178 = vst [vmem:[#allocation56_spill] sm:$0xff] %v10588_v41  ;;  %13179 = vst [vmem:[#allocation57_spill] sm:$0xff] %v10594_v29  ;;  %v10609_v41 = vmul.f32 %v8059_v6, %v1139_v17  ;;  %v10612_v29 = vmul.f32 %v13103_v26, %v1139_v17  ;;  %v10628_v17 = vadd.f32 %v10332_v32, %v13186_v11  ;;  %3072 = vperm.xlu0 %7320, %v2910_v14   ;;  %v7329_v32 = vld [vmem:[%s12650_s3 + $0x40] ss:$16 sps:$4 sm:$0xff]  }
 0x1e7   : > { %13180 = vst [vmem:[#allocation58_spill] sm:$0xff] %v10597_v12  ;;  %13181 = vst [vmem:[#allocation59_spill] sm:$0xff] %v10603_v36  ;;  %v10616_v12 = vadd.f32 %v10227_v63, %v13183_v0  ;;  %v1175_v10 = vpop.permute.xlu0 %1174  ;;  %v1155_v36 = vpop.permute.xlu1 %1154  ;;  %v10634_v63 = vmul.f32 %v8057_v1, %v1167_v33  ;;  %v10644_v58 = vadd.f32 %v10436_v4, %v13190_v15  ;;  %v2912_v4 = vld [vmem:[%s12651_s4 + $0xd0] sm:$0xff] }
 0x1e8   : > { %13182 = vst [vmem:[#allocation60_spill] sm:$0xff] %v10612_v29  ;;  %v10631_v29 = vmul.f32 %v8055_v48, %v1167_v33  ;;  %13189 = vst [vmem:[#allocation120_spill] sm:$0xff] %v10637_v37  ;;  %v10650_v11 = vmul.f32 %v13103_v26, %v1167_v33  ;;  %v10653_v62 = vmul.f32 %v8055_v48, %v1147_v3  ;;  %v7330_v33 = vld [vmem:[%s12650_s3 + $0x64] ss:$16 sps:$4 sm:$0xff]   ;;  %v13195_v15 = vld [vmem:[#allocation182_spill] sm:$0xff] }
 0x1e9   : > { %13188 = vst [vmem:[#allocation61_spill] sm:$0xff] %v10634_v63  ;;  %13191 = vst [vmem:[#allocation62_spill] sm:$0xff] %v10644_v58  ;;  %v10656_v14 = vmul.f32 %v8057_v1, %v1147_v3  ;;  %v10659_v0 = vmul.f32 %v8059_v6, %v1147_v3  ;;  %v10665_v35 = vmul.f32 %v13103_v26, %v1147_v3  ;;  %v13196_v63 = vld [vmem:[#allocation184_spill] sm:$0xff]  ;;  %3037 = vperm.xlu1 %7319, %v2903_v57  }
 0x1ea   : > { %13187 = vst [vmem:[#allocation114_spill] sm:$0xff] %v10631_v29  ;;  %13192 = vst [vmem:[#allocation209_spill] sm:$0xff] %v10650_v11  ;;  %v10672_v11 = vadd.f32 %v10444_v40, %v13195_v15  ;;  %v10676_v37 = vadd.f32 %v10471_v55, %v13196_v63  ;;  %v13197_v29 = vld [vmem:[#allocation186_spill] sm:$0xff]  ;;  %v10683_v3 = vmul.f32 %v8055_v48, %v1175_v10  ;;  %v13202_v55 = vld [vmem:[#allocation87_spill] sm:$0xff]  ;;  %3082 = vperm.xlu0 %7320, %v2912_v4  }
 0x1eb   : > { %13193 = vst [vmem:[#allocation63_spill] sm:$0xff] %v10656_v14  ;;  %13194 = vst [vmem:[#allocation119_spill] sm:$0xff] %v10665_v35  ;;  %v10680_v14 = vadd.f32 %v10479_v52, %v13197_v29  ;;  %v1183_v35 = vpop.permute.xlu0 %1182  ;;  %v1163_v58 = vpop.permute.xlu1 %1162  ;;  %v10687_v56 = vadd.f32 %v10506_v44, %v13199_v34  ;;  %v13200_v40 = vld [vmem:[#allocation190_spill] sm:$0xff]  ;;  %v10695_v63 = vadd.f32 %v10261_v30, %v13202_v55  ;;  %3963 = vmatmul.mubr.bf16.gmra.mrb[8].mxu0 %v7329_v32  ;;  %v13208_v55 = vld [vmem:[#allocation89_spill] sm:$0xff] }
 0x1ec   : > { %13198 = vst [vmem:[#allocation64_spill] sm:$0xff] %v10683_v3  ;;  %v10691_v15 = vadd.f32 %v10514_v21, %v13200_v40  ;;  %v10698_v52 = vmul.f32 %v8057_v1, %v1175_v10  ;;  %v10701_v29 = vmul.f32 %v8059_v6, %v1175_v10  ;;  %v10704_v57 = vmul.f32 %v13103_v26, %v1175_v10  ;;  %v2905_v21 = vld [vmem:[%s12651_s4 + $0x98] sm:$0xff]  ;;  %v2914_v10 = vld [vmem:[%s12651_s4 + $0xe0] sm:$0xff] }
 0x1ed   : > { %v10707_v34 = vmul.f32 %v8055_v48, %v1155_v36  ;;  %v10713_v30 = vmul.f32 %v8057_v1, %v1155_v36  ;;  %v10716_v44 = vmul.f32 %v8059_v6, %v1155_v36  ;;  %v10719_v40 = vmul.f32 %v13103_v26, %v1155_v36  ;;  %4669 = vmatmul.mubr.bf16.gmra.mrb[8].mxu1 %v7329_v32  ;;  %v13211_v36 = vld [vmem:[#allocation192_spill] sm:$0xff] }
 0x1ee   : > { %13201 = vst [vmem:[#allocation121_spill] sm:$0xff] %v10691_v15  ;;  %13203 = vst [vmem:[#allocation65_spill] sm:$0xff] %v10698_v52  ;;  %v10726_v4 = vadd.f32 %v10275_v47, %v13208_v55  ;;  %3972 = vmatprep.mubr.bf16.mxu0 %v7330_v33  ;;  %4678 = vmatprep.mubr.bf16.mxu1 %v7330_v33  ;;  %v13213_v47 = vld [vmem:[#allocation194_spill] sm:$0xff]  ;;  %v10759_v33 = vmul.f32 %v8059_v6, %v1183_v35 }
 0x1ef   : > { %13204 = vst [vmem:[#allocation213_spill] sm:$0xff] %v10701_v29  ;;  %13205 = vst [vmem:[#allocation66_spill] sm:$0xff] %v10704_v57  ;;  %v13209_v57 = vld [vmem:[#allocation21_spill] sm:$0xff]  ;;  %v13210_v29 = vld [vmem:[#allocation91_spill] sm:$0xff]  ;;  %3047 = vperm.xlu1 %7319, %v2905_v21   ;;  %v1171_v15 = vpop.permute.xlu1 %1170  ;;  %v10742_v32 = vadd.f32 %v10551_v19, %v13213_v47  ;;  %3092 = vperm.xlu0 %7320, %v2914_v10   ;;  %v10775_v47 = vmul.f32 %v8055_v48, %v1163_v58 }
 0x1f0   : > { %13206 = vst [vmem:[#allocation127_spill] sm:$0xff] %v10713_v30  ;;  %13207 = vst [vmem:[#allocation67_spill] sm:$0xff] %v10719_v40  ;;  %v10730_v52 = vadd.f32 %v10282_v16, %v13209_v57  ;;  %v10734_v3 = vadd.f32 %v10301_v38, %v13210_v29  ;;  %v10738_v40 = vadd.f32 %v10540_v31, %v13211_v36  ;;  %v1191_v30 = vpop.permute.xlu0 %1190  ;;  %v13215_v55 = vld [vmem:[#allocation22_spill] sm:$0xff]  ;;  %v13216_v57 = vld [vmem:[#allocation93_spill] sm:$0xff] }
 0x1f1   : > { %13214 = vst [vmem:[#allocation68_spill] sm:$0xff] %v10742_v32  ;;  %v10746_v16 = vadd.f32 %v10395_v53, %v13215_v55  ;;  %v10750_v38 = vadd.f32 %v10403_v8, %v13216_v57  ;;  %v10753_v29 = vmul.f32 %v8055_v48, %v1183_v35  ;;  %v10756_v31 = vmul.f32 %v8057_v1, %v1183_v35  ;;  %v2907_v19 = vld [vmem:[%s12651_s4 + $0xa8] sm:$0xff]  ;;  %v13220_v53 = vld [vmem:[#allocation196_spill] sm:$0xff] }
 0x1f2   : > { %13212 = vst [vmem:[#allocation7_spill] sm:$0xff] %v10738_v40  ;;  %13219 = vst [vmem:[#allocation133_spill] sm:$0xff] %v10759_v33  ;;  %v10766_v21 = vadd.f32 %v10573_v5, %v13220_v53  ;;  %v7332_v8 = vld [vmem:[%s12650_s3 + $0x60] ss:$16 sps:$4 sm:$0xff]   ;;  %v10772_v36 = vmul.f32 %v13103_v26, %v1183_v35  ;;  %v10778_v10 = vmul.f32 %v8057_v1, %v1163_v58  ;;  %v7333_v35 = vld [vmem:[%s12650_s3 + $0x84] ss:$16 sps:$4 sm:$0xff]  }
 0x1f3   : > { %13217 = vst [vmem:[#allocation126_spill] sm:$0xff] %v10753_v29  ;;  %13218 = vst [vmem:[#allocation69_spill] sm:$0xff] %v10756_v31  ;;  %v10781_v55 = vmul.f32 %v8059_v6, %v1163_v58  ;;  %v2916_v5 = vld [vmem:[%s12651_s4 + $0xf0] sm:$0xff]  ;;  %v10787_v57 = vmul.f32 %v13103_v26, %v1163_v58  ;;  %v13227_v29 = vld [vmem:[#allocation92_spill] sm:$0xff]  ;;  %3057 = vperm.xlu1 %7319, %v2907_v19   ;;  %v10805_v58 = vmul.f32 %v8055_v48, %v1191_v30 }
 0x1f4   : > { %13221 = vst [vmem:[#allocation70_spill] sm:$0xff] %v10766_v21  ;;  %13222 = vst [vmem:[#allocation135_spill] sm:$0xff] %v10772_v36  ;;  %v13225_v53 = vld [vmem:[#allocation198_spill] sm:$0xff]  ;;  %v1179_v21 = vpop.permute.xlu1 %1178  ;;  %v13229_v32 = vld [vmem:[#allocation32_spill] sm:$0xff]  ;;  %v10826_v19 = vmul.f32 %v13103_v26, %v1191_v30  ;;  %3102 = vperm.xlu0 %7320, %v2916_v5   ;;  %3973 = vmatmul.mubr.bf16.gmra.mrb[12].mxu0 %v7332_v8 }
 0x1f5   : > { %13223 = vst [vmem:[#allocation71_spill] sm:$0xff] %v10778_v10  ;;  %13224 = vst [vmem:[#allocation12_spill] sm:$0xff] %v10787_v57  ;;  %v10794_v36 = vadd.f32 %v10579_v28, %v13225_v53  ;;  %v13226_v31 = vld [vmem:[#allocation90_spill] sm:$0xff]  ;;  %v10802_v10 = vadd.f32 %v10305_v22, %v13227_v29  ;;  %v1199_v57 = vpop.permute.xlu0 %1198  ;;  %v10809_v40 = vadd.f32 %v10347_v2, %v13229_v32  ;;  %v13230_v28 = vld [vmem:[#allocation95_spill] sm:$0xff]  ;;  %4679 = vmatmul.mubr.bf16.gmra.mrb[12].mxu1 %v7332_v8 }
 0x1f6   : > { %v10798_v33 = vadd.f32 %v10293_v13, %v13226_v31  ;;  %13228 = vst [vmem:[#allocation168_spill] sm:$0xff] %v10805_v58  ;;  %v10813_v53 = vadd.f32 %v10366_v9, %v13230_v28  ;;  %v13231_v13 = vld [vmem:[#allocation200_spill] sm:$0xff]  ;;  %v10820_v22 = vmul.f32 %v8057_v1, %v1191_v30  ;;  %v10823_v29 = vmul.f32 %v8059_v6, %v1191_v30  ;;  %v13244_v8 = vld [vmem:[#allocation38_spill] sm:$0xff] }
 0x1f7   : > { %v10817_v31 = vadd.f32 %v10600_v23, %v13231_v13  ;;  %13234 = vst [vmem:[#allocation134_spill] sm:$0xff] %v10826_v19  ;;  %v10829_v2 = vmul.f32 %v8055_v48, %v1171_v15  ;;  %v2909_v9 = vld [vmem:[%s12651_s4 + $0xb8] sm:$0xff]  ;;  %v10835_v23 = vmul.f32 %v8057_v1, %v1171_v15  ;;  %v10838_v32 = vmul.f32 %v8059_v6, %v1171_v15  ;;  %v2918_v30 = vld [vmem:[%s12651_s4 + $0x100] sm:$0xff]  ;;  %v13239_v13 = vld [vmem:[#allocation202_spill] sm:$0xff] }
 0x1f8   : > { %13232 = vst [vmem:[#allocation132_spill] sm:$0xff] %v10820_v22  ;;  %13233 = vst [vmem:[#allocation72_spill] sm:$0xff] %v10823_v29  ;;  %v10841_v28 = vmul.f32 %v13103_v26, %v1171_v15  ;;  %v10848_v5 = vadd.f32 %v10609_v41, %v13239_v13  ;;  %3982 = vmatprep.mubr.bf16.mxu0 %v7333_v35  ;;  %v13240_v19 = vld [vmem:[#allocation17_spill] sm:$0xff]  ;;  %v13241_v29 = vld [vmem:[#allocation27_spill] sm:$0xff]  ;;  %4688 = vmatprep.mubr.bf16.mxu1 %v7333_v35 }
 0x1f9   : > { %13235 = vst [vmem:[#allocation73_spill] sm:$0xff] %v10829_v2  ;;  %13236 = vst [vmem:[#allocation141_spill] sm:$0xff] %v10835_v23  ;;  %v10852_v22 = vadd.f32 %v10328_v45, %v13240_v19  ;;  %v10856_v58 = vadd.f32 %v10399_v25, %v13241_v29  ;;  %v13242_v15 = vld [vmem:[#allocation16_spill] sm:$0xff]  ;;  %3067 = vperm.xlu1 %7319, %v2909_v9   ;;  %v1187_v23 = vpop.permute.xlu1 %1186  ;;  %v10868_v13 = vadd.f32 %v10377_v42, %v13244_v8  ;;  %v13245_v45 = vld [vmem:[#allocation97_spill] sm:$0xff]  ;;  %v1966_v42 = vpop.permute.xlu0 %1965 }
 0x1fa   : > { %13237 = vst [vmem:[#allocation74_spill] sm:$0xff] %v10838_v32  ;;  %13238 = vst [vmem:[#allocation170_spill] sm:$0xff] %v10841_v28  ;;  %v10860_v28 = vadd.f32 %v10336_v60, %v13242_v15  ;;  %v13243_v32 = vld [vmem:[#allocation94_spill] sm:$0xff]  ;;  %v10872_v19 = vadd.f32 %v10387_v43, %v13245_v45  ;;  %v10875_v25 = vmul.f32 %v8055_v48, %v1199_v57  ;;  %3112 = vperm.xlu0 %7320, %v2918_v30   ;;  %v13249_v29 = vld [vmem:[#allocation204_spill] sm:$0xff] }
 0x1fb   : > { %v10864_v41 = vadd.f32 %v10407_v18, %v13243_v32  ;;  %v10878_v60 = vmul.f32 %v8057_v1, %v1199_v57  ;;  %v10881_v35 = vmul.f32 %v8059_v6, %v1199_v57  ;;  %v2911_v18 = vld [vmem:[%s12651_s4 + $0xc8] sm:$0xff]  ;;  %v10888_v9 = vadd.f32 %v10653_v62, %v13249_v29  ;;  %v7335_v43 = vld [vmem:[%s12650_s3 + $0x80] ss:$16 sps:$4 sm:$0xff]  }
 0x1fc   : > { %13246 = vst [vmem:[#allocation169_spill] sm:$0xff] %v10875_v25  ;;  %v10894_v32 = vmul.f32 %v13103_v26, %v1199_v57  ;;  %v10897_v15 = vmul.f32 %v8055_v48, %v1179_v21  ;;  %v10900_v30 = vmul.f32 %v8057_v1, %v1179_v21  ;;  %v10903_v8 = vmul.f32 %v8059_v6, %v1179_v21  ;;  %v2920_v62 = vld [vmem:[%s12651_s4 + $0x110] sm:$0xff]  ;;  %v13257_v25 = vld [vmem:[#allocation37_spill] sm:$0xff] }
 0x1fd   : > { %13247 = vst [vmem:[#allocation171_spill] sm:$0xff] %v10878_v60  ;;  %13248 = vst [vmem:[#allocation143_spill] sm:$0xff] %v10881_v35  ;;  %v10909_v45 = vmul.f32 %v13103_v26, %v1179_v21  ;;  %v7336_v57 = vld [vmem:[%s12650_s3 + $0xa4] ss:$16 sps:$4 sm:$0xff]   ;;  %v13255_v29 = vld [vmem:[#allocation206_spill] sm:$0xff]  ;;  %3077 = vperm.xlu1 %7319, %v2911_v18   ;;  %v10927_v21 = vadd.f32 %v1966_v42, %v10616_v12  ;;  %v1981_v12 = vpop.permute.xlu0 %1980  ;;  %3983 = vmatmul.mubr.bf16.gmra.mrb[16].mxu0 %v7335_v43 }
 0x1fe   : > { %13250 = vst [vmem:[#allocation75_spill] sm:$0xff] %v10894_v32  ;;  %13251 = vst [vmem:[#allocation140_spill] sm:$0xff] %v10897_v15  ;;  %v10916_v32 = vadd.f32 %v10659_v0, %v13255_v29  ;;  %v13256_v60 = vld [vmem:[#allocation181_spill] sm:$0xff]  ;;  %v10933_v15 = vadd.f32 %v1966_v42, %v10695_v63  ;;  %v10936_v0 = vadd.f32 %v1966_v42, %v10726_v4  ;;  %3122 = vperm.xlu0 %7320, %v2920_v62   ;;  %v13261_v18 = vld [vmem:[#allocation99_spill] sm:$0xff] }
 0x1ff   : > { %13252 = vst [vmem:[#allocation76_spill] sm:$0xff] %v10900_v30  ;;  %13253 = vst [vmem:[#allocation174_spill] sm:$0xff] %v10903_v8  ;;  %v10920_v35 = vadd.f32 %v10440_v24, %v13256_v60  ;;  %v10924_v30 = vadd.f32 %v10357_v51, %v13257_v25  ;;  %v1195_v8 = vpop.permute.xlu1 %1194  ;;  %v10939_v24 = vmul.f32 %v8055_v48, %v1187_v23  ;;  %v2913_v51 = vld [vmem:[%s12651_s4 + $0xd8] sm:$0xff]  ;;  %4689 = vmatmul.mubr.bf16.gmra.mrb[16].mxu1 %v7335_v43 }
 0x200   : > { %13254 = vst [vmem:[#allocation142_spill] sm:$0xff] %v10909_v45  ;;  %v10930_v45 = vadd.f32 %v1966_v42, %v10620_v54  ;;  %v13259_v25 = vld [vmem:[#allocation183_spill] sm:$0xff]  ;;  %v13260_v60 = vld [vmem:[#allocation96_spill] sm:$0xff]  ;;  %v10954_v4 = vadd.f32 %v10417_v61, %v13261_v18  ;;  %v10957_v42 = vmul.f32 %v8057_v1, %v1187_v23  ;;  %v10960_v62 = vmul.f32 %v8059_v6, %v1187_v23 }
 0x201   : > { %13258 = vst [vmem:[#allocation77_spill] sm:$0xff] %v10939_v24  ;;  %v10946_v54 = vadd.f32 %v10448_v27, %v13259_v25  ;;  %v10950_v63 = vadd.f32 %v10370_v39, %v13260_v60  ;;  %v10963_v29 = vmul.f32 %v13103_v26, %v1187_v23  ;;  %v2922_v27 = vld [vmem:[%s12651_s4 + $0x120] sm:$0xff]  ;;  %3992 = vmatprep.mubr.bf16.mxu0 %v7336_v57  ;;  %v13269_v18 = vld [vmem:[#allocation211_spill] sm:$0xff]  ;;  %v2507_v43 = vmax.f32 %v10933_v15, 0.0  ;;  %v1991_v15 = vpop.permute.xlu0 %1990  ;;  %v13281_v24 = vld [vmem:[#allocation98_spill] sm:$0xff] }
 0x202   : > { %13262 = vst [vmem:[#allocation149_spill] sm:$0xff] %v10957_v42  ;;  %13263 = vst [vmem:[#allocation78_spill] sm:$0xff] %v10960_v62  ;;  %v13265_v39 = vld [vmem:[#allocation101_spill] sm:$0xff]  ;;  %v13267_v61 = vld [vmem:[#allocation208_spill] sm:$0xff]  ;;  %v10978_v42 = vadd.f32 %v10716_v44, %v13269_v18  ;;  %4698 = vmatprep.mubr.bf16.mxu1 %v7336_v57  ;;  %v2506_v62 = vmax.f32 %v10927_v21, 0.0  ;;  %3087 = vperm.xlu1 %7319, %v2913_v51   ;;  %v10992_v44 = vmul.f32 %v8057_v1, %v1195_v8 }
 0x203   : > { %13264 = vst [vmem:[#allocation151_spill] sm:$0xff] %v10963_v29  ;;  %v10970_v25 = vadd.f32 %v10425_v59, %v13265_v39  ;;  %v10974_v60 = vadd.f32 %v10707_v34, %v13267_v61  ;;  %v13271_v23 = vld [vmem:[#allocation185_spill] sm:$0xff]  ;;  %v2508_v59 = vmax.f32 %v10930_v45, 0.0  ;;  %v2509_v39 = vmax.f32 %v10936_v0, 0.0  ;;  %3132 = vperm.xlu0 %7320, %v2922_v27   ;;  %v1961_v57 = vpop.permute.xlu1 %1960  ;;  %v2924_v21 = vld [vmem:[%s12651_s4 + $0x130] sm:$0xff] }
 0x204   : > { %13270 = vst [vmem:[#allocation177_spill] sm:$0xff] %v10978_v42  ;;  %v10982_v29 = vadd.f32 %v10475_v46, %v13271_v23  ;;  %v10989_v34 = vmul.f32 %v8055_v48, %v1195_v8  ;;  %13273 = vst [vmem:[#allocation148_spill] sm:$0xff] %v10992_v44  ;;  %v10995_v61 = vmul.f32 %v8059_v6, %v1195_v8  ;;  %v2915_v45 = vld [vmem:[%s12651_s4 + $0xe8] sm:$0xff]  ;;  %v7338_v48 = vld [vmem:[%s12650_s3 + $0xa0] ss:$16 sps:$4 sm:$0xff]  }
 0x205   : > { %13266 = vst [vmem:[#allocation10_spill] sm:$0xff] %v10970_v25  ;;  %13268 = vst [vmem:[#allocation178_spill] sm:$0xff] %v10974_v60  ;;  %v10998_v46 = vmul.f32 %v13103_v26, %v1195_v8  ;;  %v11007_v1 = vadd.f32 %v1981_v12, %v10624_v50  ;;  %v11010_v6 = vadd.f32 %v1981_v12, %v10628_v17  ;;  %v7339_v0 = vld [vmem:[%s12650_s3 + $0xc4] ss:$16 sps:$4 sm:$0xff]   ;;  %3993 = vmatmul.mubr.bf16.gmra.mrb[20].mxu0 %v7338_v48  ;;  %v13289_v42 = vld [vmem:[#allocation214_spill] sm:$0xff] }
 0x206   : > { %13272 = vst [vmem:[#allocation179_spill] sm:$0xff] %v10989_v34  ;;  %13274 = vst [vmem:[#allocation11_spill] sm:$0xff] %v10995_v61  ;;  %v2246_v26 = vadd.f32 %v1961_v57, %v10140_v7  ;;  %v2248_v8 = vadd.f32 %v1961_v57, %v10165_v49  ;;  %v2247_v51 = vadd.f32 %v1961_v57, %v10168_v20  ;;  %v13276_v27 = vld [vmem:[#allocation167_spill] sm:$0xff]  ;;  %3097 = vperm.xlu1 %7319, %v2915_v45   ;;  %v13280_v61 = vld [vmem:[#allocation33_spill] sm:$0xff] }
 0x207   : > { %13275 = vst [vmem:[#allocation150_spill] sm:$0xff] %v10998_v46  ;;  %v2249_v50 = vadd.f32 %v1961_v57, %v13276_v27  ;;  %v11023_v18 = vadd.f32 %v1981_v12, %v10852_v22  ;;  %v11026_v17 = vadd.f32 %v1981_v12, %v10860_v28  ;;  %v13277_v49 = vld [vmem:[#allocation39_spill] sm:$0xff]  ;;  %v13282_v20 = vld [vmem:[#allocation24_spill] sm:$0xff]  ;;  %3142 = vperm.xlu0 %7320, %v2924_v21   ;;  %v11043_v28 = vpop.permute.xlu0 %2000  ;;  %v1971_v12 = vpop.permute.xlu1 %1970  ;;  %v13288_v21 = vld [vmem:[#allocation30_spill] sm:$0xff]  ;;  %v2520_v25 = vmax.f32 %v11010_v6, 0.0 }
 0x208   : > { %v2502_v7 = vmax.f32 %v2246_v26, 0.0  ;;  %v13278_v23 = vld [vmem:[#allocation23_spill] sm:$0xff]  ;;  %v11038_v2 = vadd.f32 %v13282_v20, %v13281_v24  ;;  %v2504_v57 = vmax.f32 %v2248_v8, 0.0  ;;  %v2503_v45 = vmax.f32 %v2247_v51, 0.0  ;;  %v2926_v24 = vld [vmem:[%s12651_s4 + $0x140] sm:$0xff]  ;;  %4699 = vmatmul.mubr.bf16.gmra.mrb[20].mxu1 %v7338_v48  ;;  %4002 = vmatprep.mubr.bf16.mxu0 %v7339_v0 }
 0x209   : > { %v11030_v46 = vadd.f32 %v13278_v23, %v13277_v49  ;;  %v13279_v44 = vld [vmem:[#allocation187_spill] sm:$0xff]  ;;  %v2505_v26 = vmax.f32 %v2249_v50, 0.0  ;;  %v13284_v49 = vld [vmem:[#allocation28_spill] sm:$0xff]  ;;  %v13287_v8 = vld [vmem:[#allocation105_spill] sm:$0xff]  ;;  %v11061_v51 = vadd.f32 %v10775_v47, %v13289_v42  ;;  %4708 = vmatprep.mubr.bf16.mxu1 %v7339_v0 }
 0x20a   : > { %v11034_v34 = vadd.f32 %v13280_v61, %v13279_v44  ;;  %v2917_v22 = vld [vmem:[%s12651_s4 + $0xf8] sm:$0xff]  ;;  %v13286_v44 = vld [vmem:[#allocation62_spill] sm:$0xff]  ;;  %v11057_v20 = vadd.f32 %v13288_v21, %v13287_v8  ;;  %v2822_v60 = vpack.c.bf16 %v2506_v62, %v2502_v7  ;;  %v11070_v8 = vadd.f32 %v1991_v15, %v10672_v11 }
 0x20b   : > { %v13283_v27 = vld [vmem:[#allocation103_spill] sm:$0xff]  ;;  %v11050_v61 = vadd.f32 %v1991_v15, %v13286_v44  ;;  %v13290_v50 = vld [vmem:[#allocation216_spill] sm:$0xff]  ;;  %v2823_v44 = vpack.c.bf16 %v2507_v43, %v2503_v45  ;;  %3107 = vperm.xlu1 %7319, %v2917_v22   ;;  %v11074_v21 = vadd.f32 %v1991_v15, %v10920_v35  ;;  %3152 = vperm.xlu0 %7320, %v2926_v24   ;;  %v11079_v43 = vpop.permute.xlu0 %2010  ;;  %v1976_v62 = vpop.permute.xlu1 %1975  ;;  %v2519_v22 = vmax.f32 %v11023_v18, 0.0 }
 0x20c   : > { %v11047_v23 = vadd.f32 %v13284_v49, %v13283_v27  ;;  %v11065_v27 = vadd.f32 %v10781_v55, %v13290_v50  ;;  %v2518_v49 = vmax.f32 %v11007_v1, 0.0  ;;  %v13291_v47 = vld [vmem:[#allocation164_spill] sm:$0xff]  ;;  %v2919_v55 = vld [vmem:[%s12651_s4 + $0x108] sm:$0xff]  ;;  %v13292_v48 = vld [vmem:[#allocation19_spill] sm:$0xff]  ;;  %v11089_v45 = vadd.f32 %v11043_v28, %v10676_v37 }
 0x20d   : > { %v2254_v42 = vadd.f32 %v1971_v12, %v13291_v47  ;;  %4263 = vmatprep.subr.bf16.mxu0 %v2823_v44  ;;  %v2255_v0 = vadd.f32 %v1971_v12, %v13292_v48  ;;  %v13293_v11 = vld [vmem:[#allocation20_spill] sm:$0xff]  ;;  %v2260_v24 = vadd.f32 %v1976_v62, %v10734_v3  ;;  %v13294_v50 = vld [vmem:[#allocation166_spill] sm:$0xff]  ;;  %v7342_v47 = vld [vmem:[%s12650_s3 + $0xe4] ss:$16 sps:$4 sm:$0xff]   ;;  %v2259_v37 = vadd.f32 %v1976_v62, %v10798_v33 }
 0x20e   : > { %13285 = vst [vmem:[#allocation79_spill] sm:$0xff] %v11047_v23  ;;  %v2825_v23 = vpack.c.bf16 %v2509_v39, %v2505_v26  ;;  %v2824_v39 = vpack.c.bf16 %v2508_v59, %v2504_v57  ;;  %v2257_v7 = vadd.f32 %v1971_v12, %v13293_v11  ;;  %v7341_v35 = vld [vmem:[%s12650_s3 + $0xc0] ss:$16 sps:$4 sm:$0xff]   ;;  %v2258_v26 = vadd.f32 %v1976_v62, %v10730_v52 }
 0x20f   : > { %v2928_v59 = vld [vmem:[%s12651_s4 + $0x150] sm:$0xff]  ;;  %v11097_v57 = vadd.f32 %v1991_v15, %v10946_v54  ;;  %v2256_v44 = vadd.f32 %v1971_v12, %v13294_v50  ;;  %4264 = vmatpush1.bf16.msra.mxu0 %v2822_v60  ;;  %v2261_v52 = vadd.f32 %v1976_v62, %v10802_v10  ;;  %v2521_v3 = vmax.f32 %v11026_v17, 0.0  ;;  %3117 = vperm.xlu1 %7319, %v2919_v55   ;;  %v2921_v60 = vld [vmem:[%s12651_s4 + $0x118] sm:$0xff]  ;;  %v1986_v33 = vpop.permute.xlu1 %1985 }
 0x210   : > { %4969 = vmatprep.subr.bf16.mxu1 %v2825_v23  ;;  %v11108_v23 = vadd.f32 %v11043_v28, %v10680_v14  ;;  %v2510_v54 = vmax.f32 %v2254_v42, 0.0  ;;  %v2514_v15 = vmax.f32 %v2258_v26, 0.0  ;;  %v2511_v12 = vmax.f32 %v2255_v0, 0.0  ;;  %3162 = vperm.xlu0 %7320, %v2928_v59   ;;  %v13295_v42 = vld [vmem:[#allocation121_spill] sm:$0xff] }
 0x211   : > { %4970 = vmatpush1.bf16.msra.mxu1 %v2824_v39  ;;  %v2516_v48 = vmax.f32 %v2260_v24, 0.0  ;;  %v11113_v39 = vpop.permute.xlu0 %2020  ;;  %v2515_v10 = vmax.f32 %v2259_v37, 0.0  ;;  %v2513_v62 = vmax.f32 %v2257_v7, 0.0  ;;  %v2517_v11 = vmax.f32 %v2261_v52, 0.0  ;;  %4003 = vmatmul.mubr.bf16.gmra.mrb[24].mxu0 %v7341_v35  ;;  %v2930_v24 = vld [vmem:[%s12651_s4 + $0x160] sm:$0xff] }
 0x212   : > { %v11117_v14 = vadd.f32 %v11079_v43, %v10687_v56  ;;  %v11121_v55 = vadd.f32 %v11079_v43, %v13295_v42  ;;  %v2266_v0 = vadd.f32 %v1986_v33, %v10746_v16  ;;  %v2268_v26 = vadd.f32 %v1986_v33, %v10750_v38  ;;  %4709 = vmatmul.mubr.bf16.gmra.mrb[24].mxu1 %v7341_v35  ;;  %v2923_v35 = vld [vmem:[%s12651_s4 + $0x128] sm:$0xff] }
 0x213   : > { %v2512_v7 = vmax.f32 %v2256_v44, 0.0  ;;  %4012 = vmatprep.mubr.bf16.mxu0 %v7342_v47  ;;  %v2827_v59 = vpack.c.bf16 %v2515_v10, %v2511_v12  ;;  %v2829_v50 = vpack.c.bf16 %v2517_v11, %v2513_v62  ;;  %v2826_v37 = vpack.c.bf16 %v2514_v15, %v2510_v54  ;;  %4718 = vmatprep.mubr.bf16.mxu1 %v7342_v47  ;;  %v1996_v54 = vpop.permute.xlu1 %1995  ;;  %v2932_v62 = vld [vmem:[%s12651_s4 + $0x170] sm:$0xff] }
 0x214   : > { %v2526_v56 = vmax.f32 %v11050_v61, 0.0  ;;  %v2528_v52 = vmax.f32 %v11070_v8, 0.0  ;;  %3127 = vperm.xlu1 %7319, %v2921_v60   ;;  %v2527_v16 = vmax.f32 %v11074_v21, 0.0  ;;  %v2529_v38 = vmax.f32 %v11097_v57, 0.0  ;;  %3172 = vperm.xlu0 %7320, %v2930_v24   ;;  %v7344_v57 = vld [vmem:[%s12650_s3 + $0xe0] ss:$16 sps:$4 sm:$0xff]  }
 0x215   : > { %v2534_v42 = vmax.f32 %v11089_v45, 0.0  ;;  %v11136_v44 = vpop.permute.xlu0 %2030  ;;  %4265 = vmatprep.subr.bf16.mxu0 %v2827_v59  ;;  %v2828_v15 = vpack.c.bf16 %v2516_v48, %v2512_v7  ;;  %v2267_v12 = vadd.f32 %v1986_v33, %v10856_v58  ;;  %v2269_v47 = vadd.f32 %v1986_v33, %v10864_v41  ;;  %4971 = vmatprep.subr.bf16.mxu1 %v2829_v50  ;;  %v7345_v33 = vld [vmem:[%s12650_s3 + $0x104] ss:$16 sps:$4 sm:$0xff]   ;;  %v2925_v50 = vld [vmem:[%s12651_s4 + $0x138] sm:$0xff] }
 0x216   : > { %v2536_v21 = vmax.f32 %v11108_v23, 0.0  ;;  %v2542_v60 = vmax.f32 %v11117_v14, 0.0  ;;  %v2522_v10 = vmax.f32 %v2266_v0, 0.0  ;;  %v11150_v48 = vadd.f32 %v11043_v28, %v10982_v29  ;;  %4266 = vmatpush1.bf16.msra.mxu0 %v2826_v37  ;;  %v13296_v24 = vld [vmem:[#allocation7_spill] sm:$0xff]  ;;  %v13301_v8 = vld [vmem:[#allocation41_spill] sm:$0xff] }
 0x217   : > { %v2544_v58 = vmax.f32 %v11121_v55, 0.0  ;;  %v2524_v41 = vmax.f32 %v2268_v26, 0.0  ;;  %4972 = vmatpush1.bf16.msra.mxu1 %v2828_v15  ;;  %v2523_v11 = vmax.f32 %v2267_v12, 0.0  ;;  %v2525_v0 = vmax.f32 %v2269_v47, 0.0  ;;  %v13298_v47 = vld [vmem:[#allocation70_spill] sm:$0xff]  ;;  %v2933_v55 = vld [vmem:[%s12651_s4 + $0x178] sm:$0xff] }
 0x218   : > { %v11158_v7 = vadd.f32 %v11113_v39, %v13296_v24  ;;  %3137 = vperm.xlu1 %7319, %v2923_v35   ;;  %v2274_v59 = vadd.f32 %v1996_v54, %v10809_v40  ;;  %v2276_v29 = vadd.f32 %v1996_v54, %v10813_v53  ;;  %v11164_v26 = vadd.f32 %v11043_v28, %v11034_v34  ;;  %v2006_v40 = vpop.permute.xlu1 %2005  ;;  %v13297_v34 = vld [vmem:[#allocation68_spill] sm:$0xff] }
 0x219   : > { %3182 = vperm.xlu0 %7320, %v2932_v62   ;;  %v11169_v37 = vpop.permute.xlu0 %2040  ;;  %v2831_v15 = vpack.c.bf16 %v2523_v11, %v2519_v22  ;;  %v2833_v35 = vpack.c.bf16 %v2525_v0, %v2521_v3  ;;  %v2275_v53 = vadd.f32 %v1996_v54, %v10924_v30  ;;  %v2277_v12 = vadd.f32 %v1996_v54, %v10950_v63  ;;  %v2934_v63 = vld [vmem:[%s12651_s4 + $0x180] sm:$0xff] }
 0x21a   : > { %4013 = vmatmul.mubr.bf16.gmra.mrb[28].mxu0 %v7344_v57  ;;  %v11179_v28 = vadd.f32 %v11113_v39, %v13297_v34  ;;  %v11183_v62 = vadd.f32 %v11136_v44, %v13298_v47  ;;  %v2830_v18 = vpack.c.bf16 %v2522_v10, %v2518_v49  ;;  %v2535_v17 = vmax.f32 %v11150_v48, 0.0  ;;  %4719 = vmatmul.mubr.bf16.gmra.mrb[28].mxu1 %v7344_v57  ;;  %v7350_v23 = vld [vmem:[%s12650_s3 + $0x120] ss:$16 sps:$4 sm:$0xff]  }
 0x21b   : > { %4022 = vmatprep.mubr.bf16.mxu0 %v7345_v33  ;;  %v2282_v30 = vadd.f32 %v2006_v40, %v10868_v13  ;;  %v2832_v22 = vpack.c.bf16 %v2524_v41, %v2520_v25  ;;  %v2531_v3 = vmax.f32 %v2275_v53, 0.0  ;;  %v2533_v54 = vmax.f32 %v2277_v12, 0.0  ;;  %4728 = vmatprep.mubr.bf16.mxu1 %v7345_v33  ;;  %v2927_v25 = vld [vmem:[%s12651_s4 + $0x148] sm:$0xff] }
 0x21c   : > { %v2550_v11 = vmax.f32 %v11158_v7, 0.0  ;;  %v11197_v1 = vadd.f32 %v11136_v44, %v10794_v36  ;;  %v2530_v49 = vmax.f32 %v2274_v59, 0.0  ;;  %3147 = vperm.xlu1 %7319, %v2925_v50   ;;  %v2284_v13 = vadd.f32 %v2006_v40, %v10872_v19  ;;  %4267 = vmatprep.subr.bf16.mxu0 %v2831_v15  ;;  %v11205_v41 = vpop.permute.xlu1 %2015  ;;  %v7347_v19 = vld [vmem:[%s12650_s3 + $0x100] ss:$16 sps:$4 sm:$0xff]   ;;  %v7348_v59 = vld [vmem:[%s12650_s3 + $0x124] ss:$16 sps:$4 sm:$0xff]  }
 0x21d   : > { %v2532_v57 = vmax.f32 %v2276_v29, 0.0  ;;  %4973 = vmatprep.subr.bf16.mxu1 %v2833_v35  ;;  %v11203_v6 = vpop.permute.xlu0 %2050  ;;  %v2835_v10 = vpack.c.bf16 %v2531_v3, %v2527_v16  ;;  %v2837_v48 = vpack.c.bf16 %v2533_v54, %v2529_v38  ;;  %v2283_v36 = vadd.f32 %v2006_v40, %v11030_v46  ;;  %3192 = vperm.xlu0 %7320, %v2934_v63   ;;  %v13302_v3 = vld [vmem:[#allocation100_spill] sm:$0xff]  ;;  %v13303_v54 = vld [vmem:[#allocation25_spill] sm:$0xff]  ;;  %v13334_v7 = vld [vmem:[#allocation35_spill] sm:$0xff] }
 0x21e   : > { %v2552_v33 = vmax.f32 %v11179_v28, 0.0  ;;  %v2558_v0 = vmax.f32 %v11183_v62, 0.0  ;;  %v11215_v24 = vadd.f32 %v11169_v37, %v10817_v31  ;;  %4268 = vmatpush1.bf16.msra.mxu0 %v2830_v18  ;;  %v2537_v16 = vmax.f32 %v11164_v26, 0.0  ;;  %4974 = vmatpush1.bf16.msra.mxu1 %v2832_v22  ;;  %v2936_v31 = vld [vmem:[%s12651_s4 + $0x190] sm:$0xff]  ;;  %v13300_v18 = vld [vmem:[#allocation189_spill] sm:$0xff]  ;;  %v2937_v62 = vld [vmem:[%s12651_s4 + $0x198] sm:$0xff] }
 0x21f   : > { %v11220_v38 = vadd.f32 %v11169_v37, %v10848_v5  ;;  %v2538_v46 = vmax.f32 %v2282_v30, 0.0  ;;  %4269 = vmatprep.subr.bf16.mxu0 %v2835_v10  ;;  %v2539_v29 = vmax.f32 %v2283_v36, 0.0  ;;  %v2285_v50 = vadd.f32 %v2006_v40, %v11038_v2  ;;  %4975 = vmatprep.subr.bf16.mxu1 %v2837_v48  ;;  %v13336_v28 = vld [vmem:[#allocation54_spill] sm:$0xff] }
 0x220   : > { %v2560_v26 = vmax.f32 %v11197_v1, 0.0  ;;  %v2540_v15 = vmax.f32 %v2284_v13, 0.0  ;;  %3157 = vperm.xlu1 %7319, %v2927_v25   ;;  %v11232_v5 = vadd.f32 %v11203_v6, %v10888_v9  ;;  %v2834_v35 = vpack.c.bf16 %v2530_v49, %v2526_v56  ;;  %v11248_v9 = vpop.permute.xlu1 %2025  ;;  %v13299_v56 = vld [vmem:[#allocation10_spill] sm:$0xff]  ;;  %v2938_v25 = vld [vmem:[%s12651_s4 + $0x1a0] sm:$0xff] }
 0x221   : > { %v11238_v53 = vadd.f32 %v11203_v6, %v10916_v32  ;;  %v11242_v12 = vadd.f32 %v11205_v41, %v10954_v4  ;;  %v2836_v2 = vpack.c.bf16 %v2532_v57, %v2528_v52  ;;  %v11246_v40 = vpop.permute.xlu0 %2060  ;;  %v2541_v34 = vmax.f32 %v2285_v50, 0.0  ;;  %3202 = vperm.xlu0 %7320, %v2936_v31   ;;  %v2929_v32 = vld [vmem:[%s12651_s4 + $0x158] sm:$0xff]  ;;  %v13304_v57 = vld [vmem:[#allocation178_spill] sm:$0xff] }
 0x222   : > { %4023 = vmatmul.mubr.bf16.gmra.mrb[32].mxu0 %v7347_v19  ;;  %v2566_v61 = vmax.f32 %v11215_v24, 0.0  ;;  %v2292_v47 = vadd.f32 %v11205_v41, %v13299_v56  ;;  %v2839_v4 = vpack.c.bf16 %v2539_v29, %v2535_v17  ;;  %v1647_v52 = vadd.f32 %v13301_v8, %v13300_v18  ;;  %4729 = vmatmul.mubr.bf16.gmra.mrb[32].mxu1 %v7347_v19  ;;  %v13305_v19 = vld [vmem:[#allocation191_spill] sm:$0xff]  ;;  %v13308_v31 = vld [vmem:[#allocation26_spill] sm:$0xff] }
 0x223   : > { %v2568_v30 = vmax.f32 %v11220_v38, 0.0  ;;  %4032 = vmatprep.mubr.bf16.mxu0 %v7348_v59  ;;  %v2841_v63 = vpack.c.bf16 %v2541_v34, %v2537_v16  ;;  %v2838_v22 = vpack.c.bf16 %v2538_v46, %v2534_v42  ;;  %v1651_v49 = vadd.f32 %v13303_v54, %v13302_v3  ;;  %4738 = vmatprep.mubr.bf16.mxu1 %v7348_v59  ;;  %v13306_v16 = vld [vmem:[#allocation42_spill] sm:$0xff]  ;;  %v13365_v24 = vld [vmem:[#allocation159_spill] sm:$0xff]  ;;  %v13369_v38 = vld [vmem:[#allocation173_spill] sm:$0xff] }
 0x224   : > { %v2574_v13 = vmax.f32 %v11232_v5, 0.0  ;;  %4270 = vmatpush1.bf16.msra.mxu0 %v2834_v35  ;;  %v11266_v17 = vadd.f32 %v11246_v40, %v13304_v57  ;;  %v2840_v10 = vpack.c.bf16 %v2540_v15, %v2536_v21  ;;  %v2287_v45 = vadd.f32 %v11079_v43, %v1647_v52  ;;  %4976 = vmatpush1.bf16.msra.mxu1 %v2836_v2  ;;  %v13307_v59 = vld [vmem:[#allocation102_spill] sm:$0xff]  ;;  %v13309_v15 = vld [vmem:[#allocation177_spill] sm:$0xff]  ;;  %v13310_v2 = vld [vmem:[#allocation79_spill] sm:$0xff]  ;;  %v11302_v8 = vpop.permute.xlu1 %2035 }
 0x225   : > { %v2576_v42 = vmax.f32 %v11238_v53, 0.0  ;;  %3167 = vperm.xlu1 %7319, %v2929_v32   ;;  %v11275_v48 = vpop.permute.xlu0 %2070  ;;  %v2291_v36 = vadd.f32 %v11205_v41, %v1651_v49  ;;  %v1649_v46 = vadd.f32 %v13306_v16, %v13305_v19  ;;  %v1653_v29 = vadd.f32 %v13308_v31, %v13307_v59  ;;  %4271 = vmatprep.subr.bf16.mxu0 %v2839_v4  ;;  %v2931_v56 = vld [vmem:[%s12651_s4 + $0x168] sm:$0xff]  ;;  %v5580_v5 = vld [vmem:[%s12652_s5 + $0x10] sm:$0xff]  ;;  %v2945_v53 = vld [vmem:[%s12651_s4 + $0x1d8] sm:$0xff] }
 0x226   : > { %v2546_v21 = vmax.f32 %v11242_v12, 0.0  ;;  %v2548_v50 = vmax.f32 %v2292_v47, 0.0  ;;  %v11288_v35 = vadd.f32 %v11246_v40, %v13309_v15  ;;  %4977 = vmatprep.subr.bf16.mxu1 %v2841_v63  ;;  %v11292_v34 = vadd.f32 %v11248_v9, %v13310_v2  ;;  %3212 = vperm.xlu0 %7320, %v2938_v25   ;;  %v7351_v12 = vld [vmem:[%s12650_s3 + $0x144] ss:$16 sps:$4 sm:$0xff]   ;;  %v13311_v54 = vld [vmem:[#allocation6_spill] sm:$0xff]  ;;  %v13317_v2 = vld [vmem:[#allocation104_spill] sm:$0xff] }
 0x227   : > { %v2543_v47 = vmax.f32 %v2287_v45, 0.0  ;;  %v2547_v32 = vmax.f32 %v2291_v36, 0.0  ;;  %v2289_v18 = vadd.f32 %v11079_v43, %v1649_v46  ;;  %v2293_v4 = vadd.f32 %v11205_v41, %v1653_v29  ;;  %v13312_v49 = vld [vmem:[#allocation34_spill] sm:$0xff]  ;;  %v13314_v36 = vld [vmem:[#allocation36_spill] sm:$0xff]  ;;  %v13315_v31 = vld [vmem:[#allocation193_spill] sm:$0xff] }
 0x228   : > { %v2582_v52 = vmax.f32 %v11266_v17, 0.0  ;;  %v11307_v63 = vadd.f32 %v11248_v9, %v11057_v20  ;;  %4272 = vmatpush1.bf16.msra.mxu0 %v2838_v22  ;;  %v11311_v3 = vadd.f32 %v11275_v48, %v11061_v51  ;;  %v1666_v57 = vadd.f32 %v13312_v49, %v13311_v54  ;;  %4978 = vmatpush1.bf16.msra.mxu1 %v2840_v10  ;;  %v13313_v20 = vld [vmem:[#allocation108_spill] sm:$0xff]  ;;  %v2940_v51 = vld [vmem:[%s12651_s4 + $0x1b0] sm:$0xff] }
 0x229   : > { %3177 = vperm.xlu1 %7319, %v2931_v56   ;;  %v11317_v43 = vadd.f32 %v11275_v48, %v11065_v27  ;;  %v2843_v41 = vpack.c.bf16 %v2547_v32, %v2543_v47  ;;  %v2545_v25 = vmax.f32 %v2289_v18, 0.0  ;;  %v2549_v45 = vmax.f32 %v2293_v4, 0.0  ;;  %v11332_v59 = vpop.permute.xlu0 %2080  ;;  %v13316_v29 = vld [vmem:[#allocation47_spill] sm:$0xff]  ;;  %v13318_v56 = vld [vmem:[#allocation29_spill] sm:$0xff]  ;;  %v13323_v54 = vld [vmem:[#allocation106_spill] sm:$0xff] }
 0x22a   : > { %4033 = vmatmul.mubr.bf16.gmra.mrb[36].mxu0 %v7350_v23  ;;  %v1668_v22 = vadd.f32 %v13314_v36, %v13313_v20  ;;  %v11322_v19 = vadd.f32 %v11302_v8, %v1666_v57  ;;  %v2842_v10 = vpack.c.bf16 %v2546_v21, %v2542_v60  ;;  %v2844_v27 = vpack.c.bf16 %v2548_v50, %v2544_v58  ;;  %v13319_v60 = vld [vmem:[#allocation218_spill] sm:$0xff]  ;;  %v13320_v58 = vld [vmem:[#allocation73_spill] sm:$0xff]  ;;  %v13321_v21 = vld [vmem:[#allocation195_spill] sm:$0xff] }
 0x22b   : > { %4739 = vmatmul.mubr.bf16.gmra.mrb[36].mxu1 %v7350_v23  ;;  %v2584_v16 = vmax.f32 %v11288_v35, 0.0  ;;  %4042 = vmatprep.mubr.bf16.mxu0 %v7351_v12  ;;  %v2845_v46 = vpack.c.bf16 %v2549_v45, %v2545_v25  ;;  %v1655_v15 = vadd.f32 %v13316_v29, %v13315_v31  ;;  %v1659_v47 = vadd.f32 %v13318_v56, %v13317_v2  ;;  %v13322_v50 = vld [vmem:[#allocation48_spill] sm:$0xff]  ;;  %v13324_v49 = vld [vmem:[#allocation31_spill] sm:$0xff]  ;;  %v13326_v20 = vld [vmem:[#allocation74_spill] sm:$0xff] }
 0x22c   : > { %v2554_v32 = vmax.f32 %v11292_v34, 0.0  ;;  %4748 = vmatprep.mubr.bf16.mxu1 %v7351_v12  ;;  %4273 = vmatprep.subr.bf16.mxu0 %v2843_v41  ;;  %v11340_v14 = vadd.f32 %v11302_v8, %v1668_v22  ;;  %v1702_v23 = vadd.f32 %v13320_v58, %v13319_v60  ;;  %v1657_v18 = vadd.f32 %v13322_v50, %v13321_v21  ;;  %v7353_v41 = vld [vmem:[%s12650_s3 + $0x140] ss:$16 sps:$4 sm:$0xff]   ;;  %v7354_v60 = vld [vmem:[%s12650_s3 + $0x164] ss:$16 sps:$4 sm:$0xff]  }
 0x22d   : > { %v2556_v4 = vmax.f32 %v11307_v63, 0.0  ;;  %4979 = vmatprep.subr.bf16.mxu1 %v2845_v46  ;;  %3222 = vperm.xlu0 %7320, %v2940_v51   ;;  %v2295_v34 = vadd.f32 %v11113_v39, %v1655_v15  ;;  %v2299_v12 = vadd.f32 %v11248_v9, %v1659_v47  ;;  %v1661_v57 = vadd.f32 %v13324_v49, %v13323_v54  ;;  %v13325_v45 = vld [vmem:[#allocation220_spill] sm:$0xff]  ;;  %v11364_v51 = vpop.permute.xlu1 %2045  ;;  %v13328_v15 = vld [vmem:[#allocation43_spill] sm:$0xff]  ;;  %v13332_v54 = vld [vmem:[#allocation53_spill] sm:$0xff] }
 0x22e   : > { %v2590_v25 = vmax.f32 %v11311_v3, 0.0  ;;  %4274 = vmatpush1.bf16.msra.mxu0 %v2842_v10  ;;  %4980 = vmatpush1.bf16.msra.mxu1 %v2844_v27  ;;  %v1704_v63 = vadd.f32 %v13326_v20, %v13325_v45  ;;  %v11361_v36 = vadd.f32 %v11332_v59, %v1702_v23  ;;  %v2297_v22 = vadd.f32 %v11113_v39, %v1657_v18  ;;  %v2942_v46 = vld [vmem:[%s12651_s4 + $0x1c0] sm:$0xff]  ;;  %v13327_v27 = vld [vmem:[#allocation110_spill] sm:$0xff] }
 0x22f   : > { %3187 = vperm.xlu1 %7319, %v2933_v55   ;;  %v2551_v31 = vmax.f32 %v2295_v34, 0.0  ;;  %v2555_v29 = vmax.f32 %v2299_v12, 0.0  ;;  %v2301_v10 = vadd.f32 %v11248_v9, %v1661_v57  ;;  %v1674_v2 = vadd.f32 %v13328_v15, %v13327_v27  ;;  %v13329_v50 = vld [vmem:[#allocation112_spill] sm:$0xff]  ;;  %v13331_v12 = vld [vmem:[#allocation197_spill] sm:$0xff]  ;;  %v13333_v57 = vld [vmem:[#allocation107_spill] sm:$0xff] }
 0x230   : > { %v2592_v56 = vmax.f32 %v11317_v43, 0.0  ;;  %v2562_v47 = vmax.f32 %v11322_v19, 0.0  ;;  %v11375_v39 = vadd.f32 %v11332_v59, %v1704_v63  ;;  %v2846_v55 = vpack.c.bf16 %v2554_v32, %v2550_v11  ;;  %v13330_v19 = vld [vmem:[#allocation45_spill] sm:$0xff]  ;;  %v13337_v27 = vld [vmem:[#allocation222_spill] sm:$0xff]  ;;  %v13338_v15 = vld [vmem:[#allocation140_spill] sm:$0xff] }
 0x231   : > { %v2847_v58 = vpack.c.bf16 %v2555_v29, %v2551_v31  ;;  %v2553_v23 = vmax.f32 %v2297_v22, 0.0  ;;  %v2557_v9 = vmax.f32 %v2301_v10, 0.0  ;;  %v11383_v21 = vadd.f32 %v11364_v51, %v1674_v2  ;;  %3232 = vperm.xlu0 %7320, %v2942_v46   ;;  %v2935_v63 = vld [vmem:[%s12651_s4 + $0x188] sm:$0xff]  ;;  %v13335_v22 = vld [vmem:[#allocation199_spill] sm:$0xff] }
 0x232   : > { %4043 = vmatmul.mubr.bf16.gmra.mrb[40].mxu0 %v7353_v41  ;;  %v1676_v18 = vadd.f32 %v13330_v19, %v13329_v50  ;;  %v2848_v34 = vpack.c.bf16 %v2556_v4, %v2552_v33  ;;  %v1663_v49 = vadd.f32 %v13332_v54, %v13331_v12  ;;  %v1667_v11 = vadd.f32 %v13334_v7, %v13333_v57  ;;  %v2944_v29 = vld [vmem:[%s12651_s4 + $0x1d0] sm:$0xff]  ;;  %v11417_v50 = vpop.permute.xlu1 %2055  ;;  %v13344_v7 = vld [vmem:[#allocation49_spill] sm:$0xff]  ;;  %v2949_v43 = vld [vmem:[%s12651_s4 + $0x1f8] sm:$0xff] }
 0x233   : > { %4749 = vmatmul.mubr.bf16.gmra.mrb[40].mxu1 %v7353_v41  ;;  %v2564_v32 = vmax.f32 %v11340_v14, 0.0  ;;  %v2598_v45 = vmax.f32 %v11361_v36, 0.0  ;;  %4275 = vmatprep.subr.bf16.mxu0 %v2847_v58  ;;  %v2849_v20 = vpack.c.bf16 %v2557_v9, %v2553_v23  ;;  %v1665_v33 = vadd.f32 %v13336_v28, %v13335_v22  ;;  %v11404_v41 = vpop.permute.xlu0 %2090  ;;  %v13339_v58 = vld [vmem:[#allocation109_spill] sm:$0xff]  ;;  %v13340_v23 = vld [vmem:[#allocation40_spill] sm:$0xff]  ;;  %v13342_v12 = vld [vmem:[#allocation174_spill] sm:$0xff] }
 0x234   : > { %v2600_v4 = vmax.f32 %v11375_v39, 0.0  ;;  %v11402_v46 = vadd.f32 %v11364_v51, %v1676_v18  ;;  %4052 = vmatprep.mubr.bf16.mxu0 %v7354_v60  ;;  %4276 = vmatpush1.bf16.msra.mxu0 %v2846_v55  ;;  %v2303_v14 = vadd.f32 %v11136_v44, %v1663_v49  ;;  %v2307_v31 = vadd.f32 %v11302_v8, %v1667_v11  ;;  %v7356_v19 = vld [vmem:[%s12650_s3 + $0x160] ss:$16 sps:$4 sm:$0xff]  }
 0x235   : > { %4981 = vmatprep.subr.bf16.mxu1 %v2849_v20  ;;  %v2570_v10 = vmax.f32 %v11383_v21, 0.0  ;;  %4758 = vmatprep.mubr.bf16.mxu1 %v7354_v60  ;;  %v1710_v2 = vadd.f32 %v13338_v15, %v13337_v27  ;;  %v1669_v55 = vadd.f32 %v13340_v23, %v13339_v58  ;;  %v2305_v9 = vadd.f32 %v11136_v44, %v1665_v33  ;;  %v13341_v18 = vld [vmem:[#allocation224_spill] sm:$0xff]  ;;  %v13343_v57 = vld [vmem:[#allocation115_spill] sm:$0xff]  ;;  %v13345_v22 = vld [vmem:[#allocation117_spill] sm:$0xff] }
 0x236   : > { %4982 = vmatpush1.bf16.msra.mxu1 %v2848_v34  ;;  %3197 = vperm.xlu1 %7319, %v2935_v63   ;;  %v1712_v54 = vadd.f32 %v13342_v12, %v13341_v18  ;;  %v2559_v60 = vmax.f32 %v2303_v14, 0.0  ;;  %v2563_v49 = vmax.f32 %v2307_v31, 0.0  ;;  %v1682_v11 = vadd.f32 %v13344_v7, %v13343_v57  ;;  %v13346_v34 = vld [vmem:[#allocation51_spill] sm:$0xff]  ;;  %v2946_v58 = vld [vmem:[%s12651_s4 + $0x1e0] sm:$0xff]  ;;  %v13420_v36 = vld [vmem:[#allocation142_spill] sm:$0xff] }
 0x237   : > { %v11427_v20 = vadd.f32 %v11404_v41, %v1710_v2  ;;  %v2309_v44 = vadd.f32 %v11302_v8, %v1669_v55  ;;  %v1684_v63 = vadd.f32 %v13346_v34, %v13345_v22  ;;  %3242 = vperm.xlu0 %7320, %v2944_v29   ;;  %v2850_v28 = vpack.c.bf16 %v2562_v47, %v2558_v0  ;;  %v13347_v0 = vld [vmem:[#allocation201_spill] sm:$0xff]  ;;  %v13348_v47 = vld [vmem:[#allocation59_spill] sm:$0xff]  ;;  %v11457_v1 = vpop.permute.xlu0 %2100  ;;  %v13352_v12 = vld [vmem:[#allocation44_spill] sm:$0xff] }
 0x238   : > { %v11435_v33 = vadd.f32 %v11404_v41, %v1712_v54  ;;  %v2851_v14 = vpack.c.bf16 %v2563_v49, %v2559_v60  ;;  %v2561_v31 = vmax.f32 %v2305_v9, 0.0  ;;  %v11438_v27 = vadd.f32 %v11417_v50, %v1682_v11  ;;  %v7357_v23 = vld [vmem:[%s12650_s3 + $0x184] ss:$16 sps:$4 sm:$0xff]   ;;  %v13354_v49 = vld [vmem:[#allocation60_spill] sm:$0xff] }
 0x239   : > { %v2565_v15 = vmax.f32 %v2309_v44, 0.0  ;;  %v11441_v2 = vadd.f32 %v11417_v50, %v1684_v63  ;;  %v2852_v8 = vpack.c.bf16 %v2564_v32, %v2560_v26  ;;  %v1671_v29 = vadd.f32 %v13348_v47, %v13347_v0  ;;  %v13349_v26 = vld [vmem:[#allocation226_spill] sm:$0xff]  ;;  %v13350_v32 = vld [vmem:[#allocation77_spill] sm:$0xff]  ;;  %v13351_v18 = vld [vmem:[#allocation111_spill] sm:$0xff]  ;;  %v11469_v63 = vpop.permute.xlu1 %2065 }
 0x23a   : > { %v2572_v55 = vmax.f32 %v11402_v46, 0.0  ;;  %4053 = vmatmul.mubr.bf16.gmra.mrb[44].mxu0 %v7356_v19  ;;  %4277 = vmatprep.subr.bf16.mxu0 %v2851_v14  ;;  %v1718_v9 = vadd.f32 %v13350_v32, %v13349_v26  ;;  %v1675_v54 = vadd.f32 %v13352_v12, %v13351_v18  ;;  %v13353_v60 = vld [vmem:[#allocation203_spill] sm:$0xff]  ;;  %v2606_v7 = vmax.f32 %v11427_v20, 0.0  ;;  %v13355_v44 = vld [vmem:[#allocation228_spill] sm:$0xff]  ;;  %v13356_v46 = vld [vmem:[#allocation78_spill] sm:$0xff] }
 0x23b   : > { %v1673_v57 = vadd.f32 %v13354_v49, %v13353_v60  ;;  %4759 = vmatmul.mubr.bf16.gmra.mrb[44].mxu1 %v7356_v19  ;;  %v2853_v11 = vpack.c.bf16 %v2565_v15, %v2561_v31  ;;  %4278 = vmatpush1.bf16.msra.mxu0 %v2850_v28  ;;  %v1720_v22 = vadd.f32 %v13356_v46, %v13355_v44  ;;  %v2608_v14 = vmax.f32 %v11435_v33, 0.0  ;;  %v13357_v47 = vld [vmem:[#allocation113_spill] sm:$0xff]  ;;  %v13358_v26 = vld [vmem:[#allocation46_spill] sm:$0xff]  ;;  %v13360_v18 = vld [vmem:[#allocation55_spill] sm:$0xff] }
 0x23c   : > { %v2311_v34 = vadd.f32 %v11169_v37, %v1671_v29  ;;  %3207 = vperm.xlu1 %7319, %v2937_v62   ;;  %v2315_v0 = vadd.f32 %v11364_v51, %v1675_v54  ;;  %v1677_v32 = vadd.f32 %v13358_v26, %v13357_v47  ;;  %3252 = vperm.xlu0 %7320, %v2946_v58   ;;  %v2578_v28 = vmax.f32 %v11438_v27, 0.0  ;;  %v13359_v29 = vld [vmem:[#allocation122_spill] sm:$0xff]  ;;  %v13361_v54 = vld [vmem:[#allocation124_spill] sm:$0xff]  ;;  %v13362_v60 = vld [vmem:[#allocation57_spill] sm:$0xff] }
 0x23d   : > { %v2313_v19 = vadd.f32 %v11169_v37, %v1673_v57  ;;  %4983 = vmatprep.subr.bf16.mxu1 %v2853_v11  ;;  %v11478_v31 = vadd.f32 %v11457_v1, %v1718_v9  ;;  %v11481_v15 = vadd.f32 %v11457_v1, %v1720_v22  ;;  %v1690_v62 = vadd.f32 %v13360_v18, %v13359_v29  ;;  %v2939_v12 = vld [vmem:[%s12651_s4 + $0x1a8] sm:$0xff]  ;;  %v2948_v37 = vld [vmem:[%s12651_s4 + $0x1f0] sm:$0xff]  ;;  %v11519_v18 = vpop.permute.xlu1 %2075 }
 0x23e   : > { %4062 = vmatprep.mubr.bf16.mxu0 %v7357_v23  ;;  %4984 = vmatpush1.bf16.msra.mxu1 %v2852_v8  ;;  %v2567_v27 = vmax.f32 %v2311_v34, 0.0  ;;  %v2571_v58 = vmax.f32 %v2315_v0, 0.0  ;;  %v2317_v9 = vadd.f32 %v11364_v51, %v1677_v32  ;;  %v1692_v49 = vadd.f32 %v13362_v60, %v13361_v54  ;;  %v7359_v57 = vld [vmem:[%s12650_s3 + $0x180] ss:$16 sps:$4 sm:$0xff]   ;;  %v11513_v32 = vpop.permute.xlu0 %2110 }
 0x23f   : > { %4768 = vmatprep.mubr.bf16.mxu1 %v7357_v23  ;;  %v2580_v11 = vmax.f32 %v11441_v2, 0.0  ;;  %v2569_v44 = vmax.f32 %v2313_v19, 0.0  ;;  %v11499_v46 = vadd.f32 %v11469_v63, %v1690_v62  ;;  %v2854_v8 = vpack.c.bf16 %v2570_v10, %v2566_v61  ;;  %v13363_v23 = vld [vmem:[#allocation205_spill] sm:$0xff]  ;;  %v13364_v0 = vld [vmem:[#allocation63_spill] sm:$0xff]  ;;  %v13367_v10 = vld [vmem:[#allocation116_spill] sm:$0xff] }
 0x240   : > { %v2855_v51 = vpack.c.bf16 %v2571_v58, %v2567_v27  ;;  %v2573_v22 = vmax.f32 %v2317_v9, 0.0  ;;  %v11506_v34 = vadd.f32 %v11469_v63, %v1692_v49  ;;  %3217 = vperm.xlu1 %7319, %v2939_v12   ;;  %v1679_v47 = vadd.f32 %v13364_v0, %v13363_v23  ;;  %3262 = vperm.xlu0 %7320, %v2948_v37   ;;  %v13366_v21 = vld [vmem:[#allocation179_spill] sm:$0xff]  ;;  %v13368_v19 = vld [vmem:[#allocation50_spill] sm:$0xff]  ;;  %v5578_v58 = vld [vmem:[%s12652_s5] sm:$0xff] }
 0x241   : > { %v2614_v2 = vmax.f32 %v11478_v31, 0.0  ;;  %v2856_v26 = vpack.c.bf16 %v2572_v55, %v2568_v30  ;;  %v1726_v61 = vadd.f32 %v13366_v21, %v13365_v24  ;;  %v1683_v29 = vadd.f32 %v13368_v19, %v13367_v10  ;;  %v2941_v62 = vld [vmem:[%s12651_s4 + $0x1b8] sm:$0xff]  ;;  %v7360_v9 = vld [vmem:[%s12650_s3 + $0x1a4] ss:$16 sps:$4 sm:$0xff]   ;;  %v7371_v31 = vld [vmem:[%s12650_s3 + $0x200] ss:$16 sps:$4 sm:$0xff]  }
 0x242   : > { %v2616_v12 = vmax.f32 %v11481_v15, 0.0  ;;  %4279 = vmatprep.subr.bf16.mxu0 %v2855_v51  ;;  %v2857_v37 = vpack.c.bf16 %v2573_v22, %v2569_v44  ;;  %4063 = vmatmul.mubr.bf16.gmra.mrb[48].mxu0 %v7359_v57  ;;  %v13370_v30 = vld [vmem:[#allocation11_spill] sm:$0xff]  ;;  %v2319_v27 = vadd.f32 %v11203_v6, %v1679_v47  ;;  %v2586_v54 = vmax.f32 %v11499_v46, 0.0  ;;  %v13373_v22 = vld [vmem:[#allocation118_spill] sm:$0xff]  ;;  %v13374_v23 = vld [vmem:[#allocation52_spill] sm:$0xff] }
 0x243   : > { %v1728_v55 = vadd.f32 %v13370_v30, %v13369_v38  ;;  %4280 = vmatpush1.bf16.msra.mxu0 %v2854_v8  ;;  %4769 = vmatmul.mubr.bf16.gmra.mrb[48].mxu1 %v7359_v57  ;;  %v2323_v60 = vadd.f32 %v11417_v50, %v1683_v29  ;;  %v13371_v49 = vld [vmem:[#allocation207_spill] sm:$0xff]  ;;  %v1685_v0 = vadd.f32 %v13374_v23, %v13373_v22  ;;  %v2588_v47 = vmax.f32 %v11506_v34, 0.0  ;;  %v13375_v46 = vld [vmem:[#allocation128_spill] sm:$0xff]  ;;  %v13376_v8 = vld [vmem:[#allocation114_spill] sm:$0xff]  ;;  %v11565_v22 = vpop.permute.xlu1 %2085 }
 0x244   : > { %v13372_v44 = vld [vmem:[#allocation119_spill] sm:$0xff]  ;;  %4985 = vmatprep.subr.bf16.mxu1 %v2857_v37  ;;  %v11542_v24 = vadd.f32 %v11513_v32, %v1726_v61  ;;  %v1698_v57 = vadd.f32 %v13376_v8, %v13375_v46  ;;  %3227 = vperm.xlu1 %7319, %v2941_v62   ;;  %v2575_v10 = vmax.f32 %v2319_v27, 0.0  ;;  %v2943_v34 = vld [vmem:[%s12651_s4 + $0x1c8] sm:$0xff]  ;;  %v13378_v37 = vld [vmem:[#allocation120_spill] sm:$0xff] }
 0x245   : > { %v1681_v51 = vadd.f32 %v13372_v44, %v13371_v49  ;;  %v11545_v21 = vadd.f32 %v11513_v32, %v1728_v55  ;;  %4986 = vmatpush1.bf16.msra.mxu1 %v2856_v26  ;;  %v2579_v19 = vmax.f32 %v2323_v60, 0.0  ;;  %v2325_v38 = vadd.f32 %v11417_v50, %v1685_v0  ;;  %5644 = vperm.xlu0 %7320, %v5578_v58   ;;  %v13377_v61 = vld [vmem:[#allocation130_spill] sm:$0xff]  ;;  %v13380_v27 = vld [vmem:[#allocation127_spill] sm:$0xff]  ;;  %v13382_v44 = vld [vmem:[#allocation56_spill] sm:$0xff] }
 0x246   : > { %v1700_v30 = vadd.f32 %v13378_v37, %v13377_v61  ;;  %v11557_v55 = vadd.f32 %v11519_v18, %v1698_v57  ;;  %v2858_v26 = vpack.c.bf16 %v2578_v28, %v2574_v13  ;;  %v13379_v62 = vld [vmem:[#allocation210_spill] sm:$0xff]  ;;  %4072 = vmatprep.mubr.bf16.mxu0 %v7360_v9  ;;  %v13381_v49 = vld [vmem:[#allocation123_spill] sm:$0xff]  ;;  %4778 = vmatprep.mubr.bf16.mxu1 %v7360_v9  ;;  %v13383_v46 = vld [vmem:[#allocation212_spill] sm:$0xff] }
 0x247   : > { %v2321_v29 = vadd.f32 %v11203_v6, %v1681_v51  ;;  %v1687_v60 = vadd.f32 %v13380_v27, %v13379_v62  ;;  %v2859_v6 = vpack.c.bf16 %v2579_v19, %v2575_v10  ;;  %v2581_v58 = vmax.f32 %v2325_v38, 0.0  ;;  %v7362_v23 = vld [vmem:[%s12650_s3 + $0x1a0] ss:$16 sps:$4 sm:$0xff]  }
 0x248   : > { %v1691_v51 = vadd.f32 %v13382_v44, %v13381_v49  ;;  %v11574_v13 = vadd.f32 %v11519_v18, %v1700_v30  ;;  %v2860_v28 = vpack.c.bf16 %v2580_v11, %v2576_v42  ;;  %v13384_v8 = vld [vmem:[#allocation67_spill] sm:$0xff]  ;;  %3237 = vperm.xlu1 %7319, %v2943_v34   ;;  %v13385_v19 = vld [vmem:[#allocation125_spill] sm:$0xff]  ;;  %v13387_v61 = vld [vmem:[#allocation136_spill] sm:$0xff]  ;;  %v2594_v44 = vmax.f32 %v11557_v55, 0.0 }
 0x249   : > { %v2577_v50 = vmax.f32 %v2321_v29, 0.0  ;;  %v2327_v0 = vadd.f32 %v11246_v40, %v1687_v60  ;;  %v1689_v57 = vadd.f32 %v13384_v8, %v13383_v46  ;;  %4281 = vmatprep.subr.bf16.mxu0 %v2859_v6  ;;  %v13386_v29 = vld [vmem:[#allocation58_spill] sm:$0xff]  ;;  %v13388_v37 = vld [vmem:[#allocation64_spill] sm:$0xff]  ;;  %v7363_v42 = vld [vmem:[%s12650_s3 + $0x1c4] ss:$16 sps:$4 sm:$0xff]   ;;  %v2862_v6 = vpack.c.bf16 %v2586_v54, %v2582_v52  ;;  %5654 = vperm.xlu0 %7320, %v5580_v5  }
 0x24a   : > { %v2331_v10 = vadd.f32 %v11469_v63, %v1691_v51  ;;  %v1693_v38 = vadd.f32 %v13386_v29, %v13385_v19  ;;  %v1706_v30 = vadd.f32 %v13388_v37, %v13387_v61  ;;  %4282 = vmatpush1.bf16.msra.mxu0 %v2858_v26  ;;  %v13389_v62 = vld [vmem:[#allocation138_spill] sm:$0xff]  ;;  %v13390_v27 = vld [vmem:[#allocation213_spill] sm:$0xff]  ;;  %v2864_v26 = vpack.c.bf16 %v2588_v47, %v2584_v16  ;;  %v13391_v52 = vld [vmem:[#allocation215_spill] sm:$0xff] }
 0x24b   : > { %v2861_v9 = vpack.c.bf16 %v2581_v58, %v2577_v50  ;;  %v2583_v11 = vmax.f32 %v2327_v0, 0.0  ;;  %v2329_v34 = vadd.f32 %v11246_v40, %v1689_v57  ;;  %v1708_v60 = vadd.f32 %v13390_v27, %v13389_v62  ;;  %4073 = vmatmul.mubr.bf16.gmra.mrb[52].mxu0 %v7362_v23  ;;  %v5582_v40 = vld [vmem:[%s12652_s5 + $0x20] sm:$0xff]  ;;  %v13392_v54 = vld [vmem:[#allocation71_spill] sm:$0xff]  ;;  %4779 = vmatmul.mubr.bf16.gmra.mrb[52].mxu1 %v7362_v23  ;;  %v2947_v55 = vld [vmem:[%s12651_s4 + $0x1e8] sm:$0xff] }
 0x24c   : > { %v2587_v50 = vmax.f32 %v2331_v10, 0.0  ;;  %v2333_v58 = vadd.f32 %v11469_v63, %v1693_v38  ;;  %v11599_v49 = vadd.f32 %v11565_v22, %v1706_v30  ;;  %v1695_v63 = vadd.f32 %v13392_v54, %v13391_v52  ;;  %v13393_v51 = vld [vmem:[#allocation129_spill] sm:$0xff]  ;;  %3247 = vperm.xlu1 %7319, %v2945_v53   ;;  %v13396_v8 = vld [vmem:[#allocation12_spill] sm:$0xff]  ;;  %4082 = vmatprep.mubr.bf16.mxu0 %v7363_v42  ;;  %v13397_v29 = vld [vmem:[#allocation131_spill] sm:$0xff] }
 0x24d   : > { %4987 = vmatprep.subr.bf16.mxu1 %v2861_v9  ;;  %v11608_v17 = vadd.f32 %v11565_v22, %v1708_v60  ;;  %v13394_v5 = vld [vmem:[#allocation61_spill] sm:$0xff]  ;;  %v2585_v16 = vmax.f32 %v2329_v34, 0.0  ;;  %v11616_v9 = vpop.permute.xlu1 %2095  ;;  %5664 = vperm.xlu0 %7320, %v5582_v40   ;;  %v13399_v53 = vld [vmem:[#allocation144_spill] sm:$0xff]  ;;  %v5584_v62 = vld [vmem:[%s12652_s5 + $0x30] sm:$0xff]  ;;  %v2866_v54 = vpack.c.bf16 %v2594_v44, %v2590_v25 }
 0x24e   : > { %4988 = vmatpush1.bf16.msra.mxu1 %v2860_v28  ;;  %v1699_v0 = vadd.f32 %v13394_v5, %v13393_v51  ;;  %v2863_v35 = vpack.c.bf16 %v2587_v50, %v2583_v11  ;;  %v2589_v47 = vmax.f32 %v2333_v58, 0.0  ;;  %v13395_v46 = vld [vmem:[#allocation217_spill] sm:$0xff]  ;;  %v2596_v28 = vmax.f32 %v11574_v13, 0.0  ;;  %4788 = vmatprep.mubr.bf16.mxu1 %v7363_v42  ;;  %v13400_v11 = vld [vmem:[#allocation126_spill] sm:$0xff]  ;;  %v13409_v25 = vld [vmem:[#allocation139_spill] sm:$0xff] }
 0x24f   : > { %v1697_v57 = vadd.f32 %v13396_v8, %v13395_v46  ;;  %v2335_v10 = vadd.f32 %v11275_v48, %v1695_v63  ;;  %v13398_v38 = vld [vmem:[#allocation209_spill] sm:$0xff]  ;;  %v2602_v37 = vmax.f32 %v11599_v49, 0.0  ;;  %v1714_v34 = vadd.f32 %v13400_v11, %v13399_v53  ;;  %v13401_v58 = vld [vmem:[#allocation146_spill] sm:$0xff]  ;;  %v13414_v11 = vld [vmem:[#allocation72_spill] sm:$0xff] }
 0x250   : > { %v2339_v19 = vadd.f32 %v11519_v18, %v1699_v0  ;;  %v1701_v61 = vadd.f32 %v13398_v38, %v13397_v29  ;;  %4283 = vmatprep.subr.bf16.mxu0 %v2863_v35  ;;  %v2865_v23 = vpack.c.bf16 %v2589_v47, %v2585_v16  ;;  %v7365_v13 = vld [vmem:[%s12650_s3 + $0x1c0] ss:$16 sps:$4 sm:$0xff]   ;;  %v2604_v27 = vmax.f32 %v11608_v17, 0.0  ;;  %3257 = vperm.xlu1 %7319, %v2947_v55  }
 0x251   : > { %v2337_v30 = vadd.f32 %v11275_v48, %v1697_v57  ;;  %4284 = vmatpush1.bf16.msra.mxu0 %v2862_v6  ;;  %v2591_v42 = vmax.f32 %v2335_v10, 0.0  ;;  %v13402_v49 = vld [vmem:[#allocation133_spill] sm:$0xff]  ;;  %v11641_v52 = vadd.f32 %v11616_v9, %v1714_v34  ;;  %v13403_v6 = vld [vmem:[#allocation219_spill] sm:$0xff]  ;;  %5674 = vperm.xlu0 %7320, %v5584_v62   ;;  %v2868_v47 = vpack.c.bf16 %v2596_v28, %v2592_v56  ;;  %v13408_v8 = vld [vmem:[#allocation170_spill] sm:$0xff]  ;;  %v11658_v57 = vpop.permute.xlu1 %2105 }
 0x252   : > { %v2595_v60 = vmax.f32 %v2339_v19, 0.0  ;;  %v2341_v50 = vadd.f32 %v11519_v18, %v1701_v61  ;;  %4989 = vmatprep.subr.bf16.mxu1 %v2865_v23  ;;  %v1716_v40 = vadd.f32 %v13402_v49, %v13401_v58  ;;  %v13404_v51 = vld [vmem:[#allocation141_spill] sm:$0xff]  ;;  %v13411_v29 = vld [vmem:[#allocation152_spill] sm:$0xff]  ;;  %v13413_v53 = vld [vmem:[#allocation154_spill] sm:$0xff]  ;;  %v2872_v58 = vpack.c.bf16 %v2604_v27, %v2600_v4 }
 0x253   : > { %v2593_v48 = vmax.f32 %v2337_v30, 0.0  ;;  %4990 = vmatpush1.bf16.msra.mxu1 %v2864_v26  ;;  %v1703_v5 = vadd.f32 %v13404_v51, %v13403_v6  ;;  %v13405_v0 = vld [vmem:[#allocation137_spill] sm:$0xff]  ;;  %v13410_v26 = vld [vmem:[#allocation66_spill] sm:$0xff]  ;;  %4083 = vmatmul.mubr.bf16.gmra.mrb[56].mxu0 %v7365_v13  ;;  %v13412_v38 = vld [vmem:[#allocation168_spill] sm:$0xff]  ;;  %v2610_v28 = vmax.f32 %v11641_v52, 0.0  ;;  %v1724_v34 = vadd.f32 %v13414_v11, %v13413_v53 }
 0x254   : > { %v2867_v63 = vpack.c.bf16 %v2595_v60, %v2591_v42  ;;  %v2597_v17 = vmax.f32 %v2341_v50, 0.0  ;;  %v13406_v18 = vld [vmem:[#allocation65_spill] sm:$0xff]  ;;  %v11650_v16 = vadd.f32 %v11616_v9, %v1716_v40  ;;  %v1709_v44 = vadd.f32 %v13410_v26, %v13409_v25  ;;  %4789 = vmatmul.mubr.bf16.gmra.mrb[56].mxu1 %v7365_v13  ;;  %v13415_v49 = vld [vmem:[#allocation223_spill] sm:$0xff]  ;;  %v13416_v40 = vld [vmem:[#allocation76_spill] sm:$0xff]  ;;  %3267 = vperm.xlu1 %7319, %v2949_v43  }
 0x255   : > { %v1707_v35 = vadd.f32 %v13406_v18, %v13405_v0  ;;  %v13407_v46 = vld [vmem:[#allocation221_spill] sm:$0xff]  ;;  %v2343_v10 = vadd.f32 %v11332_v59, %v1703_v5  ;;  %v1722_v61 = vadd.f32 %v13412_v38, %v13411_v29  ;;  %v1711_v52 = vadd.f32 %v13416_v40, %v13415_v49  ;;  %v13421_v4 = vld [vmem:[#allocation147_spill] sm:$0xff]  ;;  %v11698_v18 = vpop.permute.xlu1 %2115  ;;  %v13425_v29 = vld [vmem:[#allocation162_spill] sm:$0xff] }
 0x256   : > { %v1705_v3 = vadd.f32 %v13408_v8, %v13407_v46  ;;  %4285 = vmatprep.subr.bf16.mxu0 %v2867_v63  ;;  %v2869_v55 = vpack.c.bf16 %v2597_v17, %v2593_v48  ;;  %v7366_v56 = vld [vmem:[%s12650_s3 + $0x1e4] ss:$16 sps:$4 sm:$0xff]   ;;  %v2349_v30 = vadd.f32 %v11565_v22, %v1709_v44  ;;  %v2870_v48 = vpack.c.bf16 %v2602_v37, %v2598_v45 }
 0x257   : > { %v2347_v19 = vadd.f32 %v11565_v22, %v1707_v35  ;;  %4286 = vmatpush1.bf16.msra.mxu0 %v2866_v54  ;;  %v5586_v62 = vld [vmem:[%s12652_s5 + $0x40] sm:$0xff]  ;;  %v2599_v42 = vmax.f32 %v2343_v10, 0.0  ;;  %v11679_v50 = vadd.f32 %v11658_v57, %v1722_v61  ;;  %v2612_v54 = vmax.f32 %v11650_v16, 0.0  ;;  %4092 = vmatprep.mubr.bf16.mxu0 %v7366_v56  ;;  %v13422_v27 = vld [vmem:[#allocation135_spill] sm:$0xff]  ;;  %v5579_v35 = vld [vmem:[%s12652_s5 + $0x8] sm:$0xff] }
 0x258   : > { %v2345_v23 = vadd.f32 %v11332_v59, %v1705_v3  ;;  %4991 = vmatprep.subr.bf16.mxu1 %v2869_v55  ;;  %v2605_v22 = vmax.f32 %v2349_v30, 0.0  ;;  %v13417_v17 = vld [vmem:[#allocation145_spill] sm:$0xff]  ;;  %5684 = vperm.xlu0 %7320, %v5586_v62   ;;  %v11693_v13 = vadd.f32 %v11658_v57, %v1724_v34  ;;  %v2351_v39 = vadd.f32 %v11404_v41, %v1711_v52  ;;  %v13423_v3 = vld [vmem:[#allocation160_spill] sm:$0xff]  ;;  %v5588_v44 = vld [vmem:[%s12652_s5 + $0x50] sm:$0xff] }
 0x259   : > { %v2603_v60 = vmax.f32 %v2347_v19, 0.0  ;;  %4992 = vmatpush1.bf16.msra.mxu1 %v2868_v47  ;;  %v13418_v6 = vld [vmem:[#allocation69_spill] sm:$0xff]  ;;  %v1717_v0 = vadd.f32 %v13422_v27, %v13421_v4  ;;  %4798 = vmatprep.mubr.bf16.mxu1 %v7366_v56  ;;  %v2618_v47 = vmax.f32 %v11679_v50, 0.0  ;;  %v13426_v38 = vld [vmem:[#allocation143_spill] sm:$0xff]  ;;  %v2876_v30 = vpack.c.bf16 %v2612_v54, %v2608_v14  ;;  %v13434_v14 = vld [vmem:[#allocation134_spill] sm:$0xff] }
 0x25a   : > { %v2601_v59 = vmax.f32 %v2345_v23, 0.0  ;;  %v1715_v51 = vadd.f32 %v13418_v6, %v13417_v17  ;;  %v13419_v5 = vld [vmem:[#allocation225_spill] sm:$0xff]  ;;  %v2607_v10 = vmax.f32 %v2351_v39, 0.0  ;;  %v1732_v61 = vadd.f32 %v13426_v38, %v13425_v29  ;;  %5649 = vperm.xlu1 %7319, %v5579_v35   ;;  %v13427_v11 = vld [vmem:[#allocation227_spill] sm:$0xff]  ;;  %v13440_v35 = vld [vmem:[#allocation150_spill] sm:$0xff] }
 0x25b   : > { %v2871_v63 = vpack.c.bf16 %v2603_v60, %v2599_v42  ;;  %v1713_v45 = vadd.f32 %v13420_v36, %v13419_v5  ;;  %v7368_v16 = vld [vmem:[%s12650_s3 + $0x1e0] ss:$16 sps:$4 sm:$0xff]   ;;  %v7369_v55 = vld [vmem:[%s12650_s3 + $0x204] ss:$16 sps:$4 sm:$0xff]   ;;  %v2357_v19 = vadd.f32 %v11616_v9, %v1717_v0  ;;  %v5581_v54 = vld [vmem:[%s12652_s5 + $0x18] sm:$0xff]  ;;  %v2878_v6 = vpack.c.bf16 %v2618_v47, %v2614_v2 }
 0x25c   : > { %v2873_v37 = vpack.c.bf16 %v2605_v22, %v2601_v59  ;;  %v2355_v46 = vadd.f32 %v11616_v9, %v1715_v51  ;;  %v13424_v25 = vld [vmem:[#allocation169_spill] sm:$0xff]  ;;  %v13430_v42 = vld [vmem:[#allocation132_spill] sm:$0xff]  ;;  %4093 = vmatmul.mubr.bf16.gmra.mrb[60].mxu0 %v7368_v16  ;;  %5694 = vperm.xlu0 %7320, %v5588_v44   ;;  %v2372_v59 = vadd.f32 %v11698_v18, %v1732_v61  ;;  %v13433_v33 = vld [vmem:[#allocation155_spill] sm:$0xff]  ;;  %v2624_v61 = vmax.f32 %v11545_v21, 0.0 }
 0x25d   : > { %4287 = vmatprep.subr.bf16.mxu0 %v2871_v63  ;;  %v2353_v8 = vadd.f32 %v11404_v41, %v1713_v45  ;;  %v1730_v26 = vadd.f32 %v13424_v25, %v13423_v3  ;;  %v2874_v41 = vpack.c.bf16 %v2610_v28, %v2606_v7  ;;  %v2613_v53 = vmax.f32 %v2357_v19, 0.0  ;;  %v13428_v34 = vld [vmem:[#allocation149_spill] sm:$0xff]  ;;  %4799 = vmatmul.mubr.bf16.gmra.mrb[60].mxu1 %v7368_v16  ;;  %v13435_v51 = vld [vmem:[#allocation172_spill] sm:$0xff]  ;;  %v13438_v4 = vld [vmem:[#allocation171_spill] sm:$0xff] }
 0x25e   : > { %4993 = vmatprep.subr.bf16.mxu1 %v2873_v37  ;;  %4288 = vmatpush1.bf16.msra.mxu0 %v2870_v48  ;;  %v2611_v43 = vmax.f32 %v2355_v46, 0.0  ;;  %v1719_v62 = vadd.f32 %v13428_v34, %v13427_v11  ;;  %v13429_v9 = vld [vmem:[#allocation153_spill] sm:$0xff]  ;;  %v13432_v48 = vld [vmem:[#allocation151_spill] sm:$0xff]  ;;  %v2620_v7 = vmax.f32 %v11693_v13, 0.0  ;;  %v1725_v22 = vadd.f32 %v13434_v14, %v13433_v33  ;;  %v13436_v5 = vld [vmem:[#allocation148_spill] sm:$0xff] }
 0x25f   : > { %4994 = vmatpush1.bf16.msra.mxu1 %v2872_v58  ;;  %v2609_v56 = vmax.f32 %v2353_v8, 0.0  ;;  %v2370_v23 = vadd.f32 %v11698_v18, %v1730_v26  ;;  %v1723_v60 = vadd.f32 %v13430_v42, %v13429_v9  ;;  %v13431_v50 = vld [vmem:[#allocation229_spill] sm:$0xff]  ;;  %4102 = vmatprep.mubr.bf16.mxu0 %v7369_v55  ;;  %v1727_v36 = vadd.f32 %v13436_v5, %v13435_v51  ;;  %v13439_v0 = vld [vmem:[#allocation175_spill] sm:$0xff] }
 0x260   : > { %v1721_v20 = vadd.f32 %v13432_v48, %v13431_v50  ;;  %v2875_v28 = vpack.c.bf16 %v2611_v43, %v2607_v10  ;;  %v2359_v49 = vadd.f32 %v11457_v1, %v1719_v62  ;;  %4808 = vmatprep.mubr.bf16.mxu1 %v7369_v55  ;;  %v2365_v17 = vadd.f32 %v11658_v57, %v1725_v22  ;;  %v5590_v45 = vld [vmem:[%s12652_s5 + $0x60] sm:$0xff]  ;;  %v13441_v47 = vld [vmem:[#allocation163_spill] sm:$0xff]  ;;  %v5583_v38 = vld [vmem:[%s12652_s5 + $0x28] sm:$0xff]  ;;  %v11802_v48 = vpop.permute.xlu0 %2952 }
 0x261   : > { %v2877_v58 = vpack.c.bf16 %v2613_v53, %v2609_v56  ;;  %v2363_v40 = vadd.f32 %v11658_v57, %v1723_v60  ;;  %v2626_v63 = vmax.f32 %v2370_v23, 0.0  ;;  %v13437_v39 = vld [vmem:[#allocation161_spill] sm:$0xff]  ;;  %v2367_v57 = vadd.f32 %v11513_v32, %v1727_v36  ;;  %v13442_v46 = vld [vmem:[#allocation75_spill] sm:$0xff]  ;;  %5659 = vperm.xlu1 %7319, %v5581_v54   ;;  %5704 = vperm.xlu0 %7320, %v5590_v45   ;;  %v11855_v45 = vpop.permute.xlu1 %2957 }
 0x262   : > { %v2361_v52 = vadd.f32 %v11457_v1, %v1721_v20  ;;  %4289 = vmatprep.subr.bf16.mxu0 %v2875_v28  ;;  %v2615_v1 = vmax.f32 %v2359_v49, 0.0  ;;  %v1731_v27 = vadd.f32 %v13438_v4, %v13437_v39  ;;  %v2621_v2 = vmax.f32 %v2365_v17, 0.0  ;;  %v5594_v53 = vld [vmem:[%s12652_s5 + $0x80] sm:$0xff]  ;;  %v5587_v62 = vld [vmem:[%s12652_s5 + $0x48] sm:$0xff]  ;;  %v5596_v9 = vld [vmem:[%s12652_s5 + $0x90] sm:$0xff] }
 0x263   : > { %4995 = vmatprep.subr.bf16.mxu1 %v2877_v58  ;;  %4290 = vmatpush1.bf16.msra.mxu0 %v2874_v41  ;;  %v2619_v37 = vmax.f32 %v2363_v40, 0.0  ;;  %v1729_v16 = vadd.f32 %v13440_v35, %v13439_v0  ;;  %v1733_v8 = vadd.f32 %v13442_v46, %v13441_v47  ;;  %v2628_v3 = vmax.f32 %v2372_v59, 0.0  ;;  %v7374_v11 = vld [vmem:[%s12650_s3 + $0x220] ss:$16 sps:$4 sm:$0xff]   ;;  %v7375_v34 = vld [vmem:[%s12650_s3 + $0x244] ss:$16 sps:$4 sm:$0xff]  }
 0x264   : > { %v2617_v13 = vmax.f32 %v2361_v52, 0.0  ;;  %4996 = vmatpush1.bf16.msra.mxu1 %v2876_v30  ;;  %v2880_v26 = vpack.c.bf16 %v2620_v7, %v2616_v12  ;;  %v2371_v44 = vadd.f32 %v11698_v18, %v1731_v27  ;;  %v2622_v55 = vmax.f32 %v11542_v24, 0.0  ;;  %4103 = vmatmul.mubr.bf16.gmra.mrb[64].mxu0 %v7371_v31  ;;  %v5592_v12 = vld [vmem:[%s12652_s5 + $0x70] sm:$0xff]  ;;  %v5585_v30 = vld [vmem:[%s12652_s5 + $0x38] sm:$0xff]  ;;  %v5598_v60 = vld [vmem:[%s12652_s5 + $0xa0] sm:$0xff]  ;;  %v11813_v59 = vpop.permute.xlu0 %2962 }
 0x265   : > { %v2879_v25 = vpack.c.bf16 %v2619_v37, %v2615_v1  ;;  %v2369_v19 = vadd.f32 %v11513_v32, %v1729_v16  ;;  %v2373_v29 = vadd.f32 %v11698_v18, %v1733_v8  ;;  %v2623_v41 = vmax.f32 %v2367_v57, 0.0  ;;  %v7372_v32 = vld [vmem:[%s12650_s3 + $0x224] ss:$16 sps:$4 sm:$0xff]   ;;  %5669 = vperm.xlu1 %7319, %v5583_v38   ;;  %4809 = vmatmul.mubr.bf16.gmra.mrb[64].mxu1 %v7371_v31  ;;  %v5589_v42 = vld [vmem:[%s12652_s5 + $0x58] sm:$0xff]  ;;  %v7377_v50 = vld [vmem:[%s12650_s3 + $0x240] ss:$16 sps:$4 sm:$0xff]   ;;  %v11874_v31 = vpop.permute.xlu1 %2967 }
 0x266   : > { %v2881_v10 = vpack.c.bf16 %v2621_v2, %v2617_v13  ;;  %v2627_v15 = vmax.f32 %v2371_v44, 0.0  ;;  %v2882_v43 = vpack.c.bf16 %v2626_v63, %v2622_v55  ;;  %v2884_v21 = vpack.c.bf16 %v2628_v3, %v2624_v61  ;;  %5714 = vperm.xlu0 %7320, %v5592_v12   ;;  %4112 = vmatprep.mubr.bf16.mxu0 %v7372_v32  ;;  %v7378_v20 = vld [vmem:[%s12650_s3 + $0x264] ss:$16 sps:$4 sm:$0xff]   ;;  %v5591_v7 = vld [vmem:[%s12652_s5 + $0x68] sm:$0xff]  ;;  %v5593_v33 = vld [vmem:[%s12652_s5 + $0x78] sm:$0xff] }
 0x267   : > { %4291 = vmatprep.subr.bf16.mxu0 %v2879_v25  ;;  %v2625_v24 = vmax.f32 %v2369_v19, 0.0  ;;  %v2629_v18 = vmax.f32 %v2373_v29, 0.0  ;;  %4818 = vmatprep.mubr.bf16.mxu1 %v7372_v32  ;;  %v5600_v28 = vld [vmem:[%s12652_s5 + $0xb0] sm:$0xff]  ;;  %v5602_v14 = vld [vmem:[%s12652_s5 + $0xc0] sm:$0xff]  ;;  %v5595_v49 = vld [vmem:[%s12652_s5 + $0x88] sm:$0xff] }
 0x268   : > { %4997 = vmatprep.subr.bf16.mxu1 %v2881_v10  ;;  %4292 = vmatpush1.bf16.msra.mxu0 %v2878_v6  ;;  %v2883_v56 = vpack.c.bf16 %v2627_v15, %v2623_v41  ;;  %v7380_v22 = vld [vmem:[%s12650_s3 + $0x260] ss:$16 sps:$4 sm:$0xff]   ;;  %v7381_v58 = vld [vmem:[%s12650_s3 + $0x284] ss:$16 sps:$4 sm:$0xff]   ;;  %v11833_v52 = vpop.permute.xlu0 %2972  ;;  %v5597_v54 = vld [vmem:[%s12652_s5 + $0x98] sm:$0xff] }
 0x269   : > { %4998 = vmatpush1.bf16.msra.mxu1 %v2880_v26  ;;  %v2885_v23 = vpack.c.bf16 %v2629_v18, %v2625_v24  ;;  %5679 = vperm.xlu1 %7319, %v5585_v30   ;;  %v5604_v40 = vld [vmem:[%s12652_s5 + $0xd0] sm:$0xff]  ;;  %v5606_v63 = vld [vmem:[%s12652_s5 + $0xe0] sm:$0xff]  ;;  %v5599_v5 = vld [vmem:[%s12652_s5 + $0xa8] sm:$0xff]  ;;  %v11893_v46 = vpop.permute.xlu1 %2977 }
 0x26a   : > { %4293 = vmatprep.subr.bf16.mxu0 %v2883_v56  ;;  %5724 = vperm.xlu0 %7320, %v5594_v53   ;;  %v7383_v17 = vld [vmem:[%s12650_s3 + $0x280] ss:$16 sps:$4 sm:$0xff]   ;;  %v7384_v6 = vld [vmem:[%s12650_s3 + $0x2a4] ss:$16 sps:$4 sm:$0xff]   ;;  %v5601_v1 = vld [vmem:[%s12652_s5 + $0xb8] sm:$0xff] }
 0x26b   : > { %4999 = vmatprep.subr.bf16.mxu1 %v2885_v23  ;;  %v5608_v36 = vld [vmem:[%s12652_s5 + $0xf0] sm:$0xff]  ;;  %v5610_v37 = vld [vmem:[%s12652_s5 + $0x100] sm:$0xff]  ;;  %v5603_v27 = vld [vmem:[%s12652_s5 + $0xc8] sm:$0xff] }
 0x26c   : > { %4294 = vmatpush1.bf16.msra.mxu0 %v2882_v43  ;;  %v11847_v51 = vpop.permute.xlu0 %2982  ;;  %v7386_v13 = vld [vmem:[%s12650_s3 + $0x2a0] ss:$16 sps:$4 sm:$0xff]   ;;  %v7387_v4 = vld [vmem:[%s12650_s3 + $0x2c4] ss:$16 sps:$4 sm:$0xff]   ;;  %v5605_v0 = vld [vmem:[%s12652_s5 + $0xd8] sm:$0xff] }
 0x26d   : > { %5000 = vmatpush1.bf16.msra.mxu1 %v2884_v21  ;;  %4113 = vmatmul.mubr.bf16.gmra.mrb[68].mxu0 %v7374_v11  ;;  %v5612_v2 = vld [vmem:[%s12652_s5 + $0x110] sm:$0xff]  ;;  %v5614_v35 = vld [vmem:[%s12652_s5 + $0x120] sm:$0xff]  ;;  %v5607_v8 = vld [vmem:[%s12652_s5 + $0xe8] sm:$0xff]  ;;  %v11906_v44 = vpop.permute.xlu1 %2987 }
 0x26e   : > { %4122 = vmatprep.mubr.bf16.mxu0 %v7375_v34  ;;  %5689 = vperm.xlu1 %7319, %v5587_v62   ;;  %v7389_v16 = vld [vmem:[%s12650_s3 + $0x2c0] ss:$16 sps:$4 sm:$0xff]   ;;  %v7390_v47 = vld [vmem:[%s12650_s3 + $0x2e4] ss:$16 sps:$4 sm:$0xff]   ;;  %v5609_v26 = vld [vmem:[%s12652_s5 + $0xf8] sm:$0xff] }
 0x26f   : > { %4819 = vmatmul.mubr.bf16.gmra.mrb[68].mxu1 %v7374_v11  ;;  %5734 = vperm.xlu0 %7320, %v5596_v9   ;;  %v5616_v3 = vld [vmem:[%s12652_s5 + $0x130] sm:$0xff]  ;;  %v5618_v55 = vld [vmem:[%s12652_s5 + $0x140] sm:$0xff]  ;;  %v5611_v38 = vld [vmem:[%s12652_s5 + $0x108] sm:$0xff] }
 0x270   : > { %4828 = vmatprep.mubr.bf16.mxu1 %v7375_v34  ;;  %v11866_v39 = vpop.permute.xlu0 %2992  ;;  %v7392_v10 = vld [vmem:[%s12650_s3 + $0x2e0] ss:$16 sps:$4 sm:$0xff]   ;;  %v7393_v19 = vld [vmem:[%s12650_s3 + $0x304] ss:$16 sps:$4 sm:$0xff]   ;;  %v5613_v15 = vld [vmem:[%s12652_s5 + $0x118] sm:$0xff] }
 0x271   : > { %v5620_v61 = vld [vmem:[%s12652_s5 + $0x150] sm:$0xff]  ;;  %v11925_v41 = vpop.permute.xlu1 %2997  ;;  %v5622_v12 = vld [vmem:[%s12652_s5 + $0x160] sm:$0xff]  ;;  %v5615_v43 = vld [vmem:[%s12652_s5 + $0x128] sm:$0xff] }
 0x272   : > { %5699 = vperm.xlu1 %7319, %v5589_v42   ;;  %v7395_v32 = vld [vmem:[%s12650_s3 + $0x300] ss:$16 sps:$4 sm:$0xff]   ;;  %v7396_v18 = vld [vmem:[%s12650_s3 + $0x324] ss:$16 sps:$4 sm:$0xff]   ;;  %v5617_v30 = vld [vmem:[%s12652_s5 + $0x138] sm:$0xff] }
 0x273   : > { %5744 = vperm.xlu0 %7320, %v5598_v60   ;;  %v5624_v21 = vld [vmem:[%s12652_s5 + $0x170] sm:$0xff]  ;;  %v5626_v53 = vld [vmem:[%s12652_s5 + $0x180] sm:$0xff]  ;;  %v5619_v9 = vld [vmem:[%s12652_s5 + $0x148] sm:$0xff] }
 0x274   : > { %v11879_v57 = vpop.permute.xlu0 %3002  ;;  %v7398_v11 = vld [vmem:[%s12650_s3 + $0x320] ss:$16 sps:$4 sm:$0xff]   ;;  %v7399_v34 = vld [vmem:[%s12650_s3 + $0x344] ss:$16 sps:$4 sm:$0xff]  }
 0x275   : > { %4123 = vmatmul.mubr.bf16.gmra.mrb[72].mxu0 %v7377_v50  ;;  %v11944_v56 = vpop.permute.xlu1 %3007  ;;  %v5628_v42 = vld [vmem:[%s12652_s5 + $0x190] sm:$0xff] }
 0x276   : > { %4132 = vmatprep.mubr.bf16.mxu0 %v7378_v20  ;;  %5709 = vperm.xlu1 %7319, %v5591_v7   ;;  %v5630_v7 = vld [vmem:[%s12652_s5 + $0x1a0] sm:$0xff] }
 0x277   : > { %4829 = vmatmul.mubr.bf16.gmra.mrb[72].mxu1 %v7377_v50  ;;  %5754 = vperm.xlu0 %7320, %v5600_v28   ;;  %v5621_v50 = vld [vmem:[%s12652_s5 + $0x158] sm:$0xff]  ;;  %v7401_v28 = vld [vmem:[%s12650_s3 + $0x340] ss:$16 sps:$4 sm:$0xff]  }
 0x278   : > { %4838 = vmatprep.mubr.bf16.mxu1 %v7378_v20  ;;  %v11901_v25 = vpop.permute.xlu0 %3012 }
 0x279   : > { %v11963_v62 = vpop.permute.xlu1 %3017 }
 0x27a   : > { %5719 = vperm.xlu1 %7319, %v5593_v33   ;;  %v7402_v33 = vld [vmem:[%s12650_s3 + $0x364] ss:$16 sps:$4 sm:$0xff]  }
 0x27b   : > { %5764 = vperm.xlu0 %7320, %v5602_v14  }
 0x27c   : > { %v11917_v29 = vpop.permute.xlu0 %3022 }
 0x27d   : > { %4133 = vmatmul.mubr.bf16.gmra.mrb[76].mxu0 %v7380_v22  ;;  %v11976_v20 = vpop.permute.xlu1 %3027 }
 0x27e   : > { %4142 = vmatprep.mubr.bf16.mxu0 %v7381_v58  ;;  %5729 = vperm.xlu1 %7319, %v5595_v49  }
 0x27f   : > { %4839 = vmatmul.mubr.bf16.gmra.mrb[76].mxu1 %v7380_v22  ;;  %5774 = vperm.xlu0 %7320, %v5604_v40   ;;  %v5623_v22 = vld [vmem:[%s12652_s5 + $0x168] sm:$0xff]  ;;  %v5625_v40 = vld [vmem:[%s12652_s5 + $0x178] sm:$0xff] }
 0x280   : > { %4848 = vmatprep.mubr.bf16.mxu1 %v7381_v58  ;;  %v11936_v24 = vpop.permute.xlu0 %3032  ;;  %v5632_v58 = vld [vmem:[%s12652_s5 + $0x1b0] sm:$0xff] }
 0x281   : > { %v11995_v49 = vpop.permute.xlu1 %3037 }
 0x282   : > { %5739 = vperm.xlu1 %7319, %v5597_v54   ;;  %v5634_v54 = vld [vmem:[%s12652_s5 + $0x1c0] sm:$0xff] }
 0x283   : > { %5784 = vperm.xlu0 %7320, %v5606_v63   ;;  %v7404_v63 = vld [vmem:[%s12650_s3 + $0x360] ss:$16 sps:$4 sm:$0xff]  }
 0x284   : > { %v11949_v23 = vpop.permute.xlu0 %3042 }
 0x285   : > { %4143 = vmatmul.mubr.bf16.gmra.mrb[80].mxu0 %v7383_v17 }
 0x286   : > { %4152 = vmatprep.mubr.bf16.mxu0 %v7384_v6  ;;  %5749 = vperm.xlu1 %7319, %v5599_v5   ;;  %v5627_v5 = vld [vmem:[%s12652_s5 + $0x188] sm:$0xff] }
 0x287   : > { %4849 = vmatmul.mubr.bf16.gmra.mrb[80].mxu1 %v7383_v17  ;;  %5794 = vperm.xlu0 %7320, %v5608_v36   ;;  %v12014_v36 = vpop.permute.xlu1 %3047 }
 0x288   : > { %4858 = vmatprep.mubr.bf16.mxu1 %v7384_v6  ;;  %v11971_v60 = vpop.permute.xlu0 %3052  ;;  %v7405_v6 = vld [vmem:[%s12650_s3 + $0x384] ss:$16 sps:$4 sm:$0xff]  }
 0x28a   : > { %5759 = vperm.xlu1 %7319, %v5601_v1   ;;  %v5636_v1 = vld [vmem:[%s12652_s5 + $0x1d0] sm:$0xff] }
 0x28b   : > { %5804 = vperm.xlu0 %7320, %v5610_v37  }
 0x28c   : > { %v11987_v14 = vpop.permute.xlu0 %3062 }
 0x28d   : > { %4153 = vmatmul.mubr.bf16.gmra.mrb[84].mxu0 %v7386_v13 }
 0x28e   : > { %4162 = vmatprep.mubr.bf16.mxu0 %v7387_v4  ;;  %5769 = vperm.xlu1 %7319, %v5603_v27   ;;  %v7407_v27 = vld [vmem:[%s12650_s3 + $0x380] ss:$16 sps:$4 sm:$0xff]  }
 0x28f   : > { %4859 = vmatmul.mubr.bf16.gmra.mrb[84].mxu1 %v7386_v13  ;;  %5814 = vperm.xlu0 %7320, %v5612_v2   ;;  %v5629_v13 = vld [vmem:[%s12652_s5 + $0x198] sm:$0xff]  ;;  %v7408_v2 = vld [vmem:[%s12650_s3 + $0x3a4] ss:$16 sps:$4 sm:$0xff]  }
 0x290   : > { %4868 = vmatprep.mubr.bf16.mxu1 %v7387_v4  ;;  %v12006_v17 = vpop.permute.xlu0 %3072  ;;  %v5638_v4 = vld [vmem:[%s12652_s5 + $0x1e0] sm:$0xff] }
 0x292   : > { %5779 = vperm.xlu1 %7319, %v5605_v0   ;;  %v12033_v0 = vpop.permute.xlu1 %3057 }
 0x293   : > { %5824 = vperm.xlu0 %7320, %v5614_v35   ;;  %v5631_v35 = vld [vmem:[%s12652_s5 + $0x1a8] sm:$0xff] }
 0x294   : > { %v12019_v37 = vpop.permute.xlu0 %3082 }
 0x295   : > { %4163 = vmatmul.mubr.bf16.gmra.mrb[88].mxu0 %v7389_v16 }
 0x296   : > { %4172 = vmatprep.mubr.bf16.mxu0 %v7390_v47  ;;  %5789 = vperm.xlu1 %7319, %v5607_v8   ;;  %v5633_v8 = vld [vmem:[%s12652_s5 + $0x1b8] sm:$0xff] }
 0x297   : > { %4869 = vmatmul.mubr.bf16.gmra.mrb[88].mxu1 %v7389_v16  ;;  %5834 = vperm.xlu0 %7320, %v5616_v3   ;;  %v5640_v16 = vld [vmem:[%s12652_s5 + $0x1f0] sm:$0xff]  ;;  %v12046_v3 = vpop.permute.xlu1 %3067 }
 0x298   : > { %4878 = vmatprep.mubr.bf16.mxu1 %v7390_v47  ;;  %v12041_v47 = vpop.permute.xlu0 %3092 }
 0x29a   : > { %5799 = vperm.xlu1 %7319, %v5609_v26   ;;  %v6494_v26 = vld [vmem:[#allocation2] sm:$0x1] }
 0x29b   : > { %5844 = vperm.xlu0 %7320, %v5618_v55   ;;  %v7410_v55 = vld [vmem:[%s12650_s3 + $0x3a0] ss:$16 sps:$4 sm:$0xff]  }
 0x29d   : > { %4173 = vmatmul.mubr.bf16.gmra.mrb[92].mxu0 %v7392_v10 }
 0x29e   : > { %4182 = vmatprep.mubr.bf16.mxu0 %v7393_v19  ;;  %5809 = vperm.xlu1 %7319, %v5611_v38   ;;  %v5635_v38 = vld [vmem:[%s12652_s5 + $0x1c8] sm:$0xff] }
 0x29f   : > { %4879 = vmatmul.mubr.bf16.gmra.mrb[92].mxu1 %v7392_v10  ;;  %5854 = vperm.xlu0 %7320, %v5620_v61   ;;  %v7411_v10 = vld [vmem:[%s12650_s3 + $0x3c4] ss:$16 sps:$4 sm:$0xff]   ;;  %v12059_v61 = vpop.permute.xlu1 %3077 }
 0x2a0   : > { %4888 = vmatprep.mubr.bf16.mxu1 %v7393_v19  ;;  %v12054_v19 = vpop.permute.xlu0 %3102 }
 0x2a2   : > { %5819 = vperm.xlu1 %7319, %v5613_v15   ;;  %v5637_v15 = vld [vmem:[%s12652_s5 + $0x1d8] sm:$0xff] }
 0x2a3   : > { %5864 = vperm.xlu0 %7320, %v5622_v12   ;;  %v7413_v12 = vld [vmem:[%s12650_s3 + $0x3c0] ss:$16 sps:$4 sm:$0xff]  }
 0x2a5   : > { %4183 = vmatmul.mubr.bf16.gmra.mrb[96].mxu0 %v7395_v32 }
 0x2a6   : > { %4192 = vmatprep.mubr.bf16.mxu0 %v7396_v18  ;;  %5829 = vperm.xlu1 %7319, %v5615_v43   ;;  %v12073_v43 = vpop.permute.xlu1 %3087 }
 0x2a7   : > { %4889 = vmatmul.mubr.bf16.gmra.mrb[96].mxu1 %v7395_v32  ;;  %5874 = vperm.xlu0 %7320, %v5624_v21   ;;  %v7414_v32 = vld [vmem:[%s12650_s3 + $0x3e4] ss:$16 sps:$4 sm:$0xff]   ;;  %v5641_v21 = vld [vmem:[%s12652_s5 + $0x1f8] sm:$0xff] }
 0x2a8   : > { %4898 = vmatprep.mubr.bf16.mxu1 %v7396_v18  ;;  %v5639_v18 = vld [vmem:[%s12652_s5 + $0x1e8] sm:$0xff] }
 0x2aa   : > { %5839 = vperm.xlu1 %7319, %v5617_v30   ;;  %v7416_v30 = vld [vmem:[%s12650_s3 + $0x3e0] ss:$16 sps:$4 sm:$0xff]  }
 0x2ab   : > { %5884 = vperm.xlu0 %7320, %v5626_v53   ;;  %v7419_v53 = vld [vmem:[%s12650_s3 + $0xc] ss:$16 sps:$4 sm:$0xff]  }
 0x2ad   : > { %4193 = vmatmul.mubr.bf16.gmra.mrb[100].mxu0 %v7398_v11 }
 0x2ae   : > { %4202 = vmatprep.mubr.bf16.mxu0 %v7399_v34  ;;  %5849 = vperm.xlu1 %7319, %v5619_v9   ;;  %v7420_v9 = vld [vmem:[%s12650_s3 + $0x2c] ss:$16 sps:$4 sm:$0xff]  }
 0x2af   : > { %4899 = vmatmul.mubr.bf16.gmra.mrb[100].mxu1 %v7398_v11  ;;  %5894 = vperm.xlu0 %7320, %v5628_v42   ;;  %v12084_v11 = vpop.permute.xlu1 %3097  ;;  %v7422_v42 = vld [vmem:[%s12650_s3 + $0x28] ss:$16 sps:$4 sm:$0xff]  }
 0x2b0   : > { %4908 = vmatprep.mubr.bf16.mxu1 %v7399_v34  ;;  %v7417_v34 = vld [vmem:[%s12650_s3 + $0x8] ss:$16 sps:$4 sm:$0xff]  }
 0x2b2   : > { %5859 = vperm.xlu1 %7319, %v5621_v50   ;;  %v7423_v50 = vld [vmem:[%s12650_s3 + $0x4c] ss:$16 sps:$4 sm:$0xff]  }
 0x2b3   : > { %5904 = vperm.xlu0 %7320, %v5630_v7   ;;  %v7425_v7 = vld [vmem:[%s12650_s3 + $0x48] ss:$16 sps:$4 sm:$0xff]  }
 0x2b5   : > { %4203 = vmatmul.mubr.bf16.gmra.mrb[104].mxu0 %v7401_v28 }
 0x2b6   : > { %4212 = vmatprep.mubr.bf16.mxu0 %v7402_v33  ;;  %5869 = vperm.xlu1 %7319, %v5623_v22   ;;  %v7429_v22 = vld [vmem:[%s12650_s3 + $0x8c] ss:$16 sps:$4 sm:$0xff]  }
 0x2b7   : > { %4909 = vmatmul.mubr.bf16.gmra.mrb[104].mxu1 %v7401_v28  ;;  %5914 = vperm.xlu0 %7320, %v5632_v58   ;;  %v7426_v28 = vld [vmem:[%s12650_s3 + $0x6c] ss:$16 sps:$4 sm:$0xff]   ;;  %v7431_v58 = vld [vmem:[%s12650_s3 + $0x88] ss:$16 sps:$4 sm:$0xff]  }
 0x2b8   : > { %4918 = vmatprep.mubr.bf16.mxu1 %v7402_v33  ;;  %v7428_v33 = vld [vmem:[%s12650_s3 + $0x68] ss:$16 sps:$4 sm:$0xff]  }
 0x2ba   : > { %5879 = vperm.xlu1 %7319, %v5625_v40   ;;  %v7432_v40 = vld [vmem:[%s12650_s3 + $0xac] ss:$16 sps:$4 sm:$0xff]  }
 0x2bb   : > { %5924 = vperm.xlu0 %7320, %v5634_v54   ;;  %v7434_v54 = vld [vmem:[%s12650_s3 + $0xa8] ss:$16 sps:$4 sm:$0xff]  }
 0x2bd   : > { %4213 = vmatmul.mubr.bf16.gmra.mrb[108].mxu0 %v7404_v63 }
 0x2be   : > { %4222 = vmatprep.mubr.bf16.mxu0 %v7405_v6  ;;  %5889 = vperm.xlu1 %7319, %v5627_v5   ;;  %v7438_v5 = vld [vmem:[%s12650_s3 + $0xec] ss:$16 sps:$4 sm:$0xff]  }
 0x2bf   : > { %4919 = vmatmul.mubr.bf16.gmra.mrb[108].mxu1 %v7404_v63  ;;  %5934 = vperm.xlu0 %7320, %v5636_v1   ;;  %v7435_v63 = vld [vmem:[%s12650_s3 + $0xcc] ss:$16 sps:$4 sm:$0xff]   ;;  %v7440_v1 = vld [vmem:[%s12650_s3 + $0xe8] ss:$16 sps:$4 sm:$0xff]  }
 0x2c0   : > { %4928 = vmatprep.mubr.bf16.mxu1 %v7405_v6  ;;  %v7437_v6 = vld [vmem:[%s12650_s3 + $0xc8] ss:$16 sps:$4 sm:$0xff]  }
 0x2c2   : > { %5899 = vperm.xlu1 %7319, %v5629_v13   ;;  %v7441_v13 = vld [vmem:[%s12650_s3 + $0x10c] ss:$16 sps:$4 sm:$0xff]  }
 0x2c3   : > { %5944 = vperm.xlu0 %7320, %v5638_v4   ;;  %v7443_v4 = vld [vmem:[%s12650_s3 + $0x108] ss:$16 sps:$4 sm:$0xff]  }
 0x2c5   : > { %4223 = vmatmul.mubr.bf16.gmra.mrb[112].mxu0 %v7407_v27 }
 0x2c6   : > { %4232 = vmatprep.mubr.bf16.mxu0 %v7408_v2  ;;  %5909 = vperm.xlu1 %7319, %v5631_v35   ;;  %v7447_v35 = vld [vmem:[%s12650_s3 + $0x14c] ss:$16 sps:$4 sm:$0xff]  }
 0x2c7   : > { %4929 = vmatmul.mubr.bf16.gmra.mrb[112].mxu1 %v7407_v27  ;;  %5954 = vperm.xlu0 %7320, %v5640_v16   ;;  %v7444_v27 = vld [vmem:[%s12650_s3 + $0x12c] ss:$16 sps:$4 sm:$0xff]   ;;  %v7449_v16 = vld [vmem:[%s12650_s3 + $0x148] ss:$16 sps:$4 sm:$0xff]  }
 0x2c8   : > { %4938 = vmatprep.mubr.bf16.mxu1 %v7408_v2  ;;  %v7446_v2 = vld [vmem:[%s12650_s3 + $0x128] ss:$16 sps:$4 sm:$0xff]  }
 0x2ca   : > { %5919 = vperm.xlu1 %7319, %v5633_v8   ;;  %v7450_v8 = vld [vmem:[%s12650_s3 + $0x16c] ss:$16 sps:$4 sm:$0xff]  }
 0x2cb   : > { %6497 = vperm.xlu0 %7320, %v6494_v26   ;;  %v7452_v26 = vld [vmem:[%s12650_s3 + $0x168] ss:$16 sps:$4 sm:$0xff]  }
 0x2cd   : > { %4233 = vmatmul.mubr.bf16.gmra.mrb[116].mxu0 %v7410_v55 }
 0x2ce   : > { %4242 = vmatprep.mubr.bf16.mxu0 %v7411_v10  ;;  %5929 = vperm.xlu1 %7319, %v5635_v38   ;;  %v7456_v38 = vld [vmem:[%s12650_s3 + $0x1ac] ss:$16 sps:$4 sm:$0xff]  }
 0x2cf   : > { %4939 = vmatmul.mubr.bf16.gmra.mrb[116].mxu1 %v7410_v55  ;;  %v7453_v55 = vld [vmem:[%s12650_s3 + $0x18c] ss:$16 sps:$4 sm:$0xff]  }
 0x2d0   : > { %4948 = vmatprep.mubr.bf16.mxu1 %v7411_v10  ;;  %v7455_v10 = vld [vmem:[%s12650_s3 + $0x188] ss:$16 sps:$4 sm:$0xff]  }
 0x2d2   : > { %5939 = vperm.xlu1 %7319, %v5637_v15   ;;  %v7458_v15 = vld [vmem:[%s12650_s3 + $0x1a8] ss:$16 sps:$4 sm:$0xff]  }
 0x2d5   : > { %4243 = vmatmul.mubr.bf16.gmra.mrb[120].mxu0 %v7413_v12 }
 0x2d6   : > { %4252 = vmatprep.mubr.bf16.mxu0 %v7414_v32  ;;  %5949 = vperm.xlu1 %7319, %v5639_v18   ;;  %v7462_v18 = vld [vmem:[%s12650_s3 + $0x1ec] ss:$16 sps:$4 sm:$0xff]  }
 0x2d7   : > { %4949 = vmatmul.mubr.bf16.gmra.mrb[120].mxu1 %v7413_v12  ;;  %v7459_v12 = vld [vmem:[%s12650_s3 + $0x1cc] ss:$16 sps:$4 sm:$0xff]  }
 0x2d8   : > { %4958 = vmatprep.mubr.bf16.mxu1 %v7414_v32  ;;  %v7461_v32 = vld [vmem:[%s12650_s3 + $0x1c8] ss:$16 sps:$4 sm:$0xff]  }
 0x2da   : > { %5959 = vperm.xlu1 %7319, %v5641_v21   ;;  %v12176_v21 = vpop.permute.xlu1 %3107 }
 0x2dd   : > { %4253 = vmatmul.mubr.bf16.gmra.mrb[124].mxu0 %v7416_v30 }
 0x2de   : > { %4295 = vmatprep.mubr.bf16.mxu0 %v7419_v53 }
 0x2df   : > { %4959 = vmatmul.mubr.bf16.gmra.mrb[124].mxu1 %v7416_v30  ;;  %v7464_v30 = vld [vmem:[%s12650_s3 + $0x1e8] ss:$16 sps:$4 sm:$0xff]  }
 0x2e0   : > { %5001 = vmatprep.mubr.bf16.mxu1 %v7419_v53  ;;  %v7465_v53 = vld [vmem:[%s12650_s3 + $0x20c] ss:$16 sps:$4 sm:$0xff]  }
 0x2e5   : > { %4296 = vmatmul.mubr.bf16.vlgmr.msra.gmra.mrb[0].mxu0 %v7417_v34 }
 0x2e6   : > { %4305 = vmatprep.mubr.bf16.mxu0 %v7420_v9 }
 0x2e7   : > { %5002 = vmatmul.mubr.bf16.vlgmr.msra.gmra.mrb[0].mxu1 %v7417_v34  ;;  %v12184_v34 = vpop.permute.xlu0 %3112 }
 0x2e8   : > { %5011 = vmatprep.mubr.bf16.mxu1 %v7420_v9  ;;  %v12186_v9 = vpop.permute.xlu1 %3117 }
 0x2ed   : > { %4306 = vmatmul.mubr.bf16.gmra.mrb[4].mxu0 %v7422_v42 }
 0x2ee   : > { %4315 = vmatprep.mubr.bf16.mxu0 %v7423_v50 }
 0x2ef   : > { %5012 = vmatmul.mubr.bf16.gmra.mrb[4].mxu1 %v7422_v42  ;;  %v7467_v42 = vld [vmem:[%s12650_s3 + $0x208] ss:$16 sps:$4 sm:$0xff]  }
 0x2f0   : > { %5021 = vmatprep.mubr.bf16.mxu1 %v7423_v50  ;;  %v7468_v50 = vld [vmem:[%s12650_s3 + $0x22c] ss:$16 sps:$4 sm:$0xff]  }
 0x2f5   : > { %4316 = vmatmul.mubr.bf16.gmra.mrb[8].mxu0 %v7425_v7 }
 0x2f6   : > { %4325 = vmatprep.mubr.bf16.mxu0 %v7426_v28 }
 0x2f7   : > { %5022 = vmatmul.mubr.bf16.gmra.mrb[8].mxu1 %v7425_v7  ;;  %v12194_v7 = vpop.permute.xlu0 %3122 }
 0x2f8   : > { %5031 = vmatprep.mubr.bf16.mxu1 %v7426_v28  ;;  %v12196_v28 = vpop.permute.xlu1 %3127 }
 0x2fd   : > { %4326 = vmatmul.mubr.bf16.gmra.mrb[12].mxu0 %v7428_v33 }
 0x2fe   : > { %4335 = vmatprep.mubr.bf16.mxu0 %v7429_v22 }
 0x2ff   : > { %5032 = vmatmul.mubr.bf16.gmra.mrb[12].mxu1 %v7428_v33  ;;  %v12198_v33 = vpop.permute.xlu0 %3132 }
 0x300   : > { %5041 = vmatprep.mubr.bf16.mxu1 %v7429_v22  ;;  %13443 = vst [vmem:[#allocation157_spill] sm:$0xff] %v12198_v33  ;;  %v7470_v22 = vld [vmem:[%s12650_s3 + $0x228] ss:$16 sps:$4 sm:$0xff]  }
 0x305   : > { %4336 = vmatmul.mubr.bf16.gmra.mrb[16].mxu0 %v7431_v58 }
 0x306   : > { %4345 = vmatprep.mubr.bf16.mxu0 %v7432_v40 }
 0x307   : > { %5042 = vmatmul.mubr.bf16.gmra.mrb[16].mxu1 %v7431_v58  ;;  %v12203_v58 = vpop.permute.xlu1 %3137 }
 0x308   : > { %5051 = vmatprep.mubr.bf16.mxu1 %v7432_v40  ;;  %13444 = vst [vmem:[#allocation18_spill] sm:$0xff] %v12203_v58  ;;  %v7471_v40 = vld [vmem:[%s12650_s3 + $0x24c] ss:$16 sps:$4 sm:$0xff]  }
 0x30d   : > { %4346 = vmatmul.mubr.bf16.gmra.mrb[20].mxu0 %v7434_v54 }
 0x30e   : > { %4355 = vmatprep.mubr.bf16.mxu0 %v7435_v63 }
 0x30f   : > { %5052 = vmatmul.mubr.bf16.gmra.mrb[20].mxu1 %v7434_v54  ;;  %v12208_v54 = vpop.permute.xlu0 %3142 }
 0x310   : > { %5061 = vmatprep.mubr.bf16.mxu1 %v7435_v63  ;;  %13445 = vst [vmem:[#allocation80_spill] sm:$0xff] %v12208_v54  ;;  %v12210_v63 = vpop.permute.xlu1 %3147 }
 0x311   : > { %13446 = vst [vmem:[#allocation81_spill] sm:$0xff] %v12210_v63 }
 0x315   : > { %4356 = vmatmul.mubr.bf16.gmra.mrb[24].mxu0 %v7437_v6 }
 0x316   : > { %4365 = vmatprep.mubr.bf16.mxu0 %v7438_v5 }
 0x317   : > { %5062 = vmatmul.mubr.bf16.gmra.mrb[24].mxu1 %v7437_v6  ;;  %v7473_v6 = vld [vmem:[%s12650_s3 + $0x248] ss:$16 sps:$4 sm:$0xff]  }
 0x318   : > { %5071 = vmatprep.mubr.bf16.mxu1 %v7438_v5  ;;  %v7474_v5 = vld [vmem:[%s12650_s3 + $0x26c] ss:$16 sps:$4 sm:$0xff]  }
 0x31d   : > { %4366 = vmatmul.mubr.bf16.gmra.mrb[28].mxu0 %v7440_v1 }
 0x31e   : > { %4375 = vmatprep.mubr.bf16.mxu0 %v7441_v13 }
 0x31f   : > { %5072 = vmatmul.mubr.bf16.gmra.mrb[28].mxu1 %v7440_v1  ;;  %v12218_v1 = vpop.permute.xlu0 %3152 }
 0x320   : > { %5081 = vmatprep.mubr.bf16.mxu1 %v7441_v13  ;;  %13447 = vst [vmem:[#allocation82_spill] sm:$0xff] %v12218_v1  ;;  %v12220_v13 = vpop.permute.xlu1 %3157 }
 0x321   : > { %13448 = vst [vmem:[#allocation176_spill] sm:$0xff] %v12220_v13 }
 0x325   : > { %4376 = vmatmul.mubr.bf16.gmra.mrb[32].mxu0 %v7443_v4 }
 0x326   : > { %4385 = vmatprep.mubr.bf16.mxu0 %v7444_v27 }
 0x327   : > { %5082 = vmatmul.mubr.bf16.gmra.mrb[32].mxu1 %v7443_v4  ;;  %v7476_v4 = vld [vmem:[%s12650_s3 + $0x268] ss:$16 sps:$4 sm:$0xff]  }
 0x328   : > { %5091 = vmatprep.mubr.bf16.mxu1 %v7444_v27  ;;  %v7477_v27 = vld [vmem:[%s12650_s3 + $0x28c] ss:$16 sps:$4 sm:$0xff]  }
 0x32d   : > { %4386 = vmatmul.mubr.bf16.gmra.mrb[36].mxu0 %v7446_v2 }
 0x32e   : > { %4395 = vmatprep.mubr.bf16.mxu0 %v7447_v35 }
 0x32f   : > { %5092 = vmatmul.mubr.bf16.gmra.mrb[36].mxu1 %v7446_v2  ;;  %v12228_v2 = vpop.permute.xlu0 %3162 }
 0x330   : > { %5101 = vmatprep.mubr.bf16.mxu1 %v7447_v35  ;;  %13449 = vst [vmem:[#allocation83_spill] sm:$0xff] %v12228_v2  ;;  %v12230_v35 = vpop.permute.xlu1 %3167 }
 0x331   : > { %13450 = vst [vmem:[#allocation156_spill] sm:$0xff] %v12230_v35 }
 0x335   : > { %4396 = vmatmul.mubr.bf16.gmra.mrb[40].mxu0 %v7449_v16 }
 0x336   : > { %4405 = vmatprep.mubr.bf16.mxu0 %v7450_v8 }
 0x337   : > { %5102 = vmatmul.mubr.bf16.gmra.mrb[40].mxu1 %v7449_v16  ;;  %v12232_v16 = vpop.permute.xlu0 %3172 }
 0x338   : > { %5111 = vmatprep.mubr.bf16.mxu1 %v7450_v8  ;;  %13451 = vst [vmem:[#allocation84_spill] sm:$0xff] %v12232_v16  ;;  %v7479_v8 = vld [vmem:[%s12650_s3 + $0x288] ss:$16 sps:$4 sm:$0xff]  }
 0x33d   : > { %4406 = vmatmul.mubr.bf16.gmra.mrb[44].mxu0 %v7452_v26 }
 0x33e   : > { %4415 = vmatprep.mubr.bf16.mxu0 %v7453_v55 }
 0x33f   : > { %5112 = vmatmul.mubr.bf16.gmra.mrb[44].mxu1 %v7452_v26  ;;  %v12237_v26 = vpop.permute.xlu1 %3177 }
 0x340   : > { %5121 = vmatprep.mubr.bf16.mxu1 %v7453_v55  ;;  %13452 = vst [vmem:[#allocation158_spill] sm:$0xff] %v12237_v26  ;;  %v7480_v55 = vld [vmem:[%s12650_s3 + $0x2ac] ss:$16 sps:$4 sm:$0xff]  }
 0x345   : > { %4416 = vmatmul.mubr.bf16.gmra.mrb[48].mxu0 %v7455_v10 }
 0x346   : > { %4425 = vmatprep.mubr.bf16.mxu0 %v7456_v38 }
 0x347   : > { %5122 = vmatmul.mubr.bf16.gmra.mrb[48].mxu1 %v7455_v10  ;;  %v12242_v10 = vpop.permute.xlu0 %3182 }
 0x348   : > { %5131 = vmatprep.mubr.bf16.mxu1 %v7456_v38  ;;  %13453 = vst [vmem:[#allocation85_spill] sm:$0xff] %v12242_v10  ;;  %v12244_v38 = vpop.permute.xlu1 %3187 }
 0x349   : > { %13454 = vst [vmem:[#allocation165_spill] sm:$0xff] %v12244_v38 }
 0x34d   : > { %4426 = vmatmul.mubr.bf16.gmra.mrb[52].mxu0 %v7458_v15 }
 0x34e   : > { %4435 = vmatprep.mubr.bf16.mxu0 %v7459_v12 }
 0x34f   : > { %5132 = vmatmul.mubr.bf16.gmra.mrb[52].mxu1 %v7458_v15  ;;  %v7482_v15 = vld [vmem:[%s12650_s3 + $0x2a8] ss:$16 sps:$4 sm:$0xff]  }
 0x350   : > { %5141 = vmatprep.mubr.bf16.mxu1 %v7459_v12  ;;  %v7483_v12 = vld [vmem:[%s12650_s3 + $0x2cc] ss:$16 sps:$4 sm:$0xff]  }
 0x355   : > { %4436 = vmatmul.mubr.bf16.gmra.mrb[56].mxu0 %v7461_v32 }
 0x356   : > { %4445 = vmatprep.mubr.bf16.mxu0 %v7462_v18 }
 0x357   : > { %5142 = vmatmul.mubr.bf16.gmra.mrb[56].mxu1 %v7461_v32  ;;  %v12252_v32 = vpop.permute.xlu0 %3192 }
 0x358   : > { %5151 = vmatprep.mubr.bf16.mxu1 %v7462_v18  ;;  %13455 = vst [vmem:[#allocation86_spill] sm:$0xff] %v12252_v32  ;;  %v12254_v18 = vpop.permute.xlu1 %3197 }
 0x359   : > { %13456 = vst [vmem:[#allocation15_spill] sm:$0xff] %v12254_v18 }
 0x35d   : > { %4446 = vmatmul.mubr.bf16.gmra.mrb[60].mxu0 %v7464_v30 }
 0x35e   : > { %4455 = vmatprep.mubr.bf16.mxu0 %v7465_v53 }
 0x35f   : > { %5152 = vmatmul.mubr.bf16.gmra.mrb[60].mxu1 %v7464_v30  ;;  %v7485_v30 = vld [vmem:[%s12650_s3 + $0x2c8] ss:$16 sps:$4 sm:$0xff]  }
 0x360   : > { %5161 = vmatprep.mubr.bf16.mxu1 %v7465_v53  ;;  %v7486_v53 = vld [vmem:[%s12650_s3 + $0x2ec] ss:$16 sps:$4 sm:$0xff]  }
 0x365   : > { %4456 = vmatmul.mubr.bf16.gmra.mrb[64].mxu0 %v7467_v42 }
 0x366   : > { %4465 = vmatprep.mubr.bf16.mxu0 %v7468_v50 }
 0x367   : > { %5162 = vmatmul.mubr.bf16.gmra.mrb[64].mxu1 %v7467_v42  ;;  %v12262_v42 = vpop.permute.xlu0 %3202 }
 0x368   : > { %5171 = vmatprep.mubr.bf16.mxu1 %v7468_v50  ;;  %13457 = vst [vmem:[#allocation88_spill] sm:$0xff] %v12262_v42  ;;  %v12264_v50 = vpop.permute.xlu1 %3207 }
 0x369   : > { %13458 = vst [vmem:[#allocation14_spill] sm:$0xff] %v12264_v50 }
 0x36d   : > { %4466 = vmatmul.mubr.bf16.gmra.mrb[68].mxu0 %v7470_v22 }
 0x36e   : > { %4475 = vmatprep.mubr.bf16.mxu0 %v7471_v40 }
 0x36f   : > { %5172 = vmatmul.mubr.bf16.gmra.mrb[68].mxu1 %v7470_v22  ;;  %v12266_v22 = vpop.permute.xlu0 %3212 }
 0x370   : > { %5181 = vmatprep.mubr.bf16.mxu1 %v7471_v40  ;;  %13459 = vst [vmem:[#allocation13_spill] sm:$0xff] %v12266_v22  ;;  %v7488_v40 = vld [vmem:[%s12650_s3 + $0x2e8] ss:$16 sps:$4 sm:$0xff]  }
 0x375   : > { %4476 = vmatmul.mubr.bf16.gmra.mrb[72].mxu0 %v7473_v6 }
 0x376   : > { %4485 = vmatprep.mubr.bf16.mxu0 %v7474_v5 }
 0x377   : > { %5182 = vmatmul.mubr.bf16.gmra.mrb[72].mxu1 %v7473_v6  ;;  %v12271_v6 = vpop.permute.xlu1 %3217 }
 0x378   : > { %5191 = vmatprep.mubr.bf16.mxu1 %v7474_v5  ;;  %13460 = vst [vmem:[#allocation180_spill] sm:$0xff] %v12271_v6  ;;  %v7489_v5 = vld [vmem:[%s12650_s3 + $0x30c] ss:$16 sps:$4 sm:$0xff]  }
 0x379   : > { %v7501_v6 = vld [vmem:[%s12650_s3 + $0x38c] ss:$16 sps:$4 sm:$0xff]  }
 0x37d   : > { %4486 = vmatmul.mubr.bf16.gmra.mrb[76].mxu0 %v7476_v4 }
 0x37e   : > { %4495 = vmatprep.mubr.bf16.mxu0 %v7477_v27 }
 0x37f   : > { %5192 = vmatmul.mubr.bf16.gmra.mrb[76].mxu1 %v7476_v4  ;;  %v12276_v4 = vpop.permute.xlu0 %3222 }
 0x380   : > { %5201 = vmatprep.mubr.bf16.mxu1 %v7477_v27  ;;  %13461 = vst [vmem:[#allocation182_spill] sm:$0xff] %v12276_v4  ;;  %v12278_v27 = vpop.permute.xlu1 %3227 }
 0x381   : > { %13462 = vst [vmem:[#allocation184_spill] sm:$0xff] %v12278_v27 }
 0x385   : > { %4496 = vmatmul.mubr.bf16.gmra.mrb[80].mxu0 %v7479_v8 }
 0x386   : > { %4505 = vmatprep.mubr.bf16.mxu0 %v7480_v55 }
 0x387   : > { %5202 = vmatmul.mubr.bf16.gmra.mrb[80].mxu1 %v7479_v8  ;;  %v7491_v8 = vld [vmem:[%s12650_s3 + $0x308] ss:$16 sps:$4 sm:$0xff]  }
 0x388   : > { %5211 = vmatprep.mubr.bf16.mxu1 %v7480_v55  ;;  %v7492_v55 = vld [vmem:[%s12650_s3 + $0x32c] ss:$16 sps:$4 sm:$0xff]  }
 0x38d   : > { %4506 = vmatmul.mubr.bf16.gmra.mrb[84].mxu0 %v7482_v15 }
 0x38e   : > { %4515 = vmatprep.mubr.bf16.mxu0 %v7483_v12 }
 0x38f   : > { %5212 = vmatmul.mubr.bf16.gmra.mrb[84].mxu1 %v7482_v15  ;;  %v12286_v15 = vpop.permute.xlu0 %3232 }
 0x390   : > { %5221 = vmatprep.mubr.bf16.mxu1 %v7483_v12  ;;  %13463 = vst [vmem:[#allocation186_spill] sm:$0xff] %v12286_v15  ;;  %v12288_v12 = vpop.permute.xlu1 %3237 }
 0x391   : > { %13464 = vst [vmem:[#allocation188_spill] sm:$0xff] %v12288_v12  ;;  %v7498_v12 = vld [vmem:[%s12650_s3 + $0x36c] ss:$16 sps:$4 sm:$0xff]  }
 0x395   : > { %4516 = vmatmul.mubr.bf16.gmra.mrb[88].mxu0 %v7485_v30 }
 0x396   : > { %4525 = vmatprep.mubr.bf16.mxu0 %v7486_v53 }
 0x397   : > { %5222 = vmatmul.mubr.bf16.gmra.mrb[88].mxu1 %v7485_v30  ;;  %v7494_v30 = vld [vmem:[%s12650_s3 + $0x328] ss:$16 sps:$4 sm:$0xff]  }
 0x398   : > { %5231 = vmatprep.mubr.bf16.mxu1 %v7486_v53  ;;  %v7495_v53 = vld [vmem:[%s12650_s3 + $0x34c] ss:$16 sps:$4 sm:$0xff]  }
 0x39d   : > { %4526 = vmatmul.mubr.bf16.gmra.mrb[92].mxu0 %v7488_v40 }
 0x39e   : > { %4535 = vmatprep.mubr.bf16.mxu0 %v7489_v5 }
 0x39f   : > { %5232 = vmatmul.mubr.bf16.gmra.mrb[92].mxu1 %v7488_v40  ;;  %v12296_v40 = vpop.permute.xlu0 %3242 }
 0x3a0   : > { %5241 = vmatprep.mubr.bf16.mxu1 %v7489_v5  ;;  %13465 = vst [vmem:[#allocation190_spill] sm:$0xff] %v12296_v40  ;;  %v12298_v5 = vpop.permute.xlu1 %3247 }
 0x3a1   : > { %13466 = vst [vmem:[#allocation87_spill] sm:$0xff] %v12298_v5 }
 0x3a3   : > { %v12300_v15 = vpop.permute.xlu0 %3252 }
 0x3a4   : > { %13467 = vst [vmem:[#allocation89_spill] sm:$0xff] %v12300_v15 }
 0x3a5   : > { %4536 = vmatmul.mubr.bf16.gmra.mrb[96].mxu0 %v7491_v8 }
 0x3a6   : > { %4545 = vmatprep.mubr.bf16.mxu0 %v7492_v55 }
 0x3a7   : > { %5242 = vmatmul.mubr.bf16.gmra.mrb[96].mxu1 %v7491_v8  ;;  %v7497_v8 = vld [vmem:[%s12650_s3 + $0x348] ss:$16 sps:$4 sm:$0xff]   ;;  %v12310_v40 = vpop.permute.xlu0 %3262 }
 0x3a8   : > { %5251 = vmatprep.mubr.bf16.mxu1 %v7492_v55  ;;  %v12305_v55 = vpop.permute.xlu1 %3257  ;;  %13469 = vst [vmem:[#allocation91_spill] sm:$0xff] %v12310_v40 }
 0x3a9   : > { %13468 = vst [vmem:[#allocation21_spill] sm:$0xff] %v12305_v55  ;;  %v7500_v55 = vld [vmem:[%s12650_s3 + $0x368] ss:$16 sps:$4 sm:$0xff]  }
 0x3ab   : > { %v5645_v18 = vpop.permute.xlu0 %5644 }
 0x3ac   : > { %v12312_v5 = vpop.permute.xlu1 %3267 }
 0x3ad   : > { %4546 = vmatmul.mubr.bf16.gmra.mrb[100].mxu0 %v7494_v30  ;;  %13470 = vst [vmem:[#allocation192_spill] sm:$0xff] %v12312_v5 }
 0x3ae   : > { %4555 = vmatprep.mubr.bf16.mxu0 %v7495_v53 }
 0x3af   : > { %5252 = vmatmul.mubr.bf16.gmra.mrb[100].mxu1 %v7494_v30 }
 0x3b0   : > { %5261 = vmatprep.mubr.bf16.mxu1 %v7495_v53  ;;  %v5650_v10 = vpop.permute.xlu1 %5649 }
 0x3b5   : > { %4556 = vmatmul.mubr.bf16.gmra.mrb[104].mxu0 %v7497_v8 }
 0x3b6   : > { %4565 = vmatprep.mubr.bf16.mxu0 %v7498_v12 }
 0x3b7   : > { %5262 = vmatmul.mubr.bf16.gmra.mrb[104].mxu1 %v7497_v8 }
 0x3b8   : > { %v4297_v30 = vpop.f32.mrb[0].mxu0  ;;  %5271 = vmatprep.mubr.bf16.mxu1 %v7498_v12 }
 0x3b9   : > { %v6758_v53 = vadd.f32 %v4297_v30, %v11802_v48  ;;  %v4299_v15 = vpop.f32.mrb[1].mxu0 }
 0x3ba   : > { %v6759_v27 = vadd.f32 %v4299_v15, %v11802_v48  ;;  %v4301_v4 = vpop.f32.mrb[2].mxu0  ;;  %v5003_v22 = vpop.f32.mrb[0].mxu1 }
 0x3bb   : > { %v5322_v40 = vmax.f32 %v6758_v53, 0.0  ;;  %v6760_v8 = vadd.f32 %v4301_v4, %v11855_v45  ;;  %v4303_v5 = vpop.f32.mrb[3].mxu0  ;;  %v6886_v30 = vadd.f32 %v5003_v22, %v11802_v48  ;;  %v5005_v12 = vpop.f32.mrb[1].mxu1 }
 0x3bc   : > { %v5323_v50 = vmax.f32 %v6759_v27, 0.0  ;;  %v6761_v42 = vadd.f32 %v4303_v5, %v11855_v45  ;;  %v6887_v32 = vadd.f32 %v5005_v12, %v11802_v48  ;;  %v5007_v38 = vpop.f32.mrb[2].mxu1 }
 0x3bd   : > { %v5326_v15 = vmax.f32 %v6760_v8, 0.0  ;;  %4566 = vmatmul.mubr.bf16.gmra.mrb[108].mxu0 %v7500_v55  ;;  %v5324_v26 = vmax.f32 %v6886_v30, 0.0  ;;  %v6888_v53 = vadd.f32 %v5007_v38, %v11855_v45  ;;  %v5009_v35 = vpop.f32.mrb[3].mxu1  ;;  %v5962_v4 = vmul.f32 %v5645_v18, %v5322_v40  ;;  %v7503_v38 = vld [vmem:[%s12650_s3 + $0x388] ss:$16 sps:$4 sm:$0xff]  }
 0x3be   : > { %v5327_v16 = vmax.f32 %v6761_v42, 0.0  ;;  %4575 = vmatprep.mubr.bf16.mxu0 %v7501_v6  ;;  %v5325_v2 = vmax.f32 %v6887_v32, 0.0  ;;  %v6889_v27 = vadd.f32 %v5009_v35, %v11855_v45  ;;  %v5963_v13 = vmul.f32 %v5645_v18, %v5323_v50 }
 0x3bf   : > { %v5966_v22 = vmul.f32 %v5650_v10, %v5326_v15  ;;  %v5328_v5 = vmax.f32 %v6888_v53, 0.0  ;;  %5272 = vmatmul.mubr.bf16.gmra.mrb[108].mxu1 %v7500_v55  ;;  %v5964_v42 = vmul.f32 %v5645_v18, %v5324_v26 }
 0x3c0   : > { %v5967_v1 = vmul.f32 %v5650_v10, %v5327_v16  ;;  %v4307_v48 = vpop.f32.mrb[4].mxu0  ;;  %v5329_v12 = vmax.f32 %v6889_v27, 0.0  ;;  %5281 = vmatprep.mubr.bf16.mxu1 %v7501_v6  ;;  %v7504_v16 = vld [vmem:[%s12650_s3 + $0x3ac] ss:$16 sps:$4 sm:$0xff]   ;;  %v5965_v50 = vmul.f32 %v5645_v18, %v5325_v2 }
 0x3c1   : > { %v6218_v8 = vadd.f32 %v5966_v22, %v5962_v4  ;;  %v6762_v63 = vadd.f32 %v4307_v48, %v11813_v59  ;;  %v4309_v30 = vpop.f32.mrb[5].mxu0  ;;  %v5968_v32 = vmul.f32 %v5650_v10, %v5328_v5  ;;  %v5655_v22 = vpop.permute.xlu0 %5654 }
 0x3c2   : > { %v6287_v40 = vadd.f32 %v5967_v1, %v5963_v13  ;;  %v6763_v45 = vadd.f32 %v4309_v30, %v11813_v59  ;;  %v4311_v35 = vpop.f32.mrb[6].mxu0  ;;  %v5969_v55 = vmul.f32 %v5650_v10, %v5329_v12  ;;  %v5013_v53 = vpop.f32.mrb[4].mxu1 }
 0x3c3   : > { %v5330_v15 = vmax.f32 %v6762_v63, 0.0  ;;  %v6764_v6 = vadd.f32 %v4311_v35, %v11874_v31  ;;  %v4313_v4 = vpop.f32.mrb[7].mxu0  ;;  %v6356_v27 = vadd.f32 %v5968_v32, %v5964_v42  ;;  %v6890_v26 = vadd.f32 %v5013_v53, %v11813_v59  ;;  %v5015_v1 = vpop.f32.mrb[5].mxu1 }
 0x3c4   : > { %v5331_v5 = vmax.f32 %v6763_v45, 0.0  ;;  %v6765_v13 = vadd.f32 %v4313_v4, %v11874_v31  ;;  %v6425_v48 = vadd.f32 %v5969_v55, %v5965_v50  ;;  %v6891_v54 = vadd.f32 %v5015_v1, %v11813_v59  ;;  %v5017_v2 = vpop.f32.mrb[6].mxu1  ;;  %v5660_v63 = vpop.permute.xlu1 %5659 }
 0x3c5   : > { %v5970_v30 = vmul.f32 %v5655_v22, %v5330_v15  ;;  %v5334_v58 = vmax.f32 %v6764_v6, 0.0  ;;  %4576 = vmatmul.mubr.bf16.gmra.mrb[112].mxu0 %v7503_v38  ;;  %v5332_v10 = vmax.f32 %v6890_v26, 0.0  ;;  %v6892_v12 = vadd.f32 %v5017_v2, %v11874_v31  ;;  %v5019_v42 = vpop.f32.mrb[7].mxu1 }
 0x3c6   : > { %v5971_v18 = vmul.f32 %v5655_v22, %v5331_v5  ;;  %v5335_v35 = vmax.f32 %v6765_v13, 0.0  ;;  %4585 = vmatprep.mubr.bf16.mxu0 %v7504_v16  ;;  %v5333_v45 = vmax.f32 %v6891_v54, 0.0  ;;  %v6893_v4 = vadd.f32 %v5019_v42, %v11874_v31  ;;  %v7506_v54 = vld [vmem:[%s12650_s3 + $0x3a8] ss:$16 sps:$4 sm:$0xff]  }
 0x3c7   : > { %v6219_v32 = vadd.f32 %v6218_v8, %v5970_v30  ;;  %v5974_v53 = vmul.f32 %v5660_v63, %v5334_v58  ;;  %v5972_v50 = vmul.f32 %v5655_v22, %v5332_v10  ;;  %v5336_v15 = vmax.f32 %v6892_v12, 0.0  ;;  %5282 = vmatmul.mubr.bf16.gmra.mrb[112].mxu1 %v7503_v38  ;;  %v7507_v38 = vld [vmem:[%s12650_s3 + $0x3cc] ss:$16 sps:$4 sm:$0xff]  }
 0x3c8   : > { %v6288_v55 = vadd.f32 %v6287_v40, %v5971_v18  ;;  %v5975_v59 = vmul.f32 %v5660_v63, %v5335_v35  ;;  %v4317_v6 = vpop.f32.mrb[8].mxu0  ;;  %v5973_v1 = vmul.f32 %v5655_v22, %v5333_v45  ;;  %v5337_v26 = vmax.f32 %v6893_v4, 0.0  ;;  %5291 = vmatprep.mubr.bf16.mxu1 %v7504_v16  ;;  %v5665_v35 = vpop.permute.xlu0 %5664 }
 0x3c9   : > { %v6220_v33 = vadd.f32 %v6219_v32, %v5974_v53  ;;  %v6766_v5 = vadd.f32 %v4317_v6, %v11833_v52  ;;  %v4319_v2 = vpop.f32.mrb[9].mxu0  ;;  %v6357_v58 = vadd.f32 %v6356_v27, %v5972_v50  ;;  %v5976_v8 = vmul.f32 %v5660_v63, %v5336_v15 }
 0x3ca   : > { %v6289_v31 = vadd.f32 %v6288_v55, %v5975_v59  ;;  %v6767_v40 = vadd.f32 %v4319_v2, %v11833_v52  ;;  %v4321_v13 = vpop.f32.mrb[10].mxu0  ;;  %v6426_v22 = vadd.f32 %v6425_v48, %v5973_v1  ;;  %v5977_v30 = vmul.f32 %v5660_v63, %v5337_v26  ;;  %v5023_v18 = vpop.f32.mrb[8].mxu1 }
 0x3cb   : > { %v5338_v10 = vmax.f32 %v6766_v5, 0.0  ;;  %v6768_v16 = vadd.f32 %v4321_v13, %v11893_v46  ;;  %v4323_v12 = vpop.f32.mrb[11].mxu0  ;;  %v6358_v42 = vadd.f32 %v6357_v58, %v5976_v8  ;;  %v6894_v27 = vadd.f32 %v5023_v18, %v11833_v52  ;;  %v5025_v45 = vpop.f32.mrb[9].mxu1 }
 0x3cc   : > { %v5339_v32 = vmax.f32 %v6767_v40, 0.0  ;;  %v6769_v53 = vadd.f32 %v4323_v12, %v11893_v46  ;;  %v6427_v4 = vadd.f32 %v6426_v22, %v5977_v30  ;;  %v6895_v55 = vadd.f32 %v5025_v45, %v11833_v52  ;;  %v5027_v48 = vpop.f32.mrb[10].mxu1  ;;  %v5670_v63 = vpop.permute.xlu1 %5669 }
 0x3cd   : > { %v5978_v50 = vmul.f32 %v5665_v35, %v5338_v10  ;;  %v5342_v15 = vmax.f32 %v6768_v16, 0.0  ;;  %4586 = vmatmul.mubr.bf16.gmra.mrb[116].mxu0 %v7506_v54  ;;  %v5340_v59 = vmax.f32 %v6894_v27, 0.0  ;;  %v6896_v1 = vadd.f32 %v5027_v48, %v11893_v46  ;;  %v5029_v5 = vpop.f32.mrb[11].mxu1 }
 0x3ce   : > { %v5979_v6 = vmul.f32 %v5665_v35, %v5339_v32  ;;  %v5343_v26 = vmax.f32 %v6769_v53, 0.0  ;;  %4595 = vmatprep.mubr.bf16.mxu0 %v7507_v38  ;;  %v5341_v58 = vmax.f32 %v6895_v55, 0.0  ;;  %v6897_v40 = vadd.f32 %v5029_v5, %v11893_v46 }
 0x3cf   : > { %v6221_v2 = vadd.f32 %v6220_v33, %v5978_v50  ;;  %v5982_v8 = vmul.f32 %v5670_v63, %v5342_v15  ;;  %v5980_v13 = vmul.f32 %v5665_v35, %v5340_v59  ;;  %v5344_v30 = vmax.f32 %v6896_v1, 0.0  ;;  %5292 = vmatmul.mubr.bf16.gmra.mrb[116].mxu1 %v7506_v54  ;;  %v7509_v33 = vld [vmem:[%s12650_s3 + $0x3c8] ss:$16 sps:$4 sm:$0xff]   ;;  %v7510_v54 = vld [vmem:[%s12650_s3 + $0x3ec] ss:$16 sps:$4 sm:$0xff]  }
 0x3d0   : > { %v6290_v22 = vadd.f32 %v6289_v31, %v5979_v6  ;;  %v5983_v52 = vmul.f32 %v5670_v63, %v5343_v26  ;;  %v4327_v10 = vpop.f32.mrb[12].mxu0  ;;  %v5981_v18 = vmul.f32 %v5665_v35, %v5341_v58  ;;  %v5345_v12 = vmax.f32 %v6897_v40, 0.0  ;;  %5301 = vmatprep.mubr.bf16.mxu1 %v7507_v38  ;;  %v5675_v6 = vpop.permute.xlu0 %5674 }
 0x3d1   : > { %v6222_v16 = vadd.f32 %v6221_v2, %v5982_v8  ;;  %v6770_v27 = vadd.f32 %v4327_v10, %v11847_v51  ;;  %v4329_v32 = vpop.f32.mrb[13].mxu0  ;;  %v6359_v45 = vadd.f32 %v6358_v42, %v5980_v13  ;;  %v5984_v53 = vmul.f32 %v5670_v63, %v5344_v30 }
 0x3d2   : > { %v6291_v46 = vadd.f32 %v6290_v22, %v5983_v52  ;;  %v6771_v31 = vadd.f32 %v4329_v32, %v11847_v51  ;;  %v4331_v50 = vpop.f32.mrb[14].mxu0  ;;  %v6428_v35 = vadd.f32 %v6427_v4, %v5981_v18  ;;  %v5985_v55 = vmul.f32 %v5670_v63, %v5345_v12  ;;  %v5033_v48 = vpop.f32.mrb[12].mxu1 }
 0x3d3   : > { %v5346_v15 = vmax.f32 %v6770_v27, 0.0  ;;  %v6772_v38 = vadd.f32 %v4331_v50, %v11906_v44  ;;  %v4333_v59 = vpop.f32.mrb[15].mxu0  ;;  %v6360_v1 = vadd.f32 %v6359_v45, %v5984_v53  ;;  %v6898_v42 = vadd.f32 %v5033_v48, %v11847_v51  ;;  %v5035_v5 = vpop.f32.mrb[13].mxu1 }
 0x3d4   : > { %v5347_v26 = vmax.f32 %v6771_v31, 0.0  ;;  %v6773_v2 = vadd.f32 %v4333_v59, %v11906_v44  ;;  %v6429_v58 = vadd.f32 %v6428_v35, %v5985_v55  ;;  %v6899_v40 = vadd.f32 %v5035_v5, %v11847_v51  ;;  %v5037_v4 = vpop.f32.mrb[14].mxu1  ;;  %v5680_v63 = vpop.permute.xlu1 %5679 }
 0x3d5   : > { %v5986_v8 = vmul.f32 %v5675_v6, %v5346_v15  ;;  %v5350_v13 = vmax.f32 %v6772_v38, 0.0  ;;  %4596 = vmatmul.mubr.bf16.gmra.mrb[120].mxu0 %v7509_v33  ;;  %v5348_v22 = vmax.f32 %v6898_v42, 0.0  ;;  %v6900_v52 = vadd.f32 %v5037_v4, %v11906_v44  ;;  %v5039_v18 = vpop.f32.mrb[15].mxu1  ;;  %v5685_v4 = vpop.permute.xlu0 %5684 }
 0x3d6   : > { %v5987_v30 = vmul.f32 %v5675_v6, %v5347_v26  ;;  %v5351_v10 = vmax.f32 %v6773_v2, 0.0  ;;  %4605 = vmatprep.mubr.bf16.mxu0 %v7510_v54  ;;  %v5349_v27 = vmax.f32 %v6899_v40, 0.0  ;;  %v6901_v45 = vadd.f32 %v5039_v18, %v11906_v44 }
 0x3d7   : > { %v6223_v12 = vadd.f32 %v6222_v16, %v5986_v8  ;;  %v5990_v32 = vmul.f32 %v5680_v63, %v5350_v13  ;;  %v5988_v53 = vmul.f32 %v5675_v6, %v5348_v22  ;;  %v5352_v50 = vmax.f32 %v6900_v52, 0.0  ;;  %5302 = vmatmul.mubr.bf16.gmra.mrb[120].mxu1 %v7509_v33  ;;  %v7512_v16 = vld [vmem:[%s12650_s3 + $0x3e8] ss:$16 sps:$4 sm:$0xff]  }
 0x3d8   : > { %v6292_v31 = vadd.f32 %v6291_v46, %v5987_v30  ;;  %v5991_v51 = vmul.f32 %v5680_v63, %v5351_v10  ;;  %v4337_v35 = vpop.f32.mrb[16].mxu0  ;;  %v5989_v55 = vmul.f32 %v5675_v6, %v5349_v27  ;;  %v5353_v48 = vmax.f32 %v6901_v45, 0.0  ;;  %5311 = vmatprep.mubr.bf16.mxu1 %v7510_v54 }
 0x3d9   : > { %v6224_v15 = vadd.f32 %v6223_v12, %v5990_v32  ;;  %v6774_v38 = vadd.f32 %v4337_v35, %v11866_v39  ;;  %v4339_v59 = vpop.f32.mrb[17].mxu0  ;;  %v6361_v42 = vadd.f32 %v6360_v1, %v5988_v53  ;;  %v5992_v26 = vmul.f32 %v5680_v63, %v5352_v50 }
 0x3da   : > { %v6293_v44 = vadd.f32 %v6292_v31, %v5991_v51  ;;  %v6775_v46 = vadd.f32 %v4339_v59, %v11866_v39  ;;  %v4341_v5 = vpop.f32.mrb[18].mxu0  ;;  %v6430_v2 = vadd.f32 %v6429_v58, %v5989_v55  ;;  %v5993_v33 = vmul.f32 %v5680_v63, %v5353_v48  ;;  %v5043_v6 = vpop.f32.mrb[16].mxu1 }
 0x3db   : > { %v5354_v8 = vmax.f32 %v6774_v38, 0.0  ;;  %v6776_v40 = vadd.f32 %v4341_v5, %v11925_v41  ;;  %v4343_v13 = vpop.f32.mrb[19].mxu0  ;;  %v6362_v22 = vadd.f32 %v6361_v42, %v5992_v26  ;;  %v6902_v54 = vadd.f32 %v5043_v6, %v11866_v39  ;;  %v5045_v52 = vpop.f32.mrb[17].mxu1 }
 0x3dc   : > { %v5355_v30 = vmax.f32 %v6775_v46, 0.0  ;;  %v6777_v1 = vadd.f32 %v4343_v13, %v11925_v41  ;;  %v6431_v10 = vadd.f32 %v6430_v2, %v5993_v33  ;;  %v6903_v12 = vadd.f32 %v5045_v52, %v11866_v39  ;;  %v5047_v58 = vpop.f32.mrb[18].mxu1  ;;  %v5690_v63 = vpop.permute.xlu1 %5689 }
 0x3dd   : > { %v5994_v18 = vmul.f32 %v5685_v4, %v5354_v8  ;;  %v5358_v27 = vmax.f32 %v6776_v40, 0.0  ;;  %4606 = vmatmul.mubr.bf16.gmra.mrb[124].mxu0 %v7512_v16  ;;  %v5356_v32 = vmax.f32 %v6902_v54, 0.0  ;;  %v6904_v53 = vadd.f32 %v5047_v58, %v11925_v41  ;;  %v5049_v50 = vpop.f32.mrb[19].mxu1 }
 0x3de   : > { %v5995_v45 = vmul.f32 %v5685_v4, %v5355_v30  ;;  %v5359_v31 = vmax.f32 %v6777_v1, 0.0  ;;  %v5357_v35 = vmax.f32 %v6903_v12, 0.0  ;;  %v6905_v48 = vadd.f32 %v5049_v50, %v11925_v41 }
 0x3df   : > { %v6225_v51 = vadd.f32 %v6224_v15, %v5994_v18  ;;  %v5998_v55 = vmul.f32 %v5690_v63, %v5358_v27  ;;  %v5996_v38 = vmul.f32 %v5685_v4, %v5356_v32  ;;  %v5360_v42 = vmax.f32 %v6904_v53, 0.0  ;;  %5312 = vmatmul.mubr.bf16.gmra.mrb[124].mxu1 %v7512_v16  ;;  %v5695_v18 = vpop.permute.xlu0 %5694 }
 0x3e0   : > { %v6294_v59 = vadd.f32 %v6293_v44, %v5995_v45  ;;  %v5999_v26 = vmul.f32 %v5690_v63, %v5359_v31  ;;  %v4347_v39 = vpop.f32.mrb[20].mxu0  ;;  %v5997_v46 = vmul.f32 %v5685_v4, %v5357_v35  ;;  %v5361_v2 = vmax.f32 %v6905_v48, 0.0 }
 0x3e1   : > { %v6226_v5 = vadd.f32 %v6225_v51, %v5998_v55  ;;  %v6778_v33 = vadd.f32 %v4347_v39, %v11879_v57  ;;  %v4349_v8 = vpop.f32.mrb[21].mxu0  ;;  %v6363_v6 = vadd.f32 %v6362_v22, %v5996_v38  ;;  %v6000_v40 = vmul.f32 %v5690_v63, %v5360_v42 }
 0x3e2   : > { %v6295_v13 = vadd.f32 %v6294_v59, %v5999_v26  ;;  %v6779_v15 = vadd.f32 %v4349_v8, %v11879_v57  ;;  %v4351_v54 = vpop.f32.mrb[22].mxu0  ;;  %v6432_v30 = vadd.f32 %v6431_v10, %v5997_v46  ;;  %v6001_v41 = vmul.f32 %v5690_v63, %v5361_v2  ;;  %v5053_v44 = vpop.f32.mrb[20].mxu1 }
 0x3e3   : > { %v5362_v52 = vmax.f32 %v6778_v33, 0.0  ;;  %v6780_v1 = vadd.f32 %v4351_v54, %v11944_v56  ;;  %v4353_v16 = vpop.f32.mrb[23].mxu0  ;;  %v6364_v4 = vadd.f32 %v6363_v6, %v6000_v40  ;;  %v6906_v12 = vadd.f32 %v5053_v44, %v11879_v57  ;;  %v5055_v58 = vpop.f32.mrb[21].mxu1 }
 0x3e4   : > { %v5363_v27 = vmax.f32 %v6779_v15, 0.0  ;;  %v6781_v22 = vadd.f32 %v4353_v16, %v11944_v56  ;;  %v6433_v32 = vadd.f32 %v6432_v30, %v6001_v41  ;;  %v6907_v53 = vadd.f32 %v5055_v58, %v11879_v57  ;;  %v5057_v10 = vpop.f32.mrb[22].mxu1  ;;  %v5700_v63 = vpop.permute.xlu1 %5699 }
 0x3e5   : > { %v6002_v45 = vmul.f32 %v5695_v18, %v5362_v52  ;;  %v5366_v31 = vmax.f32 %v6780_v1, 0.0  ;;  %v5364_v50 = vmax.f32 %v6906_v12, 0.0  ;;  %v6908_v35 = vadd.f32 %v5057_v10, %v11944_v56  ;;  %v5059_v48 = vpop.f32.mrb[23].mxu1  ;;  %v5705_v58 = vpop.permute.xlu0 %5704 }
 0x3e6   : > { %v6003_v51 = vmul.f32 %v5695_v18, %v5363_v27  ;;  %v5367_v55 = vmax.f32 %v6781_v22, 0.0  ;;  %v5365_v59 = vmax.f32 %v6907_v53, 0.0  ;;  %v6909_v26 = vadd.f32 %v5059_v48, %v11944_v56 }
 0x3e7   : > { %v6227_v38 = vadd.f32 %v6226_v5, %v6002_v45  ;;  %v6006_v42 = vmul.f32 %v5700_v63, %v5366_v31  ;;  %v6004_v39 = vmul.f32 %v5695_v18, %v5364_v50  ;;  %v5368_v2 = vmax.f32 %v6908_v35, 0.0 }
 0x3e8   : > { %v6296_v46 = vadd.f32 %v6295_v13, %v6003_v51  ;;  %v6007_v33 = vmul.f32 %v5700_v63, %v5367_v55  ;;  %v4357_v8 = vpop.f32.mrb[24].mxu0  ;;  %v6005_v57 = vmul.f32 %v5695_v18, %v5365_v59  ;;  %v5369_v40 = vmax.f32 %v6909_v26, 0.0 }
 0x3e9   : > { %v6228_v6 = vadd.f32 %v6227_v38, %v6006_v42  ;;  %v6782_v15 = vadd.f32 %v4357_v8, %v11901_v25  ;;  %v4359_v54 = vpop.f32.mrb[25].mxu0  ;;  %v6365_v30 = vadd.f32 %v6364_v4, %v6004_v39  ;;  %v6008_v41 = vmul.f32 %v5700_v63, %v5368_v2 }
 0x3ea   : > { %v6297_v52 = vadd.f32 %v6296_v46, %v6007_v33  ;;  %v6783_v5 = vadd.f32 %v4359_v54, %v11901_v25  ;;  %v4361_v44 = vpop.f32.mrb[26].mxu0  ;;  %v6434_v1 = vadd.f32 %v6433_v32, %v6005_v57  ;;  %v6009_v16 = vmul.f32 %v5700_v63, %v5369_v40  ;;  %v5063_v12 = vpop.f32.mrb[24].mxu1 }
 0x3eb   : > { %v5370_v56 = vmax.f32 %v6782_v15, 0.0  ;;  %v6784_v13 = vadd.f32 %v4361_v44, %v11963_v62  ;;  %v4363_v27 = vpop.f32.mrb[27].mxu0  ;;  %v6366_v18 = vadd.f32 %v6365_v30, %v6008_v41  ;;  %v6910_v22 = vadd.f32 %v5063_v12, %v11901_v25  ;;  %v5065_v53 = vpop.f32.mrb[25].mxu1 }
 0x3ec   : > { %v5371_v45 = vmax.f32 %v6783_v5, 0.0  ;;  %v6785_v4 = vadd.f32 %v4363_v27, %v11963_v62  ;;  %v6435_v31 = vadd.f32 %v6434_v1, %v6009_v16  ;;  %v6911_v50 = vadd.f32 %v5065_v53, %v11901_v25  ;;  %v5067_v32 = vpop.f32.mrb[26].mxu1  ;;  %v5710_v63 = vpop.permute.xlu1 %5709 }
 0x3ed   : > { %v6010_v10 = vmul.f32 %v5705_v58, %v5370_v56  ;;  %v5374_v51 = vmax.f32 %v6784_v13, 0.0  ;;  %v5372_v35 = vmax.f32 %v6910_v22, 0.0  ;;  %v6912_v48 = vadd.f32 %v5067_v32, %v11963_v62  ;;  %v5069_v59 = vpop.f32.mrb[27].mxu1  ;;  %v5715_v22 = vpop.permute.xlu0 %5714 }
 0x3ee   : > { %v6011_v55 = vmul.f32 %v5705_v58, %v5371_v45  ;;  %v5375_v38 = vmax.f32 %v6785_v4, 0.0  ;;  %v5373_v26 = vmax.f32 %v6911_v50, 0.0  ;;  %v6913_v46 = vadd.f32 %v5069_v59, %v11963_v62 }
 0x3ef   : > { %v6229_v42 = vadd.f32 %v6228_v6, %v6010_v10  ;;  %v6014_v39 = vmul.f32 %v5710_v63, %v5374_v51  ;;  %v6012_v2 = vmul.f32 %v5705_v58, %v5372_v35  ;;  %v5376_v8 = vmax.f32 %v6912_v48, 0.0 }
 0x3f0   : > { %v6298_v33 = vadd.f32 %v6297_v52, %v6011_v55  ;;  %v6015_v57 = vmul.f32 %v5710_v63, %v5375_v38  ;;  %v4367_v40 = vpop.f32.mrb[28].mxu0  ;;  %v6013_v25 = vmul.f32 %v5705_v58, %v5373_v26  ;;  %v5377_v54 = vmax.f32 %v6913_v46, 0.0 }
 0x3f1   : > { %v6230_v15 = vadd.f32 %v6229_v42, %v6014_v39  ;;  %v6786_v30 = vadd.f32 %v4367_v40, %v11917_v29  ;;  %v4369_v41 = vpop.f32.mrb[29].mxu0  ;;  %v6367_v5 = vadd.f32 %v6366_v18, %v6012_v2  ;;  %v6016_v44 = vmul.f32 %v5710_v63, %v5376_v8 }
 0x3f2   : > { %v6299_v1 = vadd.f32 %v6298_v33, %v6015_v57  ;;  %v6787_v6 = vadd.f32 %v4369_v41, %v11917_v29  ;;  %v4371_v16 = vpop.f32.mrb[30].mxu0  ;;  %v6436_v56 = vadd.f32 %v6435_v31, %v6013_v25  ;;  %v6017_v12 = vmul.f32 %v5710_v63, %v5377_v54  ;;  %v5073_v13 = vpop.f32.mrb[28].mxu1 }
 0x3f3   : > { %v5378_v62 = vmax.f32 %v6786_v30, 0.0  ;;  %v6788_v52 = vadd.f32 %v4371_v16, %v11976_v20  ;;  %v4373_v27 = vpop.f32.mrb[31].mxu0  ;;  %v6368_v58 = vadd.f32 %v6367_v5, %v6016_v44  ;;  %v6914_v45 = vadd.f32 %v5073_v13, %v11917_v29  ;;  %v5075_v4 = vpop.f32.mrb[29].mxu1 }
 0x3f4   : > { %v5379_v53 = vmax.f32 %v6787_v6, 0.0  ;;  %v6789_v18 = vadd.f32 %v4373_v27, %v11976_v20  ;;  %v6437_v10 = vadd.f32 %v6436_v56, %v6017_v12  ;;  %v6915_v51 = vadd.f32 %v5075_v4, %v11917_v29  ;;  %v5077_v31 = vpop.f32.mrb[30].mxu1  ;;  %v5720_v63 = vpop.permute.xlu1 %5719 }
 0x3f5   : > { %v6018_v50 = vmul.f32 %v5715_v22, %v5378_v62  ;;  %v5382_v32 = vmax.f32 %v6788_v52, 0.0  ;;  %v5380_v35 = vmax.f32 %v6914_v45, 0.0  ;;  %v6916_v48 = vadd.f32 %v5077_v31, %v11976_v20  ;;  %v5079_v59 = vpop.f32.mrb[31].mxu1  ;;  %v5725_v52 = vpop.permute.xlu0 %5724 }
 0x3f6   : > { %v6019_v55 = vmul.f32 %v5715_v22, %v5379_v53  ;;  %v5383_v38 = vmax.f32 %v6789_v18, 0.0  ;;  %v5381_v26 = vmax.f32 %v6915_v51, 0.0  ;;  %v6917_v46 = vadd.f32 %v5079_v59, %v11976_v20 }
 0x3f7   : > { %v6231_v42 = vadd.f32 %v6230_v15, %v6018_v50  ;;  %v6022_v39 = vmul.f32 %v5720_v63, %v5382_v32  ;;  %v6020_v2 = vmul.f32 %v5715_v22, %v5380_v35  ;;  %v5384_v8 = vmax.f32 %v6916_v48, 0.0 }
 0x3f8   : > { %v6300_v33 = vadd.f32 %v6299_v1, %v6019_v55  ;;  %v6023_v57 = vmul.f32 %v5720_v63, %v5383_v38  ;;  %v4377_v40 = vpop.f32.mrb[32].mxu0  ;;  %v6021_v29 = vmul.f32 %v5715_v22, %v5381_v26  ;;  %v5385_v54 = vmax.f32 %v6917_v46, 0.0  ;;  %v5730_v32 = vpop.permute.xlu1 %5729 }
 0x3f9   : > { %v6232_v25 = vadd.f32 %v6231_v42, %v6022_v39  ;;  %v6790_v30 = vadd.f32 %v4377_v40, %v11936_v24  ;;  %v4379_v41 = vpop.f32.mrb[33].mxu0  ;;  %v6369_v5 = vadd.f32 %v6368_v58, %v6020_v2  ;;  %v6024_v44 = vmul.f32 %v5720_v63, %v5384_v8 }
 0x3fa   : > { %v6301_v6 = vadd.f32 %v6300_v33, %v6023_v57  ;;  %v6791_v15 = vadd.f32 %v4379_v41, %v11936_v24  ;;  %v4381_v16 = vpop.f32.mrb[34].mxu0  ;;  %v6438_v56 = vadd.f32 %v6437_v10, %v6021_v29  ;;  %v6025_v12 = vmul.f32 %v5720_v63, %v5385_v54  ;;  %v5083_v62 = vpop.f32.mrb[32].mxu1 }
 0x3fb   : > { %v5386_v20 = vmax.f32 %v6790_v30, 0.0  ;;  %v6792_v1 = vadd.f32 %v4381_v16, %v11995_v49  ;;  %v4383_v13 = vpop.f32.mrb[35].mxu0  ;;  %v6370_v27 = vadd.f32 %v6369_v5, %v6024_v44  ;;  %v6918_v22 = vadd.f32 %v5083_v62, %v11936_v24  ;;  %v5085_v53 = vpop.f32.mrb[33].mxu1 }
 0x3fc   : > { %v5387_v45 = vmax.f32 %v6791_v15, 0.0  ;;  %v6793_v58 = vadd.f32 %v4383_v13, %v11995_v49  ;;  %v6439_v4 = vadd.f32 %v6438_v56, %v6025_v12  ;;  %v6919_v50 = vadd.f32 %v5085_v53, %v11936_v24  ;;  %v5087_v10 = vpop.f32.mrb[34].mxu1 }
 0x3fd   : > { %v6026_v18 = vmul.f32 %v5725_v52, %v5386_v20  ;;  %v5390_v51 = vmax.f32 %v6792_v1, 0.0  ;;  %v5388_v31 = vmax.f32 %v6918_v22, 0.0  ;;  %v6920_v35 = vadd.f32 %v5087_v10, %v11995_v49  ;;  %v5089_v48 = vpop.f32.mrb[35].mxu1  ;;  %v5735_v20 = vpop.permute.xlu0 %5734 }
 0x3fe   : > { %v6027_v63 = vmul.f32 %v5725_v52, %v5387_v45  ;;  %v5391_v55 = vmax.f32 %v6793_v58, 0.0  ;;  %v5389_v59 = vmax.f32 %v6919_v50, 0.0  ;;  %v6921_v26 = vadd.f32 %v5089_v48, %v11995_v49 }
 0x3ff   : > { %v6233_v38 = vadd.f32 %v6232_v25, %v6026_v18  ;;  %v6030_v42 = vmul.f32 %v5730_v32, %v5390_v51  ;;  %v6028_v39 = vmul.f32 %v5725_v52, %v5388_v31  ;;  %v5392_v2 = vmax.f32 %v6920_v35, 0.0  ;;  %v5740_v18 = vpop.permute.xlu1 %5739 }
 0x400   : > { %v6302_v46 = vadd.f32 %v6301_v6, %v6027_v63  ;;  %v6031_v33 = vmul.f32 %v5730_v32, %v5391_v55  ;;  %v4387_v8 = vpop.f32.mrb[36].mxu0  ;;  %v6029_v24 = vmul.f32 %v5725_v52, %v5389_v59  ;;  %v5393_v40 = vmax.f32 %v6921_v26, 0.0 }
 0x401   : > { %v6234_v57 = vadd.f32 %v6233_v38, %v6030_v42  ;;  %v6794_v29 = vadd.f32 %v4387_v8, %v11949_v23  ;;  %v4389_v54 = vpop.f32.mrb[37].mxu0  ;;  %v6371_v30 = vadd.f32 %v6370_v27, %v6028_v39  ;;  %v6032_v41 = vmul.f32 %v5730_v32, %v5392_v2 }
 0x402   : > { %v6303_v5 = vadd.f32 %v6302_v46, %v6031_v33  ;;  %v6795_v25 = vadd.f32 %v4389_v54, %v11949_v23  ;;  %v4391_v44 = vpop.f32.mrb[38].mxu0  ;;  %v6440_v15 = vadd.f32 %v6439_v4, %v6029_v24  ;;  %v6033_v16 = vmul.f32 %v5730_v32, %v5393_v40  ;;  %v5093_v56 = vpop.f32.mrb[36].mxu1 }
 0x403   : > { %v5394_v49 = vmax.f32 %v6794_v29, 0.0  ;;  %v6796_v6 = vadd.f32 %v4391_v44, %v12014_v36  ;;  %v4393_v12 = vpop.f32.mrb[39].mxu0  ;;  %v6372_v62 = vadd.f32 %v6371_v30, %v6032_v41  ;;  %v6922_v1 = vadd.f32 %v5093_v56, %v11949_v23  ;;  %v5095_v52 = vpop.f32.mrb[37].mxu1 }
 0x404   : > { %v5395_v13 = vmax.f32 %v6795_v25, 0.0  ;;  %v6797_v27 = vadd.f32 %v4393_v12, %v12014_v36  ;;  %v6441_v22 = vadd.f32 %v6440_v15, %v6033_v16  ;;  %v6923_v53 = vadd.f32 %v5095_v52, %v11949_v23  ;;  %v5097_v4 = vpop.f32.mrb[38].mxu1  ;;  %v5745_v15 = vpop.permute.xlu0 %5744 }
 0x405   : > { %v6034_v45 = vmul.f32 %v5735_v20, %v5394_v49  ;;  %v5398_v58 = vmax.f32 %v6796_v6, 0.0  ;;  %v5396_v50 = vmax.f32 %v6922_v1, 0.0  ;;  %v6924_v10 = vadd.f32 %v5097_v4, %v12014_v36  ;;  %v5099_v31 = vpop.f32.mrb[39].mxu1 }
 0x406   : > { %v6035_v51 = vmul.f32 %v5735_v20, %v5395_v13  ;;  %v5399_v32 = vmax.f32 %v6797_v27, 0.0  ;;  %v5397_v35 = vmax.f32 %v6923_v53, 0.0  ;;  %v6925_v48 = vadd.f32 %v5099_v31, %v12014_v36  ;;  %v5750_v27 = vpop.permute.xlu1 %5749 }
 0x407   : > { %v6235_v63 = vadd.f32 %v6234_v57, %v6034_v45  ;;  %v6038_v55 = vmul.f32 %v5740_v18, %v5398_v58  ;;  %v6036_v38 = vmul.f32 %v5735_v20, %v5396_v50  ;;  %v5400_v42 = vmax.f32 %v6924_v10, 0.0 }
 0x408   : > { %v6304_v59 = vadd.f32 %v6303_v5, %v6035_v51  ;;  %v6039_v26 = vmul.f32 %v5740_v18, %v5399_v32  ;;  %v4397_v39 = vpop.f32.mrb[40].mxu0  ;;  %v6037_v23 = vmul.f32 %v5735_v20, %v5397_v35  ;;  %v5401_v2 = vmax.f32 %v6925_v48, 0.0 }
 0x409   : > { %v6236_v46 = vadd.f32 %v6235_v63, %v6038_v55  ;;  %v6798_v33 = vadd.f32 %v4397_v39, %v11971_v60  ;;  %v4399_v8 = vpop.f32.mrb[41].mxu0  ;;  %v6373_v24 = vadd.f32 %v6372_v62, %v6036_v38  ;;  %v6040_v40 = vmul.f32 %v5740_v18, %v5400_v42 }
 0x40a   : > { %v6305_v29 = vadd.f32 %v6304_v59, %v6039_v26  ;;  %v6799_v57 = vadd.f32 %v4399_v8, %v11971_v60  ;;  %v4401_v54 = vpop.f32.mrb[42].mxu0  ;;  %v6442_v30 = vadd.f32 %v6441_v22, %v6037_v23  ;;  %v6041_v41 = vmul.f32 %v5740_v18, %v5401_v2  ;;  %v5103_v25 = vpop.f32.mrb[40].mxu1 }
 0x40b   : > { %v5402_v36 = vmax.f32 %v6798_v33, 0.0  ;;  %v6800_v5 = vadd.f32 %v4401_v54, %v12033_v0  ;;  %v4403_v44 = vpop.f32.mrb[43].mxu0  ;;  %v6374_v16 = vadd.f32 %v6373_v24, %v6040_v40  ;;  %v6926_v49 = vadd.f32 %v5103_v25, %v11971_v60  ;;  %v5105_v6 = vpop.f32.mrb[41].mxu1 }
 0x40c   : > { %v5403_v56 = vmax.f32 %v6799_v57, 0.0  ;;  %v6801_v12 = vadd.f32 %v4403_v44, %v12033_v0  ;;  %v6443_v20 = vadd.f32 %v6442_v30, %v6041_v41  ;;  %v6927_v1 = vadd.f32 %v5105_v6, %v11971_v60  ;;  %v5107_v52 = vpop.f32.mrb[42].mxu1  ;;  %v5755_v57 = vpop.permute.xlu0 %5754 }
 0x40d   : > { %v6042_v62 = vmul.f32 %v5745_v15, %v5402_v36  ;;  %v5406_v13 = vmax.f32 %v6800_v5, 0.0  ;;  %v5404_v22 = vmax.f32 %v6926_v49, 0.0  ;;  %v6928_v53 = vadd.f32 %v5107_v52, %v12033_v0  ;;  %v5109_v4 = vpop.f32.mrb[43].mxu1 }
 0x40e   : > { %v6043_v45 = vmul.f32 %v5745_v15, %v5403_v56  ;;  %v5407_v58 = vmax.f32 %v6801_v12, 0.0  ;;  %v5405_v50 = vmax.f32 %v6927_v1, 0.0  ;;  %v6929_v10 = vadd.f32 %v5109_v4, %v12033_v0  ;;  %v5760_v56 = vpop.permute.xlu1 %5759 }
 0x40f   : > { %v6237_v18 = vadd.f32 %v6236_v46, %v6042_v62  ;;  %v6046_v51 = vmul.f32 %v5750_v27, %v5406_v13  ;;  %v6044_v32 = vmul.f32 %v5745_v15, %v5404_v22  ;;  %v5408_v63 = vmax.f32 %v6928_v53, 0.0 }
 0x410   : > { %v6306_v31 = vadd.f32 %v6305_v29, %v6043_v45  ;;  %v6047_v35 = vmul.f32 %v5750_v27, %v5407_v58  ;;  %v4407_v55 = vpop.f32.mrb[44].mxu0  ;;  %v6045_v60 = vmul.f32 %v5745_v15, %v5405_v50  ;;  %v5409_v38 = vmax.f32 %v6929_v10, 0.0 }
 0x411   : > { %v6238_v48 = vadd.f32 %v6237_v18, %v6046_v51  ;;  %v6802_v59 = vadd.f32 %v4407_v55, %v11987_v14  ;;  %v4409_v42 = vpop.f32.mrb[45].mxu0  ;;  %v6375_v26 = vadd.f32 %v6374_v16, %v6044_v32  ;;  %v6048_v39 = vmul.f32 %v5750_v27, %v5408_v63 }
 0x412   : > { %v6307_v23 = vadd.f32 %v6306_v31, %v6047_v35  ;;  %v6803_v46 = vadd.f32 %v4409_v42, %v11987_v14  ;;  %v4411_v2 = vpop.f32.mrb[46].mxu0  ;;  %v6444_v33 = vadd.f32 %v6443_v20, %v6045_v60  ;;  %v6049_v8 = vmul.f32 %v5750_v27, %v5409_v38  ;;  %v5113_v24 = vpop.f32.mrb[44].mxu1 }
 0x413   : > { %v5410_v0 = vmax.f32 %v6802_v59, 0.0  ;;  %v6804_v40 = vadd.f32 %v4411_v2, %v12046_v3  ;;  %v4413_v29 = vpop.f32.mrb[47].mxu0  ;;  %v6376_v54 = vadd.f32 %v6375_v26, %v6048_v39  ;;  %v6930_v30 = vadd.f32 %v5113_v24, %v11987_v14  ;;  %v5115_v36 = vpop.f32.mrb[45].mxu1 }
 0x414   : > { %v5411_v41 = vmax.f32 %v6803_v46, 0.0  ;;  %v6805_v25 = vadd.f32 %v4413_v29, %v12046_v3  ;;  %v6445_v5 = vadd.f32 %v6444_v33, %v6049_v8  ;;  %v6931_v15 = vadd.f32 %v5115_v36, %v11987_v14  ;;  %v5117_v49 = vpop.f32.mrb[46].mxu1  ;;  %v5765_v39 = vpop.permute.xlu0 %5764 }
 0x415   : > { %v6050_v44 = vmul.f32 %v5755_v57, %v5410_v0  ;;  %v5414_v16 = vmax.f32 %v6804_v40, 0.0  ;;  %v5412_v6 = vmax.f32 %v6930_v30, 0.0  ;;  %v6932_v20 = vadd.f32 %v5117_v49, %v12046_v3  ;;  %v5119_v1 = vpop.f32.mrb[47].mxu1 }
 0x416   : > { %v6051_v12 = vmul.f32 %v5755_v57, %v5411_v41  ;;  %v5415_v62 = vmax.f32 %v6805_v25, 0.0  ;;  %v5413_v52 = vmax.f32 %v6931_v15, 0.0  ;;  %v6933_v22 = vadd.f32 %v5119_v1, %v12046_v3 }
 0x417   : > { %v6239_v13 = vadd.f32 %v6238_v48, %v6050_v44  ;;  %v6054_v27 = vmul.f32 %v5760_v56, %v5414_v16  ;;  %v6052_v45 = vmul.f32 %v5755_v57, %v5412_v6  ;;  %v5416_v58 = vmax.f32 %v6932_v20, 0.0 }
 0x418   : > { %v6308_v53 = vadd.f32 %v6307_v23, %v6051_v12  ;;  %v6055_v4 = vmul.f32 %v5760_v56, %v5415_v62  ;;  %v4417_v18 = vpop.f32.mrb[48].mxu0  ;;  %v6053_v14 = vmul.f32 %v5755_v57, %v5413_v52  ;;  %v5417_v51 = vmax.f32 %v6933_v22, 0.0 }
 0x419   : > { %v6240_v50 = vadd.f32 %v6239_v13, %v6054_v27  ;;  %v6806_v10 = vadd.f32 %v4417_v18, %v12006_v17  ;;  %v4419_v32 = vpop.f32.mrb[49].mxu0  ;;  %v6377_v31 = vadd.f32 %v6376_v54, %v6052_v45  ;;  %v6056_v63 = vmul.f32 %v5760_v56, %v5416_v58  ;;  %v5770_v54 = vpop.permute.xlu1 %5769 }
 0x41a   : > { %v6309_v35 = vadd.f32 %v6308_v53, %v6055_v4  ;;  %v6807_v55 = vadd.f32 %v4419_v32, %v12006_v17  ;;  %v4421_v60 = vpop.f32.mrb[50].mxu0  ;;  %v6446_v48 = vadd.f32 %v6445_v5, %v6053_v14  ;;  %v6057_v38 = vmul.f32 %v5760_v56, %v5417_v51  ;;  %v5123_v59 = vpop.f32.mrb[48].mxu1 }
 0x41b   : > { %v5418_v3 = vmax.f32 %v6806_v10, 0.0  ;;  %v6808_v42 = vadd.f32 %v4421_v60, %v12059_v61  ;;  %v4423_v26 = vpop.f32.mrb[51].mxu0  ;;  %v6378_v23 = vadd.f32 %v6377_v31, %v6056_v63  ;;  %v6934_v46 = vadd.f32 %v5123_v59, %v12006_v17  ;;  %v5125_v33 = vpop.f32.mrb[49].mxu1 }
 0x41c   : > { %v5419_v2 = vmax.f32 %v6807_v55, 0.0  ;;  %v6809_v8 = vadd.f32 %v4423_v26, %v12059_v61  ;;  %v6447_v0 = vadd.f32 %v6446_v48, %v6057_v38  ;;  %v6935_v40 = vadd.f32 %v5125_v33, %v12006_v17  ;;  %v5127_v57 = vpop.f32.mrb[50].mxu1  ;;  %v5775_v32 = vpop.permute.xlu0 %5774 }
 0x41d   : > { %v6058_v24 = vmul.f32 %v5765_v39, %v5418_v3  ;;  %v5422_v29 = vmax.f32 %v6808_v42, 0.0  ;;  %v5420_v30 = vmax.f32 %v6934_v46, 0.0  ;;  %v6936_v36 = vadd.f32 %v5127_v57, %v12059_v61  ;;  %v5129_v5 = vpop.f32.mrb[51].mxu1  ;;  %v5780_v26 = vpop.permute.xlu1 %5779 }
 0x41e   : > { %v6059_v41 = vmul.f32 %v5765_v39, %v5419_v2  ;;  %v5423_v25 = vmax.f32 %v6809_v8, 0.0  ;;  %v5421_v15 = vmax.f32 %v6935_v40, 0.0  ;;  %v6937_v49 = vadd.f32 %v5129_v5, %v12059_v61 }
 0x41f   : > { %v6241_v44 = vadd.f32 %v6240_v50, %v6058_v24  ;;  %v6062_v16 = vmul.f32 %v5770_v54, %v5422_v29  ;;  %v6060_v56 = vmul.f32 %v5765_v39, %v5420_v30  ;;  %v5424_v12 = vmax.f32 %v6936_v36, 0.0 }
 0x420   : > { %v6310_v6 = vadd.f32 %v6309_v35, %v6059_v41  ;;  %v6063_v20 = vmul.f32 %v5770_v54, %v5423_v25  ;;  %v4427_v62 = vpop.f32.mrb[52].mxu0  ;;  %v6061_v17 = vmul.f32 %v5765_v39, %v5421_v15  ;;  %v5425_v13 = vmax.f32 %v6937_v49, 0.0 }
 0x421   : > { %v6242_v1 = vadd.f32 %v6241_v44, %v6062_v16  ;;  %v6810_v52 = vadd.f32 %v4427_v62, %v12019_v37  ;;  %v4429_v27 = vpop.f32.mrb[53].mxu0  ;;  %v6379_v22 = vadd.f32 %v6378_v23, %v6060_v56  ;;  %v6064_v45 = vmul.f32 %v5770_v54, %v5424_v12 }
 0x422   : > { %v6311_v53 = vadd.f32 %v6310_v6, %v6063_v20  ;;  %v6811_v58 = vadd.f32 %v4429_v27, %v12019_v37  ;;  %v4431_v4 = vpop.f32.mrb[54].mxu0  ;;  %v6448_v18 = vadd.f32 %v6447_v0, %v6061_v17  ;;  %v6065_v14 = vmul.f32 %v5770_v54, %v5425_v13  ;;  %v5133_v50 = vpop.f32.mrb[52].mxu1 }
 0x423   : > { %v5426_v61 = vmax.f32 %v6810_v52, 0.0  ;;  %v6812_v51 = vadd.f32 %v4431_v4, %v12073_v43  ;;  %v4433_v10 = vpop.f32.mrb[55].mxu0  ;;  %v6380_v31 = vadd.f32 %v6379_v22, %v6064_v45  ;;  %v6938_v63 = vadd.f32 %v5133_v50, %v12019_v37  ;;  %v5135_v55 = vpop.f32.mrb[53].mxu1 }
 0x424   : > { %v5427_v35 = vmax.f32 %v6811_v58, 0.0  ;;  %v6813_v60 = vadd.f32 %v4433_v10, %v12073_v43  ;;  %v6449_v48 = vadd.f32 %v6448_v18, %v6065_v14  ;;  %v6939_v3 = vadd.f32 %v5135_v55, %v12019_v37  ;;  %v5137_v42 = vpop.f32.mrb[54].mxu1  ;;  %v5785_v13 = vpop.permute.xlu0 %5784 }
 0x425   : > { %v6066_v38 = vmul.f32 %v5775_v32, %v5426_v61  ;;  %v5430_v59 = vmax.f32 %v6812_v51, 0.0  ;;  %v5428_v39 = vmax.f32 %v6938_v63, 0.0  ;;  %v6940_v46 = vadd.f32 %v5137_v42, %v12073_v43  ;;  %v5139_v33 = vpop.f32.mrb[55].mxu1  ;;  %v5790_v50 = vpop.permute.xlu1 %5789 }
 0x426   : > { %v6067_v23 = vmul.f32 %v5775_v32, %v5427_v35  ;;  %v5431_v2 = vmax.f32 %v6813_v60, 0.0  ;;  %v5429_v0 = vmax.f32 %v6939_v3, 0.0  ;;  %v6941_v40 = vadd.f32 %v5139_v33, %v12073_v43 }
 0x427   : > { %v6243_v8 = vadd.f32 %v6242_v1, %v6066_v38  ;;  %v6070_v24 = vmul.f32 %v5780_v26, %v5430_v59  ;;  %v6068_v29 = vmul.f32 %v5775_v32, %v5428_v39  ;;  %v5432_v54 = vmax.f32 %v6940_v46, 0.0 }
 0x428   : > { %v6312_v57 = vadd.f32 %v6311_v53, %v6067_v23  ;;  %v6071_v30 = vmul.f32 %v5780_v26, %v5431_v2  ;;  %v4437_v41 = vpop.f32.mrb[56].mxu0  ;;  %v6069_v37 = vmul.f32 %v5775_v32, %v5429_v0  ;;  %v5433_v25 = vmax.f32 %v6941_v40, 0.0 }
 0x429   : > { %v6244_v36 = vadd.f32 %v6243_v8, %v6070_v24  ;;  %v6814_v5 = vadd.f32 %v4437_v41, %v12041_v47  ;;  %v4439_v44 = vpop.f32.mrb[57].mxu0  ;;  %v6381_v15 = vadd.f32 %v6380_v31, %v6068_v29  ;;  %v6072_v16 = vmul.f32 %v5780_v26, %v5432_v54 }
 0x42a   : > { %v6313_v49 = vadd.f32 %v6312_v57, %v6071_v30  ;;  %v6815_v56 = vadd.f32 %v4439_v44, %v12041_v47  ;;  %v4441_v6 = vpop.f32.mrb[58].mxu0  ;;  %v6450_v12 = vadd.f32 %v6449_v48, %v6069_v37  ;;  %v6073_v20 = vmul.f32 %v5780_v26, %v5433_v25  ;;  %v5143_v62 = vpop.f32.mrb[56].mxu1 }
 0x42b   : > { %v5434_v43 = vmax.f32 %v6814_v5, 0.0  ;;  %v6816_v17 = vadd.f32 %v4441_v6, %v12084_v11  ;;  %v4443_v1 = vpop.f32.mrb[59].mxu0  ;;  %v6382_v52 = vadd.f32 %v6381_v15, %v6072_v16  ;;  %v6942_v27 = vadd.f32 %v5143_v62, %v12041_v47  ;;  %v5145_v45 = vpop.f32.mrb[57].mxu1 }
 0x42c   : > { %v5435_v22 = vmax.f32 %v6815_v56, 0.0  ;;  %v6817_v53 = vadd.f32 %v4443_v1, %v12084_v11  ;;  %v6451_v58 = vadd.f32 %v6450_v12, %v6073_v20  ;;  %v6943_v18 = vadd.f32 %v5145_v45, %v12041_v47  ;;  %v5147_v61 = vpop.f32.mrb[58].mxu1  ;;  %v5795_v37 = vpop.permute.xlu0 %5794 }
 0x42d   : > { %v6074_v4 = vmul.f32 %v5785_v13, %v5434_v43  ;;  %v5438_v14 = vmax.f32 %v6816_v17, 0.0  ;;  %v5436_v51 = vmax.f32 %v6942_v27, 0.0  ;;  %v6944_v32 = vadd.f32 %v5147_v61, %v12084_v11  ;;  %v5149_v63 = vpop.f32.mrb[59].mxu1  ;;  %v5800_v20 = vpop.permute.xlu1 %5799 }
 0x42e   : > { %v6075_v10 = vmul.f32 %v5785_v13, %v5435_v22  ;;  %v5439_v31 = vmax.f32 %v6817_v53, 0.0  ;;  %v5437_v55 = vmax.f32 %v6943_v18, 0.0  ;;  %v6945_v48 = vadd.f32 %v5149_v63, %v12084_v11 }
 0x42f   : > { %v6245_v35 = vadd.f32 %v6244_v36, %v6074_v4  ;;  %v6078_v60 = vmul.f32 %v5790_v50, %v5438_v14  ;;  %v6076_v38 = vmul.f32 %v5785_v13, %v5436_v51  ;;  %v5440_v59 = vmax.f32 %v6944_v32, 0.0 }
 0x430   : > { %v6314_v3 = vadd.f32 %v6313_v49, %v6075_v10  ;;  %v6079_v42 = vmul.f32 %v5790_v50, %v5439_v31  ;;  %v4447_v26 = vpop.f32.mrb[60].mxu0  ;;  %v6077_v47 = vmul.f32 %v5785_v13, %v5437_v55  ;;  %v5441_v23 = vmax.f32 %v6945_v48, 0.0 }
 0x431   : > { %v6246_v39 = vadd.f32 %v6245_v35, %v6078_v60  ;;  %v6818_v46 = vadd.f32 %v4447_v26, %v12054_v19  ;;  %v4449_v2 = vpop.f32.mrb[61].mxu0  ;;  %v6383_v33 = vadd.f32 %v6382_v52, %v6076_v38  ;;  %v6080_v8 = vmul.f32 %v5790_v50, %v5440_v59 }
 0x432   : > { %v6315_v0 = vadd.f32 %v6314_v3, %v6079_v42  ;;  %v6819_v24 = vadd.f32 %v4449_v2, %v12054_v19  ;;  %v4451_v40 = vpop.f32.mrb[62].mxu0  ;;  %v6452_v29 = vadd.f32 %v6451_v58, %v6077_v47  ;;  %v6081_v57 = vmul.f32 %v5790_v50, %v5441_v23  ;;  %v5153_v54 = vpop.f32.mrb[60].mxu1 }
 0x433   : > { %v5442_v11 = vmax.f32 %v6818_v46, 0.0  ;;  %v6820_v30 = vadd.f32 %v4451_v40, %v12176_v21  ;;  %v4453_v41 = vpop.f32.mrb[63].mxu0  ;;  %v6384_v36 = vadd.f32 %v6383_v33, %v6080_v8  ;;  %v6946_v25 = vadd.f32 %v5153_v54, %v12054_v19  ;;  %v5155_v44 = vpop.f32.mrb[61].mxu1 }
 0x434   : > { %v5443_v5 = vmax.f32 %v6819_v24, 0.0  ;;  %v6821_v15 = vadd.f32 %v4453_v41, %v12176_v21  ;;  %v6453_v16 = vadd.f32 %v6452_v29, %v6081_v57  ;;  %v6947_v56 = vadd.f32 %v5155_v44, %v12054_v19  ;;  %v5157_v12 = vpop.f32.mrb[62].mxu1  ;;  %v5805_v42 = vpop.permute.xlu0 %5804 }
 0x435   : > { %v6082_v49 = vmul.f32 %v5795_v37, %v5442_v11  ;;  %v5446_v6 = vmax.f32 %v6820_v30, 0.0  ;;  %v5444_v43 = vmax.f32 %v6946_v25, 0.0  ;;  %v6948_v17 = vadd.f32 %v5157_v12, %v12176_v21  ;;  %v5159_v13 = vpop.f32.mrb[63].mxu1  ;;  %v5810_v40 = vpop.permute.xlu1 %5809 }
 0x436   : > { %v6083_v62 = vmul.f32 %v5795_v37, %v5443_v5  ;;  %v5447_v1 = vmax.f32 %v6821_v15, 0.0  ;;  %v5445_v27 = vmax.f32 %v6947_v56, 0.0  ;;  %v6949_v45 = vadd.f32 %v5159_v13, %v12176_v21 }
 0x437   : > { %v6247_v52 = vadd.f32 %v6246_v39, %v6082_v49  ;;  %v6086_v22 = vmul.f32 %v5800_v20, %v5446_v6  ;;  %v6084_v53 = vmul.f32 %v5795_v37, %v5444_v43  ;;  %v5448_v4 = vmax.f32 %v6948_v17, 0.0 }
 0x438   : > { %v6316_v58 = vadd.f32 %v6315_v0, %v6083_v62  ;;  %v6087_v18 = vmul.f32 %v5800_v20, %v5447_v1  ;;  %v4457_v14 = vpop.f32.mrb[64].mxu0  ;;  %v6085_v19 = vmul.f32 %v5795_v37, %v5445_v27  ;;  %v5449_v50 = vmax.f32 %v6949_v45, 0.0 }
 0x439   : > { %v6248_v61 = vadd.f32 %v6247_v52, %v6086_v22  ;;  %v6822_v51 = vadd.f32 %v4457_v14, %v12184_v34  ;;  %v4459_v10 = vpop.f32.mrb[65].mxu0  ;;  %v6385_v32 = vadd.f32 %v6384_v36, %v6084_v53  ;;  %v6088_v31 = vmul.f32 %v5800_v20, %v5448_v4 }
 0x43a   : > { %v6317_v63 = vadd.f32 %v6316_v58, %v6087_v18  ;;  %v6823_v35 = vadd.f32 %v4459_v10, %v12184_v34  ;;  %v4461_v55 = vpop.f32.mrb[66].mxu0  ;;  %v6454_v60 = vadd.f32 %v6453_v16, %v6085_v19  ;;  %v6089_v48 = vmul.f32 %v5800_v20, %v5449_v50  ;;  %v5163_v38 = vpop.f32.mrb[64].mxu1 }
 0x43b   : > { %v5450_v21 = vmax.f32 %v6822_v51, 0.0  ;;  %v6824_v3 = vadd.f32 %v4461_v55, %v12186_v9  ;;  %v4463_v59 = vpop.f32.mrb[67].mxu0  ;;  %v6386_v26 = vadd.f32 %v6385_v32, %v6088_v31  ;;  %v6950_v47 = vadd.f32 %v5163_v38, %v12184_v34  ;;  %v5165_v23 = vpop.f32.mrb[65].mxu1 }
 0x43c   : > { %v5451_v39 = vmax.f32 %v6823_v35, 0.0  ;;  %v6825_v46 = vadd.f32 %v4463_v59, %v12186_v9  ;;  %v6455_v2 = vadd.f32 %v6454_v60, %v6089_v48  ;;  %v6951_v8 = vadd.f32 %v5165_v23, %v12184_v34  ;;  %v5167_v24 = vpop.f32.mrb[66].mxu1  ;;  %v5815_v58 = vpop.permute.xlu0 %5814 }
 0x43d   : > { %v6090_v33 = vmul.f32 %v5805_v42, %v5450_v21  ;;  %v5454_v0 = vmax.f32 %v6824_v3, 0.0  ;;  %v5452_v29 = vmax.f32 %v6950_v47, 0.0  ;;  %v6952_v11 = vadd.f32 %v5167_v24, %v12186_v9  ;;  %v5169_v30 = vpop.f32.mrb[67].mxu1 }
 0x43e   : > { %v6091_v57 = vmul.f32 %v5805_v42, %v5451_v39  ;;  %v5455_v54 = vmax.f32 %v6825_v46, 0.0  ;;  %v5453_v37 = vmax.f32 %v6951_v8, 0.0  ;;  %v6953_v25 = vadd.f32 %v5169_v30, %v12186_v9  ;;  %v13471_v8 = vld [vmem:[#allocation157_spill] sm:$0xff] }
 0x43f   : > { %v6249_v41 = vadd.f32 %v6248_v61, %v6090_v33  ;;  %v6094_v36 = vmul.f32 %v5810_v40, %v5454_v0  ;;  %v6092_v5 = vmul.f32 %v5805_v42, %v5452_v29  ;;  %v5456_v15 = vmax.f32 %v6952_v11, 0.0 }
 0x440   : > { %v6318_v44 = vadd.f32 %v6317_v63, %v6091_v57  ;;  %v6095_v16 = vmul.f32 %v5810_v40, %v5455_v54  ;;  %v4467_v49 = vpop.f32.mrb[68].mxu0  ;;  %v6093_v34 = vmul.f32 %v5805_v42, %v5453_v37  ;;  %v5457_v6 = vmax.f32 %v6953_v25, 0.0  ;;  %v5820_v63 = vpop.permute.xlu1 %5819 }
 0x441   : > { %v6250_v56 = vadd.f32 %v6249_v41, %v6094_v36  ;;  %v6826_v12 = vadd.f32 %v4467_v49, %v12194_v7  ;;  %v4469_v20 = vpop.f32.mrb[69].mxu0  ;;  %v6387_v43 = vadd.f32 %v6386_v26, %v6092_v5  ;;  %v6096_v62 = vmul.f32 %v5810_v40, %v5456_v15  ;;  %v13472_v36 = vld [vmem:[#allocation18_spill] sm:$0xff] }
 0x442   : > { %v6319_v17 = vadd.f32 %v6318_v44, %v6095_v16  ;;  %v6827_v1 = vadd.f32 %v4469_v20, %v12194_v7  ;;  %v4471_v13 = vpop.f32.mrb[70].mxu0  ;;  %v6456_v52 = vadd.f32 %v6455_v2, %v6093_v34  ;;  %v6097_v27 = vmul.f32 %v5810_v40, %v5457_v6  ;;  %v5173_v22 = vpop.f32.mrb[68].mxu1 }
 0x443   : > { %v5458_v9 = vmax.f32 %v6826_v12, 0.0  ;;  %v6828_v45 = vadd.f32 %v4471_v13, %v12196_v28  ;;  %v4473_v53 = vpop.f32.mrb[71].mxu0  ;;  %v6388_v4 = vadd.f32 %v6387_v43, %v6096_v62  ;;  %v6954_v18 = vadd.f32 %v5173_v22, %v12194_v7  ;;  %v5175_v19 = vpop.f32.mrb[69].mxu1 }
 0x444   : > { %v5459_v14 = vmax.f32 %v6827_v1, 0.0  ;;  %v6829_v61 = vadd.f32 %v4473_v53, %v12196_v28  ;;  %v6457_v50 = vadd.f32 %v6456_v52, %v6097_v27  ;;  %v6955_v10 = vadd.f32 %v5175_v19, %v12194_v7  ;;  %v5177_v31 = vpop.f32.mrb[70].mxu1  ;;  %v5825_v44 = vpop.permute.xlu0 %5824 }
 0x445   : > { %v6098_v51 = vmul.f32 %v5815_v58, %v5458_v9  ;;  %v5462_v32 = vmax.f32 %v6828_v45, 0.0  ;;  %v5460_v35 = vmax.f32 %v6954_v18, 0.0  ;;  %v6956_v60 = vadd.f32 %v5177_v31, %v12196_v28  ;;  %v5179_v21 = vpop.f32.mrb[71].mxu1 }
 0x446   : > { %v6099_v55 = vmul.f32 %v5815_v58, %v5459_v14  ;;  %v5463_v48 = vmax.f32 %v6829_v61, 0.0  ;;  %v5461_v3 = vmax.f32 %v6955_v10, 0.0  ;;  %v6957_v42 = vadd.f32 %v5179_v21, %v12196_v28 }
 0x447   : > { %v6251_v38 = vadd.f32 %v6250_v56, %v6098_v51  ;;  %v6102_v59 = vmul.f32 %v5820_v63, %v5462_v32  ;;  %v6100_v26 = vmul.f32 %v5815_v58, %v5460_v35  ;;  %v5464_v39 = vmax.f32 %v6956_v60, 0.0  ;;  %v13473_v32 = vld [vmem:[#allocation80_spill] sm:$0xff] }
 0x448   : > { %v6320_v47 = vadd.f32 %v6319_v17, %v6099_v55  ;;  %v6103_v23 = vmul.f32 %v5820_v63, %v5463_v48  ;;  %v4477_v46 = vpop.f32.mrb[72].mxu0  ;;  %v6101_v7 = vmul.f32 %v5815_v58, %v5461_v3  ;;  %v5465_v33 = vmax.f32 %v6957_v42, 0.0  ;;  %v5830_v17 = vpop.permute.xlu1 %5829 }
 0x449   : > { %v6252_v2 = vadd.f32 %v6251_v38, %v6102_v59  ;;  %v6830_v0 = vadd.f32 %v4477_v46, %v13471_v8  ;;  %v4479_v24 = vpop.f32.mrb[73].mxu0  ;;  %v6389_v40 = vadd.f32 %v6388_v4, %v6100_v26  ;;  %v6104_v29 = vmul.f32 %v5820_v63, %v5464_v39  ;;  %v13474_v26 = vld [vmem:[#allocation81_spill] sm:$0xff] }
 0x44a   : > { %v6321_v57 = vadd.f32 %v6320_v47, %v6103_v23  ;;  %v6831_v11 = vadd.f32 %v4479_v24, %v13471_v8  ;;  %v4481_v54 = vpop.f32.mrb[74].mxu0  ;;  %v6458_v30 = vadd.f32 %v6457_v50, %v6101_v7  ;;  %v6105_v41 = vmul.f32 %v5820_v63, %v5465_v33  ;;  %v5183_v37 = vpop.f32.mrb[72].mxu1 }
 0x44b   : > { %v5466_v28 = vmax.f32 %v6830_v0, 0.0  ;;  %v6832_v25 = vadd.f32 %v4481_v54, %v13472_v36  ;;  %v4483_v5 = vpop.f32.mrb[75].mxu0  ;;  %v6390_v15 = vadd.f32 %v6389_v40, %v6104_v29  ;;  %v6958_v16 = vadd.f32 %v5183_v37, %v13471_v8  ;;  %v5185_v34 = vpop.f32.mrb[73].mxu1 }
 0x44c   : > { %v5467_v49 = vmax.f32 %v6831_v11, 0.0  ;;  %v6833_v56 = vadd.f32 %v4483_v5, %v13472_v36  ;;  %v6459_v6 = vadd.f32 %v6458_v30, %v6105_v41  ;;  %v6959_v20 = vadd.f32 %v5185_v34, %v13471_v8  ;;  %v5187_v62 = vpop.f32.mrb[74].mxu1  ;;  %v5835_v23 = vpop.permute.xlu0 %5834 }
 0x44d   : > { %v6106_v12 = vmul.f32 %v5825_v44, %v5466_v28  ;;  %v5470_v43 = vmax.f32 %v6832_v25, 0.0  ;;  %v5468_v1 = vmax.f32 %v6958_v16, 0.0  ;;  %v6960_v52 = vadd.f32 %v5187_v62, %v13472_v36  ;;  %v5189_v9 = vpop.f32.mrb[75].mxu1  ;;  %v5840_v11 = vpop.permute.xlu1 %5839 }
 0x44e   : > { %v6107_v13 = vmul.f32 %v5825_v44, %v5467_v49  ;;  %v5471_v27 = vmax.f32 %v6833_v56, 0.0  ;;  %v5469_v45 = vmax.f32 %v6959_v20, 0.0  ;;  %v6961_v58 = vadd.f32 %v5189_v9, %v13472_v36 }
 0x44f   : > { %v6253_v22 = vadd.f32 %v6252_v2, %v6106_v12  ;;  %v6110_v53 = vmul.f32 %v5830_v17, %v5470_v43  ;;  %v6108_v4 = vmul.f32 %v5825_v44, %v5468_v1  ;;  %v5472_v14 = vmax.f32 %v6960_v52, 0.0  ;;  %v13475_v43 = vld [vmem:[#allocation82_spill] sm:$0xff] }
 0x450   : > { %v6322_v18 = vadd.f32 %v6321_v57, %v6107_v13  ;;  %v6111_v19 = vmul.f32 %v5830_v17, %v5471_v27  ;;  %v4487_v61 = vpop.f32.mrb[76].mxu0  ;;  %v6109_v50 = vmul.f32 %v5825_v44, %v5469_v45  ;;  %v5473_v10 = vmax.f32 %v6961_v58, 0.0 }
 0x451   : > { %v6254_v51 = vadd.f32 %v6253_v22, %v6110_v53  ;;  %v6834_v31 = vadd.f32 %v4487_v61, %v13473_v32  ;;  %v4489_v63 = vpop.f32.mrb[77].mxu0  ;;  %v6391_v35 = vadd.f32 %v6390_v15, %v6108_v4  ;;  %v6112_v55 = vmul.f32 %v5830_v17, %v5472_v14  ;;  %v13476_v4 = vld [vmem:[#allocation176_spill] sm:$0xff] }
 0x452   : > { %v6323_v60 = vadd.f32 %v6322_v18, %v6111_v19  ;;  %v6835_v48 = vadd.f32 %v4489_v63, %v13473_v32  ;;  %v4491_v21 = vpop.f32.mrb[78].mxu0  ;;  %v6460_v38 = vadd.f32 %v6459_v6, %v6109_v50  ;;  %v6113_v3 = vmul.f32 %v5830_v17, %v5473_v10  ;;  %v5193_v42 = vpop.f32.mrb[76].mxu1 }
 0x453   : > { %v5474_v59 = vmax.f32 %v6834_v31, 0.0  ;;  %v6836_v47 = vadd.f32 %v4491_v21, %v13474_v26  ;;  %v4493_v39 = vpop.f32.mrb[79].mxu0  ;;  %v6392_v46 = vadd.f32 %v6391_v35, %v6112_v55  ;;  %v6962_v7 = vadd.f32 %v5193_v42, %v13473_v32  ;;  %v5195_v33 = vpop.f32.mrb[77].mxu1 }
 0x454   : > { %v5475_v2 = vmax.f32 %v6835_v48, 0.0  ;;  %v6837_v8 = vadd.f32 %v4493_v39, %v13474_v26  ;;  %v6461_v0 = vadd.f32 %v6460_v38, %v6113_v3  ;;  %v6963_v40 = vadd.f32 %v5195_v33, %v13473_v32  ;;  %v5197_v57 = vpop.f32.mrb[78].mxu1  ;;  %v5845_v19 = vpop.permute.xlu0 %5844 }
 0x455   : > { %v6114_v24 = vmul.f32 %v5835_v23, %v5474_v59  ;;  %v5478_v29 = vmax.f32 %v6836_v47, 0.0  ;;  %v5476_v54 = vmax.f32 %v6962_v7, 0.0  ;;  %v6964_v41 = vadd.f32 %v5197_v57, %v13474_v26  ;;  %v5199_v37 = vpop.f32.mrb[79].mxu1  ;;  %v5850_v48 = vpop.permute.xlu1 %5849 }
 0x456   : > { %v6115_v30 = vmul.f32 %v5835_v23, %v5475_v2  ;;  %v5479_v28 = vmax.f32 %v6837_v8, 0.0  ;;  %v5477_v25 = vmax.f32 %v6963_v40, 0.0  ;;  %v6965_v44 = vadd.f32 %v5199_v37, %v13474_v26 }
 0x457   : > { %v6255_v36 = vadd.f32 %v6254_v51, %v6114_v24  ;;  %v6118_v5 = vmul.f32 %v5840_v11, %v5478_v29  ;;  %v6116_v15 = vmul.f32 %v5835_v23, %v5476_v54  ;;  %v5480_v49 = vmax.f32 %v6964_v41, 0.0  ;;  %v13477_v29 = vld [vmem:[#allocation83_spill] sm:$0xff] }
 0x458   : > { %v6324_v16 = vadd.f32 %v6323_v60, %v6115_v30  ;;  %v6119_v34 = vmul.f32 %v5840_v11, %v5479_v28  ;;  %v4497_v56 = vpop.f32.mrb[80].mxu0  ;;  %v6117_v6 = vmul.f32 %v5835_v23, %v5477_v25  ;;  %v5481_v20 = vmax.f32 %v6965_v44, 0.0 }
 0x459   : > { %v6256_v12 = vadd.f32 %v6255_v36, %v6118_v5  ;;  %v6838_v62 = vadd.f32 %v4497_v56, %v13475_v43  ;;  %v4499_v17 = vpop.f32.mrb[81].mxu0  ;;  %v6393_v1 = vadd.f32 %v6392_v46, %v6116_v15  ;;  %v6120_v13 = vmul.f32 %v5840_v11, %v5480_v49  ;;  %v13478_v15 = vld [vmem:[#allocation156_spill] sm:$0xff] }
 0x45a   : > { %v6325_v52 = vadd.f32 %v6324_v16, %v6119_v34  ;;  %v6839_v27 = vadd.f32 %v4499_v17, %v13475_v43  ;;  %v4501_v9 = vpop.f32.mrb[82].mxu0  ;;  %v6462_v22 = vadd.f32 %v6461_v0, %v6117_v6  ;;  %v6121_v45 = vmul.f32 %v5840_v11, %v5481_v20  ;;  %v5203_v58 = vpop.f32.mrb[80].mxu1 }
 0x45b   : > { %v5482_v53 = vmax.f32 %v6838_v62, 0.0  ;;  %v6840_v18 = vadd.f32 %v4501_v9, %v13476_v4  ;;  %v4503_v14 = vpop.f32.mrb[83].mxu0  ;;  %v6394_v61 = vadd.f32 %v6393_v1, %v6120_v13  ;;  %v6966_v50 = vadd.f32 %v5203_v58, %v13475_v43  ;;  %v5205_v10 = vpop.f32.mrb[81].mxu1 }
 0x45c   : > { %v5483_v51 = vmax.f32 %v6839_v27, 0.0  ;;  %v6841_v32 = vadd.f32 %v4503_v14, %v13476_v4  ;;  %v6463_v31 = vadd.f32 %v6462_v22, %v6121_v45  ;;  %v6967_v35 = vadd.f32 %v5205_v10, %v13475_v43  ;;  %v5207_v60 = vpop.f32.mrb[82].mxu1  ;;  %v5855_v34 = vpop.permute.xlu0 %5854 }
 0x45d   : > { %v6122_v63 = vmul.f32 %v5845_v19, %v5482_v53  ;;  %v5486_v55 = vmax.f32 %v6840_v18, 0.0  ;;  %v5484_v21 = vmax.f32 %v6966_v50, 0.0  ;;  %v6968_v3 = vadd.f32 %v5207_v60, %v13476_v4  ;;  %v5209_v42 = vpop.f32.mrb[83].mxu1  ;;  %v5860_v27 = vpop.permute.xlu1 %5859 }
 0x45e   : > { %v6123_v38 = vmul.f32 %v5845_v19, %v5483_v51  ;;  %v5487_v59 = vmax.f32 %v6841_v32, 0.0  ;;  %v5485_v47 = vmax.f32 %v6967_v35, 0.0  ;;  %v6969_v23 = vadd.f32 %v5209_v42, %v13476_v4 }
 0x45f   : > { %v6257_v26 = vadd.f32 %v6256_v12, %v6122_v63  ;;  %v6126_v39 = vmul.f32 %v5850_v48, %v5486_v55  ;;  %v6124_v46 = vmul.f32 %v5845_v19, %v5484_v21  ;;  %v5488_v2 = vmax.f32 %v6968_v3, 0.0  ;;  %v13479_v55 = vld [vmem:[#allocation84_spill] sm:$0xff] }
 0x460   : > { %v6326_v7 = vadd.f32 %v6325_v52, %v6123_v38  ;;  %v6127_v33 = vmul.f32 %v5850_v48, %v5487_v59  ;;  %v4507_v8 = vpop.f32.mrb[84].mxu0  ;;  %v6125_v0 = vmul.f32 %v5845_v19, %v5485_v47  ;;  %v5489_v40 = vmax.f32 %v6969_v23, 0.0 }
 0x461   : > { %v6258_v24 = vadd.f32 %v6257_v26, %v6126_v39  ;;  %v6842_v57 = vadd.f32 %v4507_v8, %v13477_v29  ;;  %v4509_v11 = vpop.f32.mrb[85].mxu0  ;;  %v6395_v54 = vadd.f32 %v6394_v61, %v6124_v46  ;;  %v6128_v30 = vmul.f32 %v5850_v48, %v5488_v2  ;;  %v13480_v46 = vld [vmem:[#allocation158_spill] sm:$0xff] }
 0x462   : > { %v6327_v41 = vadd.f32 %v6326_v7, %v6127_v33  ;;  %v6843_v28 = vadd.f32 %v4509_v11, %v13477_v29  ;;  %v4511_v37 = vpop.f32.mrb[86].mxu0  ;;  %v6464_v36 = vadd.f32 %v6463_v31, %v6125_v0  ;;  %v6129_v25 = vmul.f32 %v5850_v48, %v5489_v40  ;;  %v5213_v44 = vpop.f32.mrb[84].mxu1 }
 0x463   : > { %v5490_v5 = vmax.f32 %v6842_v57, 0.0  ;;  %v6844_v16 = vadd.f32 %v4511_v37, %v13478_v15  ;;  %v4513_v49 = vpop.f32.mrb[87].mxu0  ;;  %v6396_v56 = vadd.f32 %v6395_v54, %v6128_v30  ;;  %v6970_v6 = vadd.f32 %v5213_v44, %v13477_v29  ;;  %v5215_v20 = vpop.f32.mrb[85].mxu1 }
 0x464   : > { %v5491_v12 = vmax.f32 %v6843_v28, 0.0  ;;  %v6845_v43 = vadd.f32 %v4513_v49, %v13478_v15  ;;  %v6465_v62 = vadd.f32 %v6464_v36, %v6129_v25  ;;  %v6971_v1 = vadd.f32 %v5215_v20, %v13477_v29  ;;  %v5217_v52 = vpop.f32.mrb[86].mxu1  ;;  %v5865_v33 = vpop.permute.xlu0 %5864 }
 0x465   : > { %v6130_v17 = vmul.f32 %v5855_v34, %v5490_v5  ;;  %v5494_v13 = vmax.f32 %v6844_v16, 0.0  ;;  %v5492_v9 = vmax.f32 %v6970_v6, 0.0  ;;  %v6972_v45 = vadd.f32 %v5217_v52, %v13478_v15  ;;  %v5219_v58 = vpop.f32.mrb[87].mxu1  ;;  %v5870_v28 = vpop.permute.xlu1 %5869 }
 0x466   : > { %v6131_v22 = vmul.f32 %v5855_v34, %v5491_v12  ;;  %v5495_v53 = vmax.f32 %v6845_v43, 0.0  ;;  %v5493_v18 = vmax.f32 %v6971_v1, 0.0  ;;  %v6973_v19 = vadd.f32 %v5219_v58, %v13478_v15 }
 0x467   : > { %v6259_v4 = vadd.f32 %v6258_v24, %v6130_v17  ;;  %v6134_v14 = vmul.f32 %v5860_v27, %v5494_v13  ;;  %v6132_v61 = vmul.f32 %v5855_v34, %v5492_v9  ;;  %v5496_v51 = vmax.f32 %v6972_v45, 0.0  ;;  %v13481_v13 = vld [vmem:[#allocation85_spill] sm:$0xff] }
 0x468   : > { %v6328_v50 = vadd.f32 %v6327_v41, %v6131_v22  ;;  %v6135_v10 = vmul.f32 %v5860_v27, %v5495_v53  ;;  %v4517_v32 = vpop.f32.mrb[88].mxu0  ;;  %v6133_v31 = vmul.f32 %v5855_v34, %v5493_v18  ;;  %v5497_v35 = vmax.f32 %v6973_v19, 0.0 }
 0x469   : > { %v6260_v63 = vadd.f32 %v6259_v4, %v6134_v14  ;;  %v6846_v60 = vadd.f32 %v4517_v32, %v13479_v55  ;;  %v4519_v48 = vpop.f32.mrb[89].mxu0  ;;  %v6397_v21 = vadd.f32 %v6396_v56, %v6132_v61  ;;  %v6136_v38 = vmul.f32 %v5860_v27, %v5496_v51  ;;  %v13482_v61 = vld [vmem:[#allocation165_spill] sm:$0xff] }
 0x46a   : > { %v6329_v3 = vadd.f32 %v6328_v50, %v6135_v10  ;;  %v6847_v59 = vadd.f32 %v4519_v48, %v13479_v55  ;;  %v4521_v42 = vpop.f32.mrb[90].mxu0  ;;  %v6466_v26 = vadd.f32 %v6465_v62, %v6133_v31  ;;  %v6137_v47 = vmul.f32 %v5860_v27, %v5497_v35  ;;  %v5223_v23 = vpop.f32.mrb[88].mxu1 }
 0x46b   : > { %v5498_v39 = vmax.f32 %v6846_v60, 0.0  ;;  %v6848_v7 = vadd.f32 %v4521_v42, %v13480_v46  ;;  %v4523_v2 = vpop.f32.mrb[91].mxu0  ;;  %v6398_v8 = vadd.f32 %v6397_v21, %v6136_v38  ;;  %v6974_v0 = vadd.f32 %v5223_v23, %v13479_v55  ;;  %v5225_v40 = vpop.f32.mrb[89].mxu1 }
 0x46c   : > { %v5499_v24 = vmax.f32 %v6847_v59, 0.0  ;;  %v6849_v29 = vadd.f32 %v4523_v2, %v13480_v46  ;;  %v6467_v57 = vadd.f32 %v6466_v26, %v6137_v47  ;;  %v6975_v54 = vadd.f32 %v5225_v40, %v13479_v55  ;;  %v5227_v41 = vpop.f32.mrb[90].mxu1  ;;  %v5875_v10 = vpop.permute.xlu0 %5874 }
 0x46d   : > { %v6138_v11 = vmul.f32 %v5865_v33, %v5498_v39  ;;  %v5502_v30 = vmax.f32 %v6848_v7, 0.0  ;;  %v5500_v37 = vmax.f32 %v6974_v0, 0.0  ;;  %v6976_v25 = vadd.f32 %v5227_v41, %v13480_v46  ;;  %v5229_v44 = vpop.f32.mrb[91].mxu1  ;;  %v5880_v59 = vpop.permute.xlu1 %5879 }
 0x46e   : > { %v6139_v36 = vmul.f32 %v5865_v33, %v5499_v24  ;;  %v5503_v5 = vmax.f32 %v6849_v29, 0.0  ;;  %v5501_v16 = vmax.f32 %v6975_v54, 0.0  ;;  %v6977_v34 = vadd.f32 %v5229_v44, %v13480_v46 }
 0x46f   : > { %v6261_v15 = vadd.f32 %v6260_v63, %v6138_v11  ;;  %v6142_v49 = vmul.f32 %v5870_v28, %v5502_v30  ;;  %v6140_v56 = vmul.f32 %v5865_v33, %v5500_v37  ;;  %v5504_v12 = vmax.f32 %v6976_v25, 0.0  ;;  %v13483_v30 = vld [vmem:[#allocation86_spill] sm:$0xff] }
 0x470   : > { %v6330_v6 = vadd.f32 %v6329_v3, %v6139_v36  ;;  %v6143_v20 = vmul.f32 %v5870_v28, %v5503_v5  ;;  %v4527_v43 = vpop.f32.mrb[92].mxu0  ;;  %v6141_v62 = vmul.f32 %v5865_v33, %v5501_v16  ;;  %v5505_v1 = vmax.f32 %v6977_v34, 0.0 }
 0x471   : > { %v6262_v17 = vadd.f32 %v6261_v15, %v6142_v49  ;;  %v6850_v52 = vadd.f32 %v4527_v43, %v13481_v13  ;;  %v4529_v27 = vpop.f32.mrb[93].mxu0  ;;  %v6399_v9 = vadd.f32 %v6398_v8, %v6140_v56  ;;  %v6144_v22 = vmul.f32 %v5870_v28, %v5504_v12  ;;  %v13484_v56 = vld [vmem:[#allocation15_spill] sm:$0xff] }
 0x472   : > { %v6331_v45 = vadd.f32 %v6330_v6, %v6143_v20  ;;  %v6851_v53 = vadd.f32 %v4529_v27, %v13481_v13  ;;  %v4531_v58 = vpop.f32.mrb[94].mxu0  ;;  %v6468_v4 = vadd.f32 %v6467_v57, %v6141_v62  ;;  %v6145_v18 = vmul.f32 %v5870_v28, %v5505_v1  ;;  %v5233_v19 = vpop.f32.mrb[92].mxu1 }
 0x473   : > { %v5506_v14 = vmax.f32 %v6850_v52, 0.0  ;;  %v6852_v50 = vadd.f32 %v4531_v58, %v13482_v61  ;;  %v4533_v51 = vpop.f32.mrb[95].mxu0  ;;  %v6400_v32 = vadd.f32 %v6399_v9, %v6144_v22  ;;  %v6978_v31 = vadd.f32 %v5233_v19, %v13481_v13  ;;  %v5235_v35 = vpop.f32.mrb[93].mxu1 }
 0x474   : > { %v5507_v63 = vmax.f32 %v6851_v53, 0.0  ;;  %v6853_v55 = vadd.f32 %v4533_v51, %v13482_v61  ;;  %v6469_v60 = vadd.f32 %v6468_v4, %v6145_v18  ;;  %v6979_v21 = vadd.f32 %v5235_v35, %v13481_v13  ;;  %v5237_v3 = vpop.f32.mrb[94].mxu1  ;;  %v5885_v20 = vpop.permute.xlu0 %5884 }
 0x475   : > { %v6146_v48 = vmul.f32 %v5875_v10, %v5506_v14  ;;  %v5510_v38 = vmax.f32 %v6852_v50, 0.0  ;;  %v5508_v42 = vmax.f32 %v6978_v31, 0.0  ;;  %v6980_v47 = vadd.f32 %v5237_v3, %v13482_v61  ;;  %v5239_v23 = vpop.f32.mrb[95].mxu1  ;;  %v5890_v53 = vpop.permute.xlu1 %5889 }
 0x476   : > { %v6147_v26 = vmul.f32 %v5875_v10, %v5507_v63  ;;  %v5511_v39 = vmax.f32 %v6853_v55, 0.0  ;;  %v5509_v7 = vmax.f32 %v6979_v21, 0.0  ;;  %v6981_v33 = vadd.f32 %v5239_v23, %v13482_v61 }
 0x477   : > { %v6263_v46 = vadd.f32 %v6262_v17, %v6146_v48  ;;  %v6150_v2 = vmul.f32 %v5880_v59, %v5510_v38  ;;  %v6148_v8 = vmul.f32 %v5875_v10, %v5508_v42  ;;  %v5512_v24 = vmax.f32 %v6980_v47, 0.0  ;;  %v13485_v38 = vld [vmem:[#allocation88_spill] sm:$0xff] }
 0x478   : > { %v6332_v0 = vadd.f32 %v6331_v45, %v6147_v26  ;;  %v6151_v40 = vmul.f32 %v5880_v59, %v5511_v39  ;;  %v4537_v29 = vpop.f32.mrb[96].mxu0  ;;  %v6149_v57 = vmul.f32 %v5875_v10, %v5509_v7  ;;  %v5513_v54 = vmax.f32 %v6981_v33, 0.0 }
 0x479   : > { %v6264_v11 = vadd.f32 %v6263_v46, %v6150_v2  ;;  %v6854_v41 = vadd.f32 %v4537_v29, %v13483_v30  ;;  %v4539_v28 = vpop.f32.mrb[97].mxu0  ;;  %v6401_v37 = vadd.f32 %v6400_v32, %v6148_v8  ;;  %v6152_v36 = vmul.f32 %v5880_v59, %v5512_v24  ;;  %v13486_v8 = vld [vmem:[#allocation14_spill] sm:$0xff] }
 0x47a   : > { %v6333_v25 = vadd.f32 %v6332_v0, %v6151_v40  ;;  %v6855_v5 = vadd.f32 %v4539_v28, %v13483_v30  ;;  %v4541_v44 = vpop.f32.mrb[98].mxu0  ;;  %v6470_v15 = vadd.f32 %v6469_v60, %v6149_v57  ;;  %v6153_v16 = vmul.f32 %v5880_v59, %v5513_v54  ;;  %v5243_v34 = vpop.f32.mrb[96].mxu1 }
 0x47b   : > { %v5514_v49 = vmax.f32 %v6854_v41, 0.0  ;;  %v6856_v6 = vadd.f32 %v4541_v44, %v13484_v56  ;;  %v4543_v12 = vpop.f32.mrb[99].mxu0  ;;  %v6402_v43 = vadd.f32 %v6401_v37, %v6152_v36  ;;  %v6982_v62 = vadd.f32 %v5243_v34, %v13483_v30  ;;  %v5245_v1 = vpop.f32.mrb[97].mxu1 }
 0x47c   : > { %v5515_v17 = vmax.f32 %v6855_v5, 0.0  ;;  %v6857_v13 = vadd.f32 %v4543_v12, %v13484_v56  ;;  %v6471_v52 = vadd.f32 %v6470_v15, %v6153_v16  ;;  %v6983_v9 = vadd.f32 %v5245_v1, %v13483_v30  ;;  %v5247_v45 = vpop.f32.mrb[98].mxu1  ;;  %v5895_v40 = vpop.permute.xlu0 %5894 }
 0x47d   : > { %v6154_v27 = vmul.f32 %v5885_v20, %v5514_v49  ;;  %v5518_v22 = vmax.f32 %v6856_v6, 0.0  ;;  %v5516_v58 = vmax.f32 %v6982_v62, 0.0  ;;  %v6984_v18 = vadd.f32 %v5247_v45, %v13484_v56  ;;  %v5249_v19 = vpop.f32.mrb[99].mxu1  ;;  %v5900_v5 = vpop.permute.xlu1 %5899 }
 0x47e   : > { %v6155_v4 = vmul.f32 %v5885_v20, %v5515_v17  ;;  %v5519_v14 = vmax.f32 %v6857_v13, 0.0  ;;  %v5517_v50 = vmax.f32 %v6983_v9, 0.0  ;;  %v6985_v10 = vadd.f32 %v5249_v19, %v13484_v56 }
 0x47f   : > { %v6265_v61 = vadd.f32 %v6264_v11, %v6154_v27  ;;  %v6158_v51 = vmul.f32 %v5890_v53, %v5518_v22  ;;  %v6156_v32 = vmul.f32 %v5885_v20, %v5516_v58  ;;  %v5520_v63 = vmax.f32 %v6984_v18, 0.0  ;;  %v13487_v22 = vld [vmem:[#allocation13_spill] sm:$0xff] }
 0x480   : > { %v6334_v31 = vadd.f32 %v6333_v25, %v6155_v4  ;;  %v6159_v35 = vmul.f32 %v5890_v53, %v5519_v14  ;;  %v4547_v55 = vpop.f32.mrb[100].mxu0  ;;  %v6157_v60 = vmul.f32 %v5885_v20, %v5517_v50  ;;  %v5521_v21 = vmax.f32 %v6985_v10, 0.0 }
 0x481   : > { %v6266_v48 = vadd.f32 %v6265_v61, %v6158_v51  ;;  %v6858_v3 = vadd.f32 %v4547_v55, %v13485_v38  ;;  %v4549_v59 = vpop.f32.mrb[101].mxu0  ;;  %v6403_v42 = vadd.f32 %v6402_v43, %v6156_v32  ;;  %v6160_v26 = vmul.f32 %v5890_v53, %v5520_v63  ;;  %v13488_v32 = vld [vmem:[#allocation180_spill] sm:$0xff] }
 0x482   : > { %v6335_v47 = vadd.f32 %v6334_v31, %v6159_v35  ;;  %v6859_v39 = vadd.f32 %v4549_v59, %v13485_v38  ;;  %v4551_v23 = vpop.f32.mrb[102].mxu0  ;;  %v6472_v46 = vadd.f32 %v6471_v52, %v6157_v60  ;;  %v6161_v7 = vmul.f32 %v5890_v53, %v5521_v21  ;;  %v5253_v33 = vpop.f32.mrb[100].mxu1 }
 0x483   : > { %v5522_v2 = vmax.f32 %v6858_v3, 0.0  ;;  %v6860_v0 = vadd.f32 %v4551_v23, %v13486_v8  ;;  %v4553_v24 = vpop.f32.mrb[103].mxu0  ;;  %v6404_v29 = vadd.f32 %v6403_v42, %v6160_v26  ;;  %v6986_v57 = vadd.f32 %v5253_v33, %v13485_v38  ;;  %v5255_v54 = vpop.f32.mrb[101].mxu1 }
 0x484   : > { %v5523_v11 = vmax.f32 %v6859_v39, 0.0  ;;  %v6861_v30 = vadd.f32 %v4553_v24, %v13486_v8  ;;  %v6473_v41 = vadd.f32 %v6472_v46, %v6161_v7  ;;  %v6987_v37 = vadd.f32 %v5255_v54, %v13485_v38  ;;  %v5257_v25 = vpop.f32.mrb[102].mxu1  ;;  %v5905_v35 = vpop.permute.xlu0 %5904 }
 0x485   : > { %v6162_v28 = vmul.f32 %v5895_v40, %v5522_v2  ;;  %v5526_v36 = vmax.f32 %v6860_v0, 0.0  ;;  %v5524_v44 = vmax.f32 %v6986_v57, 0.0  ;;  %v6988_v16 = vadd.f32 %v5257_v25, %v13486_v8  ;;  %v5259_v34 = vpop.f32.mrb[103].mxu1  ;;  %v5910_v39 = vpop.permute.xlu1 %5909 }
 0x486   : > { %v6163_v15 = vmul.f32 %v5895_v40, %v5523_v11  ;;  %v5527_v49 = vmax.f32 %v6861_v30, 0.0  ;;  %v5525_v6 = vmax.f32 %v6987_v37, 0.0  ;;  %v6989_v20 = vadd.f32 %v5259_v34, %v13486_v8 }
 0x487   : > { %v6267_v56 = vadd.f32 %v6266_v48, %v6162_v28  ;;  %v6166_v12 = vmul.f32 %v5900_v5, %v5526_v36  ;;  %v6164_v43 = vmul.f32 %v5895_v40, %v5524_v44  ;;  %v5528_v17 = vmax.f32 %v6988_v16, 0.0  ;;  %v13489_v36 = vld [vmem:[#allocation182_spill] sm:$0xff] }
 0x488   : > { %v6336_v62 = vadd.f32 %v6335_v47, %v6163_v15  ;;  %v6167_v1 = vmul.f32 %v5900_v5, %v5527_v49  ;;  %v4557_v13 = vpop.f32.mrb[104].mxu0  ;;  %v6165_v52 = vmul.f32 %v5895_v40, %v5525_v6  ;;  %v5529_v9 = vmax.f32 %v6989_v20, 0.0 }
 0x489   : > { %v6268_v27 = vadd.f32 %v6267_v56, %v6166_v12  ;;  %v6862_v45 = vadd.f32 %v4557_v13, %v13487_v22  ;;  %v4559_v53 = vpop.f32.mrb[105].mxu0  ;;  %v6405_v58 = vadd.f32 %v6404_v29, %v6164_v43  ;;  %v6168_v4 = vmul.f32 %v5900_v5, %v5528_v17  ;;  %v13490_v43 = vld [vmem:[#allocation184_spill] sm:$0xff] }
 0x48a   : > { %v6337_v18 = vadd.f32 %v6336_v62, %v6167_v1  ;;  %v6863_v14 = vadd.f32 %v4559_v53, %v13487_v22  ;;  %v4561_v19 = vpop.f32.mrb[106].mxu0  ;;  %v6474_v61 = vadd.f32 %v6473_v41, %v6165_v52  ;;  %v6169_v50 = vmul.f32 %v5900_v5, %v5529_v9  ;;  %v5263_v10 = vpop.f32.mrb[104].mxu1 }
 0x48b   : > { %v5530_v51 = vmax.f32 %v6862_v45, 0.0  ;;  %v6864_v31 = vadd.f32 %v4561_v19, %v13488_v32  ;;  %v4563_v63 = vpop.f32.mrb[107].mxu0  ;;  %v6406_v55 = vadd.f32 %v6405_v58, %v6168_v4  ;;  %v6990_v60 = vadd.f32 %v5263_v10, %v13487_v22  ;;  %v5265_v21 = vpop.f32.mrb[105].mxu1 }
 0x48c   : > { %v5531_v48 = vmax.f32 %v6863_v14, 0.0  ;;  %v6865_v38 = vadd.f32 %v4563_v63, %v13488_v32  ;;  %v6475_v3 = vadd.f32 %v6474_v61, %v6169_v50  ;;  %v6991_v42 = vadd.f32 %v5265_v21, %v13487_v22  ;;  %v5267_v47 = vpop.f32.mrb[106].mxu1  ;;  %v5915_v1 = vpop.permute.xlu0 %5914 }
 0x48d   : > { %v6170_v59 = vmul.f32 %v5905_v35, %v5530_v51  ;;  %v5534_v26 = vmax.f32 %v6864_v31, 0.0  ;;  %v5532_v23 = vmax.f32 %v6990_v60, 0.0  ;;  %v6992_v7 = vadd.f32 %v5267_v47, %v13488_v32  ;;  %v5269_v33 = vpop.f32.mrb[107].mxu1  ;;  %v5920_v14 = vpop.permute.xlu1 %5919 }
 0x48e   : > { %v6171_v46 = vmul.f32 %v5905_v35, %v5531_v48  ;;  %v5535_v2 = vmax.f32 %v6865_v38, 0.0  ;;  %v5533_v0 = vmax.f32 %v6991_v42, 0.0  ;;  %v6993_v40 = vadd.f32 %v5269_v33, %v13488_v32 }
 0x48f   : > { %v6269_v8 = vadd.f32 %v6268_v27, %v6170_v59  ;;  %v6174_v24 = vmul.f32 %v5910_v39, %v5534_v26  ;;  %v6172_v29 = vmul.f32 %v5905_v35, %v5532_v23  ;;  %v5536_v11 = vmax.f32 %v6992_v7, 0.0  ;;  %v13491_v26 = vld [vmem:[#allocation186_spill] sm:$0xff] }
 0x490   : > { %v6338_v57 = vadd.f32 %v6337_v18, %v6171_v46  ;;  %v6175_v54 = vmul.f32 %v5910_v39, %v5535_v2  ;;  %v4567_v30 = vpop.f32.mrb[108].mxu0  ;;  %v6173_v41 = vmul.f32 %v5905_v35, %v5533_v0  ;;  %v5537_v37 = vmax.f32 %v6993_v40, 0.0 }
 0x491   : > { %v6270_v28 = vadd.f32 %v6269_v8, %v6174_v24  ;;  %v6866_v25 = vadd.f32 %v4567_v30, %v13489_v36  ;;  %v4569_v5 = vpop.f32.mrb[109].mxu0  ;;  %v6407_v44 = vadd.f32 %v6406_v55, %v6172_v29  ;;  %v6176_v15 = vmul.f32 %v5910_v39, %v5536_v11  ;;  %v13492_v29 = vld [vmem:[#allocation188_spill] sm:$0xff] }
 0x492   : > { %v6339_v16 = vadd.f32 %v6338_v57, %v6175_v54  ;;  %v6867_v49 = vadd.f32 %v4569_v5, %v13489_v36  ;;  %v4571_v34 = vpop.f32.mrb[110].mxu0  ;;  %v6476_v56 = vadd.f32 %v6475_v3, %v6173_v41  ;;  %v6177_v6 = vmul.f32 %v5910_v39, %v5537_v37  ;;  %v5273_v20 = vpop.f32.mrb[108].mxu1 }
 0x493   : > { %v5538_v12 = vmax.f32 %v6866_v25, 0.0  ;;  %v6868_v62 = vadd.f32 %v4571_v34, %v13490_v43  ;;  %v4573_v17 = vpop.f32.mrb[111].mxu0  ;;  %v6408_v13 = vadd.f32 %v6407_v44, %v6176_v15  ;;  %v6994_v52 = vadd.f32 %v5273_v20, %v13489_v36  ;;  %v5275_v9 = vpop.f32.mrb[109].mxu1 }
 0x494   : > { %v5539_v27 = vmax.f32 %v6867_v49, 0.0  ;;  %v6869_v22 = vadd.f32 %v4573_v17, %v13490_v43  ;;  %v6477_v45 = vadd.f32 %v6476_v56, %v6177_v6  ;;  %v6995_v58 = vadd.f32 %v5275_v9, %v13489_v36  ;;  %v5277_v18 = vpop.f32.mrb[110].mxu1  ;;  %v5925_v54 = vpop.permute.xlu0 %5924 }
 0x495   : > { %v6178_v53 = vmul.f32 %v5915_v1, %v5538_v12  ;;  %v5542_v4 = vmax.f32 %v6868_v62, 0.0  ;;  %v5540_v19 = vmax.f32 %v6994_v52, 0.0  ;;  %v6996_v50 = vadd.f32 %v5277_v18, %v13490_v43  ;;  %v5279_v10 = vpop.f32.mrb[111].mxu1  ;;  %v5930_v49 = vpop.permute.xlu1 %5929 }
 0x496   : > { %v6179_v61 = vmul.f32 %v5915_v1, %v5539_v27  ;;  %v5543_v51 = vmax.f32 %v6869_v22, 0.0  ;;  %v5541_v31 = vmax.f32 %v6995_v58, 0.0  ;;  %v6997_v35 = vadd.f32 %v5279_v10, %v13490_v43 }
 0x497   : > { %v6271_v32 = vadd.f32 %v6270_v28, %v6178_v53  ;;  %v6182_v63 = vmul.f32 %v5920_v14, %v5542_v4  ;;  %v6180_v55 = vmul.f32 %v5915_v1, %v5540_v19  ;;  %v5544_v48 = vmax.f32 %v6996_v50, 0.0  ;;  %v13493_v4 = vld [vmem:[#allocation190_spill] sm:$0xff] }
 0x498   : > { %v6340_v60 = vadd.f32 %v6339_v16, %v6179_v61  ;;  %v6183_v21 = vmul.f32 %v5920_v14, %v5543_v51  ;;  %v4577_v38 = vpop.f32.mrb[112].mxu0  ;;  %v6181_v3 = vmul.f32 %v5915_v1, %v5541_v31  ;;  %v5545_v42 = vmax.f32 %v6997_v35, 0.0 }
 0x499   : > { %v6272_v59 = vadd.f32 %v6271_v32, %v6182_v63  ;;  %v6870_v47 = vadd.f32 %v4577_v38, %v13491_v26  ;;  %v4579_v39 = vpop.f32.mrb[113].mxu0  ;;  %v6409_v23 = vadd.f32 %v6408_v13, %v6180_v55  ;;  %v6184_v46 = vmul.f32 %v5920_v14, %v5544_v48  ;;  %v13494_v55 = vld [vmem:[#allocation87_spill] sm:$0xff] }
 0x49a   : > { %v6341_v7 = vadd.f32 %v6340_v60, %v6183_v21  ;;  %v6871_v2 = vadd.f32 %v4579_v39, %v13491_v26  ;;  %v4581_v33 = vpop.f32.mrb[114].mxu0  ;;  %v6478_v8 = vadd.f32 %v6477_v45, %v6181_v3  ;;  %v6185_v0 = vmul.f32 %v5920_v14, %v5545_v42  ;;  %v5283_v40 = vpop.f32.mrb[112].mxu1 }
 0x49b   : > { %v5546_v24 = vmax.f32 %v6870_v47, 0.0  ;;  %v6872_v57 = vadd.f32 %v4581_v33, %v13492_v29  ;;  %v4583_v11 = vpop.f32.mrb[115].mxu0  ;;  %v6410_v30 = vadd.f32 %v6409_v23, %v6184_v46  ;;  %v6998_v41 = vadd.f32 %v5283_v40, %v13491_v26  ;;  %v5285_v37 = vpop.f32.mrb[113].mxu1 }
 0x49c   : > { %v5547_v28 = vmax.f32 %v6871_v2, 0.0  ;;  %v6873_v36 = vadd.f32 %v4583_v11, %v13492_v29  ;;  %v6479_v25 = vadd.f32 %v6478_v8, %v6185_v0  ;;  %v6999_v44 = vadd.f32 %v5285_v37, %v13491_v26  ;;  %v5287_v16 = vpop.f32.mrb[114].mxu1  ;;  %v5935_v21 = vpop.permute.xlu0 %5934 }
 0x49d   : > { %v6186_v5 = vmul.f32 %v5925_v54, %v5546_v24  ;;  %v5550_v15 = vmax.f32 %v6872_v57, 0.0  ;;  %v5548_v34 = vmax.f32 %v6998_v41, 0.0  ;;  %v7000_v6 = vadd.f32 %v5287_v16, %v13492_v29  ;;  %v5289_v20 = vpop.f32.mrb[115].mxu1  ;;  %v5940_v2 = vpop.permute.xlu1 %5939 }
 0x49e   : > { %v6187_v56 = vmul.f32 %v5925_v54, %v5547_v28  ;;  %v5551_v12 = vmax.f32 %v6873_v36, 0.0  ;;  %v5549_v62 = vmax.f32 %v6999_v44, 0.0  ;;  %v7001_v1 = vadd.f32 %v5289_v20, %v13492_v29 }
 0x49f   : > { %v6273_v43 = vadd.f32 %v6272_v59, %v6186_v5  ;;  %v6190_v17 = vmul.f32 %v5930_v49, %v5550_v15  ;;  %v6188_v13 = vmul.f32 %v5925_v54, %v5548_v34  ;;  %v5552_v27 = vmax.f32 %v7000_v6, 0.0  ;;  %v13495_v15 = vld [vmem:[#allocation89_spill] sm:$0xff] }
 0x4a0   : > { %v6342_v52 = vadd.f32 %v6341_v7, %v6187_v56  ;;  %v6191_v9 = vmul.f32 %v5930_v49, %v5551_v12  ;;  %v4587_v22 = vpop.f32.mrb[116].mxu0  ;;  %v6189_v45 = vmul.f32 %v5925_v54, %v5549_v62  ;;  %v5553_v58 = vmax.f32 %v7001_v1, 0.0 }
 0x4a1   : > { %v6274_v53 = vadd.f32 %v6273_v43, %v6190_v17  ;;  %v6874_v18 = vadd.f32 %v4587_v22, %v13493_v4  ;;  %v4589_v14 = vpop.f32.mrb[117].mxu0  ;;  %v6411_v19 = vadd.f32 %v6410_v30, %v6188_v13  ;;  %v6192_v61 = vmul.f32 %v5930_v49, %v5552_v27  ;;  %v13496_v13 = vld [vmem:[#allocation21_spill] sm:$0xff] }
 0x4a2   : > { %v6343_v50 = vadd.f32 %v6342_v52, %v6191_v9  ;;  %v6875_v51 = vadd.f32 %v4589_v14, %v13493_v4  ;;  %v4591_v10 = vpop.f32.mrb[118].mxu0  ;;  %v6480_v32 = vadd.f32 %v6479_v25, %v6189_v45  ;;  %v6193_v31 = vmul.f32 %v5930_v49, %v5553_v58  ;;  %v5293_v35 = vpop.f32.mrb[116].mxu1 }
 0x4a3   : > { %v5554_v63 = vmax.f32 %v6874_v18, 0.0  ;;  %v6876_v60 = vadd.f32 %v4591_v10, %v13494_v55  ;;  %v4593_v48 = vpop.f32.mrb[119].mxu0  ;;  %v6412_v38 = vadd.f32 %v6411_v19, %v6192_v61  ;;  %v7002_v3 = vadd.f32 %v5293_v35, %v13493_v4  ;;  %v5295_v42 = vpop.f32.mrb[117].mxu1 }
 0x4a4   : > { %v5555_v59 = vmax.f32 %v6875_v51, 0.0  ;;  %v6877_v26 = vadd.f32 %v4593_v48, %v13494_v55  ;;  %v6481_v47 = vadd.f32 %v6480_v32, %v6193_v31  ;;  %v7003_v23 = vadd.f32 %v5295_v42, %v13493_v4  ;;  %v5297_v7 = vpop.f32.mrb[118].mxu1  ;;  %v5945_v9 = vpop.permute.xlu0 %5944 }
 0x4a5   : > { %v6194_v39 = vmul.f32 %v5935_v21, %v5554_v63  ;;  %v5558_v46 = vmax.f32 %v6876_v60, 0.0  ;;  %v5556_v33 = vmax.f32 %v7002_v3, 0.0  ;;  %v7004_v0 = vadd.f32 %v5297_v7, %v13494_v55  ;;  %v5299_v40 = vpop.f32.mrb[119].mxu1  ;;  %v5950_v51 = vpop.permute.xlu1 %5949 }
 0x4a6   : > { %v6195_v8 = vmul.f32 %v5935_v21, %v5555_v59  ;;  %v5559_v24 = vmax.f32 %v6877_v26, 0.0  ;;  %v5557_v57 = vmax.f32 %v7003_v23, 0.0  ;;  %v7005_v54 = vadd.f32 %v5299_v40, %v13494_v55 }
 0x4a7   : > { %v6275_v29 = vadd.f32 %v6274_v53, %v6194_v39  ;;  %v6198_v11 = vmul.f32 %v5940_v2, %v5558_v46  ;;  %v6196_v30 = vmul.f32 %v5935_v21, %v5556_v33  ;;  %v5560_v28 = vmax.f32 %v7004_v0, 0.0  ;;  %v13497_v46 = vld [vmem:[#allocation91_spill] sm:$0xff] }
 0x4a8   : > { %v6344_v41 = vadd.f32 %v6343_v50, %v6195_v8  ;;  %v6199_v37 = vmul.f32 %v5940_v2, %v5559_v24  ;;  %v4597_v36 = vpop.f32.mrb[120].mxu0  ;;  %v6197_v25 = vmul.f32 %v5935_v21, %v5557_v57  ;;  %v5561_v44 = vmax.f32 %v7005_v54, 0.0 }
 0x4a9   : > { %v6276_v5 = vadd.f32 %v6275_v29, %v6198_v11  ;;  %v6878_v16 = vadd.f32 %v4597_v36, %v13495_v15  ;;  %v4599_v49 = vpop.f32.mrb[121].mxu0  ;;  %v6413_v34 = vadd.f32 %v6412_v38, %v6196_v30  ;;  %v6200_v56 = vmul.f32 %v5940_v2, %v5560_v28  ;;  %v13498_v30 = vld [vmem:[#allocation192_spill] sm:$0xff] }
 0x4aa   : > { %v6345_v6 = vadd.f32 %v6344_v41, %v6199_v37  ;;  %v6879_v12 = vadd.f32 %v4599_v49, %v13495_v15  ;;  %v4601_v20 = vpop.f32.mrb[122].mxu0  ;;  %v6482_v43 = vadd.f32 %v6481_v47, %v6197_v25  ;;  %v6201_v62 = vmul.f32 %v5940_v2, %v5561_v44  ;;  %v5303_v1 = vpop.f32.mrb[120].mxu1 }
 0x4ab   : > { %v5562_v17 = vmax.f32 %v6878_v16, 0.0  ;;  %v6880_v52 = vadd.f32 %v4601_v20, %v13496_v13  ;;  %v4603_v27 = vpop.f32.mrb[123].mxu0  ;;  %v6414_v22 = vadd.f32 %v6413_v34, %v6200_v56  ;;  %v7006_v45 = vadd.f32 %v5303_v1, %v13495_v15  ;;  %v5305_v58 = vpop.f32.mrb[121].mxu1 }
 0x4ac   : > { %v5563_v53 = vmax.f32 %v6879_v12, 0.0  ;;  %v6881_v4 = vadd.f32 %v4603_v27, %v13496_v13  ;;  %v6483_v18 = vadd.f32 %v6482_v43, %v6201_v62  ;;  %v7007_v19 = vadd.f32 %v5305_v58, %v13495_v15  ;;  %v5307_v50 = vpop.f32.mrb[122].mxu1  ;;  %v5955_v37 = vpop.permute.xlu0 %5954 }
 0x4ad   : > { %v6202_v14 = vmul.f32 %v5945_v9, %v5562_v17  ;;  %v5566_v61 = vmax.f32 %v6880_v52, 0.0  ;;  %v5564_v10 = vmax.f32 %v7006_v45, 0.0  ;;  %v7008_v31 = vadd.f32 %v5307_v50, %v13496_v13  ;;  %v5309_v35 = vpop.f32.mrb[123].mxu1  ;;  %v5960_v12 = vpop.permute.xlu1 %5959 }
 0x4ae   : > { %v6203_v32 = vmul.f32 %v5945_v9, %v5563_v53  ;;  %v5567_v63 = vmax.f32 %v6881_v4, 0.0  ;;  %v5565_v60 = vmax.f32 %v7007_v19, 0.0  ;;  %v7009_v21 = vadd.f32 %v5309_v35, %v13496_v13 }
 0x4af   : > { %v6277_v55 = vadd.f32 %v6276_v5, %v6202_v14  ;;  %v6206_v48 = vmul.f32 %v5950_v51, %v5566_v61  ;;  %v6204_v38 = vmul.f32 %v5945_v9, %v5564_v10  ;;  %v5568_v59 = vmax.f32 %v7008_v31, 0.0 }
 0x4b0   : > { %v6346_v3 = vadd.f32 %v6345_v6, %v6203_v32  ;;  %v6207_v42 = vmul.f32 %v5950_v51, %v5567_v63  ;;  %v4607_v26 = vpop.f32.mrb[124].mxu0  ;;  %v6205_v47 = vmul.f32 %v5945_v9, %v5565_v60  ;;  %v5569_v23 = vmax.f32 %v7009_v21, 0.0 }
 0x4b1   : > { %v6278_v39 = vadd.f32 %v6277_v55, %v6206_v48  ;;  %v6882_v7 = vadd.f32 %v4607_v26, %v13497_v46  ;;  %v4609_v2 = vpop.f32.mrb[125].mxu0  ;;  %v6415_v33 = vadd.f32 %v6414_v22, %v6204_v38  ;;  %v6208_v8 = vmul.f32 %v5950_v51, %v5568_v59 }
 0x4b2   : > { %v6347_v0 = vadd.f32 %v6346_v3, %v6207_v42  ;;  %v6883_v24 = vadd.f32 %v4609_v2, %v13497_v46  ;;  %v4611_v40 = vpop.f32.mrb[126].mxu0  ;;  %v6484_v29 = vadd.f32 %v6483_v18, %v6205_v47  ;;  %v6209_v57 = vmul.f32 %v5950_v51, %v5569_v23  ;;  %v5313_v54 = vpop.f32.mrb[124].mxu1 }
 0x4b3   : > { %v5570_v11 = vmax.f32 %v6882_v7, 0.0  ;;  %v6884_v41 = vadd.f32 %v4611_v40, %v13498_v30  ;;  %v4613_v28 = vpop.f32.mrb[127].mxu0  ;;  %v6416_v36 = vadd.f32 %v6415_v33, %v6208_v8  ;;  %v7010_v25 = vadd.f32 %v5313_v54, %v13497_v46  ;;  %v5315_v44 = vpop.f32.mrb[125].mxu1 }
 0x4b4   : > { %v5571_v5 = vmax.f32 %v6883_v24, 0.0  ;;  %v6885_v15 = vadd.f32 %v4613_v28, %v13498_v30  ;;  %v6485_v16 = vadd.f32 %v6484_v29, %v6209_v57  ;;  %v7011_v34 = vadd.f32 %v5315_v44, %v13497_v46  ;;  %v5317_v6 = vpop.f32.mrb[126].mxu1  ;;  %v6498_v23 = vpop.permute.xlu0 %6497  ;;  %v13499_v24 = vld [vmem:[#allocation9_spill] sm:$0xff] }
 0x4b5   : > { %v6210_v49 = vmul.f32 %v5955_v37, %v5570_v11  ;;  %v5574_v56 = vmax.f32 %v6884_v41, 0.0  ;;  %v5572_v20 = vmax.f32 %v7010_v25, 0.0  ;;  %v7012_v62 = vadd.f32 %v5317_v6, %v13498_v30  ;;  %v5319_v1 = vpop.f32.mrb[127].mxu1 }
 0x4b6   : > { %v6211_v43 = vmul.f32 %v5955_v37, %v5571_v5  ;;  %v5575_v17 = vmax.f32 %v6885_v15, 0.0  ;;  %v5573_v52 = vmax.f32 %v7011_v34, 0.0  ;;  %v7013_v9 = vadd.f32 %v5319_v1, %v13498_v30  ;;  %v13500_v5 = vld [vmem:[#allocation8_spill] sm:$0xff] }
 0x4b7   : > { %v6279_v13 = vadd.f32 %v6278_v39, %v6210_v49  ;;  %v6214_v27 = vmul.f32 %v5960_v12, %v5574_v56  ;;  %v6212_v22 = vmul.f32 %v5955_v37, %v5572_v20  ;;  %v5576_v53 = vmax.f32 %v7012_v62, 0.0 }
 0x4b8   : > { %v6348_v45 = vadd.f32 %v6347_v0, %v6211_v43  ;;  %v6215_v58 = vmul.f32 %v5960_v12, %v5575_v17  ;;  %v6213_v4 = vmul.f32 %v5955_v37, %v5573_v52  ;;  %v5577_v14 = vmax.f32 %v7013_v9, 0.0 }
 0x4b9   : > { %v6280_v18 = vadd.f32 %v6279_v13, %v6214_v27  ;;  %v6417_v19 = vadd.f32 %v6416_v36, %v6212_v22  ;;  %v6216_v61 = vmul.f32 %v5960_v12, %v5576_v53  ;;  %v7607_v47 = vmov 1966171168  }
 0x4ba   : > { %v6349_v50 = vadd.f32 %v6348_v45, %v6215_v58  ;;  %v6486_v51 = vadd.f32 %v6485_v16, %v6213_v4  ;;  %v6217_v32 = vmul.f32 %v5960_v12, %v5577_v14  ;;  %v6515_v39 = vunpack.c.l.s4 %v7607_v47 }
 0x4bb   : > { %v6281_v10 = vrot.slane %v6280_v18, 4  ;;  %v6418_v31 = vadd.f32 %v6417_v19, %v6216_v61  ;;  %v6503_v40 = vrot.slane %v6498_v23, %v13499_v24  ;;  %v13501_v20 = vlaneseq }
 0x4bc   : > { %v6350_v63 = vrot.slane %v6349_v50, 4  ;;  %v6487_v55 = vadd.f32 %v6486_v51, %v6217_v32  ;;  %v6516_v11 = vunpack.c.0.s8 %v6515_v39 }
 0x4bd   : > { %v6282_v35 = vadd.f32 %v6281_v10, %v6280_v18  ;;  %v6419_v60 = vrot.slane %v6418_v31, 4  ;;  %vm6539_vm0 = vcmp.lt.s32.totalorder %v13501_v20, 512 }
 0x4be   : > { %v6351_v48 = vadd.f32 %v6350_v63, %v6349_v50  ;;  %v6488_v38 = vrot.slane %v6487_v55, 4  ;;  %v6519_v44 = vsub.s32 %v6516_v11, %v13500_v5 }
 0x4bf   : > { %v6283_v21 = vrot.slane %v6282_v35, 2  ;;  %v6420_v3 = vadd.f32 %v6419_v60, %v6418_v31 }
 0x4c0   : > { %v6352_v59 = vrot.slane %v6351_v48, 2  ;;  %v6489_v26 = vadd.f32 %v6488_v38, %v6487_v55 }
 0x4c1   : > { %v6284_v42 = vadd.f32 %v6283_v21, %v6282_v35  ;;  %v6421_v46 = vrot.slane %v6420_v3, 2 }
 0x4c2   : > { %v6353_v7 = vadd.f32 %v6352_v59, %v6351_v48  ;;  %v6490_v33 = vrot.slane %v6489_v26, 2 }
 0x4c3   : > { %v6285_v2 = vrot.slane %v6284_v42, 1  ;;  %v6422_v8 = vadd.f32 %v6421_v46, %v6420_v3 }
 0x4c4   : > { %v6354_v0 = vrot.slane %v6353_v7, 1  ;;  %v6491_v57 = vadd.f32 %v6490_v33, %v6489_v26 }
 0x4c5   : > { %v6286_v29 = vadd.f32 %v6285_v2, %v6284_v42  ;;  %v6423_v54 = vrot.slane %v6422_v8, 1 }
 0x4c6   : > { %v6355_v30 = vadd.f32 %v6354_v0, %v6353_v7  ;;  %v6492_v28 = vrot.slane %v6491_v57, 1 }
 0x4c7   : > { %v6504_v41 = vadd.f32 %v6503_v40, %v6286_v29  ;;  %v6424_v37 = vadd.f32 %v6423_v54, %v6422_v8 }
 0x4c8   : > { %v6505_v36 = vadd.f32 %v6503_v40, %v6355_v30  ;;  %v6493_v25 = vadd.f32 %v6492_v28, %v6491_v57 }
 0x4c9   : > { %v6506_v15 = vadd.f32 %v6503_v40, %v6424_v37 }
 0x4ca   : > { %v6512_v16 = vcombine.low %v6504_v41, %v6505_v36  ;;  %v6507_v49 = vadd.f32 %v6503_v40, %v6493_v25 }
 0x4cc   : > { %v6513_v34 = vcombine.low %v6506_v15, %v6507_v49  ;;  %v6520_v56 = vrot.slane %v6512_v16, %v6519_v44 }
 0x4ce   : > { %v6527_v6 = vrot.slane %v6513_v34, %v6519_v44 }
 0x4d0   : > { %v6528_v12 = vcombine.low %v6520_v56, %v6527_v6 }
 0x4d2   : > { %v6535_v43 = vrot.slane %v6528_v12, %v6519_v44 }
 0x4d4   : > { %6541 = vst.msk [vmem:[%s274_s21] sm:$0xf] %vm6539_vm0, %v6535_v43 }
 0x4d5   : > { %7554 = shalt.err (!%p7551_p3)
}
 0x4d6   : > { %s7555_s15 = scalar_lea.hbm %s12605_s25, 64  ;;  %s7559_s18 = scalar_lea.hbm %s12654_s7, 256 }
 0x4d7   : > { %p7556_p4 = scmp.ne.s32.totalorder %s12605_s25, %s7555_s15  ;;  %p7560_p9 = scmp.lt.u32.totalorder %s12605_s25, %s12654_s7 }
 0x4d8   : > { %p7561_p10 = scmp.lt.u32.totalorder %s7559_s18, %s7555_s15  ;;  %p7563_p12 = scmp.lt.u32.totalorder %s7555_s15, %s12605_s25 }
 0x4d9   : > { %p7557_p7 = pnand %p7556_p4, %p7690_p5 }
 0x4da   : > { %p7562_p11 = por %p7561_p10, %p7560_p9 }
 0x4db   : > { %p7558_p8 = pneg %p7557_p7 }
 0x4dc   : > { %p7564_p13 = por %p7563_p12, %p7562_p11 }
 0x4de   : > { %p7565_p0 = pnand %p7564_p13, %p7558_p8 }
 0x4e0   : > { %7568 = shalt.err (!%p7565_p0)
}
 0x4e1   : > { %7270 = dma.vmem_to_hbm [thread:$0]  (%p7690_p5), %s12607_s22, 64, %s12605_s25, %s6543_s30  }
 0x4e2 PF: > { %p7276_p1 = scmp.ge.s32.totalorder %s7603_s29, 2  ;;  %s6569_s21 = sand.u32 1, %s7591_s26  }
 0x4e3   : > { %s6570_s23 = scalar_lea.sflag [#allocation4], %s6569_s21 }
 0x4e4   : > { %p7273_p2 = pnand %p7276_p1, %p7694_p6 }
 0x4e6   : > { %7586 = dma.done.wait (!%p7273_p2), %s6570_s23, 64  }
 0x4e7   : > { %7588 = vsyncadd (!%p7273_p2), %s6570_s23, 4294967232  ;;  %p19_p3 = scmp.ge.s32.totalorder %s7677_s8, 6   ;;  %s13502_s26 = smov %s7595_s27 }
 0x4e8   : > { %s13503_s27 = smov %s7599_s28  ;;  %s13504_s28 = smov %s7688_s11 }
 0x4e9   : > { %s13505_s29 = smov %s7677_s8  ;;  %21 = sbr.rel (!%p19_p3) target bundleno = 6 (0x6), region = 84 }
 0x4f0   :  { %6575 = vsyncpa [#allocation4], 1 }
 0x4f1   :  { %6577 = vsyncpa [#allocation4 + $0x1], 1 }

</bundles_post_ra>
